<compile_context>
chip_gen: v5e
topology: v5e:2x2
jax: 0.10.0
libtpu: 0.0.40
codegen_flags: <defaults>
</compile_context>

<pallas_src>
import jax
import jax.numpy as jnp
from jax.experimental import pallas as pl
from jax.experimental.pallas import tpu as pltpu


# ----------------------------------------------------------------------------
# Linear: y = x @ W + b, single MXU dot per output tile (no K pipeline).
# ----------------------------------------------------------------------------
def _linear_kernel(x_ref, w_ref, b_ref, o_ref):
    # x_ref: (tm, K), w_ref: (K, N), b_ref: (1, N), o_ref: (tm, N)
    acc = jnp.dot(
        x_ref[...],
        w_ref[...],
        preferred_element_type=jnp.float32,
        precision=jax.lax.Precision.HIGHEST,
    )
    o_ref[...] = (acc + b_ref[...]).astype(o_ref.dtype)


def svm_forward(x, w, b, *, tm=256):
    """nn.Linear forward: x: (M, K), w: (K, N), b: (1, N) -> (M, N).

    For small M (the common R-CNN SVM scoring case here, M=2) the whole
    problem is one grid step with everything resident in VMEM.  For large M
    (e.g. ~2k region proposals) the batch axis is tiled with `tm` rows per
    step and marked "parallel" so the weight DMA is amortized and both
    TensorCores are used on v7x.
    """
    M, K = x.shape
    Kw, N = w.shape
    assert K == Kw, (K, Kw)

    if M <= tm:
        tm_eff = M          # single full-extent block (no (8,128) constraint)
        grid = (1,)
    else:
        assert tm % 8 == 0, tm
        tm_eff = tm
        grid = (pl.cdiv(M, tm_eff),)

    cost = pl.CostEstimate(
        flops=2 * M * K * N,
        transcendentals=0,
        bytes_accessed=4 * (M * K + K * N + N + M * N),
    )

    return pl.pallas_call(
        _linear_kernel,
        out_shape=jax.ShapeDtypeStruct((M, N), x.dtype),
        grid_spec=pl.GridSpec(
            grid=grid,
            in_specs=[
                pl.BlockSpec((tm_eff, K), lambda i: (i, 0)),  # x tile
                pl.BlockSpec((K, N), lambda i: (0, 0)),       # W resident
                pl.BlockSpec((1, N), lambda i: (0, 0)),       # bias resident
            ],
            out_specs=pl.BlockSpec((tm_eff, N), lambda i: (i, 0)),
        ),
        compiler_params=pltpu.CompilerParams(
            dimension_semantics=("parallel",),  # M axis (size 1 when M small)
            vmem_limit_bytes=32 * 1024 * 1024,
        ),
        cost_estimate=cost,
    )(x, w, b)


# ----------------------------------------------------------------------------
# Parameters (deterministic synthetic init matching nn.Linear fan-in scaling).
# Weight is stored pre-transposed as (in_features, classes).
# ----------------------------------------------------------------------------
def init_params(key, classes, in_features=4096):
    kw, kb = jax.random.split(key)
    bound = 1.0 / (in_features ** 0.5)
    w = jax.random.uniform(kw, (in_features, classes), jnp.float32, -bound, bound)
    b = jax.random.uniform(kb, (1, classes), jnp.float32, -bound, bound)
    return {"w": w, "b": b}


if __name__ == "__main__":
    key = jax.random.PRNGKey(0)
    kp, kx = jax.random.split(key)

    classes = 21  # e.g. 20 object classes + background, as in R-CNN
    params = init_params(kp, classes)
    x = jax.random.normal(kx, (2, 4096), jnp.float32)  # batch=2, features=4096

    fwd = jax.jit(svm_forward)
    out = fwd(x, params["w"], params["b"])
    out = jax.block_until_ready(out)

    assert out.shape == (2, classes), out.shape
    assert out.dtype == jnp.float32, out.dtype

    # Reference with matching (HIGHEST) matmul precision -> tight tolerance.
    ref = (
        jnp.dot(x, params["w"], precision=jax.lax.Precision.HIGHEST)
        + params["b"]
    )
    max_err = float(jnp.max(jnp.abs(out - ref)))
    assert jnp.allclose(out, ref, atol=1e-3, rtol=1e-3), max_err

    print("KERNEL_OK")
</pallas_src>

<mosaic_0001>
module attributes {stable_mosaic.version = 11 : i64} {
  func.func @_linear_kernel(%arg0: i32, %arg1: memref<2x4096xf32, #tpu.memory_space<vmem>>, %arg2: memref<4096x21xf32, #tpu.memory_space<vmem>>, %arg3: memref<1x21xf32, #tpu.memory_space<vmem>>, %arg4: memref<2x21xf32, #tpu.memory_space<vmem>>) attributes {dimension_semantics = [#tpu.dimension_semantics<parallel>], iteration_bounds = array<i64: 1>, scalar_prefetch = 0 : i64, scratch_operands = 0 : i64, tpu.core_type = #tpu.core_type<tc>, window_params = [{transform_indices = @transform_0, window_bounds = array<i64: 2, 4096>}, {pipeline_mode = #tpu.pipeline_mode<synchronous>, transform_indices = @transform_1, window_bounds = array<i64: 4096, 21>}, {pipeline_mode = #tpu.pipeline_mode<synchronous>, transform_indices = @transform_2, window_bounds = array<i64: 1, 21>}, {transform_indices = @transform_3, window_bounds = array<i64: 2, 21>}]} {
    %c0 = arith.constant 0 : index
    %c0_0 = arith.constant 0 : index
    %0 = vector.load %arg1[%c0, %c0_0] : memref<2x4096xf32, #tpu.memory_space<vmem>>, vector<2x4096xf32>
    %c0_1 = arith.constant 0 : index
    %c0_2 = arith.constant 0 : index
    %1 = vector.load %arg2[%c0_1, %c0_2] : memref<4096x21xf32, #tpu.memory_space<vmem>>, vector<4096x21xf32>
    %cst = arith.constant dense<0.000000e+00> : vector<2x21xf32>
    %2 = tpu.matmul %0, %1, %cst {dimension_numbers = #tpu.dot_dimension_numbers<[1], [0], [0], [1], [0, 0, 1, 1], [], []>, precision = #tpu.contract_precision<fp32>} : vector<2x4096xf32>, vector<4096x21xf32>, vector<2x21xf32> -> vector<2x21xf32>
    %c0_3 = arith.constant 0 : index
    %c0_4 = arith.constant 0 : index
    %3 = vector.load %arg3[%c0_3, %c0_4] : memref<1x21xf32, #tpu.memory_space<vmem>>, vector<1x21xf32>
    %4 = vector.broadcast %3 : vector<1x21xf32> to vector<2x21xf32>
    %5 = arith.addf %2, %4 : vector<2x21xf32>
    %c0_5 = arith.constant 0 : index
    %c0_6 = arith.constant 0 : index
    %6 = vector.load %arg4[%c0_5, %c0_6] : memref<2x21xf32, #tpu.memory_space<vmem>>, vector<2x21xf32>
    tpu.vector_store %arg4[%c0_5, %c0_6], %5 {strides = array<i32>} : memref<2x21xf32, #tpu.memory_space<vmem>>, vector<2x21xf32>,
    return
  }
  func.func @transform_0(%arg0: i32) -> (i32, i32) {
    %c0_i32 = arith.constant 0 : i32
    %c0_i32_0 = arith.constant 0 : i32
    return %arg0, %c0_i32 : i32, i32
  }
  func.func @transform_1(%arg0: i32) -> (i32, i32) {
    %c0_i32 = arith.constant 0 : i32
    %c0_i32_0 = arith.constant 0 : i32
    %c0_i32_1 = arith.constant 0 : i32
    return %c0_i32, %c0_i32_0 : i32, i32
  }
  func.func @transform_2(%arg0: i32) -> (i32, i32) {
    %c0_i32 = arith.constant 0 : i32
    %c0_i32_0 = arith.constant 0 : i32
    %c0_i32_1 = arith.constant 0 : i32
    return %c0_i32, %c0_i32_0 : i32, i32
  }
  func.func @transform_3(%arg0: i32) -> (i32, i32) {
    %c0_i32 = arith.constant 0 : i32
    %c0_i32_0 = arith.constant 0 : i32
    return %arg0, %c0_i32 : i32, i32
  }
}

</mosaic_0001>

<bundles_post_ra>
// kernel: svm_forward.1
= control target key start
LH: loop header
LB: loop body
LE: loop exit
PB: predicated region body
PF: predicated region fallthrough
CT: control target
= control target key end

     0   :  { %s21526_s0 = inlined_call_operand.vmem [shape: f32[2,4096], index: 0, kind: input, shape index: {}]   ;;  %s21527_s1 = inlined_call_operand.vmem [shape: f32[4096,21], index: 1, kind: input, shape index: {}]   ;;  %s21528_s2 = inlined_call_operand.vmem [shape: f32[1,21], index: 2, kind: input, shape index: {}]   ;;  %s21529_s3 = inlined_call_operand.hbm [shape: f32[2,21], index: 3, kind: output, shape index: {}]  }
   0x1   :  { %v38_v0 = vld [vmem:[%s21527_s1 + $0x78] sm:$0xff]  ;;  %v37_v1 = vld [vmem:[%s21527_s1 + $0x70] sm:$0xff]  ;;  %v36_v2 = vld [vmem:[%s21527_s1 + $0x68] sm:$0xff] }
   0x2   :  { %v11608_v3 = vand.u32 4294901760, %v38_v0  ;;  %v11610_v4 = vand.u32 4294901760, %v37_v1  ;;  %v11612_v5 = vand.u32 4294901760, %v36_v2  ;;  %v35_v6 = vld [vmem:[%s21527_s1 + $0x60] sm:$0xff]  ;;  %v34_v7 = vld [vmem:[%s21527_s1 + $0x58] sm:$0xff]  ;;  %v33_v8 = vld [vmem:[%s21527_s1 + $0x50] sm:$0xff] }
   0x3   :  { %v11623_v9 = vand.u32 4294901760, %v35_v6  ;;  %v11625_v10 = vand.u32 4294901760, %v34_v7  ;;  %v11627_v11 = vand.u32 4294901760, %v33_v8  ;;  %v32_v12 = vld [vmem:[%s21527_s1 + $0x48] sm:$0xff]  ;;  %v31_v13 = vld [vmem:[%s21527_s1 + $0x40] sm:$0xff]  ;;  %v30_v21 = vld [vmem:[%s21527_s1 + $0x38] sm:$0xff] }
   0x4   :  { %621 = vmatpush.msra.mxu0 %v11608_v3  ;;  %v11637_v14 = vsub.f32 %v38_v0, %v11608_v3  ;;  %v11640_v15 = vsub.f32 %v37_v1, %v11610_v4  ;;  %817 = vmatpush.msra.mxu3 %v11608_v3  ;;  %v11644_v16 = vsub.f32 %v36_v2, %v11612_v5  ;;  %v11646_v17 = vand.u32 4294901760, %v32_v12  ;;  %v29_v26 = vld [vmem:[%s21527_s1 + $0x30] sm:$0xff]  ;;  %v28_v36 = vld [vmem:[%s21527_s1 + $0x28] sm:$0xff] }
   0x5   :  { %v11649_v18 = vsub.f32 %v35_v6, %v11623_v9  ;;  %v11652_v19 = vsub.f32 %v34_v7, %v11625_v10  ;;  %v11655_v20 = vsub.f32 %v33_v8, %v11627_v11  ;;  %v11665_v25 = vand.u32 4294901760, %v31_v13 }
   0x6   :  { %623 = vmatpush.msra.mxu0 %v11610_v4  ;;  %764 = vmatpush.msra.mxu2 %v11637_v14  ;;  %v663_v22 = vand.u32 4294901760, %v11637_v14  ;;  %v21545_v23 = vand.u32 4294901760, %v11640_v15  ;;  %v21543_v24 = vand.u32 4294901760, %v11644_v16  ;;  %v11674_v29 = vsub.f32 %v32_v12, %v11646_v17 }
   0x7   :  { %819 = vmatpush.msra.mxu3 %v11610_v4  ;;  %v21542_v27 = vand.u32 4294901760, %v11649_v18  ;;  %v21539_v28 = vand.u32 4294901760, %v11652_v19  ;;  %v11687_v33 = vand.u32 4294901760, %v30_v21  ;;  %v11690_v34 = vand.u32 4294901760, %v29_v26 }
   0x8   :  { %625 = vmatpush.msra.mxu0 %v11612_v5  ;;  %767 = vmatpush.msra.mxu2 %v11640_v15  ;;  %v664_v30 = vsub.f32 %v11637_v14, %v663_v22  ;;  %v670_v31 = vsub.f32 %v11640_v15, %v21545_v23  ;;  %v676_v32 = vsub.f32 %v11644_v16, %v21543_v24  ;;  %v21537_v35 = vand.u32 4294901760, %v11655_v20 }
   0x9   :  { %821 = vmatpush.msra.mxu3 %v11612_v5 }
   0xa   :  { %8 = vsyncpa [#allocation3], 0  ;;  %627 = vmatpush.msra.mxu0 %v11623_v9  ;;  %v665_v37 = vand.u32 4294901760, %v664_v30  ;;  %770 = vmatpush.msra.mxu2 %v11644_v16  ;;  %v671_v38 = vand.u32 4294901760, %v670_v31  ;;  %v682_v39 = vsub.f32 %v11649_v18, %v21542_v27  ;;  %v11702_v40 = vsub.f32 %v31_v13, %v11665_v25  ;;  %v27_v42 = vld [vmem:[%s21527_s1 + $0x20] sm:$0xff]  ;;  %v26_v47 = vld [vmem:[%s21527_s1 + $0x18] sm:$0xff] }
   0xb   :  { %823 = vmatpush.msra.mxu3 %v11623_v9  ;;  %v688_v41 = vsub.f32 %v11652_v19, %v21539_v28  ;;  %v677_v43 = vand.u32 4294901760, %v676_v32  ;;  %v11712_v44 = vand.u32 4294901760, %v28_v36  ;;  %v21536_v45 = vand.u32 4294901760, %v11674_v29  ;;  %v25_v54 = vld [vmem:[%s21527_s1 + $0x10] sm:$0xff]  ;;  %v15_v55 = vld [vmem:[%s21526_s0] sm:$0xff]  ;;  %v54_v60 = vld [vmem:[%s21527_s1 + $0xf8] sm:$0xff] }
   0xc   :  { %629 = vmatpush.msra.mxu0 %v11625_v10  ;;  %666 = vmatpush.msra.mxu1 %v665_v37  ;;  %v11716_v46 = vsub.f32 %v30_v21, %v11687_v33  ;;  %v694_v48 = vsub.f32 %v11655_v20, %v21537_v35  ;;  %v683_v49 = vand.u32 4294901760, %v682_v39  ;;  %v11727_v50 = vand.u32 4294901760, %v27_v42  ;;  %547 = vst [vmem:[#allocation1] ss:$4 sm:$0xff] %v15_v55  ;;  %v24_v62 = vld [vmem:[%s21527_s1 + $0x8] sm:$0xff]  ;;  %v23_v6 = vld [vmem:[%s21527_s1] sm:$0xff] }
   0xd   :  { %773 = vmatpush.msra.mxu2 %v11649_v18  ;;  %825 = vmatpush.msra.mxu3 %v11625_v10  ;;  %v21535_v51 = vand.u32 4294901760, %v11702_v40  ;;  %v11731_v52 = vsub.f32 %v29_v26, %v11690_v34  ;;  %v11735_v53 = vand.u32 4294901760, %v26_v47  ;;  %v689_v56 = vand.u32 4294901760, %v688_v41  ;;  %v53_v7 = vld [vmem:[%s21527_s1 + $0xf0] sm:$0xff]  ;;  %s11541_s16 = sshll.u32 %s21529_s3, 4  ;;  %s11542_s16 = int_to_ptr.hbm [resolvable:$true] %s11541_s16 }
   0xe   :  { %631 = vmatpush.msra.mxu0 %v11627_v11  ;;  %672 = vmatpush.msra.mxu1 %v671_v38  ;;  %v700_v57 = vsub.f32 %v11674_v29, %v21536_v45  ;;  %v21534_v58 = vand.u32 4294901760, %v11716_v46  ;;  %v11749_v59 = vsub.f32 %v28_v36, %v11712_v44  ;;  %v695_v61 = vand.u32 4294901760, %v694_v48  ;;  %v52_v36 = vld [vmem:[%s21527_s1 + $0xe8] sm:$0xff]  ;;  %v47_v45 = vld [vmem:[%s21527_s1 + $0xc0] sm:$0xff] }
   0xf   :  { %776 = vmatpush.msra.mxu2 %v11652_v19  ;;  %827 = vmatpush.msra.mxu3 %v11627_v11  ;;  %v706_v63 = vsub.f32 %v11702_v40, %v21535_v51  ;;  %v11763_v0 = vand.u32 4294901760, %v25_v54  ;;  %v21533_v1 = vand.u32 4294901760, %v11731_v52  ;;  %v11767_v2 = vsub.f32 %v27_v42, %v11727_v50 }
  0x10   :  { %633 = vmatpush.msra.mxu0 %v11646_v17  ;;  %678 = vmatpush.msra.mxu1 %v677_v43  ;;  %v11778_v8 = vsub.f32 %v26_v47, %v11735_v53  ;;  %v11780_v12 = vand.u32 4294901760, %v54_v60  ;;  %v701_v13 = vand.u32 4294901760, %v700_v57  ;;  %v712_v21 = vsub.f32 %v11716_v46, %v21534_v58  ;;  %v51_v47 = vld [vmem:[%s21527_s1 + $0xe0] sm:$0xff] }
  0x11   :  { %779 = vmatpush.msra.mxu2 %v11655_v20  ;;  %829 = vmatpush.msra.mxu3 %v11646_v17  ;;  %v11786_v26 = vand.u32 4294901760, %v24_v62  ;;  %v21531_v30 = vand.u32 4294901760, %v11749_v59  ;;  %v11791_v31 = vand.u32 4294901760, %v23_v6  ;;  %v11793_v32 = vand.u32 4294901760, %v53_v7 }
  0x12   :  { %635 = vmatpush.msra.mxu0 %v11665_v25  ;;  %684 = vmatpush.msra.mxu1 %v683_v49  ;;  %v707_v37 = vand.u32 4294901760, %v706_v63  ;;  %v718_v38 = vsub.f32 %v11731_v52, %v21533_v1  ;;  %v21530_v39 = vand.u32 4294901760, %v11767_v2  ;;  %v11804_v41 = vsub.f32 %v25_v54, %v11763_v0 }
  0x13   :  { %782 = vmatpush.msra.mxu2 %v11674_v29  ;;  %831 = vmatpush.msra.mxu3 %v11665_v25  ;;  %v21532_v42 = vand.u32 4294901760, %v11778_v8  ;;  %v11810_v43 = vsub.f32 %v54_v60, %v11780_v12  ;;  %v713_v48 = vand.u32 4294901760, %v712_v21  ;;  %v724_v49 = vsub.f32 %v11749_v59, %v21531_v30  ;;  %v50_v60 = vld [vmem:[%s21527_s1 + $0xd8] sm:$0xff]  ;;  %v49_v21 = vld [vmem:[%s21527_s1 + $0xd0] sm:$0xff] }
  0x14   :  { %637 = vmatpush.msra.mxu0 %v11687_v33  ;;  %690 = vmatpush.msra.mxu1 %v689_v56  ;;  %v11820_v54 = vsub.f32 %v24_v62, %v11786_v26  ;;  %v11822_v55 = vand.u32 4294901760, %v52_v36  ;;  %v11827_v56 = vsub.f32 %v23_v6, %v11791_v31  ;;  %v11830_v57 = vsub.f32 %v53_v7, %v11793_v32 }
  0x15   :  { %785 = vmatpush.msra.mxu2 %v11702_v40  ;;  %833 = vmatpush.msra.mxu3 %v11687_v33  ;;  %v730_v62 = vsub.f32 %v11767_v2, %v21530_v39  ;;  %v21538_v63 = vand.u32 4294901760, %v11804_v41  ;;  %v736_v6 = vsub.f32 %v11778_v8, %v21532_v42  ;;  %v21540_v7 = vand.u32 4294901760, %v11810_v43 }
  0x16   :  { %639 = vmatpush.msra.mxu0 %v11690_v34  ;;  %696 = vmatpush.msra.mxu1 %v695_v61  ;;  %21886 = vst [vmem:[#allocation5_spill] sm:$0xff] %v11822_v55  ;;  %v719_v61 = vand.u32 4294901760, %v718_v38  ;;  %v21541_v38 = vand.u32 4294901760, %v11820_v54  ;;  %v11854_v39 = vsub.f32 %v52_v36, %v11822_v55  ;;  %v11856_v30 = vand.u32 4294901760, %v50_v60 }
  0x17   :  { %788 = vmatpush.msra.mxu2 %v11716_v46  ;;  %835 = vmatpush.msra.mxu3 %v11690_v34  ;;  %v21546_v42 = vand.u32 4294901760, %v11827_v56  ;;  %v21544_v1 = vand.u32 4294901760, %v11830_v57  ;;  %v742_v36 = vsub.f32 %v11804_v41, %v21538_v63  ;;  %v11872_v51 = vand.u32 4294901760, %v49_v21 }
  0x18   :  { %641 = vmatpush.msra.mxu0 %v11712_v44  ;;  %702 = vmatpush.msra.mxu1 %v701_v13  ;;  %v11840_v13 = vand.u32 4294901760, %v51_v47  ;;  %v737_v35 = vand.u32 4294901760, %v736_v6  ;;  %v11888_v63 = vsub.f32 %v50_v60, %v11856_v30  ;;  %v46_v6 = vld [vmem:[%s21527_s1 + $0xb8] sm:$0xff]  ;;  %vm11532_vm0 = vcmask 164864  }
  0x19   :  { %791 = vmatpush.msra.mxu2 %v11731_v52  ;;  %837 = vmatpush.msra.mxu3 %v11712_v44  ;;  %v743_v60 = vand.u32 4294901760, %v742_v36  ;;  %v11908_v24 = vsub.f32 %v49_v21, %v11872_v51  ;;  %v11913_v23 = vand.u32 4294901760, %v46_v6 }
  0x1a   :  { %643 = vmatpush.msra.mxu0 %v11727_v50  ;;  %708 = vmatpush.msra.mxu1 %v707_v37  ;;  %v725_v37 = vand.u32 4294901760, %v724_v49  ;;  %v731_v49 = vand.u32 4294901760, %v730_v62  ;;  %v11870_v58 = vsub.f32 %v51_v47, %v11840_v13  ;;  %v748_v47 = vsub.f32 %v11820_v54, %v21541_v38 }
  0x1b   :  { %794 = vmatpush.msra.mxu2 %v11749_v59  ;;  %839 = vmatpush.msra.mxu3 %v11727_v50  ;;  %v21547_v62 = vand.u32 4294901760, %v11854_v39  ;;  %v754_v38 = vsub.f32 %v11827_v56, %v21546_v42  ;;  %v21549_v14 = vand.u32 4294901760, %v11888_v63 }
  0x1c   :  { %645 = vmatpush.msra.mxu0 %v11735_v53  ;;  %714 = vmatpush.msra.mxu1 %v713_v48  ;;  %v48_v48 = vld [vmem:[%s21527_s1 + $0xc8] sm:$0xff]  ;;  %v21548_v27 = vand.u32 4294901760, %v11870_v58  ;;  %v749_v36 = vand.u32 4294901760, %v748_v47 }
  0x1d   :  { %797 = vmatpush.msra.mxu2 %v11767_v2  ;;  %841 = vmatpush.msra.mxu3 %v11735_v53  ;;  %v11890_v28 = vand.u32 4294901760, %v48_v48  ;;  %v1017_v21 = vsub.f32 %v11854_v39, %v21547_v62  ;;  %v44_v47 = vld [vmem:[%s21527_s1 + $0xa8] sm:$0xff]  ;;  %v755_v62 = vand.u32 4294901760, %v754_v38 }
  0x1e   :  { %647 = vmatpush.msra.mxu0 %v11763_v0  ;;  %720 = vmatpush.msra.mxu1 %v719_v61  ;;  %v1005_v61 = vsub.f32 %v11810_v43, %v21540_v7  ;;  %v11900_v7 = vand.u32 4294901760, %v47_v45 }
  0x1f   :  { %800 = vmatpush.msra.mxu2 %v11778_v8  ;;  %843 = vmatpush.msra.mxu3 %v11763_v0  ;;  %v1018_v38 = vand.u32 4294901760, %v1017_v21 }
  0x20   :  { %649 = vmatpush.msra.mxu0 %v11786_v26  ;;  %726 = vmatpush.msra.mxu1 %v725_v37  ;;  %v1011_v37 = vsub.f32 %v11830_v57, %v21544_v1  ;;  %v1006_v1 = vand.u32 4294901760, %v1005_v61  ;;  %v21887_v61 = vand.u32 4294901760, %v11640_v15 }
  0x21   :  { %803 = vmatpush.msra.mxu2 %v11804_v41  ;;  %845 = vmatpush.msra.mxu3 %v11786_v26 }
  0x22   :  { %651 = vmatpush.msra.mxu0 %v11791_v31  ;;  %732 = vmatpush.msra.mxu1 %v731_v49  ;;  %v45_v49 = vld [vmem:[%s21527_s1 + $0xb0] sm:$0xff]  ;;  %v1012_v42 = vand.u32 4294901760, %v1011_v37  ;;  %v21888_v37 = vand.u32 4294901760, %v11644_v16  ;;  %v11955_v16 = vand.u32 4294901760, %v44_v47 }
  0x23   :  { %806 = vmatpush.msra.mxu2 %v11820_v54  ;;  %847 = vmatpush.msra.mxu3 %v11791_v31 }
  0x24   :  { %858 = vmatpush.msrb.mxu0 %v663_v22  ;;  %738 = vmatpush.msra.mxu1 %v737_v35  ;;  %v11924_v22 = vsub.f32 %v48_v48, %v11890_v28  ;;  %v11930_v35 = vsub.f32 %v47_v45, %v11900_v7  ;;  %v1023_v48 = vsub.f32 %v11870_v58, %v21548_v27 }
  0x25   :  { %809 = vmatpush.msra.mxu2 %v11827_v56  ;;  %1007 = vmatpush.msrb.mxu3 %v1006_v1  ;;  %v11945_v45 = vsub.f32 %v46_v6, %v11913_v23  ;;  %v1029_v27 = vsub.f32 %v11888_v63, %v21549_v14  ;;  %v21889_v1 = vand.u32 4294901760, %v11649_v18 }
  0x26   :  { %862 = vmatpush.msrb.mxu0 %v21887_v61  ;;  %744 = vmatpush.msra.mxu1 %v743_v60  ;;  %v11940_v61 = vand.u32 4294901760, %v45_v49  ;;  %v43_v60 = vld [vmem:[%s21527_s1 + $0xa0] sm:$0xff]  ;;  %v1024_v21 = vand.u32 4294901760, %v1023_v48  ;;  %v21892_v6 = vand.u32 4294901760, %v11924_v22 }
  0x27   :  { %962 = vmatpush.msrb.mxu2 %v11780_v12  ;;  %1013 = vmatpush.msrb.mxu3 %v1012_v42  ;;  %v11970_v18 = vand.u32 4294901760, %v43_v60  ;;  %v21891_v42 = vand.u32 4294901760, %v11652_v19  ;;  %v1030_v48 = vand.u32 4294901760, %v1029_v27  ;;  %v21893_v19 = vand.u32 4294901760, %v11655_v20  ;;  %v41_v27 = vld [vmem:[%s21527_s1 + $0x90] sm:$0xff] }
  0x28   :  { %866 = vmatpush.msrb.mxu0 %v21888_v37  ;;  %750 = vmatpush.msra.mxu1 %v749_v36  ;;  %v42_v36 = vld [vmem:[%s21527_s1 + $0x98] sm:$0xff]  ;;  %v21890_v37 = vand.u32 4294901760, %v11908_v24  ;;  %v11968_v15 = vsub.f32 %v45_v49, %v11940_v61  ;;  %v11981_v49 = vsub.f32 %v44_v47, %v11955_v16 }
  0x29   :  { %964 = vmatpush.msrb.mxu2 %v11793_v32  ;;  %1019 = vmatpush.msrb.mxu3 %v1018_v38 }
  0x2a   :  { %870 = vmatpush.msrb.mxu0 %v21889_v1  ;;  %756 = vmatpush.msra.mxu1 %v755_v62  ;;  %v1035_v14 = vsub.f32 %v11908_v24, %v21890_v37  ;;  %v21552_v1 = vand.u32 4294901760, %v11945_v45  ;;  %v550_v62 = vld.sshfl [vmem:[#allocation1] sm:$0xff pattern:$0x73625140]  ;;  %v1041_v37 = vsub.f32 %v11924_v22, %v21892_v6  ;;  %v21553_v38 = vand.u32 4294901760, %v11968_v15 }
  0x2b   :  { %966 = vmatpush.msrb.mxu2 %v11822_v55  ;;  %v11983_v55 = vand.u32 4294901760, %v42_v36  ;;  %1025 = vmatpush.msrb.mxu3 %v1024_v21  ;;  %v11997_v6 = vsub.f32 %v43_v60, %v11970_v18  ;;  %v11999_v20 = vand.u32 4294901760, %v550_v62  ;;  %v1064_v21 = vand.u32 4294901760, %v11981_v49 }
  0x2c   :  { %874 = vmatpush.msrb.mxu0 %v21891_v42  ;;  %925 = vmatpush.msrb.mxu1 %v11608_v3  ;;  %v21894_v3 = vand.u32 4294901760, %v11930_v35  ;;  %v1036_v47 = vand.u32 4294901760, %v1035_v14  ;;  %v40_v14 = vld [vmem:[%s21527_s1 + $0x88] sm:$0xff]  ;;  %v1042_v60 = vand.u32 4294901760, %v1041_v37 }
  0x2d   :  { %968 = vmatpush.msrb.mxu2 %v11840_v13  ;;  %1031 = vmatpush.msrb.mxu3 %v1030_v48  ;;  %v1059_v48 = vsub.f32 %v11968_v15, %v21553_v38  ;;  %v12029_v37 = vsub.f32 %v550_v62, %v11999_v20 }
  0x2e   :  { %878 = vmatpush.msrb.mxu0 %v21893_v19  ;;  %927 = vmatpush.msrb.mxu1 %v11610_v4  ;;  %v1047_v42 = vsub.f32 %v11930_v35, %v21894_v3  ;;  %v21895_v4 = vand.u32 4294901760, %v11674_v29  ;;  %v1053_v19 = vsub.f32 %v11945_v45, %v21552_v1  ;;  %v12012_v3 = vand.u32 4294901760, %v41_v27  ;;  %v39_v1 = vld [vmem:[%s21527_s1 + $0x80] sm:$0xff] }
  0x2f   :  { %970 = vmatpush.msrb.mxu2 %v11856_v30  ;;  %v12015_v29 = vsub.f32 %v42_v36, %v11983_v55  ;;  %1037 = vmatpush.msrb.mxu3 %v1036_v47  ;;  %v1070_v36 = vand.u32 4294901760, %v11997_v6  ;;  %v1065_v47 = vsub.f32 %v11981_v49, %v1064_v21  ;;  %v12044_v38 = vand.u32 4294901760, %v39_v1 }
  0x30   :  { %882 = vmatpush.msrb.mxu0 %v21895_v4  ;;  %929 = vmatpush.msrb.mxu1 %v11612_v5  ;;  %v21896_v5 = vand.u32 4294901760, %v11702_v40  ;;  %v1048_v4 = vand.u32 4294901760, %v1047_v42  ;;  %v12031_v40 = vand.u32 4294901760, %v40_v14  ;;  %v1054_v42 = vand.u32 4294901760, %v1053_v19 }
  0x31   :  { %972 = vmatpush.msrb.mxu2 %v11872_v51  ;;  %1043 = vmatpush.msrb.mxu3 %v1042_v60  ;;  %v12042_v62 = vsub.f32 %v41_v27, %v12012_v3  ;;  %v1071_v19 = vsub.f32 %v11997_v6, %v1070_v36  ;;  %v654_v60 = vand.u32 4294901760, %v12029_v37 }
  0x32   :  { %886 = vmatpush.msrb.mxu0 %v21896_v5  ;;  %931 = vmatpush.msrb.mxu1 %v11623_v9  ;;  %v21897_v9 = vand.u32 4294901760, %v11716_v46  ;;  %v1076_v5 = vand.u32 4294901760, %v12015_v29  ;;  %v21898_v46 = vand.u32 4294901760, %v11731_v52  ;;  %v12055_v27 = vsub.f32 %v40_v14, %v12031_v40 }
  0x33   :  { %974 = vmatpush.msrb.mxu2 %v11890_v28  ;;  %1049 = vmatpush.msrb.mxu3 %v1048_v4  ;;  %v1082_v4 = vand.u32 4294901760, %v12042_v62  ;;  %v21900_v14 = vand.u32 4294901760, %v11767_v2 }
  0x34   :  { %890 = vmatpush.msrb.mxu0 %v21897_v9  ;;  %933 = vmatpush.msrb.mxu1 %v11625_v10  ;;  %v1060_v10 = vand.u32 4294901760, %v1059_v48  ;;  %v21899_v9 = vand.u32 4294901760, %v11749_v59  ;;  %v1077_v52 = vsub.f32 %v12015_v29, %v1076_v5  ;;  %v12066_v48 = vsub.f32 %v39_v1, %v12044_v38  ;;  %v551_v59 = vld.sshfl [vmem:[#allocation1 + $0x8] sm:$0xff pattern:$0x73625140] }
  0x35   :  { %976 = vmatpush.msrb.mxu2 %v11900_v7  ;;  %1055 = vmatpush.msrb.mxu3 %v1054_v42  ;;  %v655_v42 = vsub.f32 %v12029_v37, %v654_v60 }
  0x36   :  { %894 = vmatpush.msrb.mxu0 %v21898_v46  ;;  %935 = vmatpush.msrb.mxu1 %v11627_v11  ;;  %v1066_v11 = vand.u32 4294901760, %v1065_v47  ;;  %v1088_v47 = vand.u32 4294901760, %v12055_v27  ;;  %v21901_v46 = vand.u32 4294901760, %v11778_v8  ;;  %v1078_v2 = vand.u32 4294901760, %v1077_v52 }
  0x37   :  { %978 = vmatpush.msrb.mxu2 %v11913_v23  ;;  %1061 = vmatpush.msrb.mxu3 %v1060_v10  ;;  %v1094_v1 = vand.u32 4294901760, %v12066_v48  ;;  %v12082_v10 = vand.u32 4294901760, %v551_v59  ;;  %v21904_v52 = vand.u32 4294901760, %v11827_v56  ;;  %v21908_v56 = vand.u32 4294901760, %v11870_v58 }
  0x38   :  { %898 = vmatpush.msrb.mxu0 %v21899_v9  ;;  %937 = vmatpush.msrb.mxu1 %v11646_v17  ;;  %v1072_v17 = vand.u32 4294901760, %v1071_v19  ;;  %v21902_v19 = vand.u32 4294901760, %v11804_v41  ;;  %v1089_v8 = vsub.f32 %v12055_v27, %v1088_v47  ;;  %v21903_v9 = vand.u32 4294901760, %v11820_v54 }
  0x39   :  { %980 = vmatpush.msrb.mxu2 %v11940_v61  ;;  %1067 = vmatpush.msrb.mxu3 %v1066_v11  ;;  %v12099_v11 = vsub.f32 %v551_v59, %v12082_v10 }
  0x3a   :  { %902 = vmatpush.msrb.mxu0 %v21900_v14  ;;  %939 = vmatpush.msrb.mxu1 %v11665_v25  ;;  %v1083_v25 = vsub.f32 %v12042_v62, %v1082_v4 }
  0x3b   :  { %982 = vmatpush.msrb.mxu2 %v11955_v16  ;;  %1073 = vmatpush.msrb.mxu3 %v1072_v17  ;;  %v995_v14 = vand.u32 4294901760, %v12099_v11  ;;  %v61_v17 = vld [vmem:[%s21527_s1 + $0x130] sm:$0xff] }
  0x3c   :  { %906 = vmatpush.msrb.mxu0 %v21901_v46  ;;  %941 = vmatpush.msrb.mxu1 %v11687_v33  ;;  %v656_v33 = vand.u32 4294901760, %v655_v42  ;;  %v1084_v41 = vand.u32 4294901760, %v1083_v25  ;;  %v60_v25 = vld [vmem:[%s21527_s1 + $0x128] sm:$0xff] }
  0x3d   :  { %984 = vmatpush.msrb.mxu2 %v11970_v18  ;;  %1079 = vmatpush.msrb.mxu3 %v1078_v2 }
  0x3e   :  { %910 = vmatpush.msrb.mxu0 %v21902_v19  ;;  %943 = vmatpush.msrb.mxu1 %v11690_v34  ;;  %v1095_v34 = vsub.f32 %v12066_v48, %v1094_v1  ;;  %v12300_v19 = vand.u32 4294901760, %v61_v17 }
  0x3f   :  { %986 = vmatpush.msrb.mxu2 %v11983_v55  ;;  %657 = vmatmul.f32.vlgmr.msra.gmra.mxu0 %v656_v33 }
  0x40   :  { %914 = vmatpush.msrb.mxu0 %v21903_v9  ;;  %945 = vmatpush.msrb.mxu1 %v11712_v44  ;;  %v1090_v44 = vand.u32 4294901760, %v1089_v8  ;;  %v1096_v54 = vand.u32 4294901760, %v1095_v34  ;;  %v59_v8 = vld [vmem:[%s21527_s1 + $0x120] sm:$0xff] }
  0x41   :  { %988 = vmatpush.msrb.mxu2 %v12012_v3  ;;  %1085 = vmatpush.msrb.mxu3 %v1084_v41  ;;  %v12315_v41 = vand.u32 4294901760, %v60_v25 }
  0x42   :  { %918 = vmatpush.msrb.mxu0 %v21904_v52  ;;  %947 = vmatpush.msrb.mxu1 %v11727_v50  ;;  %v21905_v50 = vand.u32 4294901760, %v11810_v43  ;;  %v552_v52 = vld.sshfl [vmem:[#allocation1 + $0x10] sm:$0xff pattern:$0x73625140] }
  0x43   :  { %990 = vmatpush.msrb.mxu2 %v12031_v40  ;;  %1091 = vmatpush.msrb.mxu3 %v1090_v44 }
  0x44   :  { %1105 = vmatpush.msra.mxu0 %v11810_v43  ;;  %949 = vmatpush.msrb.mxu1 %v11735_v53  ;;  %v996_v53 = vsub.f32 %v12099_v11, %v995_v14 }
  0x45   :  { %992 = vmatpush.msrb.mxu2 %v12044_v38  ;;  %1097 = vmatpush.msrb.mxu3 %v1096_v54  ;;  %v58_v54 = vld [vmem:[%s21527_s1 + $0x118] sm:$0xff] }
  0x46   :  { %1108 = vmatpush.msra.mxu0 %v11830_v57  ;;  %951 = vmatpush.msrb.mxu1 %v11763_v0  ;;  %v21906_v0 = vand.u32 4294901760, %v11830_v57  ;;  %v997_v43 = vand.u32 4294901760, %v996_v53  ;;  %v21915_v57 = vand.u32 4294901760, %v11968_v15 }
  0x47   :  { %812 = vmatmul.f32.vlgmr.msra.gmra.mxu2 %v12029_v37  ;;  %851 = vmatmul.f32.vlgmr.msra.gmra.mxu3 %v654_v60  ;;  %v62_v60 = vld [vmem:[%s21527_s1 + $0x138] sm:$0xff] }
  0x48   :  { %1111 = vmatpush.msra.mxu0 %v11854_v39  ;;  %1199 = vmatpush.msra.mxu2 %v21905_v50  ;;  %v12284_v46 = vand.u32 4294901760, %v62_v60  ;;  %v12330_v50 = vand.u32 4294901760, %v59_v8 }
  0x49   :  { %953 = vmatpush.msrb.mxu1 %v11786_v26  ;;  %1266 = vmatpush.msra.mxu3 %v11780_v12  ;;  %v21907_v26 = vand.u32 4294901760, %v11854_v39  ;;  %v21910_v39 = vand.u32 4294901760, %v11888_v63 }
  0x4a   :  { %1114 = vmatpush.msra.mxu0 %v11870_v58  ;;  %1203 = vmatpush.msra.mxu2 %v21906_v0  ;;  %v21911_v58 = vand.u32 4294901760, %v11908_v24  ;;  %v12334_v0 = vsub.f32 %v61_v17, %v12300_v19 }
  0x4b   :  { %955 = vmatpush.msrb.mxu1 %v11791_v31  ;;  %1268 = vmatpush.msra.mxu3 %v11793_v32  ;;  %v21909_v31 = vld [vmem:[#allocation5_spill] sm:$0xff] }
  0x4c   :  { %1117 = vmatpush.msra.mxu0 %v11888_v63  ;;  %758 = vmatmul.f32.vlgmr.msra.gmra.mxu1 %v11999_v20  ;;  %v68_v63 = vld [vmem:[%s21527_s1 + $0x168] sm:$0xff] }
  0x4d   :  { %1207 = vmatpush.msra.mxu2 %v21907_v26  ;;  %1158 = vmatpush.msra.mxu1 %v11780_v12  ;;  %v21912_v12 = vand.u32 4294901760, %v11924_v22 }
  0x4e   :  { %1120 = vmatpush.msra.mxu0 %v11908_v24  ;;  %1270 = vmatpush.msra.mxu3 %v21909_v31  ;;  %v21913_v24 = vand.u32 4294901760, %v11930_v35 }
  0x4f   :  { %1211 = vmatpush.msra.mxu2 %v21908_v56  ;;  %1160 = vmatpush.msra.mxu1 %v11793_v32  ;;  %v21914_v32 = vand.u32 4294901760, %v11945_v45  ;;  %v12341_v56 = vand.u32 4294901760, %v552_v52 }
  0x50   :  { %998 = vmatmul.f32.vlgmr.msrb.gmra.mxu2 %v997_v43  ;;  %1123 = vmatpush.msra.mxu0 %v11924_v22  ;;  %v57_v43 = vld [vmem:[%s21527_s1 + $0x110] sm:$0xff] }
  0x51   :  { %1162 = vmatpush.msra.mxu1 %v21909_v31  ;;  %1215 = vmatpush.msra.mxu2 %v21910_v39  ;;  %v12347_v39 = vand.u32 4294901760, %v58_v54 }
  0x52   :  { %1272 = vmatpush.msra.mxu3 %v11840_v13  ;;  %920 = vmatmul.f32.vlgmr.msrb.gmra.mxu0 %v11999_v20 }
  0x53   :  { %1099 = vmatmul.f32.vlgmr.msrb.gmra.mxu3 %v12082_v10  ;;  %1126 = vmatpush.msra.mxu0 %v11930_v35  ;;  %v66_v35 = vld [vmem:[%s21527_s1 + $0x158] sm:$0xff] }
  0x54   :  { %1164 = vmatpush.msra.mxu1 %v11840_v13  ;;  %1219 = vmatpush.msra.mxu2 %v21911_v58 }
  0x55   :  { %1274 = vmatpush.msra.mxu3 %v11856_v30  ;;  %957 = vmatmul.f32.vlgmr.msrb.gmra.mxu1 %v11999_v20 }
  0x56   :  { %1129 = vmatpush.msra.mxu0 %v11945_v45  ;;  %1166 = vmatpush.msra.mxu1 %v11856_v30  ;;  %v70_v30 = vld [vmem:[%s21527_s1 + $0x178] sm:$0xff]  ;;  %v65_v45 = vld [vmem:[%s21527_s1 + $0x150] sm:$0xff] }
  0x57   :  { %1223 = vmatpush.msra.mxu2 %v21912_v12  ;;  %1276 = vmatpush.msra.mxu3 %v11872_v51  ;;  %v12228_v20 = vand.u32 4294901760, %v65_v45  ;;  %v12351_v12 = vsub.f32 %v60_v25, %v12315_v41 }
  0x58   :  { %1132 = vmatpush.msra.mxu0 %v11968_v15  ;;  %1168 = vmatpush.msra.mxu1 %v11872_v51  ;;  %v69_v51 = vld [vmem:[%s21527_s1 + $0x170] sm:$0xff] }
  0x59   :  { %1227 = vmatpush.msra.mxu2 %v21913_v24  ;;  %1278 = vmatpush.msra.mxu3 %v11890_v28  ;;  %v12184_v13 = vand.u32 4294901760, %v69_v51 }
  0x5a   :  { %1135 = vmatpush.msra.mxu0 %v11981_v49  ;;  %1170 = vmatpush.msra.mxu1 %v11890_v28  ;;  %v12174_v28 = vand.u32 4294901760, %v70_v30  ;;  %v12217_v49 = vand.u32 4294901760, %v66_v35 }
  0x5b   :  { %1231 = vmatpush.msra.mxu2 %v21914_v32  ;;  %1280 = vmatpush.msra.mxu3 %v11900_v7  ;;  %v12359_v32 = vand.u32 4294901760, %v57_v43 }
  0x5c   :  { %1138 = vmatpush.msra.mxu0 %v11997_v6  ;;  %1172 = vmatpush.msra.mxu1 %v11900_v7  ;;  %v67_v7 = vld [vmem:[%s21527_s1 + $0x160] sm:$0xff]  ;;  %v12197_v22 = vsub.f32 %v70_v30, %v12174_v28 }
  0x5d   :  { %1235 = vmatpush.msra.mxu2 %v21915_v57  ;;  %1282 = vmatpush.msra.mxu3 %v11913_v23  ;;  %v12207_v15 = vand.u32 4294901760, %v67_v7  ;;  %v12363_v57 = vsub.f32 %v59_v8, %v12330_v50  ;;  %v12397_v25 = vsub.f32 %v57_v43, %v12359_v32 }
  0x5e   :  { %1141 = vmatpush.msra.mxu0 %v12015_v29  ;;  %1174 = vmatpush.msra.mxu1 %v11913_v23  ;;  %v12194_v23 = vand.u32 4294901760, %v68_v63 }
  0x5f   :  { %1239 = vmatpush.msra.mxu2 %v1064_v21  ;;  %1284 = vmatpush.msra.mxu3 %v11940_v61  ;;  %v12238_v29 = vsub.f32 %v67_v7, %v12207_v15  ;;  %v12371_v7 = vsub.f32 %v552_v52, %v12341_v56 }
  0x60   :  { %1144 = vmatpush.msra.mxu0 %v12042_v62  ;;  %1176 = vmatpush.msra.mxu1 %v11940_v61  ;;  %v12210_v61 = vsub.f32 %v69_v51, %v12184_v13  ;;  %v12224_v6 = vsub.f32 %v68_v63, %v12194_v23  ;;  %v12260_v62 = vsub.f32 %v65_v45, %v12228_v20  ;;  %v21557_v51 = vand.u32 4294901760, %v12334_v0  ;;  %v56_v63 = vld [vmem:[%s21527_s1 + $0x108] sm:$0xff] }
  0x61   :  { %1243 = vmatpush.msra.mxu2 %v1070_v36  ;;  %1286 = vmatpush.msra.mxu3 %v11955_v16  ;;  %v63_v36 = vld [vmem:[%s21527_s1 + $0x140] sm:$0xff] }
  0x62   :  { %1147 = vmatpush.msra.mxu0 %v12055_v27  ;;  %1178 = vmatpush.msra.mxu1 %v11955_v16  ;;  %v1345_v16 = vand.u32 4294901760, %v12197_v22  ;;  %v1351_v21 = vand.u32 4294901760, %v12210_v61  ;;  %v21562_v2 = vand.u32 4294901760, %v12260_v62 }
  0x63   :  { %1247 = vmatpush.msra.mxu2 %v1076_v5  ;;  %1288 = vmatpush.msra.mxu3 %v11970_v18 }
  0x64   :  { %1150 = vmatpush.msra.mxu0 %v12066_v48  ;;  %1180 = vmatpush.msra.mxu1 %v11970_v18  ;;  %v64_v18 = vld [vmem:[%s21527_s1 + $0x148] sm:$0xff]  ;;  %v1346_v37 = vsub.f32 %v12197_v22, %v1345_v16  ;;  %v1352_v27 = vsub.f32 %v12210_v61, %v1351_v21  ;;  %v21567_v48 = vand.u32 4294901760, %v12238_v29  ;;  %v1376_v44 = vsub.f32 %v12260_v62, %v21562_v2 }
  0x65   :  { %1251 = vmatpush.msra.mxu2 %v1082_v4  ;;  %1290 = vmatpush.msra.mxu3 %v11983_v55  ;;  %v12254_v5 = vand.u32 4294901760, %v64_v18  ;;  %v12270_v4 = vand.u32 4294901760, %v63_v36 }
  0x66   :  { %1153 = vmatmul.f32.vlgmr.msra.gmra.mxu0 %v12099_v11  ;;  %1182 = vmatpush.msra.mxu1 %v11983_v55  ;;  %v12243_v55 = vsub.f32 %v66_v35, %v12217_v49  ;;  %v1347_v42 = vand.u32 4294901760, %v1346_v37  ;;  %v12319_v11 = vsub.f32 %v62_v60, %v12284_v46  ;;  %v1377_v24 = vand.u32 4294901760, %v1376_v44  ;;  %v86_v37 = vld [vmem:[%s21527_s1 + $0x1f8] sm:$0xff] }
  0x67   :  { %1303 = vmatpush.msrb.mxu0 %v12174_v28  ;;  %1255 = vmatpush.msra.mxu2 %v1088_v47  ;;  %v12303_v33 = vsub.f32 %v63_v36, %v12270_v4  ;;  %v12379_v36 = vsub.f32 %v58_v54, %v12347_v39  ;;  %v12386_v60 = vand.u32 4294901760, %v56_v63 }
  0x68   :  { %1292 = vmatpush.msra.mxu3 %v12012_v3  ;;  %1184 = vmatpush.msra.mxu1 %v12012_v3  ;;  %v1357_v3 = vand.u32 4294901760, %v12224_v6  ;;  %v21564_v59 = vand.u32 4294901760, %v12243_v55  ;;  %v21558_v58 = vand.u32 4294901760, %v12319_v11 }
  0x69   :  { %1305 = vmatpush.msrb.mxu0 %v12184_v13  ;;  %1259 = vmatpush.msra.mxu2 %v1094_v1  ;;  %v1353_v1 = vand.u32 4294901760, %v1352_v27  ;;  %v21559_v53 = vand.u32 4294901760, %v12303_v33  ;;  %v55_v27 = vld [vmem:[%s21527_s1 + $0x100] sm:$0xff]  ;;  %v21556_v44 = vand.u32 4294901760, %v12379_v36  ;;  %v12417_v54 = vsub.f32 %v56_v63, %v12386_v60 }
  0x6a   :  { %1294 = vmatpush.msra.mxu3 %v12031_v40  ;;  %1261 = vmatmul.f32.vlgmr.msra.gmra.mxu2 %v12082_v10  ;;  %v1358_v47 = vsub.f32 %v12224_v6, %v1357_v3  ;;  %v1394_v45 = vsub.f32 %v12319_v11, %v21558_v58  ;;  %v12411_v52 = vand.u32 4294901760, %v55_v27 }
  0x6b   :  { %1307 = vmatpush.msrb.mxu0 %v12194_v23  ;;  %1446 = vmatpush.msrb.mxu2 %v12197_v22  ;;  %v1388_v30 = vsub.f32 %v12303_v33, %v21559_v53  ;;  %v78_v22 = vld [vmem:[%s21527_s1 + $0x1b8] sm:$0xff] }
  0x6c   :  { %1186 = vmatpush.msra.mxu1 %v12031_v40  ;;  %1296 = vmatpush.msra.mxu3 %v12044_v38  ;;  %v12287_v40 = vsub.f32 %v64_v18, %v12254_v5  ;;  %v1359_v9 = vand.u32 4294901760, %v1358_v47  ;;  %v21555_v18 = vand.u32 4294901760, %v12351_v12  ;;  %v21554_v47 = vand.u32 4294901760, %v12363_v57  ;;  %21916 = vst [vmem:[#allocation5_spill] sm:$0xff] %v12411_v52 }
  0x6d   :  { %1298 = vmatmul.f32.vlgmr.msra.gmra.mxu3 %v12082_v10  ;;  %1309 = vmatpush.msrb.mxu0 %v12207_v15  ;;  %v1364_v10 = vsub.f32 %v12238_v29, %v21567_v48  ;;  %v1389_v17 = vand.u32 4294901760, %v1388_v30  ;;  %v1395_v8 = vand.u32 4294901760, %v1394_v45  ;;  %v83_v30 = vld [vmem:[%s21527_s1 + $0x1e0] sm:$0xff] }
  0x6e   :  { %1449 = vmatpush.msrb.mxu2 %v12210_v61  ;;  %1499 = vmatpush.msrb.mxu3 %v12174_v28  ;;  %v21561_v34 = vand.u32 4294901760, %v12287_v40  ;;  %v1412_v43 = vsub.f32 %v12363_v57, %v21554_v47  ;;  %v77_v61 = vld [vmem:[%s21527_s1 + $0x1b0] sm:$0xff] }
  0x6f   :  { %1188 = vmatpush.msra.mxu1 %v12044_v38  ;;  %1311 = vmatpush.msrb.mxu0 %v12217_v49  ;;  %v1370_v38 = vsub.f32 %v12243_v55, %v21564_v59  ;;  %v12563_v48 = vand.u32 4294901760, %v77_v61 }
  0x70   :  { %1192 = vmatmul.f32.vlgmr.msra.gmra.mxu1 %v995_v14  ;;  %1452 = vmatpush.msrb.mxu2 %v12224_v6  ;;  %v1365_v14 = vand.u32 4294901760, %v1364_v10  ;;  %v1382_v31 = vsub.f32 %v12287_v40, %v21561_v34  ;;  %v12402_v10 = vand.u32 4294901760, %v86_v37 }
  0x71   :  { %1348 = vmatpush.msrb.mxu1 %v1347_v42  ;;  %1501 = vmatpush.msrb.mxu3 %v12184_v13  ;;  %v1371_v26 = vand.u32 4294901760, %v1370_v38  ;;  %v1400_v42 = vsub.f32 %v12334_v0, %v21557_v51  ;;  %v85_v38 = vld [vmem:[%s21527_s1 + $0x1f0] sm:$0xff] }
  0x72   :  { %1313 = vmatpush.msrb.mxu0 %v12228_v20  ;;  %1455 = vmatpush.msrb.mxu2 %v12238_v29  ;;  %v1383_v35 = vand.u32 4294901760, %v1382_v31  ;;  %v21560_v31 = vand.u32 4294901760, %v12397_v25 }
  0x73   :  { %1354 = vmatpush.msrb.mxu1 %v1353_v1  ;;  %1503 = vmatpush.msrb.mxu3 %v12194_v23  ;;  %v1336_v1 = vand.u32 4294901760, %v12371_v7 }
  0x74   :  { %1315 = vmatpush.msrb.mxu0 %v12254_v5  ;;  %1458 = vmatpush.msrb.mxu2 %v12243_v55 }
  0x75   :  { %1360 = vmatpush.msrb.mxu1 %v1359_v9  ;;  %1505 = vmatpush.msrb.mxu3 %v12207_v15  ;;  %v1406_v9 = vsub.f32 %v12351_v12, %v21555_v18  ;;  %v1337_v63 = vsub.f32 %v12371_v7, %v1336_v1  ;;  %v82_v18 = vld [vmem:[%s21527_s1 + $0x1d8] sm:$0xff] }
  0x76   :  { %1317 = vmatpush.msrb.mxu0 %v12270_v4  ;;  %1461 = vmatpush.msrb.mxu2 %v12260_v62  ;;  %v12467_v53 = vand.u32 4294901760, %v82_v18 }
  0x77   :  { %1366 = vmatpush.msrb.mxu1 %v1365_v14  ;;  %1507 = vmatpush.msrb.mxu3 %v12217_v49  ;;  %v84_v14 = vld [vmem:[%s21527_s1 + $0x1e8] sm:$0xff]  ;;  %v1407_v45 = vand.u32 4294901760, %v1406_v9  ;;  %v1413_v9 = vand.u32 4294901760, %v1412_v43  ;;  %v1338_v51 = vand.u32 4294901760, %v1337_v63 }
  0x78   :  { %1319 = vmatpush.msrb.mxu0 %v12284_v46  ;;  %1464 = vmatpush.msrb.mxu2 %v12287_v40  ;;  %v12447_v47 = vand.u32 4294901760, %v84_v14 }
  0x79   :  { %1372 = vmatpush.msrb.mxu1 %v1371_v26  ;;  %1509 = vmatpush.msrb.mxu3 %v12228_v20  ;;  %v1401_v26 = vand.u32 4294901760, %v1400_v42  ;;  %v12445_v42 = vsub.f32 %v55_v27, %v12411_v52  ;;  %v1424_v27 = vsub.f32 %v12397_v25, %v21560_v31 }
  0x7a   :  { %1321 = vmatpush.msrb.mxu0 %v12300_v19  ;;  %1467 = vmatpush.msrb.mxu2 %v12303_v33  ;;  %v12475_v31 = vsub.f32 %v84_v14, %v12447_v47 }
  0x7b   :  { %1378 = vmatpush.msrb.mxu1 %v1377_v24  ;;  %1511 = vmatpush.msrb.mxu3 %v12254_v5  ;;  %v12427_v24 = vand.u32 4294901760, %v85_v38  ;;  %v1425_v14 = vand.u32 4294901760, %v1424_v27 }
  0x7c   :  { %1323 = vmatpush.msrb.mxu0 %v12315_v41  ;;  %1470 = vmatpush.msrb.mxu2 %v12319_v11  ;;  %v21568_v27 = vand.u32 4294901760, %v12475_v31 }
  0x7d   :  { %1384 = vmatpush.msrb.mxu1 %v1383_v35  ;;  %1513 = vmatpush.msrb.mxu3 %v12270_v4  ;;  %v12438_v35 = vsub.f32 %v86_v37, %v12402_v10  ;;  %v21563_v37 = vand.u32 4294901760, %v12417_v54 }
  0x7e   :  { %1325 = vmatpush.msrb.mxu0 %v12330_v50  ;;  %1473 = vmatpush.msrb.mxu2 %v12334_v0 }
  0x7f   :  { %1390 = vmatpush.msrb.mxu1 %v1389_v17  ;;  %1515 = vmatpush.msrb.mxu3 %v12284_v46  ;;  %v1418_v17 = vsub.f32 %v12379_v36, %v21556_v44  ;;  %v12462_v44 = vsub.f32 %v85_v38, %v12427_v24  ;;  %v21565_v58 = vand.u32 4294901760, %v12438_v35  ;;  %v21566_v38 = vand.u32 4294901760, %v12445_v42 }
  0x80   :  { %1327 = vmatpush.msrb.mxu0 %v12347_v39  ;;  %1476 = vmatpush.msrb.mxu2 %v12351_v12  ;;  %v1430_v63 = vsub.f32 %v12417_v54, %v21563_v37  ;;  %v12497_v37 = vsub.f32 %v82_v18, %v12467_v53 }
  0x81   :  { %1396 = vmatpush.msrb.mxu1 %v1395_v8  ;;  %1517 = vmatpush.msrb.mxu3 %v12300_v19  ;;  %v12455_v8 = vand.u32 4294901760, %v83_v30  ;;  %v1419_v43 = vand.u32 4294901760, %v1418_v17  ;;  %v21569_v17 = vand.u32 4294901760, %v12462_v44 }
  0x82   :  { %1329 = vmatpush.msrb.mxu0 %v12359_v32  ;;  %1479 = vmatpush.msrb.mxu2 %v12363_v57  ;;  %v1431_v18 = vand.u32 4294901760, %v1430_v63 }
  0x83   :  { %1402 = vmatpush.msrb.mxu1 %v1401_v26  ;;  %1519 = vmatpush.msrb.mxu3 %v12315_v41  ;;  %v81_v26 = vld [vmem:[%s21527_s1 + $0x1d0] sm:$0xff]  ;;  %v12483_v34 = vsub.f32 %v83_v30, %v12455_v8  ;;  %v1687_v30 = vsub.f32 %v12438_v35, %v21565_v58 }
  0x84   :  { %1331 = vmatpush.msrb.mxu0 %v12386_v60  ;;  %1482 = vmatpush.msrb.mxu2 %v12379_v36  ;;  %v12490_v2 = vand.u32 4294901760, %v81_v26 }
  0x85   :  { %1408 = vmatpush.msrb.mxu1 %v1407_v45  ;;  %1521 = vmatpush.msrb.mxu3 %v12330_v50  ;;  %v80_v45 = vld [vmem:[%s21527_s1 + $0x1c8] sm:$0xff]  ;;  %v21570_v58 = vand.u32 4294901760, %v12483_v34  ;;  %v1688_v63 = vand.u32 4294901760, %v1687_v30  ;;  %v12541_v30 = vand.u32 4294901760, %v78_v22 }
  0x86   :  { %1333 = vmatpush.msrb.mxu0 %v12411_v52  ;;  %1485 = vmatpush.msrb.mxu2 %v12397_v25  ;;  %v12508_v59 = vand.u32 4294901760, %v80_v45 }
  0x87   :  { %1414 = vmatpush.msrb.mxu1 %v1413_v9  ;;  %1523 = vmatpush.msrb.mxu3 %v12347_v39  ;;  %v79_v9 = vld [vmem:[%s21527_s1 + $0x1c0] sm:$0xff]  ;;  %v1705_v6 = vsub.f32 %v12483_v34, %v21570_v58 }
  0x88   :  { %1339 = vmatmul.f32.vlgmr.msrb.gmra.mxu0 %v1338_v51  ;;  %1488 = vmatpush.msrb.mxu2 %v12417_v54  ;;  %v1436_v51 = vsub.f32 %v12445_v42, %v21566_v38  ;;  %v12524_v38 = vand.u32 4294901760, %v79_v9 }
  0x89   :  { %1540 = vmatpush.msra.mxu0 %v1345_v16  ;;  %1420 = vmatpush.msrb.mxu1 %v1419_v43  ;;  %v1693_v16 = vsub.f32 %v12462_v44, %v21569_v17  ;;  %v12522_v43 = vsub.f32 %v81_v26, %v12490_v2  ;;  %v1699_v26 = vsub.f32 %v12475_v31, %v21568_v27  ;;  %v12553_v27 = vld.sshfl [vmem:[#allocation1 + $0x18] sm:$0xff pattern:$0x73625140] }
  0x8a   :  { %1525 = vmatpush.msrb.mxu3 %v12359_v32  ;;  %1491 = vmatpush.msrb.mxu2 %v12445_v42  ;;  %v12561_v58 = vsub.f32 %v79_v9, %v12524_v38 }
  0x8b   :  { %1544 = vmatpush.msra.mxu0 %v1351_v21  ;;  %1426 = vmatpush.msrb.mxu1 %v1425_v14  ;;  %v1437_v21 = vand.u32 4294901760, %v1436_v51  ;;  %v12539_v14 = vsub.f32 %v80_v45, %v12508_v59  ;;  %v17_v51 = vld [vmem:[%s21526_s0 + $0x10] sm:$0xff]  ;;  %v21917_v45 = vand.u32 4294901760, %v12238_v29  ;;  %v21572_v17 = vand.u32 4294901760, %v12522_v43  ;;  %v75_v29 = vld [vmem:[%s21527_s1 + $0x1a0] sm:$0xff] }
  0x8c   :  { %1527 = vmatpush.msrb.mxu3 %v12386_v60  ;;  %1494 = vmatmul.f32.vlgmr.msrb.gmra.mxu2 %v12371_v7  ;;  %558 = vst [vmem:[#allocation1] ss:$4 sm:$0xff] %v17_v51  ;;  %v1700_v9 = vand.u32 4294901760, %v1699_v26  ;;  %v12576_v51 = vsub.f32 %v78_v22, %v12541_v30  ;;  %v21573_v22 = vand.u32 4294901760, %v12561_v58  ;;  %v12593_v26 = vand.u32 4294901760, %v75_v29 }
  0x8d   :  { %1548 = vmatpush.msra.mxu0 %v1357_v3  ;;  %1644 = vmatpush.msra.mxu2 %v12402_v10  ;;  %v76_v3 = vld [vmem:[%s21527_s1 + $0x1a8] sm:$0xff] }
  0x8e   :  { %1432 = vmatpush.msrb.mxu1 %v1431_v18  ;;  %1529 = vmatpush.msrb.mxu3 %v12411_v52  ;;  %v1694_v18 = vand.u32 4294901760, %v1693_v16  ;;  %v21918_v52 = vand.u32 4294901760, %v12497_v37  ;;  %v21575_v16 = vand.u32 4294901760, %v12539_v14 }
  0x8f   :  { %1533 = vmatmul.f32.vlgmr.msrb.gmra.mxu3 %v1336_v1  ;;  %1552 = vmatpush.msra.mxu0 %v21917_v45  ;;  %v21919_v1 = vand.u32 4294901760, %v12243_v55  ;;  %v12578_v45 = vand.u32 4294901760, %v76_v3  ;;  %v1717_v55 = vsub.f32 %v12522_v43, %v21572_v17 }
  0x90   :  { %1646 = vmatpush.msra.mxu2 %v12427_v24  ;;  %1689 = vmatpush.msra.mxu3 %v1688_v63  ;;  %v1711_v7 = vsub.f32 %v12497_v37, %v21918_v52  ;;  %v1706_v52 = vand.u32 4294901760, %v1705_v6  ;;  %v74_v63 = vld [vmem:[%s21527_s1 + $0x198] sm:$0xff]  ;;  %v21920_v6 = vand.u32 4294901760, %v12260_v62  ;;  %v73_v62 = vld [vmem:[%s21527_s1 + $0x190] sm:$0xff] }
  0x91   :  { %1438 = vmatpush.msrb.mxu1 %v1437_v21  ;;  %1556 = vmatpush.msra.mxu0 %v21919_v1  ;;  %v12591_v21 = vsub.f32 %v77_v61, %v12563_v48  ;;  %v12604_v61 = vsub.f32 %v76_v3, %v12578_v45  ;;  %v12606_v17 = vand.u32 4294901760, %v74_v63  ;;  %v1729_v3 = vsub.f32 %v12561_v58, %v21573_v22 }
  0x92   :  { %1440 = vmatmul.f32.vlgmr.msrb.gmra.mxu1 %v12341_v56  ;;  %1648 = vmatpush.msra.mxu2 %v12447_v47  ;;  %v1712_v1 = vand.u32 4294901760, %v1711_v7  ;;  %v21921_v7 = vand.u32 4294901760, %v12287_v40  ;;  %v72_v40 = vld [vmem:[%s21527_s1 + $0x188] sm:$0xff] }
  0x93   :  { %1607 = vmatpush.msra.mxu1 %v12174_v28  ;;  %1695 = vmatpush.msra.mxu3 %v1694_v18  ;;  %v1723_v28 = vsub.f32 %v12539_v14, %v21575_v16  ;;  %v21574_v18 = vand.u32 4294901760, %v12576_v51  ;;  %v12636_v22 = vsub.f32 %v74_v63, %v12606_v17 }
  0x94   :  { %1560 = vmatpush.msra.mxu0 %v21920_v6  ;;  %1650 = vmatpush.msra.mxu2 %v12455_v8  ;;  %v12620_v6 = vsub.f32 %v75_v29, %v12593_v26 }
  0x95   :  { %1609 = vmatpush.msra.mxu1 %v12184_v13  ;;  %1701 = vmatpush.msra.mxu3 %v1700_v9  ;;  %v1718_v13 = vand.u32 4294901760, %v1717_v55  ;;  %v1740_v9 = vand.u32 4294901760, %v12591_v21  ;;  %v1735_v29 = vsub.f32 %v12576_v51, %v21574_v18  ;;  %v1746_v55 = vand.u32 4294901760, %v12604_v61 }
  0x96   :  { %1564 = vmatpush.msra.mxu0 %v21921_v7  ;;  %1652 = vmatpush.msra.mxu2 %v12467_v53  ;;  %v21922_v7 = vand.u32 4294901760, %v12303_v33  ;;  %v71_v33 = vld [vmem:[%s21527_s1 + $0x180] sm:$0xff]  ;;  %v1752_v18 = vand.u32 4294901760, %v12620_v6 }
  0x97   :  { %1611 = vmatpush.msra.mxu1 %v12194_v23  ;;  %1707 = vmatpush.msra.mxu3 %v1706_v52  ;;  %v12628_v23 = vand.u32 4294901760, %v73_v62  ;;  %v1724_v52 = vand.u32 4294901760, %v1723_v28  ;;  %v1730_v28 = vand.u32 4294901760, %v1729_v3  ;;  %v1741_v63 = vsub.f32 %v12591_v21, %v1740_v9 }
  0x98   :  { %1568 = vmatpush.msra.mxu0 %v21922_v7  ;;  %1654 = vmatpush.msra.mxu2 %v12490_v2  ;;  %v21923_v7 = vand.u32 4294901760, %v12319_v11  ;;  %v21924_v11 = vand.u32 4294901760, %v12334_v0  ;;  %v12660_v16 = vand.u32 4294901760, %v71_v33  ;;  %v1758_v3 = vand.u32 4294901760, %v12636_v22 }
  0x99   :  { %1613 = vmatpush.msra.mxu1 %v12207_v15  ;;  %1713 = vmatpush.msra.mxu3 %v1712_v1  ;;  %v12644_v15 = vand.u32 4294901760, %v72_v40  ;;  %v12647_v1 = vand.u32 4294901760, %v12553_v27  ;;  %v21925_v0 = vand.u32 4294901760, %v12351_v12  ;;  %v21926_v12 = vand.u32 4294901760, %v12363_v57 }
  0x9a   :  { %1572 = vmatpush.msra.mxu0 %v21923_v7  ;;  %1656 = vmatpush.msra.mxu2 %v12508_v59  ;;  %v12658_v7 = vsub.f32 %v73_v62, %v12628_v23 }
  0x9b   :  { %1615 = vmatpush.msra.mxu1 %v12217_v49  ;;  %1719 = vmatpush.msra.mxu3 %v1718_v13  ;;  %v1736_v49 = vand.u32 4294901760, %v1735_v29  ;;  %v1747_v13 = vsub.f32 %v12604_v61, %v1746_v55  ;;  %v12671_v62 = vsub.f32 %v72_v40, %v12644_v15  ;;  %v12686_v29 = vsub.f32 %v71_v33, %v12660_v16 }
  0x9c   :  { %1576 = vmatpush.msra.mxu0 %v21924_v11  ;;  %1658 = vmatpush.msra.mxu2 %v12524_v38  ;;  %v12675_v11 = vsub.f32 %v12553_v27, %v12647_v1  ;;  %v1764_v40 = vand.u32 4294901760, %v12658_v7  ;;  %v1759_v27 = vsub.f32 %v12636_v22, %v1758_v3 }
  0x9d   :  { %1617 = vmatpush.msra.mxu1 %v12228_v20  ;;  %1725 = vmatpush.msra.mxu3 %v1724_v52  ;;  %v1742_v20 = vand.u32 4294901760, %v1741_v63  ;;  %v1753_v52 = vsub.f32 %v12620_v6, %v1752_v18  ;;  %v1770_v57 = vand.u32 4294901760, %v12671_v62 }
  0x9e   :  { %1580 = vmatpush.msra.mxu0 %v21925_v0  ;;  %1660 = vmatpush.msra.mxu2 %v12541_v30  ;;  %v1677_v63 = vand.u32 4294901760, %v12675_v11  ;;  %v21929_v0 = vand.u32 4294901760, %v12417_v54 }
  0x9f   :  { %1619 = vmatpush.msra.mxu1 %v12254_v5  ;;  %1731 = vmatpush.msra.mxu3 %v1730_v28  ;;  %v1748_v5 = vand.u32 4294901760, %v1747_v13  ;;  %v21927_v28 = vand.u32 4294901760, %v12379_v36  ;;  %v1754_v33 = vand.u32 4294901760, %v1753_v52  ;;  %v1765_v36 = vsub.f32 %v12658_v7, %v1764_v40 }
  0xa0   :  { %1584 = vmatpush.msra.mxu0 %v21926_v12  ;;  %1662 = vmatpush.msra.mxu2 %v12563_v48  ;;  %v1760_v13 = vand.u32 4294901760, %v1759_v27 }
  0xa1   :  { %1621 = vmatpush.msra.mxu1 %v12270_v4  ;;  %1737 = vmatpush.msra.mxu3 %v1736_v49  ;;  %v21928_v4 = vand.u32 4294901760, %v12397_v25  ;;  %v1776_v49 = vand.u32 4294901760, %v12686_v29  ;;  %v1678_v25 = vsub.f32 %v12675_v11, %v1677_v63  ;;  %v1766_v54 = vand.u32 4294901760, %v1765_v36 }
  0xa2   :  { %1588 = vmatpush.msra.mxu0 %v21927_v28  ;;  %1664 = vmatpush.msra.mxu2 %v12578_v45 }
  0xa3   :  { %1623 = vmatpush.msra.mxu1 %v12284_v46  ;;  %1743 = vmatpush.msra.mxu3 %v1742_v20  ;;  %v1771_v46 = vsub.f32 %v12671_v62, %v1770_v57  ;;  %v1777_v20 = vsub.f32 %v12686_v29, %v1776_v49 }
  0xa4   :  { %1592 = vmatpush.msra.mxu0 %v21928_v4  ;;  %1666 = vmatpush.msra.mxu2 %v12593_v26 }
  0xa5   :  { %1625 = vmatpush.msra.mxu1 %v12300_v19  ;;  %1749 = vmatpush.msra.mxu3 %v1748_v5  ;;  %v21930_v19 = vand.u32 4294901760, %v12445_v42  ;;  %v1772_v52 = vand.u32 4294901760, %v1771_v46  ;;  %v1778_v42 = vand.u32 4294901760, %v1777_v20  ;;  %v93_v5 = vld [vmem:[%s21527_s1 + $0x230] sm:$0xff]  ;;  %v90_v20 = vld [vmem:[%s21527_s1 + $0x218] sm:$0xff] }
  0xa6   :  { %1596 = vmatpush.msra.mxu0 %v21929_v0  ;;  %1668 = vmatpush.msra.mxu2 %v12606_v17  ;;  %v91_v0 = vld [vmem:[%s21527_s1 + $0x220] sm:$0xff] }
  0xa7   :  { %1627 = vmatpush.msra.mxu1 %v12315_v41  ;;  %1755 = vmatpush.msra.mxu3 %v1754_v33  ;;  %v1679_v41 = vand.u32 4294901760, %v1678_v25 }
  0xa8   :  { %1600 = vmatpush.msra.mxu0 %v21930_v19  ;;  %1670 = vmatpush.msra.mxu2 %v12628_v23 }
  0xa9   :  { %1629 = vmatpush.msra.mxu1 %v12330_v50  ;;  %1761 = vmatpush.msra.mxu3 %v1760_v13  ;;  %v21931_v50 = vand.u32 4294901760, %v12438_v35 }
  0xaa   :  { %1602 = vmatmul.f32.vlgmr.msra.gmra.mxu0 %v12341_v56  ;;  %1672 = vmatpush.msra.mxu2 %v12644_v15 }
  0xab   :  { %1787 = vmatpush.msrb.mxu0 %v12438_v35  ;;  %1631 = vmatpush.msra.mxu1 %v12347_v39  ;;  %v21932_v39 = vand.u32 4294901760, %v12462_v44  ;;  %v21934_v35 = vand.u32 4294901760, %v12475_v31 }
  0xac   :  { %1767 = vmatpush.msra.mxu3 %v1766_v54  ;;  %1674 = vmatpush.msra.mxu2 %v12660_v16 }
  0xad   :  { %1790 = vmatpush.msrb.mxu0 %v12462_v44  ;;  %1633 = vmatpush.msra.mxu1 %v12359_v32  ;;  %v21933_v32 = vld [vmem:[#allocation5_spill] sm:$0xff]  ;;  %v21938_v44 = vand.u32 4294901760, %v12539_v14 }
  0xae   :  { %1773 = vmatpush.msra.mxu3 %v1772_v52  ;;  %1680 = vmatmul.f32.vlgmr.msra.gmra.mxu2 %v1679_v41  ;;  %v12946_v41 = vand.u32 4294901760, %v91_v0 }
  0xaf   :  { %1793 = vmatpush.msrb.mxu0 %v12475_v31  ;;  %1881 = vmatpush.msrb.mxu2 %v21931_v50  ;;  %v21940_v31 = vand.u32 4294901760, %v12576_v51 }
  0xb0   :  { %1635 = vmatpush.msra.mxu1 %v12386_v60  ;;  %1779 = vmatpush.msra.mxu3 %v1778_v42  ;;  %v21935_v60 = vand.u32 4294901760, %v12483_v34 }
  0xb1   :  { %1781 = vmatmul.f32.vlgmr.msra.gmra.mxu3 %v12647_v1  ;;  %1796 = vmatpush.msrb.mxu0 %v12483_v34  ;;  %v16_v34 = vld [vmem:[%s21526_s0 + $0x8] sm:$0xff] }
  0xb2   :  { %1885 = vmatpush.msrb.mxu2 %v21932_v39  ;;  %1948 = vmatpush.msrb.mxu3 %v12402_v10  ;;  %549 = vst [vmem:[#allocation1 + $0x20] ss:$4 sm:$0xff] %v16_v34 }
  0xb3   :  { %1637 = vmatpush.msra.mxu1 %v21933_v32  ;;  %1799 = vmatpush.msrb.mxu0 %v12497_v37  ;;  %v89_v32 = vld [vmem:[%s21527_s1 + $0x210] sm:$0xff] }
  0xb4   :  { %1639 = vmatmul.f32.vlgmr.msra.gmra.mxu1 %v12341_v56  ;;  %1889 = vmatpush.msrb.mxu2 %v21934_v35  ;;  %v21936_v56 = vand.u32 4294901760, %v12497_v37  ;;  %v99_v37 = vld [vmem:[%s21527_s1 + $0x260] sm:$0xff] }
  0xb5   :  { %1840 = vmatpush.msrb.mxu1 %v12402_v10  ;;  %1950 = vmatpush.msrb.mxu3 %v12427_v24  ;;  %v21937_v10 = vand.u32 4294901760, %v12522_v43 }
  0xb6   :  { %1802 = vmatpush.msrb.mxu0 %v12522_v43  ;;  %1893 = vmatpush.msrb.mxu2 %v21935_v60  ;;  %v98_v43 = vld [vmem:[%s21527_s1 + $0x258] sm:$0xff] }
  0xb7   :  { %1842 = vmatpush.msrb.mxu1 %v12427_v24  ;;  %1952 = vmatpush.msrb.mxu3 %v12447_v47 }
  0xb8   :  { %1805 = vmatpush.msrb.mxu0 %v12539_v14  ;;  %1897 = vmatpush.msrb.mxu2 %v21936_v56  ;;  %v12963_v56 = vand.u32 4294901760, %v90_v20 }
  0xb9   :  { %1844 = vmatpush.msrb.mxu1 %v12447_v47  ;;  %1954 = vmatpush.msrb.mxu3 %v12455_v8  ;;  %v21939_v47 = vand.u32 4294901760, %v12561_v58 }
  0xba   :  { %1808 = vmatpush.msrb.mxu0 %v12561_v58  ;;  %1901 = vmatpush.msrb.mxu2 %v21937_v10 }
  0xbb   :  { %1846 = vmatpush.msrb.mxu1 %v12455_v8  ;;  %1956 = vmatpush.msrb.mxu3 %v12467_v53 }
  0xbc   :  { %1811 = vmatpush.msrb.mxu0 %v12576_v51  ;;  %1905 = vmatpush.msrb.mxu2 %v21938_v44  ;;  %v12834_v51 = vand.u32 4294901760, %v98_v43 }
  0xbd   :  { %1848 = vmatpush.msrb.mxu1 %v12467_v53  ;;  %1958 = vmatpush.msrb.mxu3 %v12490_v2  ;;  %v102_v53 = vld [vmem:[%s21527_s1 + $0x278] sm:$0xff] }
  0xbe   :  { %1814 = vmatpush.msrb.mxu0 %v12591_v21  ;;  %1909 = vmatpush.msrb.mxu2 %v21939_v47  ;;  %v12790_v58 = vand.u32 4294901760, %v102_v53 }
  0xbf   :  { %1850 = vmatpush.msrb.mxu1 %v12490_v2  ;;  %1960 = vmatpush.msrb.mxu3 %v12508_v59  ;;  %v101_v2 = vld [vmem:[%s21527_s1 + $0x270] sm:$0xff] }
  0xc0   :  { %1817 = vmatpush.msrb.mxu0 %v12604_v61  ;;  %1913 = vmatpush.msrb.mxu2 %v21940_v31  ;;  %v12800_v24 = vand.u32 4294901760, %v101_v2  ;;  %v12975_v31 = vand.u32 4294901760, %v89_v32 }
  0xc1   :  { %1852 = vmatpush.msrb.mxu1 %v12508_v59  ;;  %1962 = vmatpush.msrb.mxu3 %v12524_v38  ;;  %v100_v59 = vld [vmem:[%s21527_s1 + $0x268] sm:$0xff] }
  0xc2   :  { %1820 = vmatpush.msrb.mxu0 %v12620_v6  ;;  %1917 = vmatpush.msrb.mxu2 %v1740_v9  ;;  %v12810_v8 = vand.u32 4294901760, %v100_v59  ;;  %v12826_v14 = vsub.f32 %v101_v2, %v12800_v24  ;;  %v12860_v9 = vsub.f32 %v98_v43, %v12834_v51  ;;  %v95_v6 = vld [vmem:[%s21527_s1 + $0x240] sm:$0xff]  ;;  %v12979_v2 = vsub.f32 %v91_v0, %v12946_v41 }
  0xc3   :  { %1854 = vmatpush.msrb.mxu1 %v12524_v38  ;;  %1964 = vmatpush.msrb.mxu3 %v12541_v30  ;;  %v12813_v38 = vsub.f32 %v102_v53, %v12790_v58  ;;  %v12886_v12 = vand.u32 4294901760, %v95_v6 }
  0xc4   :  { %1823 = vmatpush.msrb.mxu0 %v12636_v22  ;;  %1921 = vmatpush.msrb.mxu2 %v1746_v55  ;;  %v12840_v22 = vsub.f32 %v100_v59, %v12810_v8  ;;  %v88_v59 = vld [vmem:[%s21527_s1 + $0x208] sm:$0xff] }
  0xc5   :  { %1856 = vmatpush.msrb.mxu1 %v12541_v30  ;;  %1966 = vmatpush.msrb.mxu3 %v12563_v48  ;;  %v97_v30 = vld [vmem:[%s21527_s1 + $0x250] sm:$0xff]  ;;  %v12919_v13 = vsub.f32 %v95_v6, %v12886_v12  ;;  %v12995_v6 = vsub.f32 %v90_v20, %v12963_v56 }
  0xc6   :  { %1826 = vmatpush.msrb.mxu0 %v12658_v7  ;;  %1925 = vmatpush.msrb.mxu2 %v1752_v18  ;;  %v12845_v21 = vand.u32 4294901760, %v97_v30  ;;  %v96_v18 = vld [vmem:[%s21527_s1 + $0x248] sm:$0xff]  ;;  %v2039_v7 = vand.u32 4294901760, %v12840_v22 }
  0xc7   :  { %1858 = vmatpush.msrb.mxu1 %v12563_v48  ;;  %1968 = vmatpush.msrb.mxu3 %v12578_v45  ;;  %v12823_v48 = vand.u32 4294901760, %v99_v37  ;;  %v12870_v55 = vand.u32 4294901760, %v96_v18  ;;  %v21581_v42 = vand.u32 4294901760, %v12919_v13 }
  0xc8   :  { %1829 = vmatpush.msrb.mxu0 %v12671_v62  ;;  %1929 = vmatpush.msrb.mxu2 %v1758_v3  ;;  %v12876_v3 = vsub.f32 %v97_v30, %v12845_v21  ;;  %v94_v62 = vld [vmem:[%s21527_s1 + $0x238] sm:$0xff]  ;;  %v2040_v28 = vsub.f32 %v12840_v22, %v2039_v7 }
  0xc9   :  { %1860 = vmatpush.msrb.mxu1 %v12578_v45  ;;  %1970 = vmatpush.msrb.mxu3 %v12593_v26  ;;  %v2027_v45 = vand.u32 4294901760, %v12813_v38  ;;  %v12854_v61 = vsub.f32 %v99_v37, %v12823_v48  ;;  %v2070_v47 = vsub.f32 %v12919_v13, %v21581_v42 }
  0xca   :  { %1832 = vmatpush.msrb.mxu0 %v12686_v29  ;;  %1933 = vmatpush.msrb.mxu2 %v1764_v40  ;;  %v21586_v29 = vand.u32 4294901760, %v12860_v9  ;;  %v21584_v33 = vand.u32 4294901760, %v12876_v3  ;;  %v2041_v46 = vand.u32 4294901760, %v2040_v28  ;;  %v21576_v28 = vand.u32 4294901760, %v12979_v2 }
  0xcb   :  { %1862 = vmatpush.msrb.mxu1 %v12593_v26  ;;  %1972 = vmatpush.msrb.mxu3 %v12606_v17  ;;  %v2033_v26 = vand.u32 4294901760, %v12826_v14  ;;  %v21589_v40 = vand.u32 4294901760, %v12854_v61 }
  0xcc   :  { %1835 = vmatmul.f32.vlgmr.msrb.gmra.mxu0 %v12675_v11  ;;  %1937 = vmatpush.msrb.mxu2 %v1770_v57  ;;  %v12900_v57 = vand.u32 4294901760, %v94_v62  ;;  %v2058_v54 = vsub.f32 %v12876_v3, %v21584_v33 }
  0xcd   :  { %1985 = vmatpush.msra.mxu0 %v12790_v58  ;;  %1864 = vmatpush.msrb.mxu1 %v12606_v17  ;;  %v2028_v17 = vsub.f32 %v12813_v38, %v2027_v45  ;;  %v2046_v36 = vsub.f32 %v12854_v61, %v21589_v40 }
  0xce   :  { %1974 = vmatpush.msrb.mxu3 %v12628_v23  ;;  %1941 = vmatpush.msrb.mxu2 %v1776_v49  ;;  %v12916_v49 = vand.u32 4294901760, %v93_v5  ;;  %v12935_v11 = vsub.f32 %v94_v62, %v12900_v57  ;;  %v2059_v44 = vand.u32 4294901760, %v2058_v54  ;;  %v13002_v62 = vand.u32 4294901760, %v88_v59 }
  0xcf   :  { %1987 = vmatpush.msra.mxu0 %v12800_v24  ;;  %1866 = vmatpush.msrb.mxu1 %v12628_v23  ;;  %v2034_v23 = vsub.f32 %v12826_v14, %v2033_v26  ;;  %v2029_v27 = vand.u32 4294901760, %v2028_v17  ;;  %v2047_v52 = vand.u32 4294901760, %v2046_v36  ;;  %v118_v17 = vld [vmem:[%s21527_s1 + $0x2f8] sm:$0xff]  ;;  %v21578_v54 = vand.u32 4294901760, %v12995_v6 }
  0xd0   :  { %1976 = vmatpush.msrb.mxu3 %v12644_v15  ;;  %1943 = vmatmul.f32.vlgmr.msrb.gmra.mxu2 %v12647_v1  ;;  %v12950_v50 = vsub.f32 %v93_v5, %v12916_v49  ;;  %v21580_v10 = vand.u32 4294901760, %v12935_v11  ;;  %v2071_v5 = vand.u32 4294901760, %v2070_v47  ;;  %v13018_v36 = vand.u32 4294901760, %v118_v17  ;;  %v115_v47 = vld [vmem:[%s21527_s1 + $0x2e0] sm:$0xff] }
  0xd1   :  { %1989 = vmatpush.msra.mxu0 %v12810_v8  ;;  %2128 = vmatpush.msra.mxu2 %v12813_v38  ;;  %v2035_v4 = vand.u32 4294901760, %v2034_v23  ;;  %v87_v23 = vld [vmem:[%s21527_s1 + $0x200] sm:$0xff]  ;;  %v13033_v20 = vsub.f32 %v88_v59, %v13002_v62  ;;  %v110_v38 = vld [vmem:[%s21527_s1 + $0x2b8] sm:$0xff] }
  0xd2   :  { %1868 = vmatpush.msrb.mxu1 %v12644_v15  ;;  %1978 = vmatpush.msrb.mxu3 %v12660_v16  ;;  %v12903_v15 = vsub.f32 %v96_v18, %v12870_v55  ;;  %v21579_v53 = vand.u32 4294901760, %v12950_v50  ;;  %v2076_v30 = vsub.f32 %v12935_v11, %v21580_v10 }
  0xd3   :  { %1980 = vmatmul.f32.vlgmr.msrb.gmra.mxu3 %v12647_v1  ;;  %1991 = vmatpush.msra.mxu0 %v12823_v48  ;;  %v92_v1 = vld [vmem:[%s21527_s1 + $0x228] sm:$0xff] }
  0xd4   :  { %2131 = vmatpush.msra.mxu2 %v12826_v14  ;;  %2181 = vmatpush.msra.mxu3 %v12790_v58  ;;  %v12931_v25 = vand.u32 4294901760, %v92_v1  ;;  %v21583_v19 = vand.u32 4294901760, %v12903_v15  ;;  %v2077_v0 = vand.u32 4294901760, %v2076_v30  ;;  %v109_v14 = vld [vmem:[%s21527_s1 + $0x2b0] sm:$0xff] }
  0xd5   :  { %1870 = vmatpush.msrb.mxu1 %v12660_v16  ;;  %1993 = vmatpush.msra.mxu0 %v12834_v51  ;;  %v2052_v16 = vsub.f32 %v12860_v9, %v21586_v29 }
  0xd6   :  { %1874 = vmatmul.f32.vlgmr.msrb.gmra.mxu1 %v1677_v63  ;;  %2134 = vmatpush.msra.mxu2 %v12840_v22  ;;  %v554_v63 = vld.sshfl [vmem:[#allocation1 + $0x20] sm:$0xff pattern:$0x73625140]  ;;  %v2064_v60 = vsub.f32 %v12903_v15, %v21583_v19  ;;  %v12967_v34 = vsub.f32 %v92_v1, %v12931_v25  ;;  %v13013_v1 = vsub.f32 %v89_v32, %v12975_v31 }
  0xd7   :  { %2030 = vmatpush.msra.mxu1 %v2029_v27  ;;  %2183 = vmatpush.msra.mxu3 %v12800_v24  ;;  %v2053_v39 = vand.u32 4294901760, %v2052_v16  ;;  %v12957_v35 = vand.u32 4294901760, %v554_v63  ;;  %v2082_v27 = vsub.f32 %v12950_v50, %v21579_v53  ;;  %v117_v16 = vld [vmem:[%s21527_s1 + $0x2f0] sm:$0xff]  ;;  %v2094_v32 = vsub.f32 %v12979_v2, %v21576_v28 }
  0xd8   :  { %1995 = vmatpush.msra.mxu0 %v12845_v21  ;;  %2137 = vmatpush.msra.mxu2 %v12854_v61  ;;  %v2065_v43 = vand.u32 4294901760, %v2064_v60  ;;  %v21577_v18 = vand.u32 4294901760, %v12967_v34  ;;  %v21582_v60 = vand.u32 4294901760, %v13013_v1 }
  0xd9   :  { %2036 = vmatpush.msra.mxu1 %v2035_v4  ;;  %2185 = vmatpush.msra.mxu3 %v12810_v8  ;;  %v12987_v37 = vsub.f32 %v554_v63, %v12957_v35  ;;  %v13027_v63 = vand.u32 4294901760, %v87_v23 }
  0xda   :  { %1997 = vmatpush.msra.mxu0 %v12870_v55  ;;  %2140 = vmatpush.msra.mxu2 %v12860_v9 }
  0xdb   :  { %2042 = vmatpush.msra.mxu1 %v2041_v46  ;;  %2187 = vmatpush.msra.mxu3 %v12823_v48  ;;  %v2018_v4 = vand.u32 4294901760, %v12987_v37  ;;  %v2088_v46 = vsub.f32 %v12967_v34, %v21577_v18  ;;  %v114_v18 = vld [vmem:[%s21527_s1 + $0x2d8] sm:$0xff] }
  0xdc   :  { %1999 = vmatpush.msra.mxu0 %v12886_v12  ;;  %2143 = vmatpush.msra.mxu2 %v12876_v3  ;;  %v13083_v42 = vand.u32 4294901760, %v114_v18 }
  0xdd   :  { %2048 = vmatpush.msra.mxu1 %v2047_v52  ;;  %2189 = vmatpush.msra.mxu3 %v12834_v51  ;;  %v116_v52 = vld [vmem:[%s21527_s1 + $0x2e8] sm:$0xff]  ;;  %v2019_v59 = vsub.f32 %v12987_v37, %v2018_v4  ;;  %v2089_v30 = vand.u32 4294901760, %v2088_v46  ;;  %v2095_v46 = vand.u32 4294901760, %v2094_v32 }
  0xde   :  { %2001 = vmatpush.msra.mxu0 %v12900_v57  ;;  %2146 = vmatpush.msra.mxu2 %v12903_v15  ;;  %v13063_v28 = vand.u32 4294901760, %v116_v52 }
  0xdf   :  { %2054 = vmatpush.msra.mxu1 %v2053_v39  ;;  %2191 = vmatpush.msra.mxu3 %v12845_v21  ;;  %v2083_v39 = vand.u32 4294901760, %v2082_v27  ;;  %v13061_v27 = vsub.f32 %v87_v23, %v13027_v63  ;;  %v2106_v23 = vsub.f32 %v13013_v1, %v21582_v60  ;;  %v2020_v53 = vand.u32 4294901760, %v2019_v59 }
  0xe0   :  { %2003 = vmatpush.msra.mxu0 %v12916_v49  ;;  %2149 = vmatpush.msra.mxu2 %v12919_v13  ;;  %v13091_v60 = vsub.f32 %v116_v52, %v13063_v28 }
  0xe1   :  { %2060 = vmatpush.msra.mxu1 %v2059_v44  ;;  %2193 = vmatpush.msra.mxu3 %v12870_v55  ;;  %v13043_v44 = vand.u32 4294901760, %v117_v16  ;;  %v2107_v52 = vand.u32 4294901760, %v2106_v23 }
  0xe2   :  { %2005 = vmatpush.msra.mxu0 %v12931_v25  ;;  %2152 = vmatpush.msra.mxu2 %v12935_v11  ;;  %v21590_v23 = vand.u32 4294901760, %v13091_v60 }
  0xe3   :  { %2066 = vmatpush.msra.mxu1 %v2065_v43  ;;  %2195 = vmatpush.msra.mxu3 %v12886_v12  ;;  %v13054_v43 = vsub.f32 %v118_v17, %v13018_v36  ;;  %v21585_v17 = vand.u32 4294901760, %v13033_v20 }
  0xe4   :  { %2007 = vmatpush.msra.mxu0 %v12946_v41  ;;  %2155 = vmatpush.msra.mxu2 %v12950_v50 }
  0xe5   :  { %2072 = vmatpush.msra.mxu1 %v2071_v5  ;;  %2197 = vmatpush.msra.mxu3 %v12900_v57  ;;  %v2100_v5 = vsub.f32 %v12995_v6, %v21578_v54  ;;  %v13078_v54 = vsub.f32 %v117_v16, %v13043_v44  ;;  %v21587_v10 = vand.u32 4294901760, %v13054_v43  ;;  %v21588_v16 = vand.u32 4294901760, %v13061_v27 }
  0xe6   :  { %2009 = vmatpush.msra.mxu0 %v12963_v56  ;;  %2158 = vmatpush.msra.mxu2 %v12967_v34  ;;  %v2112_v59 = vsub.f32 %v13033_v20, %v21585_v17  ;;  %v13113_v17 = vsub.f32 %v114_v18, %v13083_v42 }
  0xe7   :  { %2078 = vmatpush.msra.mxu1 %v2077_v0  ;;  %2199 = vmatpush.msra.mxu3 %v12916_v49  ;;  %v13071_v0 = vand.u32 4294901760, %v115_v47  ;;  %v2101_v32 = vand.u32 4294901760, %v2100_v5  ;;  %v21591_v5 = vand.u32 4294901760, %v13078_v54 }
  0xe8   :  { %2011 = vmatpush.msra.mxu0 %v12975_v31  ;;  %2161 = vmatpush.msra.mxu2 %v12979_v2  ;;  %v2113_v18 = vand.u32 4294901760, %v2112_v59  ;;  %v21593_v40 = vand.u32 4294901760, %v13113_v17 }
  0xe9   :  { %2084 = vmatpush.msra.mxu1 %v2083_v39  ;;  %2201 = vmatpush.msra.mxu3 %v12931_v25  ;;  %v113_v39 = vld [vmem:[%s21527_s1 + $0x2d0] sm:$0xff]  ;;  %v13099_v19 = vsub.f32 %v115_v47, %v13071_v0  ;;  %v2369_v47 = vsub.f32 %v13054_v43, %v21587_v10 }
  0xea   :  { %2013 = vmatpush.msra.mxu0 %v13002_v62  ;;  %2164 = vmatpush.msra.mxu2 %v12995_v6  ;;  %v13106_v33 = vand.u32 4294901760, %v113_v39 }
  0xeb   :  { %2090 = vmatpush.msra.mxu1 %v2089_v30  ;;  %2203 = vmatpush.msra.mxu3 %v12946_v41  ;;  %v112_v30 = vld [vmem:[%s21527_s1 + $0x2c8] sm:$0xff]  ;;  %v21592_v10 = vand.u32 4294901760, %v13099_v19  ;;  %v2370_v59 = vand.u32 4294901760, %v2369_v47  ;;  %v13157_v47 = vand.u32 4294901760, %v110_v38 }
  0xec   :  { %2015 = vmatpush.msra.mxu0 %v13027_v63  ;;  %2167 = vmatpush.msra.mxu2 %v13013_v1  ;;  %v13124_v29 = vand.u32 4294901760, %v112_v30 }
  0xed   :  { %2096 = vmatpush.msra.mxu1 %v2095_v46  ;;  %2205 = vmatpush.msra.mxu3 %v12963_v56  ;;  %v111_v46 = vld [vmem:[%s21527_s1 + $0x2c0] sm:$0xff]  ;;  %v2387_v22 = vsub.f32 %v13099_v19, %v21592_v10  ;;  %v2393_v10 = vsub.f32 %v13113_v17, %v21593_v40 }
  0xee   :  { %2021 = vmatmul.f32.vlgmr.msra.gmra.mxu0 %v2020_v53  ;;  %2170 = vmatpush.msra.mxu2 %v13033_v20  ;;  %v2118_v53 = vsub.f32 %v13061_v27, %v21588_v16  ;;  %v13140_v16 = vand.u32 4294901760, %v111_v46 }
  0xef   :  { %2222 = vmatpush.msrb.mxu0 %v2027_v45  ;;  %2102 = vmatpush.msra.mxu1 %v2101_v32  ;;  %v2375_v45 = vsub.f32 %v13078_v54, %v21591_v5  ;;  %v13138_v32 = vsub.f32 %v113_v39, %v13106_v33  ;;  %v2381_v39 = vsub.f32 %v13091_v60, %v21590_v23  ;;  %v13174_v5 = vand.u32 4294901760, %v109_v14 }
  0xf0   :  { %2207 = vmatpush.msra.mxu3 %v12975_v31  ;;  %2173 = vmatpush.msra.mxu2 %v13061_v27  ;;  %v2394_v40 = vand.u32 4294901760, %v2393_v10  ;;  %v21944_v10 = vand.u32 4294901760, %v12903_v15  ;;  %v104_v15 = vld [vmem:[%s21527_s1 + $0x288] sm:$0xff] }
  0xf1   :  { %2226 = vmatpush.msrb.mxu0 %v2033_v26  ;;  %2108 = vmatpush.msra.mxu1 %v2107_v52  ;;  %v2119_v26 = vand.u32 4294901760, %v2118_v53  ;;  %v13155_v52 = vsub.f32 %v112_v30, %v13124_v29  ;;  %v21941_v53 = vand.u32 4294901760, %v12854_v61  ;;  %v2376_v30 = vand.u32 4294901760, %v2375_v45  ;;  %v107_v61 = vld [vmem:[%s21527_s1 + $0x2a0] sm:$0xff] }
  0xf2   :  { %2209 = vmatpush.msra.mxu3 %v13002_v62  ;;  %2176 = vmatmul.f32.vlgmr.msra.gmra.mxu2 %v12987_v37  ;;  %v21594_v23 = vand.u32 4294901760, %v13138_v32  ;;  %v21942_v37 = vand.u32 4294901760, %v12860_v9  ;;  %v13187_v45 = vsub.f32 %v110_v38, %v13157_v47 }
  0xf3   :  { %2230 = vmatpush.msrb.mxu0 %v2039_v7  ;;  %2326 = vmatpush.msrb.mxu2 %v13018_v36  ;;  %v108_v7 = vld [vmem:[%s21527_s1 + $0x2a8] sm:$0xff] }
  0xf4   :  { %2114 = vmatpush.msra.mxu1 %v2113_v18  ;;  %2211 = vmatpush.msra.mxu3 %v13027_v63  ;;  %v13172_v18 = vsub.f32 %v111_v46, %v13140_v16  ;;  %v21595_v46 = vand.u32 4294901760, %v13155_v52  ;;  %v2399_v9 = vsub.f32 %v13138_v32, %v21594_v23 }
  0xf5   :  { %2215 = vmatmul.f32.vlgmr.msra.gmra.mxu3 %v2018_v4  ;;  %2234 = vmatpush.msrb.mxu0 %v21941_v53  ;;  %v2382_v4 = vand.u32 4294901760, %v2381_v39  ;;  %v13189_v53 = vand.u32 4294901760, %v108_v7  ;;  %v13202_v39 = vsub.f32 %v109_v14, %v13174_v5 }
  0xf6   :  { %2328 = vmatpush.msrb.mxu2 %v13043_v44  ;;  %2371 = vmatpush.msrb.mxu3 %v2370_v59  ;;  %v2388_v59 = vand.u32 4294901760, %v2387_v22  ;;  %v21596_v38 = vand.u32 4294901760, %v13172_v18  ;;  %v21943_v22 = vand.u32 4294901760, %v12876_v3  ;;  %v105_v3 = vld [vmem:[%s21527_s1 + $0x290] sm:$0xff] }
  0xf7   :  { %2120 = vmatpush.msra.mxu1 %v2119_v26  ;;  %2238 = vmatpush.msrb.mxu0 %v21942_v37  ;;  %v106_v26 = vld [vmem:[%s21527_s1 + $0x298] sm:$0xff]  ;;  %v13204_v37 = vand.u32 4294901760, %v107_v61  ;;  %v13215_v14 = vsub.f32 %v108_v7, %v13189_v53 }
  0xf8   :  { %2122 = vmatmul.f32.vlgmr.msra.gmra.mxu1 %v12957_v35  ;;  %2330 = vmatpush.msrb.mxu2 %v13063_v28  ;;  %v13217_v23 = vand.u32 4294901760, %v106_v26  ;;  %v2411_v7 = vsub.f32 %v13172_v18, %v21596_v38 }
  0xf9   :  { %2289 = vmatpush.msrb.mxu1 %v12790_v58  ;;  %2377 = vmatpush.msrb.mxu3 %v2376_v30  ;;  %v2405_v58 = vsub.f32 %v13155_v52, %v21595_v46  ;;  %v21597_v30 = vand.u32 4294901760, %v13187_v45  ;;  %v21945_v46 = vand.u32 4294901760, %v12919_v13  ;;  %v103_v13 = vld [vmem:[%s21527_s1 + $0x280] sm:$0xff] }
  0xfa   :  { %2242 = vmatpush.msrb.mxu0 %v21943_v22  ;;  %2332 = vmatpush.msrb.mxu2 %v13071_v0  ;;  %v13231_v22 = vsub.f32 %v107_v61, %v13204_v37  ;;  %v13247_v38 = vsub.f32 %v106_v26, %v13217_v23 }
  0xfb   :  { %2291 = vmatpush.msrb.mxu1 %v12800_v24  ;;  %2383 = vmatpush.msrb.mxu3 %v2382_v4  ;;  %v2400_v24 = vand.u32 4294901760, %v2399_v9  ;;  %v21598_v4 = vand.u32 4294901760, %v13202_v39  ;;  %v2417_v61 = vsub.f32 %v13187_v45, %v21597_v30  ;;  %v21947_v9 = vand.u32 4294901760, %v12950_v50 }
  0xfc   :  { %2246 = vmatpush.msrb.mxu0 %v21944_v10  ;;  %2334 = vmatpush.msrb.mxu2 %v13083_v42  ;;  %v555_v10 = vld.sshfl [vmem:[#allocation1 + $0x28] sm:$0xff pattern:$0x73625140]  ;;  %v2434_v30 = vand.u32 4294901760, %v13231_v22  ;;  %v21949_v50 = vand.u32 4294901760, %v12967_v34 }
  0xfd   :  { %2293 = vmatpush.msrb.mxu1 %v12810_v8  ;;  %2389 = vmatpush.msrb.mxu3 %v2388_v59  ;;  %v13239_v8 = vand.u32 4294901760, %v105_v3  ;;  %v2406_v59 = vand.u32 4294901760, %v2405_v58  ;;  %v2412_v58 = vand.u32 4294901760, %v2411_v7  ;;  %v2423_v26 = vsub.f32 %v13202_v39, %v21598_v4 }
  0xfe   :  { %2250 = vmatpush.msrb.mxu0 %v21945_v46  ;;  %2336 = vmatpush.msrb.mxu2 %v13106_v33  ;;  %v21946_v46 = vand.u32 4294901760, %v12935_v11  ;;  %v2440_v4 = vand.u32 4294901760, %v13247_v38 }
  0xff   :  { %2295 = vmatpush.msrb.mxu1 %v12823_v48  ;;  %2395 = vmatpush.msrb.mxu3 %v2394_v40  ;;  %v13255_v48 = vand.u32 4294901760, %v104_v15  ;;  %v13257_v40 = vand.u32 4294901760, %v555_v10  ;;  %v13268_v11 = vsub.f32 %v105_v3, %v13239_v8 }
 0x100   :  { %2254 = vmatpush.msrb.mxu0 %v21946_v46  ;;  %2338 = vmatpush.msrb.mxu2 %v13124_v29  ;;  %v13270_v46 = vand.u32 4294901760, %v103_v13 }
 0x101   :  { %2297 = vmatpush.msrb.mxu1 %v12834_v51  ;;  %2401 = vmatpush.msrb.mxu3 %v2400_v24  ;;  %v2418_v51 = vand.u32 4294901760, %v2417_v61  ;;  %v21948_v24 = vand.u32 4294901760, %v13215_v14  ;;  %v13281_v3 = vsub.f32 %v104_v15, %v13255_v48  ;;  %v21950_v61 = vand.u32 4294901760, %v12979_v2 }
 0x102   :  { %2258 = vmatpush.msrb.mxu0 %v21947_v9  ;;  %2340 = vmatpush.msrb.mxu2 %v13140_v16  ;;  %v13284_v9 = vsub.f32 %v555_v10, %v13257_v40  ;;  %v2446_v34 = vand.u32 4294901760, %v13268_v11  ;;  %v13295_v15 = vsub.f32 %v103_v13, %v13270_v46  ;;  %v2441_v10 = vsub.f32 %v13247_v38, %v2440_v4 }
 0x103   :  { %2299 = vmatpush.msrb.mxu1 %v12845_v21  ;;  %2407 = vmatpush.msrb.mxu3 %v2406_v59  ;;  %v2429_v7 = vsub.f32 %v13215_v14, %v21948_v24  ;;  %v2424_v21 = vand.u32 4294901760, %v2423_v26  ;;  %v2435_v59 = vsub.f32 %v13231_v22, %v2434_v30  ;;  %v2452_v2 = vand.u32 4294901760, %v13281_v3 }
 0x104   :  { %2262 = vmatpush.msrb.mxu0 %v21949_v50  ;;  %2342 = vmatpush.msrb.mxu2 %v13157_v47  ;;  %v2359_v26 = vand.u32 4294901760, %v13284_v9  ;;  %v2442_v24 = vand.u32 4294901760, %v2441_v10 }
 0x105   :  { %2301 = vmatpush.msrb.mxu1 %v12870_v55  ;;  %2413 = vmatpush.msrb.mxu3 %v2412_v58  ;;  %v2430_v55 = vand.u32 4294901760, %v2429_v7  ;;  %v21951_v58 = vand.u32 4294901760, %v12995_v6  ;;  %v2436_v13 = vand.u32 4294901760, %v2435_v59  ;;  %v2447_v6 = vsub.f32 %v13268_v11, %v2446_v34  ;;  %v126_v59 = vld [vmem:[%s21527_s1 + $0x338] sm:$0xff] }
 0x106   :  { %2266 = vmatpush.msrb.mxu0 %v21950_v61  ;;  %2344 = vmatpush.msrb.mxu2 %v13174_v5  ;;  %v21953_v7 = vand.u32 4294901760, %v13033_v20 }
 0x107   :  { %2303 = vmatpush.msrb.mxu1 %v12886_v12  ;;  %2419 = vmatpush.msrb.mxu3 %v2418_v51  ;;  %v21952_v12 = vand.u32 4294901760, %v13013_v1  ;;  %v2458_v51 = vand.u32 4294901760, %v13295_v15  ;;  %v2360_v1 = vsub.f32 %v13284_v9, %v2359_v26  ;;  %v2448_v20 = vand.u32 4294901760, %v2447_v6 }
 0x108   :  { %2270 = vmatpush.msrb.mxu0 %v21951_v58  ;;  %2346 = vmatpush.msrb.mxu2 %v13189_v53 }
 0x109   :  { %2305 = vmatpush.msrb.mxu1 %v12900_v57  ;;  %2425 = vmatpush.msrb.mxu3 %v2424_v21  ;;  %v2453_v57 = vsub.f32 %v13281_v3, %v2452_v2  ;;  %v2459_v50 = vsub.f32 %v13295_v15, %v2458_v51 }
 0x10a   :  { %2274 = vmatpush.msrb.mxu0 %v21952_v12  ;;  %2348 = vmatpush.msrb.mxu2 %v13204_v37 }
 0x10b   :  { %2307 = vmatpush.msrb.mxu1 %v12916_v49  ;;  %2431 = vmatpush.msrb.mxu3 %v2430_v55  ;;  %v21954_v49 = vand.u32 4294901760, %v13061_v27  ;;  %v2454_v21 = vand.u32 4294901760, %v2453_v57  ;;  %v2460_v27 = vand.u32 4294901760, %v2459_v50  ;;  %v125_v55 = vld [vmem:[%s21527_s1 + $0x330] sm:$0xff]  ;;  %v122_v50 = vld [vmem:[%s21527_s1 + $0x318] sm:$0xff] }
 0x10c   :  { %2278 = vmatpush.msrb.mxu0 %v21953_v7  ;;  %2350 = vmatpush.msrb.mxu2 %v13217_v23  ;;  %v123_v7 = vld [vmem:[%s21527_s1 + $0x320] sm:$0xff] }
 0x10d   :  { %2309 = vmatpush.msrb.mxu1 %v12931_v25  ;;  %2437 = vmatpush.msrb.mxu3 %v2436_v13  ;;  %v2361_v25 = vand.u32 4294901760, %v2360_v1 }
 0x10e   :  { %2282 = vmatpush.msrb.mxu0 %v21954_v49  ;;  %2352 = vmatpush.msrb.mxu2 %v13239_v8 }
 0x10f   :  { %2311 = vmatpush.msrb.mxu1 %v12946_v41  ;;  %2443 = vmatpush.msrb.mxu3 %v2442_v24  ;;  %v21955_v41 = vand.u32 4294901760, %v13054_v43 }
 0x110   :  { %2284 = vmatmul.f32.vlgmr.msrb.gmra.mxu0 %v12957_v35  ;;  %2354 = vmatpush.msrb.mxu2 %v13255_v48 }
 0x111   :  { %2469 = vmatpush.msra.mxu0 %v13054_v43  ;;  %2313 = vmatpush.msrb.mxu1 %v12963_v56  ;;  %v21956_v56 = vand.u32 4294901760, %v13078_v54 }
 0x112   :  { %2449 = vmatpush.msrb.mxu3 %v2448_v20  ;;  %2356 = vmatpush.msrb.mxu2 %v13270_v46 }
 0x113   :  { %2472 = vmatpush.msra.mxu0 %v13078_v54  ;;  %2315 = vmatpush.msrb.mxu1 %v12975_v31  ;;  %v21957_v31 = vand.u32 4294901760, %v13091_v60  ;;  %v21964_v54 = vand.u32 4294901760, %v13202_v39 }
 0x114   :  { %2455 = vmatpush.msrb.mxu3 %v2454_v21  ;;  %2362 = vmatmul.f32.vlgmr.msrb.gmra.mxu2 %v2361_v25  ;;  %v13552_v25 = vand.u32 4294901760, %v123_v7 }
 0x115   :  { %2475 = vmatpush.msra.mxu0 %v13091_v60  ;;  %2563 = vmatpush.msra.mxu2 %v21955_v41 }
 0x116   :  { %2317 = vmatpush.msrb.mxu1 %v13002_v62  ;;  %2461 = vmatpush.msrb.mxu3 %v2460_v27  ;;  %v21958_v62 = vand.u32 4294901760, %v13099_v19 }
 0x117   :  { %2463 = vmatmul.f32.vlgmr.msrb.gmra.mxu3 %v13257_v40  ;;  %2478 = vmatpush.msra.mxu0 %v13099_v19  ;;  %v21961_v19 = vand.u32 4294901760, %v13155_v52 }
 0x118   :  { %2567 = vmatpush.msra.mxu2 %v21956_v56  ;;  %2630 = vmatpush.msra.mxu3 %v13018_v36 }
 0x119   :  { %2319 = vmatpush.msrb.mxu1 %v13027_v63  ;;  %2481 = vmatpush.msra.mxu0 %v13113_v17  ;;  %v21963_v63 = vand.u32 4294901760, %v13187_v45 }
 0x11a   :  { %2321 = vmatmul.f32.vlgmr.msrb.gmra.mxu1 %v12957_v35  ;;  %2571 = vmatpush.msra.mxu2 %v21957_v31  ;;  %v21959_v35 = vand.u32 4294901760, %v13113_v17  ;;  %v131_v17 = vld [vmem:[%s21527_s1 + $0x360] sm:$0xff]  ;;  %v121_v31 = vld [vmem:[%s21527_s1 + $0x310] sm:$0xff] }
 0x11b   :  { %2522 = vmatpush.msra.mxu1 %v13018_v36  ;;  %2632 = vmatpush.msra.mxu3 %v13043_v44  ;;  %v21960_v36 = vand.u32 4294901760, %v13138_v32 }
 0x11c   :  { %2484 = vmatpush.msra.mxu0 %v13138_v32  ;;  %2575 = vmatpush.msra.mxu2 %v21958_v62  ;;  %v130_v32 = vld [vmem:[%s21527_s1 + $0x358] sm:$0xff] }
 0x11d   :  { %2524 = vmatpush.msra.mxu1 %v13043_v44  ;;  %2634 = vmatpush.msra.mxu3 %v13063_v28  ;;  %v132_v44 = vld [vmem:[%s21527_s1 + $0x368] sm:$0xff] }
 0x11e   :  { %2487 = vmatpush.msra.mxu0 %v13155_v52  ;;  %2579 = vmatpush.msra.mxu2 %v21959_v35 }
 0x11f   :  { %2526 = vmatpush.msra.mxu1 %v13063_v28  ;;  %2636 = vmatpush.msra.mxu3 %v13071_v0  ;;  %v21962_v28 = vand.u32 4294901760, %v13172_v18 }
 0x120   :  { %2490 = vmatpush.msra.mxu0 %v13172_v18  ;;  %2583 = vmatpush.msra.mxu2 %v21960_v36  ;;  %v13440_v18 = vand.u32 4294901760, %v130_v32  ;;  %v13569_v36 = vand.u32 4294901760, %v122_v50 }
 0x121   :  { %2528 = vmatpush.msra.mxu1 %v13071_v0  ;;  %2638 = vmatpush.msra.mxu3 %v13083_v42  ;;  %v13416_v0 = vand.u32 4294901760, %v132_v44 }
 0x122   :  { %2493 = vmatpush.msra.mxu0 %v13187_v45  ;;  %2587 = vmatpush.msra.mxu2 %v21961_v19 }
 0x123   :  { %2530 = vmatpush.msra.mxu1 %v13083_v42  ;;  %2640 = vmatpush.msra.mxu3 %v13106_v33  ;;  %v134_v42 = vld [vmem:[%s21527_s1 + $0x378] sm:$0xff] }
 0x124   :  { %2496 = vmatpush.msra.mxu0 %v13202_v39  ;;  %2591 = vmatpush.msra.mxu2 %v21962_v28  ;;  %v13396_v60 = vand.u32 4294901760, %v134_v42  ;;  %v128_v39 = vld [vmem:[%s21527_s1 + $0x348] sm:$0xff] }
 0x125   :  { %2532 = vmatpush.msra.mxu1 %v13106_v33  ;;  %2642 = vmatpush.msra.mxu3 %v13124_v29  ;;  %v133_v33 = vld [vmem:[%s21527_s1 + $0x370] sm:$0xff] }
 0x126   :  { %2499 = vmatpush.msra.mxu0 %v13215_v14  ;;  %2595 = vmatpush.msra.mxu2 %v21963_v63  ;;  %v13406_v43 = vand.u32 4294901760, %v133_v33 }
 0x127   :  { %2534 = vmatpush.msra.mxu1 %v13124_v29  ;;  %2644 = vmatpush.msra.mxu3 %v13140_v16  ;;  %v21965_v29 = vand.u32 4294901760, %v13215_v14  ;;  %v13466_v14 = vsub.f32 %v130_v32, %v13440_v18 }
 0x128   :  { %2502 = vmatpush.msra.mxu0 %v13231_v22  ;;  %2599 = vmatpush.msra.mxu2 %v21964_v54  ;;  %v13432_v52 = vsub.f32 %v133_v33, %v13406_v43  ;;  %v13476_v22 = vand.u32 4294901760, %v128_v39  ;;  %v13581_v54 = vand.u32 4294901760, %v121_v31 }
 0x129   :  { %2536 = vmatpush.msra.mxu1 %v13140_v16  ;;  %2646 = vmatpush.msra.mxu3 %v13157_v47  ;;  %v13419_v16 = vsub.f32 %v134_v42, %v13396_v60 }
 0x12a   :  { %2505 = vmatpush.msra.mxu0 %v13247_v38  ;;  %2603 = vmatpush.msra.mxu2 %v21965_v29  ;;  %v13585_v29 = vsub.f32 %v123_v7, %v13552_v25 }
 0x12b   :  { %2538 = vmatpush.msra.mxu1 %v13157_v47  ;;  %2648 = vmatpush.msra.mxu3 %v13174_v5  ;;  %v129_v47 = vld [vmem:[%s21527_s1 + $0x350] sm:$0xff]  ;;  %v2709_v45 = vand.u32 4294901760, %v13419_v16 }
 0x12c   :  { %2508 = vmatpush.msra.mxu0 %v13268_v11  ;;  %2607 = vmatpush.msra.mxu2 %v2434_v30  ;;  %v13451_v38 = vand.u32 4294901760, %v129_v47 }
 0x12d   :  { %2540 = vmatpush.msra.mxu1 %v13174_v5  ;;  %2650 = vmatpush.msra.mxu3 %v13189_v53  ;;  %v13429_v5 = vand.u32 4294901760, %v131_v17 }
 0x12e   :  { %2511 = vmatpush.msra.mxu0 %v13281_v3  ;;  %2611 = vmatpush.msra.mxu2 %v2440_v4  ;;  %v127_v4 = vld [vmem:[%s21527_s1 + $0x340] sm:$0xff]  ;;  %v13482_v3 = vsub.f32 %v129_v47, %v13451_v38 }
 0x12f   :  { %2542 = vmatpush.msra.mxu1 %v13189_v53  ;;  %2652 = vmatpush.msra.mxu3 %v13204_v37  ;;  %v13446_v53 = vsub.f32 %v132_v44, %v13416_v0  ;;  %v13460_v30 = vsub.f32 %v131_v17, %v13429_v5  ;;  %v13492_v61 = vand.u32 4294901760, %v127_v4  ;;  %v120_v44 = vld [vmem:[%s21527_s1 + $0x308] sm:$0xff] }
 0x130   :  { %2514 = vmatpush.msra.mxu0 %v13295_v15  ;;  %2615 = vmatpush.msra.mxu2 %v2446_v34  ;;  %v21609_v15 = vand.u32 4294901760, %v13466_v14  ;;  %v21607_v13 = vand.u32 4294901760, %v13482_v3 }
 0x131   :  { %2544 = vmatpush.msra.mxu1 %v13204_v37  ;;  %2654 = vmatpush.msra.mxu3 %v13217_v23  ;;  %v2715_v37 = vand.u32 4294901760, %v13432_v52  ;;  %v2721_v11 = vand.u32 4294901760, %v13446_v53  ;;  %v21612_v34 = vand.u32 4294901760, %v13460_v30  ;;  %v13525_v24 = vsub.f32 %v127_v4, %v13492_v61 }
 0x132   :  { %2517 = vmatmul.f32.vlgmr.msra.gmra.mxu0 %v13284_v9  ;;  %2619 = vmatpush.msra.mxu2 %v2452_v2  ;;  %v13506_v2 = vand.u32 4294901760, %v126_v59  ;;  %v2740_v20 = vsub.f32 %v13482_v3, %v21607_v13  ;;  %v13601_v4 = vsub.f32 %v122_v50, %v13569_v36 }
 0x133   :  { %2667 = vmatpush.msrb.mxu0 %v13396_v60  ;;  %2546 = vmatpush.msra.mxu1 %v13217_v23  ;;  %v2710_v23 = vsub.f32 %v13419_v16, %v2709_v45  ;;  %v2722_v58 = vsub.f32 %v13446_v53, %v2721_v11  ;;  %v2728_v6 = vsub.f32 %v13460_v30, %v21612_v34  ;;  %v21604_v27 = vand.u32 4294901760, %v13525_v24 }
 0x134   :  { %2656 = vmatpush.msra.mxu3 %v13239_v8  ;;  %2623 = vmatpush.msra.mxu2 %v2458_v51  ;;  %v13522_v51 = vand.u32 4294901760, %v125_v55  ;;  %v13541_v9 = vsub.f32 %v126_v59, %v13506_v2  ;;  %v2741_v63 = vand.u32 4294901760, %v2740_v20  ;;  %v13608_v59 = vand.u32 4294901760, %v120_v44 }
 0x135   :  { %2669 = vmatpush.msrb.mxu0 %v13406_v43  ;;  %2548 = vmatpush.msra.mxu1 %v13239_v8  ;;  %v2716_v8 = vsub.f32 %v13432_v52, %v2715_v37  ;;  %v2711_v10 = vand.u32 4294901760, %v2710_v23  ;;  %v2723_v57 = vand.u32 4294901760, %v2722_v58  ;;  %v2729_v21 = vand.u32 4294901760, %v2728_v6  ;;  %v150_v23 = vld [vmem:[%s21527_s1 + $0x3f8] sm:$0xff] }
 0x136   :  { %2658 = vmatpush.msra.mxu3 %v13255_v48  ;;  %2625 = vmatmul.f32.vlgmr.msra.gmra.mxu2 %v13257_v40  ;;  %v13556_v41 = vsub.f32 %v125_v55, %v13522_v51  ;;  %v21603_v19 = vand.u32 4294901760, %v13541_v9  ;;  %v2752_v42 = vsub.f32 %v13525_v24, %v21604_v27  ;;  %v21599_v58 = vand.u32 4294901760, %v13585_v29 }
 0x137   :  { %2671 = vmatpush.msrb.mxu0 %v13416_v0  ;;  %2810 = vmatpush.msrb.mxu2 %v13419_v16  ;;  %v2717_v12 = vand.u32 4294901760, %v2716_v8  ;;  %v119_v8 = vld [vmem:[%s21527_s1 + $0x300] sm:$0xff]  ;;  %v13624_v6 = vand.u32 4294901760, %v150_v23  ;;  %v21601_v20 = vand.u32 4294901760, %v13601_v4  ;;  %v13639_v50 = vsub.f32 %v120_v44, %v13608_v59  ;;  %v142_v16 = vld [vmem:[%s21527_s1 + $0x3b8] sm:$0xff] }
 0x138   :  { %2550 = vmatpush.msra.mxu1 %v13255_v48  ;;  %2660 = vmatpush.msra.mxu3 %v13270_v46  ;;  %v13509_v48 = vsub.f32 %v128_v39, %v13476_v22  ;;  %v21602_v33 = vand.u32 4294901760, %v13556_v41  ;;  %v2758_v47 = vsub.f32 %v13541_v9, %v21603_v19  ;;  %v2753_v55 = vand.u32 4294901760, %v2752_v42  ;;  %v147_v42 = vld [vmem:[%s21527_s1 + $0x3e0] sm:$0xff] }
 0x139   :  { %2662 = vmatmul.f32.vlgmr.msra.gmra.mxu3 %v13257_v40  ;;  %2673 = vmatpush.msrb.mxu0 %v13429_v5  ;;  %v124_v40 = vld [vmem:[%s21527_s1 + $0x328] sm:$0xff] }
 0x13a   :  { %2813 = vmatpush.msrb.mxu2 %v13432_v52  ;;  %2863 = vmatpush.msrb.mxu3 %v13396_v60  ;;  %v13537_v1 = vand.u32 4294901760, %v124_v40  ;;  %v21606_v49 = vand.u32 4294901760, %v13509_v48  ;;  %v2759_v7 = vand.u32 4294901760, %v2758_v47  ;;  %v141_v52 = vld [vmem:[%s21527_s1 + $0x3b0] sm:$0xff] }
 0x13b   :  { %2552 = vmatpush.msra.mxu1 %v13270_v46  ;;  %2675 = vmatpush.msrb.mxu0 %v13440_v18  ;;  %v2734_v46 = vsub.f32 %v13466_v14, %v21609_v15  ;;  %v13785_v34 = vand.u32 4294901760, %v141_v52 }
 0x13c   :  { %2556 = vmatmul.f32.vlgmr.msra.gmra.mxu1 %v2359_v26  ;;  %2816 = vmatpush.msrb.mxu2 %v13446_v53  ;;  %v556_v26 = vld.sshfl [vmem:[#allocation1 + $0x30] sm:$0xff pattern:$0x73625140]  ;;  %v2746_v35 = vsub.f32 %v13509_v48, %v21606_v49  ;;  %v13573_v28 = vsub.f32 %v124_v40, %v13537_v1  ;;  %v13619_v40 = vsub.f32 %v121_v31, %v13581_v54 }
 0x13d   :  { %2712 = vmatpush.msrb.mxu1 %v2711_v10  ;;  %2865 = vmatpush.msrb.mxu3 %v13406_v43  ;;  %v2735_v56 = vand.u32 4294901760, %v2734_v46  ;;  %v13563_v62 = vand.u32 4294901760, %v556_v26  ;;  %v2764_v10 = vsub.f32 %v13556_v41, %v21602_v33  ;;  %v149_v46 = vld [vmem:[%s21527_s1 + $0x3f0] sm:$0xff]  ;;  %v2776_v31 = vsub.f32 %v13585_v29, %v21599_v58 }
 0x13e   :  { %2677 = vmatpush.msrb.mxu0 %v13451_v38  ;;  %2819 = vmatpush.msrb.mxu2 %v13460_v30  ;;  %v2747_v32 = vand.u32 4294901760, %v2746_v35  ;;  %v21600_v39 = vand.u32 4294901760, %v13573_v28  ;;  %v21605_v35 = vand.u32 4294901760, %v13619_v40 }
 0x13f   :  { %2718 = vmatpush.msrb.mxu1 %v2717_v12  ;;  %2867 = vmatpush.msrb.mxu3 %v13416_v0  ;;  %v13593_v17 = vsub.f32 %v556_v26, %v13563_v62  ;;  %v13633_v26 = vand.u32 4294901760, %v119_v8 }
 0x140   :  { %2679 = vmatpush.msrb.mxu0 %v13476_v22  ;;  %2822 = vmatpush.msrb.mxu2 %v13466_v14 }
 0x141   :  { %2724 = vmatpush.msrb.mxu1 %v2723_v57  ;;  %2869 = vmatpush.msrb.mxu3 %v13429_v5  ;;  %v2700_v12 = vand.u32 4294901760, %v13593_v17  ;;  %v2770_v57 = vsub.f32 %v13573_v28, %v21600_v39  ;;  %21966 = vst [vmem:[#allocation5_spill] sm:$0xff] %v13633_v26  ;;  %v146_v39 = vld [vmem:[%s21527_s1 + $0x3d8] sm:$0xff] }
 0x142   :  { %2681 = vmatpush.msrb.mxu0 %v13492_v61  ;;  %2825 = vmatpush.msrb.mxu2 %v13482_v3  ;;  %v13689_v27 = vand.u32 4294901760, %v146_v39 }
 0x143   :  { %2730 = vmatpush.msrb.mxu1 %v2729_v21  ;;  %2871 = vmatpush.msrb.mxu3 %v13440_v18  ;;  %v148_v21 = vld [vmem:[%s21527_s1 + $0x3e8] sm:$0xff]  ;;  %v2701_v44 = vsub.f32 %v13593_v17, %v2700_v12  ;;  %v2771_v47 = vand.u32 4294901760, %v2770_v57  ;;  %v2777_v57 = vand.u32 4294901760, %v2776_v31 }
 0x144   :  { %2683 = vmatpush.msrb.mxu0 %v13506_v2  ;;  %2828 = vmatpush.msrb.mxu2 %v13509_v48  ;;  %v13669_v58 = vand.u32 4294901760, %v148_v21 }
 0x145   :  { %2736 = vmatpush.msrb.mxu1 %v2735_v56  ;;  %2873 = vmatpush.msrb.mxu3 %v13451_v38  ;;  %v2765_v56 = vand.u32 4294901760, %v2764_v10  ;;  %v13667_v10 = vsub.f32 %v119_v8, %v13633_v26  ;;  %v2788_v8 = vsub.f32 %v13619_v40, %v21605_v35  ;;  %v2702_v33 = vand.u32 4294901760, %v2701_v44 }
 0x146   :  { %2685 = vmatpush.msrb.mxu0 %v13522_v51  ;;  %2831 = vmatpush.msrb.mxu2 %v13525_v24  ;;  %v13697_v35 = vsub.f32 %v148_v21, %v13669_v58 }
 0x147   :  { %2742 = vmatpush.msrb.mxu1 %v2741_v63  ;;  %2875 = vmatpush.msrb.mxu3 %v13476_v22  ;;  %v13649_v63 = vand.u32 4294901760, %v149_v46  ;;  %v2789_v21 = vand.u32 4294901760, %v2788_v8 }
 0x148   :  { %2687 = vmatpush.msrb.mxu0 %v13537_v1  ;;  %2834 = vmatpush.msrb.mxu2 %v13541_v9  ;;  %v21613_v8 = vand.u32 4294901760, %v13697_v35 }
 0x149   :  { %2748 = vmatpush.msrb.mxu1 %v2747_v32  ;;  %2877 = vmatpush.msrb.mxu3 %v13492_v61  ;;  %v13660_v32 = vsub.f32 %v150_v23, %v13624_v6  ;;  %v21608_v23 = vand.u32 4294901760, %v13639_v50 }
 0x14a   :  { %2689 = vmatpush.msrb.mxu0 %v13552_v25  ;;  %2837 = vmatpush.msrb.mxu2 %v13556_v41 }
 0x14b   :  { %2754 = vmatpush.msrb.mxu1 %v2753_v55  ;;  %2879 = vmatpush.msrb.mxu3 %v13506_v2  ;;  %v2782_v55 = vsub.f32 %v13601_v4, %v21601_v20  ;;  %v13684_v20 = vsub.f32 %v149_v46, %v13649_v63  ;;  %v21610_v19 = vand.u32 4294901760, %v13660_v32  ;;  %v21611_v46 = vand.u32 4294901760, %v13667_v10 }
 0x14c   :  { %2691 = vmatpush.msrb.mxu0 %v13569_v36  ;;  %2840 = vmatpush.msrb.mxu2 %v13573_v28  ;;  %v2794_v44 = vsub.f32 %v13639_v50, %v21608_v23  ;;  %v13719_v23 = vsub.f32 %v146_v39, %v13689_v27 }
 0x14d   :  { %2760 = vmatpush.msrb.mxu1 %v2759_v7  ;;  %2881 = vmatpush.msrb.mxu3 %v13522_v51  ;;  %v13677_v7 = vand.u32 4294901760, %v147_v42  ;;  %v2783_v31 = vand.u32 4294901760, %v2782_v55  ;;  %v21614_v55 = vand.u32 4294901760, %v13684_v20 }
 0x14e   :  { %2693 = vmatpush.msrb.mxu0 %v13581_v54  ;;  %2843 = vmatpush.msrb.mxu2 %v13585_v29  ;;  %v2795_v39 = vand.u32 4294901760, %v2794_v44 }
 0x14f   :  { %2766 = vmatpush.msrb.mxu1 %v2765_v56  ;;  %2883 = vmatpush.msrb.mxu3 %v13537_v1  ;;  %v145_v56 = vld [vmem:[%s21527_s1 + $0x3d0] sm:$0xff]  ;;  %v13705_v49 = vsub.f32 %v147_v42, %v13677_v7  ;;  %v3051_v42 = vsub.f32 %v13660_v32, %v21610_v19 }
 0x150   :  { %2695 = vmatpush.msrb.mxu0 %v13608_v59  ;;  %2846 = vmatpush.msrb.mxu2 %v13601_v4  ;;  %v13712_v13 = vand.u32 4294901760, %v145_v56 }
 0x151   :  { %2772 = vmatpush.msrb.mxu1 %v2771_v47  ;;  %2885 = vmatpush.msrb.mxu3 %v13552_v25  ;;  %v144_v47 = vld [vmem:[%s21527_s1 + $0x3c8] sm:$0xff]  ;;  %v21615_v19 = vand.u32 4294901760, %v13705_v49  ;;  %v3052_v44 = vand.u32 4294901760, %v3051_v42  ;;  %v13763_v42 = vand.u32 4294901760, %v142_v16 }
 0x152   :  { %2697 = vmatpush.msrb.mxu0 %v13633_v26  ;;  %2849 = vmatpush.msrb.mxu2 %v13619_v40  ;;  %v13730_v15 = vand.u32 4294901760, %v144_v47 }
 0x153   :  { %2778 = vmatpush.msrb.mxu1 %v2777_v57  ;;  %2887 = vmatpush.msrb.mxu3 %v13569_v36  ;;  %v143_v57 = vld [vmem:[%s21527_s1 + $0x3c0] sm:$0xff]  ;;  %v3069_v53 = vsub.f32 %v13705_v49, %v21615_v19 }
 0x154   :  { %2703 = vmatmul.f32.vlgmr.msrb.gmra.mxu0 %v2702_v33  ;;  %2852 = vmatpush.msrb.mxu2 %v13639_v50  ;;  %v2800_v33 = vsub.f32 %v13667_v10, %v21611_v46  ;;  %v13746_v46 = vand.u32 4294901760, %v143_v57 }
 0x155   :  { %2904 = vmatpush.msra.mxu0 %v2709_v45  ;;  %2784 = vmatpush.msrb.mxu1 %v2783_v31  ;;  %v3057_v45 = vsub.f32 %v13684_v20, %v21614_v55  ;;  %v13744_v31 = vsub.f32 %v145_v56, %v13712_v13  ;;  %v3063_v56 = vsub.f32 %v13697_v35, %v21613_v8  ;;  %v13775_v8 = vld.sshfl [vmem:[#allocation1 + $0x38] sm:$0xff pattern:$0x73625140] }
 0x156   :  { %2889 = vmatpush.msrb.mxu3 %v13581_v54  ;;  %2855 = vmatpush.msrb.mxu2 %v13667_v10  ;;  %v13783_v19 = vsub.f32 %v143_v57, %v13746_v46 }
 0x157   :  { %2908 = vmatpush.msra.mxu0 %v2715_v37  ;;  %2790 = vmatpush.msrb.mxu1 %v2789_v21  ;;  %v2801_v37 = vand.u32 4294901760, %v2800_v33  ;;  %v13761_v21 = vsub.f32 %v144_v47, %v13730_v15  ;;  %v18_v33 = vld [vmem:[%s21526_s0 + $0x18] sm:$0xff]  ;;  %v21967_v47 = vand.u32 4294901760, %v13460_v30  ;;  %v21617_v55 = vand.u32 4294901760, %v13744_v31  ;;  %v139_v30 = vld [vmem:[%s21527_s1 + $0x3a0] sm:$0xff] }
 0x158   :  { %2891 = vmatpush.msrb.mxu3 %v13608_v59  ;;  %2858 = vmatmul.f32.vlgmr.msrb.gmra.mxu2 %v13593_v17  ;;  %559 = vst [vmem:[#allocation1 + $0x20] ss:$4 sm:$0xff] %v18_v33  ;;  %v3064_v57 = vand.u32 4294901760, %v3063_v56  ;;  %v13798_v33 = vsub.f32 %v142_v16, %v13763_v42  ;;  %v21618_v16 = vand.u32 4294901760, %v13783_v19  ;;  %v13815_v56 = vand.u32 4294901760, %v139_v30 }
 0x159   :  { %2912 = vmatpush.msra.mxu0 %v2721_v11  ;;  %3008 = vmatpush.msra.mxu2 %v13624_v6  ;;  %v140_v11 = vld [vmem:[%s21527_s1 + $0x3a8] sm:$0xff] }
 0x15a   :  { %2796 = vmatpush.msrb.mxu1 %v2795_v39  ;;  %2893 = vmatpush.msrb.mxu3 %v13633_v26  ;;  %v3058_v39 = vand.u32 4294901760, %v3057_v45  ;;  %v21968_v26 = vand.u32 4294901760, %v13719_v23  ;;  %v21620_v45 = vand.u32 4294901760, %v13761_v21 }
 0x15b   :  { %2897 = vmatmul.f32.vlgmr.msrb.gmra.mxu3 %v2700_v12  ;;  %2916 = vmatpush.msra.mxu0 %v21967_v47  ;;  %v21969_v12 = vand.u32 4294901760, %v13466_v14  ;;  %v13800_v47 = vand.u32 4294901760, %v140_v11  ;;  %v3081_v14 = vsub.f32 %v13744_v31, %v21617_v55 }
 0x15c   :  { %3010 = vmatpush.msra.mxu2 %v13649_v63  ;;  %3053 = vmatpush.msra.mxu3 %v3052_v44  ;;  %v3075_v17 = vsub.f32 %v13719_v23, %v21968_v26  ;;  %v3070_v26 = vand.u32 4294901760, %v3069_v53  ;;  %v138_v44 = vld [vmem:[%s21527_s1 + $0x398] sm:$0xff]  ;;  %v21970_v53 = vand.u32 4294901760, %v13482_v3  ;;  %v137_v3 = vld [vmem:[%s21527_s1 + $0x390] sm:$0xff] }
 0x15d   :  { %2802 = vmatpush.msrb.mxu1 %v2801_v37  ;;  %2920 = vmatpush.msra.mxu0 %v21969_v12  ;;  %v13813_v37 = vsub.f32 %v141_v52, %v13785_v34  ;;  %v13826_v52 = vsub.f32 %v140_v11, %v13800_v47  ;;  %v13828_v55 = vand.u32 4294901760, %v138_v44  ;;  %v3093_v11 = vsub.f32 %v13783_v19, %v21618_v16 }
 0x15e   :  { %2804 = vmatmul.f32.vlgmr.msrb.gmra.mxu1 %v13563_v62  ;;  %3012 = vmatpush.msra.mxu2 %v13669_v58  ;;  %v3076_v12 = vand.u32 4294901760, %v3075_v17  ;;  %v21971_v17 = vand.u32 4294901760, %v13509_v48  ;;  %v136_v48 = vld [vmem:[%s21527_s1 + $0x388] sm:$0xff] }
 0x15f   :  { %2971 = vmatpush.msra.mxu1 %v13396_v60  ;;  %3059 = vmatpush.msra.mxu3 %v3058_v39  ;;  %v3087_v60 = vsub.f32 %v13761_v21, %v21620_v45  ;;  %v21619_v39 = vand.u32 4294901760, %v13798_v33  ;;  %v13858_v16 = vsub.f32 %v138_v44, %v13828_v55 }
 0x160   :  { %2924 = vmatpush.msra.mxu0 %v21970_v53  ;;  %3014 = vmatpush.msra.mxu2 %v13677_v7  ;;  %v13842_v53 = vsub.f32 %v139_v30, %v13815_v56 }
 0x161   :  { %2973 = vmatpush.msra.mxu1 %v13406_v43  ;;  %3065 = vmatpush.msra.mxu3 %v3064_v57  ;;  %v3082_v43 = vand.u32 4294901760, %v3081_v14  ;;  %v3104_v57 = vand.u32 4294901760, %v13813_v37  ;;  %v3099_v30 = vsub.f32 %v13798_v33, %v21619_v39  ;;  %v3110_v14 = vand.u32 4294901760, %v13826_v52 }
 0x162   :  { %2928 = vmatpush.msra.mxu0 %v21971_v17  ;;  %3016 = vmatpush.msra.mxu2 %v13689_v27  ;;  %v21972_v17 = vand.u32 4294901760, %v13525_v24  ;;  %v135_v24 = vld [vmem:[%s21527_s1 + $0x380] sm:$0xff]  ;;  %v3116_v39 = vand.u32 4294901760, %v13842_v53 }
 0x163   :  { %2975 = vmatpush.msra.mxu1 %v13416_v0  ;;  %3071 = vmatpush.msra.mxu3 %v3070_v26  ;;  %v13850_v0 = vand.u32 4294901760, %v137_v3  ;;  %v3088_v26 = vand.u32 4294901760, %v3087_v60  ;;  %v3094_v60 = vand.u32 4294901760, %v3093_v11  ;;  %v3105_v44 = vsub.f32 %v13813_v37, %v3104_v57 }
 0x164   :  { %2932 = vmatpush.msra.mxu0 %v21972_v17  ;;  %3018 = vmatpush.msra.mxu2 %v13712_v13  ;;  %v21973_v17 = vand.u32 4294901760, %v13541_v9  ;;  %v21974_v9 = vand.u32 4294901760, %v13556_v41  ;;  %v13882_v45 = vand.u32 4294901760, %v135_v24  ;;  %v3122_v11 = vand.u32 4294901760, %v13858_v16 }
 0x165   :  { %2977 = vmatpush.msra.mxu1 %v13429_v5  ;;  %3077 = vmatpush.msra.mxu3 %v3076_v12  ;;  %v13866_v5 = vand.u32 4294901760, %v136_v48  ;;  %v13869_v12 = vand.u32 4294901760, %v13775_v8  ;;  %v21975_v41 = vand.u32 4294901760, %v13573_v28  ;;  %v21976_v28 = vand.u32 4294901760, %v13585_v29 }
 0x166   :  { %2936 = vmatpush.msra.mxu0 %v21973_v17  ;;  %3020 = vmatpush.msra.mxu2 %v13730_v15  ;;  %v13880_v17 = vsub.f32 %v137_v3, %v13850_v0 }
 0x167   :  { %2979 = vmatpush.msra.mxu1 %v13440_v18  ;;  %3083 = vmatpush.msra.mxu3 %v3082_v43  ;;  %v3100_v18 = vand.u32 4294901760, %v3099_v30  ;;  %v3111_v43 = vsub.f32 %v13826_v52, %v3110_v14  ;;  %v13893_v3 = vsub.f32 %v136_v48, %v13866_v5  ;;  %v13908_v30 = vsub.f32 %v135_v24, %v13882_v45 }
 0x168   :  { %2940 = vmatpush.msra.mxu0 %v21974_v9  ;;  %3022 = vmatpush.msra.mxu2 %v13746_v46  ;;  %v13897_v9 = vsub.f32 %v13775_v8, %v13869_v12  ;;  %v3128_v48 = vand.u32 4294901760, %v13880_v17  ;;  %v3123_v8 = vsub.f32 %v13858_v16, %v3122_v11 }
 0x169   :  { %2981 = vmatpush.msra.mxu1 %v13451_v38  ;;  %3089 = vmatpush.msra.mxu3 %v3088_v26  ;;  %v3106_v38 = vand.u32 4294901760, %v3105_v44  ;;  %v3117_v26 = vsub.f32 %v13842_v53, %v3116_v39  ;;  %v3134_v29 = vand.u32 4294901760, %v13893_v3 }
 0x16a   :  { %2944 = vmatpush.msra.mxu0 %v21975_v41  ;;  %3024 = vmatpush.msra.mxu2 %v13763_v42  ;;  %v3041_v44 = vand.u32 4294901760, %v13897_v9  ;;  %v21979_v41 = vand.u32 4294901760, %v13639_v50 }
 0x16b   :  { %2983 = vmatpush.msra.mxu1 %v13476_v22  ;;  %3095 = vmatpush.msra.mxu3 %v3094_v60  ;;  %v3112_v22 = vand.u32 4294901760, %v3111_v43  ;;  %v21977_v60 = vand.u32 4294901760, %v13601_v4  ;;  %v3118_v24 = vand.u32 4294901760, %v3117_v26  ;;  %v3129_v4 = vsub.f32 %v13880_v17, %v3128_v48 }
 0x16c   :  { %2948 = vmatpush.msra.mxu0 %v21976_v28  ;;  %3026 = vmatpush.msra.mxu2 %v13785_v34  ;;  %v3124_v43 = vand.u32 4294901760, %v3123_v8 }
 0x16d   :  { %2985 = vmatpush.msra.mxu1 %v13492_v61  ;;  %3101 = vmatpush.msra.mxu3 %v3100_v18  ;;  %v21978_v61 = vand.u32 4294901760, %v13619_v40  ;;  %v3140_v18 = vand.u32 4294901760, %v13908_v30  ;;  %v3042_v40 = vsub.f32 %v13897_v9, %v3041_v44  ;;  %v3130_v50 = vand.u32 4294901760, %v3129_v4 }
 0x16e   :  { %2952 = vmatpush.msra.mxu0 %v21977_v60  ;;  %3028 = vmatpush.msra.mxu2 %v13800_v47 }
 0x16f   :  { %2987 = vmatpush.msra.mxu1 %v13506_v2  ;;  %3107 = vmatpush.msra.mxu3 %v3106_v38  ;;  %v3135_v2 = vsub.f32 %v13893_v3, %v3134_v29  ;;  %v3141_v38 = vsub.f32 %v13908_v30, %v3140_v18 }
 0x170   :  { %2956 = vmatpush.msra.mxu0 %v21978_v61  ;;  %3030 = vmatpush.msra.mxu2 %v13815_v56 }
 0x171   :  { %2989 = vmatpush.msra.mxu1 %v13522_v51  ;;  %3113 = vmatpush.msra.mxu3 %v3112_v22  ;;  %v21980_v51 = vand.u32 4294901760, %v13667_v10  ;;  %v3136_v26 = vand.u32 4294901760, %v3135_v2  ;;  %v3142_v10 = vand.u32 4294901760, %v3141_v38 }
 0x172   :  { %2960 = vmatpush.msra.mxu0 %v21979_v41  ;;  %3032 = vmatpush.msra.mxu2 %v13828_v55 }
 0x173   :  { %2991 = vmatpush.msra.mxu1 %v13537_v1  ;;  %3119 = vmatpush.msra.mxu3 %v3118_v24  ;;  %v3043_v1 = vand.u32 4294901760, %v3042_v40 }
 0x174   :  { %2964 = vmatpush.msra.mxu0 %v21980_v51  ;;  %3034 = vmatpush.msra.mxu2 %v13850_v0 }
 0x175   :  { %2993 = vmatpush.msra.mxu1 %v13552_v25  ;;  %3125 = vmatpush.msra.mxu3 %v3124_v43  ;;  %v21981_v25 = vand.u32 4294901760, %v13660_v32  ;;  %v155_v43 = vld [vmem:[%s21527_s1 + $0x420] sm:$0xff] }
 0x176   :  { %2966 = vmatmul.f32.vlgmr.msra.gmra.mxu0 %v13563_v62  ;;  %3036 = vmatpush.msra.mxu2 %v13866_v5 }
 0x177   :  { %3151 = vmatpush.msrb.mxu0 %v13660_v32  ;;  %2995 = vmatpush.msra.mxu1 %v13569_v36  ;;  %v21982_v36 = vand.u32 4294901760, %v13684_v20  ;;  %v21984_v32 = vand.u32 4294901760, %v13697_v35 }
 0x178   :  { %3131 = vmatpush.msra.mxu3 %v3130_v50  ;;  %3038 = vmatpush.msra.mxu2 %v13882_v45  ;;  %v154_v50 = vld [vmem:[%s21527_s1 + $0x418] sm:$0xff] }
 0x179   :  { %3154 = vmatpush.msrb.mxu0 %v13684_v20  ;;  %2997 = vmatpush.msra.mxu1 %v13581_v54  ;;  %v21983_v54 = vld [vmem:[#allocation5_spill] sm:$0xff]  ;;  %v21990_v20 = vand.u32 4294901760, %v13798_v33 }
 0x17a   :  { %3137 = vmatpush.msra.mxu3 %v3136_v26  ;;  %3044 = vmatmul.f32.vlgmr.msra.gmra.mxu2 %v3043_v1  ;;  %v14165_v26 = vand.u32 4294901760, %v155_v43 }
 0x17b   :  { %3157 = vmatpush.msrb.mxu0 %v13697_v35  ;;  %3245 = vmatpush.msrb.mxu2 %v21981_v25 }
 0x17c   :  { %2999 = vmatpush.msra.mxu1 %v13608_v59  ;;  %3143 = vmatpush.msra.mxu3 %v3142_v10  ;;  %v21985_v59 = vand.u32 4294901760, %v13705_v49 }
 0x17d   :  { %3145 = vmatmul.f32.vlgmr.msra.gmra.mxu3 %v13869_v12  ;;  %3160 = vmatpush.msrb.mxu0 %v13705_v49  ;;  %v21988_v49 = vand.u32 4294901760, %v13761_v21 }
 0x17e   :  { %3249 = vmatpush.msrb.mxu2 %v21982_v36  ;;  %3312 = vmatpush.msrb.mxu3 %v13624_v6  ;;  %v153_v36 = vld [vmem:[%s21527_s1 + $0x410] sm:$0xff] }
 0x17f   :  { %3001 = vmatpush.msra.mxu1 %v21983_v54  ;;  %3163 = vmatpush.msrb.mxu0 %v13719_v23 }
 0x180   :  { %3003 = vmatmul.f32.vlgmr.msra.gmra.mxu1 %v13563_v62  ;;  %3253 = vmatpush.msrb.mxu2 %v21984_v32  ;;  %v21986_v62 = vand.u32 4294901760, %v13719_v23 }
 0x181   :  { %3204 = vmatpush.msrb.mxu1 %v13624_v6  ;;  %3314 = vmatpush.msrb.mxu3 %v13649_v63  ;;  %v21987_v6 = vand.u32 4294901760, %v13744_v31 }
 0x182   :  { %3166 = vmatpush.msrb.mxu0 %v13744_v31  ;;  %3257 = vmatpush.msrb.mxu2 %v21985_v59  ;;  %v14182_v59 = vand.u32 4294901760, %v154_v50 }
 0x183   :  { %3206 = vmatpush.msrb.mxu1 %v13649_v63  ;;  %3316 = vmatpush.msrb.mxu3 %v13669_v58  ;;  %v163_v63 = vld [vmem:[%s21527_s1 + $0x460] sm:$0xff] }
 0x184   :  { %3169 = vmatpush.msrb.mxu0 %v13761_v21  ;;  %3261 = vmatpush.msrb.mxu2 %v21986_v62  ;;  %v161_v21 = vld [vmem:[%s21527_s1 + $0x450] sm:$0xff] }
 0x185   :  { %3208 = vmatpush.msrb.mxu1 %v13669_v58  ;;  %3318 = vmatpush.msrb.mxu3 %v13677_v7  ;;  %v21989_v58 = vand.u32 4294901760, %v13783_v19 }
 0x186   :  { %3172 = vmatpush.msrb.mxu0 %v13783_v19  ;;  %3265 = vmatpush.msrb.mxu2 %v21987_v6 }
 0x187   :  { %3210 = vmatpush.msrb.mxu1 %v13677_v7  ;;  %3320 = vmatpush.msrb.mxu3 %v13689_v27 }
 0x188   :  { %3175 = vmatpush.msrb.mxu0 %v13798_v33  ;;  %3269 = vmatpush.msrb.mxu2 %v21988_v49 }
 0x189   :  { %3212 = vmatpush.msrb.mxu1 %v13689_v27  ;;  %3322 = vmatpush.msrb.mxu3 %v13712_v13  ;;  %v166_v27 = vld [vmem:[%s21527_s1 + $0x478] sm:$0xff] }
 0x18a   :  { %3178 = vmatpush.msrb.mxu0 %v13813_v37  ;;  %3273 = vmatpush.msrb.mxu2 %v21989_v58  ;;  %v14009_v19 = vand.u32 4294901760, %v166_v27  ;;  %v160_v37 = vld [vmem:[%s21527_s1 + $0x448] sm:$0xff] }
 0x18b   :  { %3214 = vmatpush.msrb.mxu1 %v13712_v13  ;;  %3324 = vmatpush.msrb.mxu3 %v13730_v15  ;;  %v165_v13 = vld [vmem:[%s21527_s1 + $0x470] sm:$0xff] }
 0x18c   :  { %3181 = vmatpush.msrb.mxu0 %v13826_v52  ;;  %3277 = vmatpush.msrb.mxu2 %v21990_v20  ;;  %v14019_v35 = vand.u32 4294901760, %v165_v13  ;;  %v14032_v7 = vsub.f32 %v166_v27, %v14009_v19  ;;  %v14194_v20 = vand.u32 4294901760, %v153_v36 }
 0x18d   :  { %3216 = vmatpush.msrb.mxu1 %v13730_v15  ;;  %3326 = vmatpush.msrb.mxu3 %v13746_v46  ;;  %v164_v15 = vld [vmem:[%s21527_s1 + $0x468] sm:$0xff] }
 0x18e   :  { %3184 = vmatpush.msrb.mxu0 %v13842_v53  ;;  %3281 = vmatpush.msrb.mxu2 %v3104_v57  ;;  %v14029_v23 = vand.u32 4294901760, %v164_v15  ;;  %v14045_v31 = vsub.f32 %v165_v13, %v14019_v35  ;;  %v3391_v33 = vand.u32 4294901760, %v14032_v7  ;;  %v159_v57 = vld [vmem:[%s21527_s1 + $0x440] sm:$0xff]  ;;  %v14089_v53 = vand.u32 4294901760, %v160_v37 }
 0x18f   :  { %3218 = vmatpush.msrb.mxu1 %v13746_v46  ;;  %3328 = vmatpush.msrb.mxu3 %v13763_v42  ;;  %v162_v46 = vld [vmem:[%s21527_s1 + $0x458] sm:$0xff]  ;;  %v14198_v13 = vsub.f32 %v155_v43, %v14165_v26 }
 0x190   :  { %3187 = vmatpush.msrb.mxu0 %v13858_v16  ;;  %3285 = vmatpush.msrb.mxu2 %v3110_v14  ;;  %v14064_v16 = vand.u32 4294901760, %v161_v21 }
 0x191   :  { %3220 = vmatpush.msrb.mxu1 %v13763_v42  ;;  %3330 = vmatpush.msrb.mxu3 %v13785_v34  ;;  %v14053_v42 = vand.u32 4294901760, %v162_v46 }
 0x192   :  { %3190 = vmatpush.msrb.mxu0 %v13880_v17  ;;  %3289 = vmatpush.msrb.mxu2 %v3116_v39  ;;  %v14095_v17 = vsub.f32 %v161_v21, %v14064_v16 }
 0x193   :  { %3222 = vmatpush.msrb.mxu1 %v13785_v34  ;;  %3332 = vmatpush.msrb.mxu3 %v13800_v47  ;;  %v14042_v34 = vand.u32 4294901760, %v163_v63  ;;  %v14079_v52 = vsub.f32 %v162_v46, %v14053_v42 }
 0x194   :  { %3193 = vmatpush.msrb.mxu0 %v13893_v3  ;;  %3293 = vmatpush.msrb.mxu2 %v3122_v11  ;;  %v158_v11 = vld [vmem:[%s21527_s1 + $0x438] sm:$0xff]  ;;  %v14105_v3 = vand.u32 4294901760, %v159_v57 }
 0x195   :  { %3224 = vmatpush.msrb.mxu1 %v13800_v47  ;;  %3334 = vmatpush.msrb.mxu3 %v13815_v56  ;;  %v14059_v47 = vsub.f32 %v164_v15, %v14029_v23  ;;  %v14073_v39 = vsub.f32 %v163_v63, %v14042_v34  ;;  %v14119_v60 = vand.u32 4294901760, %v158_v11  ;;  %v152_v15 = vld [vmem:[%s21527_s1 + $0x408] sm:$0xff] }
 0x196   :  { %3196 = vmatpush.msrb.mxu0 %v13908_v30  ;;  %3297 = vmatpush.msrb.mxu2 %v3128_v48  ;;  %v21631_v48 = vand.u32 4294901760, %v14079_v52  ;;  %v157_v30 = vld [vmem:[%s21527_s1 + $0x430] sm:$0xff] }
 0x197   :  { %3226 = vmatpush.msrb.mxu1 %v13815_v56  ;;  %3336 = vmatpush.msrb.mxu3 %v13828_v55  ;;  %v3397_v56 = vand.u32 4294901760, %v14045_v31  ;;  %v3403_v14 = vand.u32 4294901760, %v14059_v47  ;;  %v21634_v28 = vand.u32 4294901760, %v14073_v39  ;;  %v14135_v4 = vand.u32 4294901760, %v157_v30 }
 0x198   :  { %3199 = vmatmul.f32.vlgmr.msrb.gmra.mxu0 %v13897_v9  ;;  %3301 = vmatpush.msrb.mxu2 %v3134_v29  ;;  %v21629_v29 = vand.u32 4294901760, %v14095_v17  ;;  %v14154_v9 = vsub.f32 %v158_v11, %v14119_v60  ;;  %v14221_v11 = vand.u32 4294901760, %v152_v15 }
 0x199   :  { %3349 = vmatpush.msra.mxu0 %v14009_v19  ;;  %3228 = vmatpush.msrb.mxu1 %v13828_v55  ;;  %v3392_v55 = vsub.f32 %v14032_v7, %v3391_v33  ;;  %v3404_v8 = vsub.f32 %v14059_v47, %v3403_v14  ;;  %v3410_v61 = vsub.f32 %v14073_v39, %v21634_v28 }
 0x19a   :  { %3338 = vmatpush.msrb.mxu3 %v13850_v0  ;;  %3305 = vmatpush.msrb.mxu2 %v3140_v18  ;;  %v14138_v18 = vsub.f32 %v159_v57, %v14105_v3  ;;  %v3422_v51 = vsub.f32 %v14095_v17, %v21629_v29  ;;  %v14169_v10 = vsub.f32 %v157_v30, %v14135_v4  ;;  %v21625_v62 = vand.u32 4294901760, %v14154_v9 }
 0x19b   :  { %3351 = vmatpush.msra.mxu0 %v14019_v35  ;;  %3230 = vmatpush.msrb.mxu1 %v13850_v0  ;;  %v3398_v0 = vsub.f32 %v14045_v31, %v3397_v56  ;;  %v3393_v22 = vand.u32 4294901760, %v3392_v55  ;;  %v3405_v41 = vand.u32 4294901760, %v3404_v8  ;;  %v3411_v38 = vand.u32 4294901760, %v3410_v61  ;;  %v182_v55 = vld [vmem:[%s21527_s1 + $0x4f8] sm:$0xff] }
 0x19c   :  { %3340 = vmatpush.msrb.mxu3 %v13866_v5  ;;  %3307 = vmatmul.f32.vlgmr.msrb.gmra.mxu2 %v13869_v12  ;;  %v21626_v1 = vand.u32 4294901760, %v14138_v18  ;;  %v3423_v49 = vand.u32 4294901760, %v3422_v51  ;;  %v21624_v27 = vand.u32 4294901760, %v14169_v10  ;;  %v3440_v21 = vsub.f32 %v14154_v9, %v21625_v62 }
 0x19d   :  { %3353 = vmatpush.msra.mxu0 %v14029_v23  ;;  %3492 = vmatpush.msra.mxu2 %v14032_v7  ;;  %v3399_v24 = vand.u32 4294901760, %v3398_v0  ;;  %v14214_v57 = vsub.f32 %v154_v50, %v14182_v59  ;;  %v151_v0 = vld [vmem:[%s21527_s1 + $0x400] sm:$0xff]  ;;  %v21621_v8 = vand.u32 4294901760, %v14198_v13  ;;  %v14237_v61 = vand.u32 4294901760, %v182_v55  ;;  %v174_v7 = vld [vmem:[%s21527_s1 + $0x4b8] sm:$0xff] }
 0x19e   :  { %3232 = vmatpush.msrb.mxu1 %v13866_v5  ;;  %3342 = vmatpush.msrb.mxu3 %v13882_v45  ;;  %v14122_v5 = vsub.f32 %v160_v37, %v14089_v53  ;;  %v3434_v58 = vsub.f32 %v14138_v18, %v21626_v1  ;;  %v3441_v43 = vand.u32 4294901760, %v3440_v21  ;;  %v14252_v50 = vsub.f32 %v152_v15, %v14221_v11 }
 0x19f   :  { %3344 = vmatmul.f32.vlgmr.msrb.gmra.mxu3 %v13869_v12  ;;  %3355 = vmatpush.msra.mxu0 %v14042_v34  ;;  %v156_v12 = vld [vmem:[%s21527_s1 + $0x428] sm:$0xff]  ;;  %v21623_v51 = vand.u32 4294901760, %v14214_v57 }
 0x1a0   :  { %3495 = vmatpush.msra.mxu2 %v14045_v31  ;;  %3545 = vmatpush.msra.mxu3 %v14009_v19  ;;  %v14150_v2 = vand.u32 4294901760, %v156_v12  ;;  %v21628_v40 = vand.u32 4294901760, %v14122_v5  ;;  %v3435_v30 = vand.u32 4294901760, %v3434_v58  ;;  %v179_v58 = vld [vmem:[%s21527_s1 + $0x4e0] sm:$0xff]  ;;  %v173_v31 = vld [vmem:[%s21527_s1 + $0x4b0] sm:$0xff] }
 0x1a1   :  { %3234 = vmatpush.msrb.mxu1 %v13882_v45  ;;  %3357 = vmatpush.msra.mxu0 %v14053_v42  ;;  %v3416_v45 = vsub.f32 %v14079_v52, %v21631_v48 }
 0x1a2   :  { %3238 = vmatmul.f32.vlgmr.msrb.gmra.mxu1 %v3041_v44  ;;  %3498 = vmatpush.msra.mxu2 %v14059_v47  ;;  %v560_v44 = vld.sshfl [vmem:[#allocation1] sm:$0xff pattern:$0x73625140]  ;;  %v3428_v32 = vsub.f32 %v14122_v5, %v21628_v40  ;;  %v14186_v6 = vsub.f32 %v156_v12, %v14150_v2  ;;  %v14232_v12 = vsub.f32 %v153_v36, %v14194_v20 }
 0x1a3   :  { %3394 = vmatpush.msra.mxu1 %v3393_v22  ;;  %3547 = vmatpush.msra.mxu3 %v14019_v35  ;;  %v3417_v25 = vand.u32 4294901760, %v3416_v45  ;;  %v14176_v54 = vand.u32 4294901760, %v560_v44  ;;  %v3446_v22 = vsub.f32 %v14169_v10, %v21624_v27  ;;  %v181_v45 = vld [vmem:[%s21527_s1 + $0x4f0] sm:$0xff]  ;;  %v3458_v36 = vsub.f32 %v14198_v13, %v21621_v8 }
 0x1a4   :  { %3359 = vmatpush.msra.mxu0 %v14064_v16  ;;  %3501 = vmatpush.msra.mxu2 %v14073_v39  ;;  %v3429_v46 = vand.u32 4294901760, %v3428_v32  ;;  %v21622_v37 = vand.u32 4294901760, %v14186_v6  ;;  %v21627_v32 = vand.u32 4294901760, %v14232_v12 }
 0x1a5   :  { %3400 = vmatpush.msra.mxu1 %v3399_v24  ;;  %3549 = vmatpush.msra.mxu3 %v14029_v23  ;;  %v14206_v63 = vsub.f32 %v560_v44, %v14176_v54  ;;  %v14246_v44 = vand.u32 4294901760, %v151_v0 }
 0x1a6   :  { %3361 = vmatpush.msra.mxu0 %v14089_v53  ;;  %3504 = vmatpush.msra.mxu2 %v14079_v52 }
 0x1a7   :  { %3406 = vmatpush.msra.mxu1 %v3405_v41  ;;  %3551 = vmatpush.msra.mxu3 %v14042_v34  ;;  %v3382_v24 = vand.u32 4294901760, %v14206_v63  ;;  %v3452_v41 = vsub.f32 %v14186_v6, %v21622_v37  ;;  %v178_v37 = vld [vmem:[%s21527_s1 + $0x4d8] sm:$0xff] }
 0x1a8   :  { %3363 = vmatpush.msra.mxu0 %v14105_v3  ;;  %3507 = vmatpush.msra.mxu2 %v14095_v17  ;;  %v14302_v1 = vand.u32 4294901760, %v178_v37 }
 0x1a9   :  { %3412 = vmatpush.msra.mxu1 %v3411_v38  ;;  %3553 = vmatpush.msra.mxu3 %v14053_v42  ;;  %v180_v38 = vld [vmem:[%s21527_s1 + $0x4e8] sm:$0xff]  ;;  %v3383_v15 = vsub.f32 %v14206_v63, %v3382_v24  ;;  %v3453_v21 = vand.u32 4294901760, %v3452_v41  ;;  %v3459_v41 = vand.u32 4294901760, %v3458_v36 }
 0x1aa   :  { %3365 = vmatpush.msra.mxu0 %v14119_v60  ;;  %3510 = vmatpush.msra.mxu2 %v14122_v5  ;;  %v14282_v8 = vand.u32 4294901760, %v180_v38 }
 0x1ab   :  { %3418 = vmatpush.msra.mxu1 %v3417_v25  ;;  %3555 = vmatpush.msra.mxu3 %v14064_v16  ;;  %v3447_v25 = vand.u32 4294901760, %v3446_v22  ;;  %v14280_v22 = vsub.f32 %v151_v0, %v14246_v44  ;;  %v3470_v0 = vsub.f32 %v14232_v12, %v21627_v32  ;;  %v3384_v27 = vand.u32 4294901760, %v3383_v15 }
 0x1ac   :  { %3367 = vmatpush.msra.mxu0 %v14135_v4  ;;  %3513 = vmatpush.msra.mxu2 %v14138_v18  ;;  %v14310_v32 = vsub.f32 %v180_v38, %v14282_v8 }
 0x1ad   :  { %3424 = vmatpush.msra.mxu1 %v3423_v49  ;;  %3557 = vmatpush.msra.mxu3 %v14089_v53  ;;  %v14262_v49 = vand.u32 4294901760, %v181_v45  ;;  %v3471_v38 = vand.u32 4294901760, %v3470_v0 }
 0x1ae   :  { %3369 = vmatpush.msra.mxu0 %v14150_v2  ;;  %3516 = vmatpush.msra.mxu2 %v14154_v9  ;;  %v21635_v0 = vand.u32 4294901760, %v14310_v32 }
 0x1af   :  { %3430 = vmatpush.msra.mxu1 %v3429_v46  ;;  %3559 = vmatpush.msra.mxu3 %v14105_v3  ;;  %v14273_v46 = vsub.f32 %v182_v55, %v14237_v61  ;;  %v21630_v55 = vand.u32 4294901760, %v14252_v50 }
 0x1b0   :  { %3371 = vmatpush.msra.mxu0 %v14165_v26  ;;  %3519 = vmatpush.msra.mxu2 %v14169_v10 }
 0x1b1   :  { %3436 = vmatpush.msra.mxu1 %v3435_v30  ;;  %3561 = vmatpush.msra.mxu3 %v14119_v60  ;;  %v3464_v30 = vsub.f32 %v14214_v57, %v21623_v51  ;;  %v14297_v51 = vsub.f32 %v181_v45, %v14262_v49  ;;  %v21632_v62 = vand.u32 4294901760, %v14273_v46  ;;  %v21633_v45 = vand.u32 4294901760, %v14280_v22 }
 0x1b2   :  { %3373 = vmatpush.msra.mxu0 %v14182_v59  ;;  %3522 = vmatpush.msra.mxu2 %v14186_v6  ;;  %v3476_v15 = vsub.f32 %v14252_v50, %v21630_v55  ;;  %v14332_v55 = vsub.f32 %v178_v37, %v14302_v1 }
 0x1b3   :  { %3442 = vmatpush.msra.mxu1 %v3441_v43  ;;  %3563 = vmatpush.msra.mxu3 %v14135_v4  ;;  %v14290_v43 = vand.u32 4294901760, %v179_v58  ;;  %v3465_v36 = vand.u32 4294901760, %v3464_v30  ;;  %v21636_v30 = vand.u32 4294901760, %v14297_v51 }
 0x1b4   :  { %3375 = vmatpush.msra.mxu0 %v14194_v20  ;;  %3525 = vmatpush.msra.mxu2 %v14198_v13  ;;  %v3477_v37 = vand.u32 4294901760, %v3476_v15  ;;  %v21638_v28 = vand.u32 4294901760, %v14332_v55 }
 0x1b5   :  { %3448 = vmatpush.msra.mxu1 %v3447_v25  ;;  %3565 = vmatpush.msra.mxu3 %v14150_v2  ;;  %v177_v25 = vld [vmem:[%s21527_s1 + $0x4d0] sm:$0xff]  ;;  %v14318_v40 = vsub.f32 %v179_v58, %v14290_v43  ;;  %v3733_v58 = vsub.f32 %v14273_v46, %v21632_v62 }
 0x1b6   :  { %3377 = vmatpush.msra.mxu0 %v14221_v11  ;;  %3528 = vmatpush.msra.mxu2 %v14214_v57  ;;  %v14325_v29 = vand.u32 4294901760, %v177_v25 }
 0x1b7   :  { %3454 = vmatpush.msra.mxu1 %v3453_v21  ;;  %3567 = vmatpush.msra.mxu3 %v14165_v26  ;;  %v176_v21 = vld [vmem:[%s21527_s1 + $0x4c8] sm:$0xff]  ;;  %v21637_v62 = vand.u32 4294901760, %v14318_v40  ;;  %v3734_v15 = vand.u32 4294901760, %v3733_v58  ;;  %v14376_v58 = vand.u32 4294901760, %v174_v7 }
 0x1b8   :  { %3379 = vmatpush.msra.mxu0 %v14246_v44  ;;  %3531 = vmatpush.msra.mxu2 %v14232_v12  ;;  %v14343_v48 = vand.u32 4294901760, %v176_v21 }
 0x1b9   :  { %3460 = vmatpush.msra.mxu1 %v3459_v41  ;;  %3569 = vmatpush.msra.mxu3 %v14182_v59  ;;  %v175_v41 = vld [vmem:[%s21527_s1 + $0x4c0] sm:$0xff]  ;;  %v3751_v47 = vsub.f32 %v14318_v40, %v21637_v62  ;;  %v3757_v62 = vsub.f32 %v14332_v55, %v21638_v28 }
 0x1ba   :  { %3385 = vmatmul.f32.vlgmr.msra.gmra.mxu0 %v3384_v27  ;;  %3534 = vmatpush.msra.mxu2 %v14252_v50  ;;  %v3482_v27 = vsub.f32 %v14280_v22, %v21633_v45  ;;  %v14359_v45 = vand.u32 4294901760, %v175_v41 }
 0x1bb   :  { %3586 = vmatpush.msrb.mxu0 %v3391_v33  ;;  %3466 = vmatpush.msra.mxu1 %v3465_v36  ;;  %v3739_v33 = vsub.f32 %v14297_v51, %v21636_v30  ;;  %v14357_v36 = vsub.f32 %v177_v25, %v14325_v29  ;;  %v3745_v25 = vsub.f32 %v14310_v32, %v21635_v0  ;;  %v14393_v30 = vand.u32 4294901760, %v173_v31 }
 0x1bc   :  { %3571 = vmatpush.msra.mxu3 %v14194_v20  ;;  %3537 = vmatpush.msra.mxu2 %v14280_v22  ;;  %v3758_v28 = vand.u32 4294901760, %v3757_v62  ;;  %v21994_v62 = vand.u32 4294901760, %v14122_v5  ;;  %v168_v5 = vld [vmem:[%s21527_s1 + $0x488] sm:$0xff] }
 0x1bd   :  { %3590 = vmatpush.msrb.mxu0 %v3397_v56  ;;  %3472 = vmatpush.msra.mxu1 %v3471_v38  ;;  %v3483_v56 = vand.u32 4294901760, %v3482_v27  ;;  %v14374_v38 = vsub.f32 %v176_v21, %v14343_v48  ;;  %v21991_v27 = vand.u32 4294901760, %v14073_v39  ;;  %v3740_v21 = vand.u32 4294901760, %v3739_v33  ;;  %v171_v39 = vld [vmem:[%s21527_s1 + $0x4a0] sm:$0xff] }
 0x1be   :  { %3573 = vmatpush.msra.mxu3 %v14221_v11  ;;  %3540 = vmatmul.f32.vlgmr.msra.gmra.mxu2 %v14206_v63  ;;  %v21639_v0 = vand.u32 4294901760, %v14357_v36  ;;  %v21992_v63 = vand.u32 4294901760, %v14079_v52  ;;  %v14406_v33 = vsub.f32 %v174_v7, %v14376_v58 }
 0x1bf   :  { %3594 = vmatpush.msrb.mxu0 %v3403_v14  ;;  %3690 = vmatpush.msrb.mxu2 %v14237_v61  ;;  %v172_v14 = vld [vmem:[%s21527_s1 + $0x4a8] sm:$0xff] }
 0x1c0   :  { %3478 = vmatpush.msra.mxu1 %v3477_v37  ;;  %3575 = vmatpush.msra.mxu3 %v14246_v44  ;;  %v14391_v37 = vsub.f32 %v175_v41, %v14359_v45  ;;  %v21640_v41 = vand.u32 4294901760, %v14374_v38  ;;  %v3763_v52 = vsub.f32 %v14357_v36, %v21639_v0 }
 0x1c1   :  { %3579 = vmatmul.f32.vlgmr.msra.gmra.mxu3 %v3382_v24  ;;  %3598 = vmatpush.msrb.mxu0 %v21991_v27  ;;  %v3746_v24 = vand.u32 4294901760, %v3745_v25  ;;  %v14408_v27 = vand.u32 4294901760, %v172_v14  ;;  %v14421_v25 = vsub.f32 %v173_v31, %v14393_v30 }
 0x1c2   :  { %3692 = vmatpush.msrb.mxu2 %v14262_v49  ;;  %3735 = vmatpush.msrb.mxu3 %v3734_v15  ;;  %v3752_v15 = vand.u32 4294901760, %v3751_v47  ;;  %v21641_v7 = vand.u32 4294901760, %v14391_v37  ;;  %v21993_v47 = vand.u32 4294901760, %v14095_v17  ;;  %v169_v17 = vld [vmem:[%s21527_s1 + $0x490] sm:$0xff] }
 0x1c3   :  { %3484 = vmatpush.msra.mxu1 %v3483_v56  ;;  %3602 = vmatpush.msrb.mxu0 %v21992_v63  ;;  %v170_v56 = vld [vmem:[%s21527_s1 + $0x498] sm:$0xff]  ;;  %v14423_v63 = vand.u32 4294901760, %v171_v39  ;;  %v14434_v31 = vsub.f32 %v172_v14, %v14408_v27 }
 0x1c4   :  { %3486 = vmatmul.f32.vlgmr.msra.gmra.mxu1 %v14176_v54  ;;  %3694 = vmatpush.msrb.mxu2 %v14282_v8  ;;  %v14436_v0 = vand.u32 4294901760, %v170_v56  ;;  %v3775_v14 = vsub.f32 %v14391_v37, %v21641_v7 }
 0x1c5   :  { %3653 = vmatpush.msrb.mxu1 %v14009_v19  ;;  %3741 = vmatpush.msrb.mxu3 %v3740_v21  ;;  %v3769_v19 = vsub.f32 %v14374_v38, %v21640_v41  ;;  %v21642_v21 = vand.u32 4294901760, %v14406_v33  ;;  %v21995_v41 = vand.u32 4294901760, %v14138_v18  ;;  %v167_v18 = vld [vmem:[%s21527_s1 + $0x480] sm:$0xff] }
 0x1c6   :  { %3606 = vmatpush.msrb.mxu0 %v21993_v47  ;;  %3696 = vmatpush.msrb.mxu2 %v14290_v43  ;;  %v14450_v47 = vsub.f32 %v171_v39, %v14423_v63  ;;  %v14466_v7 = vsub.f32 %v170_v56, %v14436_v0 }
 0x1c7   :  { %3655 = vmatpush.msrb.mxu1 %v14019_v35  ;;  %3747 = vmatpush.msrb.mxu3 %v3746_v24  ;;  %v3764_v35 = vand.u32 4294901760, %v3763_v52  ;;  %v21643_v24 = vand.u32 4294901760, %v14421_v25  ;;  %v3781_v39 = vsub.f32 %v14406_v33, %v21642_v21  ;;  %v21997_v52 = vand.u32 4294901760, %v14169_v10 }
 0x1c8   :  { %3610 = vmatpush.msrb.mxu0 %v21994_v62  ;;  %3698 = vmatpush.msrb.mxu2 %v14302_v1  ;;  %v561_v62 = vld.sshfl [vmem:[#allocation1 + $0x8] sm:$0xff pattern:$0x73625140]  ;;  %v3798_v21 = vand.u32 4294901760, %v14450_v47  ;;  %v21999_v10 = vand.u32 4294901760, %v14186_v6 }
 0x1c9   :  { %3657 = vmatpush.msrb.mxu1 %v14029_v23  ;;  %3753 = vmatpush.msrb.mxu3 %v3752_v15  ;;  %v14458_v23 = vand.u32 4294901760, %v169_v17  ;;  %v3770_v15 = vand.u32 4294901760, %v3769_v19  ;;  %v3776_v19 = vand.u32 4294901760, %v3775_v14  ;;  %v3787_v56 = vsub.f32 %v14421_v25, %v21643_v24 }
 0x1ca   :  { %3614 = vmatpush.msrb.mxu0 %v21995_v41  ;;  %3700 = vmatpush.msrb.mxu2 %v14325_v29  ;;  %v21996_v41 = vand.u32 4294901760, %v14154_v9  ;;  %v3804_v24 = vand.u32 4294901760, %v14466_v7 }
 0x1cb   :  { %3659 = vmatpush.msrb.mxu1 %v14042_v34  ;;  %3759 = vmatpush.msrb.mxu3 %v3758_v28  ;;  %v14474_v34 = vand.u32 4294901760, %v168_v5  ;;  %v14476_v28 = vand.u32 4294901760, %v561_v62  ;;  %v14487_v9 = vsub.f32 %v169_v17, %v14458_v23 }
 0x1cc   :  { %3618 = vmatpush.msrb.mxu0 %v21996_v41  ;;  %3702 = vmatpush.msrb.mxu2 %v14343_v48  ;;  %v14489_v41 = vand.u32 4294901760, %v167_v18 }
 0x1cd   :  { %3661 = vmatpush.msrb.mxu1 %v14053_v42  ;;  %3765 = vmatpush.msrb.mxu3 %v3764_v35  ;;  %v3782_v42 = vand.u32 4294901760, %v3781_v39  ;;  %v21998_v35 = vand.u32 4294901760, %v14434_v31  ;;  %v14500_v17 = vsub.f32 %v168_v5, %v14474_v34  ;;  %v22000_v39 = vand.u32 4294901760, %v14198_v13 }
 0x1ce   :  { %3622 = vmatpush.msrb.mxu0 %v21997_v52  ;;  %3704 = vmatpush.msrb.mxu2 %v14359_v45  ;;  %v14503_v52 = vsub.f32 %v561_v62, %v14476_v28  ;;  %v3810_v6 = vand.u32 4294901760, %v14487_v9  ;;  %v14514_v5 = vsub.f32 %v167_v18, %v14489_v41  ;;  %v3805_v62 = vsub.f32 %v14466_v7, %v3804_v24 }
 0x1cf   :  { %3663 = vmatpush.msrb.mxu1 %v14064_v16  ;;  %3771 = vmatpush.msrb.mxu3 %v3770_v15  ;;  %v3793_v14 = vsub.f32 %v14434_v31, %v21998_v35  ;;  %v3788_v16 = vand.u32 4294901760, %v3787_v56  ;;  %v3799_v15 = vsub.f32 %v14450_v47, %v3798_v21  ;;  %v3816_v13 = vand.u32 4294901760, %v14500_v17 }
 0x1d0   :  { %3626 = vmatpush.msrb.mxu0 %v21999_v10  ;;  %3706 = vmatpush.msrb.mxu2 %v14376_v58  ;;  %v3723_v56 = vand.u32 4294901760, %v14503_v52  ;;  %v3806_v35 = vand.u32 4294901760, %v3805_v62 }
 0x1d1   :  { %3665 = vmatpush.msrb.mxu1 %v14089_v53  ;;  %3777 = vmatpush.msrb.mxu3 %v3776_v19  ;;  %v3794_v53 = vand.u32 4294901760, %v3793_v14  ;;  %v22001_v19 = vand.u32 4294901760, %v14214_v57  ;;  %v3800_v18 = vand.u32 4294901760, %v3799_v15  ;;  %v3811_v57 = vsub.f32 %v14487_v9, %v3810_v6  ;;  %v190_v15 = vld [vmem:[%s21527_s1 + $0x538] sm:$0xff] }
 0x1d2   :  { %3630 = vmatpush.msrb.mxu0 %v22000_v39  ;;  %3708 = vmatpush.msrb.mxu2 %v14393_v30  ;;  %v22003_v14 = vand.u32 4294901760, %v14252_v50 }
 0x1d3   :  { %3667 = vmatpush.msrb.mxu1 %v14105_v3  ;;  %3783 = vmatpush.msrb.mxu3 %v3782_v42  ;;  %v22002_v3 = vand.u32 4294901760, %v14232_v12  ;;  %v3822_v42 = vand.u32 4294901760, %v14514_v5  ;;  %v3724_v12 = vsub.f32 %v14503_v52, %v3723_v56  ;;  %v3812_v50 = vand.u32 4294901760, %v3811_v57 }
 0x1d4   :  { %3634 = vmatpush.msrb.mxu0 %v22001_v19  ;;  %3710 = vmatpush.msrb.mxu2 %v14408_v27 }
 0x1d5   :  { %3669 = vmatpush.msrb.mxu1 %v14119_v60  ;;  %3789 = vmatpush.msrb.mxu3 %v3788_v16  ;;  %v3817_v60 = vsub.f32 %v14500_v17, %v3816_v13  ;;  %v3823_v10 = vsub.f32 %v14514_v5, %v3822_v42 }
 0x1d6   :  { %3638 = vmatpush.msrb.mxu0 %v22002_v3  ;;  %3712 = vmatpush.msrb.mxu2 %v14423_v63 }
 0x1d7   :  { %3671 = vmatpush.msrb.mxu1 %v14135_v4  ;;  %3795 = vmatpush.msrb.mxu3 %v3794_v53  ;;  %v22004_v4 = vand.u32 4294901760, %v14280_v22  ;;  %v3818_v16 = vand.u32 4294901760, %v3817_v60  ;;  %v3824_v22 = vand.u32 4294901760, %v3823_v10  ;;  %v189_v53 = vld [vmem:[%s21527_s1 + $0x530] sm:$0xff]  ;;  %v186_v10 = vld [vmem:[%s21527_s1 + $0x518] sm:$0xff] }
 0x1d8   :  { %3642 = vmatpush.msrb.mxu0 %v22003_v14  ;;  %3714 = vmatpush.msrb.mxu2 %v14436_v0  ;;  %v187_v14 = vld [vmem:[%s21527_s1 + $0x520] sm:$0xff] }
 0x1d9   :  { %3673 = vmatpush.msrb.mxu1 %v14150_v2  ;;  %3801 = vmatpush.msrb.mxu3 %v3800_v18  ;;  %v3725_v2 = vand.u32 4294901760, %v3724_v12 }
 0x1da   :  { %3646 = vmatpush.msrb.mxu0 %v22004_v4  ;;  %3716 = vmatpush.msrb.mxu2 %v14458_v23 }
 0x1db   :  { %3675 = vmatpush.msrb.mxu1 %v14165_v26  ;;  %3807 = vmatpush.msrb.mxu3 %v3806_v35  ;;  %v22005_v26 = vand.u32 4294901760, %v14273_v46 }
 0x1dc   :  { %3648 = vmatmul.f32.vlgmr.msrb.gmra.mxu0 %v14176_v54  ;;  %3718 = vmatpush.msrb.mxu2 %v14474_v34 }
 0x1dd   :  { %3833 = vmatpush.msra.mxu0 %v14273_v46  ;;  %3677 = vmatpush.msrb.mxu1 %v14182_v59  ;;  %v22006_v59 = vand.u32 4294901760, %v14297_v51 }
 0x1de   :  { %3813 = vmatpush.msrb.mxu3 %v3812_v50  ;;  %3720 = vmatpush.msrb.mxu2 %v14489_v41 }
 0x1df   :  { %3836 = vmatpush.msra.mxu0 %v14297_v51  ;;  %3679 = vmatpush.msrb.mxu1 %v14194_v20  ;;  %v22007_v20 = vand.u32 4294901760, %v14310_v32  ;;  %v22014_v51 = vand.u32 4294901760, %v14421_v25 }
 0x1e0   :  { %3819 = vmatpush.msrb.mxu3 %v3818_v16  ;;  %3726 = vmatmul.f32.vlgmr.msrb.gmra.mxu2 %v3725_v2  ;;  %v14771_v2 = vand.u32 4294901760, %v187_v14 }
 0x1e1   :  { %3839 = vmatpush.msra.mxu0 %v14310_v32  ;;  %3927 = vmatpush.msra.mxu2 %v22005_v26 }
 0x1e2   :  { %3681 = vmatpush.msrb.mxu1 %v14221_v11  ;;  %3825 = vmatpush.msrb.mxu3 %v3824_v22  ;;  %v22008_v11 = vand.u32 4294901760, %v14318_v40 }
 0x1e3   :  { %3827 = vmatmul.f32.vlgmr.msrb.gmra.mxu3 %v14476_v28  ;;  %3842 = vmatpush.msra.mxu0 %v14318_v40  ;;  %v22011_v40 = vand.u32 4294901760, %v14374_v38 }
 0x1e4   :  { %3931 = vmatpush.msra.mxu2 %v22006_v59  ;;  %3994 = vmatpush.msra.mxu3 %v14237_v61 }
 0x1e5   :  { %3683 = vmatpush.msrb.mxu1 %v14246_v44  ;;  %3845 = vmatpush.msra.mxu0 %v14332_v55  ;;  %v22013_v44 = vand.u32 4294901760, %v14406_v33 }
 0x1e6   :  { %3685 = vmatmul.f32.vlgmr.msrb.gmra.mxu1 %v14176_v54  ;;  %3935 = vmatpush.msra.mxu2 %v22007_v20  ;;  %v22009_v54 = vand.u32 4294901760, %v14332_v55  ;;  %v195_v55 = vld [vmem:[%s21527_s1 + $0x560] sm:$0xff]  ;;  %v185_v20 = vld [vmem:[%s21527_s1 + $0x510] sm:$0xff] }
 0x1e7   :  { %3886 = vmatpush.msra.mxu1 %v14237_v61  ;;  %3996 = vmatpush.msra.mxu3 %v14262_v49  ;;  %v22010_v61 = vand.u32 4294901760, %v14357_v36 }
 0x1e8   :  { %3848 = vmatpush.msra.mxu0 %v14357_v36  ;;  %3939 = vmatpush.msra.mxu2 %v22008_v11  ;;  %v194_v36 = vld [vmem:[%s21527_s1 + $0x558] sm:$0xff] }
 0x1e9   :  { %3888 = vmatpush.msra.mxu1 %v14262_v49  ;;  %3998 = vmatpush.msra.mxu3 %v14282_v8  ;;  %v196_v49 = vld [vmem:[%s21527_s1 + $0x568] sm:$0xff] }
 0x1ea   :  { %3851 = vmatpush.msra.mxu0 %v14374_v38  ;;  %3943 = vmatpush.msra.mxu2 %v22009_v54 }
 0x1eb   :  { %3890 = vmatpush.msra.mxu1 %v14282_v8  ;;  %4000 = vmatpush.msra.mxu3 %v14290_v43  ;;  %v22012_v8 = vand.u32 4294901760, %v14391_v37 }
 0x1ec   :  { %3854 = vmatpush.msra.mxu0 %v14391_v37  ;;  %3947 = vmatpush.msra.mxu2 %v22010_v61  ;;  %v14659_v37 = vand.u32 4294901760, %v194_v36  ;;  %v14788_v61 = vand.u32 4294901760, %v186_v10 }
 0x1ed   :  { %3892 = vmatpush.msra.mxu1 %v14290_v43  ;;  %4002 = vmatpush.msra.mxu3 %v14302_v1  ;;  %v14635_v43 = vand.u32 4294901760, %v196_v49 }
 0x1ee   :  { %3857 = vmatpush.msra.mxu0 %v14406_v33  ;;  %3951 = vmatpush.msra.mxu2 %v22011_v40 }
 0x1ef   :  { %3894 = vmatpush.msra.mxu1 %v14302_v1  ;;  %4004 = vmatpush.msra.mxu3 %v14325_v29  ;;  %v198_v1 = vld [vmem:[%s21527_s1 + $0x578] sm:$0xff] }
 0x1f0   :  { %3860 = vmatpush.msra.mxu0 %v14421_v25  ;;  %3955 = vmatpush.msra.mxu2 %v22012_v8  ;;  %v14615_v32 = vand.u32 4294901760, %v198_v1  ;;  %v192_v25 = vld [vmem:[%s21527_s1 + $0x548] sm:$0xff] }
 0x1f1   :  { %3896 = vmatpush.msra.mxu1 %v14325_v29  ;;  %4006 = vmatpush.msra.mxu3 %v14343_v48  ;;  %v197_v29 = vld [vmem:[%s21527_s1 + $0x570] sm:$0xff] }
 0x1f2   :  { %3863 = vmatpush.msra.mxu0 %v14434_v31  ;;  %3959 = vmatpush.msra.mxu2 %v22013_v44  ;;  %v14625_v46 = vand.u32 4294901760, %v197_v29 }
 0x1f3   :  { %3898 = vmatpush.msra.mxu1 %v14343_v48  ;;  %4008 = vmatpush.msra.mxu3 %v14359_v45  ;;  %v22015_v48 = vand.u32 4294901760, %v14434_v31  ;;  %v14685_v31 = vsub.f32 %v194_v36, %v14659_v37 }
 0x1f4   :  { %3866 = vmatpush.msra.mxu0 %v14450_v47  ;;  %3963 = vmatpush.msra.mxu2 %v22014_v51  ;;  %v14651_v38 = vsub.f32 %v197_v29, %v14625_v46  ;;  %v14695_v47 = vand.u32 4294901760, %v192_v25  ;;  %v14800_v51 = vand.u32 4294901760, %v185_v20 }
 0x1f5   :  { %3900 = vmatpush.msra.mxu1 %v14359_v45  ;;  %4010 = vmatpush.msra.mxu3 %v14376_v58  ;;  %v14638_v45 = vsub.f32 %v198_v1, %v14615_v32 }
 0x1f6   :  { %3869 = vmatpush.msra.mxu0 %v14466_v7  ;;  %3967 = vmatpush.msra.mxu2 %v22015_v48  ;;  %v14804_v48 = vsub.f32 %v187_v14, %v14771_v2 }
 0x1f7   :  { %3902 = vmatpush.msra.mxu1 %v14376_v58  ;;  %4012 = vmatpush.msra.mxu3 %v14393_v30  ;;  %v193_v58 = vld [vmem:[%s21527_s1 + $0x550] sm:$0xff]  ;;  %v4073_v33 = vand.u32 4294901760, %v14638_v45 }
 0x1f8   :  { %3872 = vmatpush.msra.mxu0 %v14487_v9  ;;  %3971 = vmatpush.msra.mxu2 %v3798_v21  ;;  %v14670_v7 = vand.u32 4294901760, %v193_v58 }
 0x1f9   :  { %3904 = vmatpush.msra.mxu1 %v14393_v30  ;;  %4014 = vmatpush.msra.mxu3 %v14408_v27  ;;  %v14648_v30 = vand.u32 4294901760, %v195_v55 }
 0x1fa   :  { %3875 = vmatpush.msra.mxu0 %v14500_v17  ;;  %3975 = vmatpush.msra.mxu2 %v3804_v24  ;;  %v191_v24 = vld [vmem:[%s21527_s1 + $0x540] sm:$0xff]  ;;  %v14701_v17 = vsub.f32 %v193_v58, %v14670_v7 }
 0x1fb   :  { %3906 = vmatpush.msra.mxu1 %v14408_v27  ;;  %4016 = vmatpush.msra.mxu3 %v14423_v63  ;;  %v14665_v27 = vsub.f32 %v196_v49, %v14635_v43  ;;  %v14679_v21 = vsub.f32 %v195_v55, %v14648_v30  ;;  %v14711_v39 = vand.u32 4294901760, %v191_v24  ;;  %v184_v49 = vld [vmem:[%s21527_s1 + $0x508] sm:$0xff] }
 0x1fc   :  { %3878 = vmatpush.msra.mxu0 %v14514_v5  ;;  %3979 = vmatpush.msra.mxu2 %v3810_v6  ;;  %v21654_v5 = vand.u32 4294901760, %v14685_v31  ;;  %v21652_v18 = vand.u32 4294901760, %v14701_v17 }
 0x1fd   :  { %3908 = vmatpush.msra.mxu1 %v14423_v63  ;;  %4018 = vmatpush.msra.mxu3 %v14436_v0  ;;  %v4079_v63 = vand.u32 4294901760, %v14651_v38  ;;  %v4085_v9 = vand.u32 4294901760, %v14665_v27  ;;  %v21657_v6 = vand.u32 4294901760, %v14679_v21  ;;  %v14744_v35 = vsub.f32 %v191_v24, %v14711_v39 }
 0x1fe   :  { %3881 = vmatmul.f32.vlgmr.msra.gmra.mxu0 %v14503_v52  ;;  %3983 = vmatpush.msra.mxu2 %v3816_v13  ;;  %v14725_v13 = vand.u32 4294901760, %v190_v15  ;;  %v4104_v50 = vsub.f32 %v14701_v17, %v21652_v18  ;;  %v14820_v24 = vsub.f32 %v186_v10, %v14788_v61 }
 0x1ff   :  { %4031 = vmatpush.msrb.mxu0 %v14615_v32  ;;  %3910 = vmatpush.msra.mxu1 %v14436_v0  ;;  %v4074_v0 = vsub.f32 %v14638_v45, %v4073_v33  ;;  %v4086_v19 = vsub.f32 %v14665_v27, %v4085_v9  ;;  %v4092_v57 = vsub.f32 %v14679_v21, %v21657_v6  ;;  %v21649_v22 = vand.u32 4294901760, %v14744_v35 }
 0x200   :  { %4020 = vmatpush.msra.mxu3 %v14458_v23  ;;  %3987 = vmatpush.msra.mxu2 %v3822_v42  ;;  %v14741_v42 = vand.u32 4294901760, %v189_v53  ;;  %v14760_v52 = vsub.f32 %v190_v15, %v14725_v13  ;;  %v4105_v44 = vand.u32 4294901760, %v4104_v50  ;;  %v14827_v15 = vand.u32 4294901760, %v184_v49 }
 0x201   :  { %4033 = vmatpush.msrb.mxu0 %v14625_v46  ;;  %3912 = vmatpush.msra.mxu1 %v14458_v23  ;;  %v4080_v23 = vsub.f32 %v14651_v38, %v4079_v63  ;;  %v4075_v62 = vand.u32 4294901760, %v4074_v0  ;;  %v4087_v60 = vand.u32 4294901760, %v4086_v19  ;;  %v4093_v16 = vand.u32 4294901760, %v4092_v57  ;;  %v214_v0 = vld [vmem:[%s21527_s1 + $0x5f8] sm:$0xff] }
 0x202   :  { %4022 = vmatpush.msra.mxu3 %v14474_v34  ;;  %3989 = vmatmul.f32.vlgmr.msra.gmra.mxu2 %v14476_v28  ;;  %v14775_v26 = vsub.f32 %v189_v53, %v14741_v42  ;;  %v21648_v40 = vand.u32 4294901760, %v14760_v52  ;;  %v4116_v1 = vsub.f32 %v14744_v35, %v21649_v22  ;;  %v21644_v19 = vand.u32 4294901760, %v14804_v48 }
 0x203   :  { %4035 = vmatpush.msrb.mxu0 %v14635_v43  ;;  %4174 = vmatpush.msrb.mxu2 %v14638_v45  ;;  %v4081_v3 = vand.u32 4294901760, %v4080_v23  ;;  %v183_v23 = vld [vmem:[%s21527_s1 + $0x500] sm:$0xff]  ;;  %v14843_v57 = vand.u32 4294901760, %v214_v0  ;;  %v21646_v50 = vand.u32 4294901760, %v14820_v24  ;;  %v14858_v10 = vsub.f32 %v184_v49, %v14827_v15  ;;  %v206_v45 = vld [vmem:[%s21527_s1 + $0x5b8] sm:$0xff] }
 0x204   :  { %3914 = vmatpush.msra.mxu1 %v14474_v34  ;;  %4024 = vmatpush.msra.mxu3 %v14489_v41  ;;  %v14728_v34 = vsub.f32 %v192_v25, %v14695_v47  ;;  %v21647_v29 = vand.u32 4294901760, %v14775_v26  ;;  %v4122_v58 = vsub.f32 %v14760_v52, %v21648_v40  ;;  %v4117_v53 = vand.u32 4294901760, %v4116_v1  ;;  %v211_v1 = vld [vmem:[%s21527_s1 + $0x5e0] sm:$0xff] }
 0x205   :  { %4026 = vmatmul.f32.vlgmr.msra.gmra.mxu3 %v14476_v28  ;;  %4037 = vmatpush.msrb.mxu0 %v14648_v30  ;;  %v188_v28 = vld [vmem:[%s21527_s1 + $0x528] sm:$0xff] }
 0x206   :  { %4177 = vmatpush.msrb.mxu2 %v14651_v38  ;;  %4227 = vmatpush.msrb.mxu3 %v14615_v32  ;;  %v14756_v12 = vand.u32 4294901760, %v188_v28  ;;  %v21651_v4 = vand.u32 4294901760, %v14728_v34  ;;  %v4123_v14 = vand.u32 4294901760, %v4122_v58  ;;  %v205_v38 = vld [vmem:[%s21527_s1 + $0x5b0] sm:$0xff] }
 0x207   :  { %3916 = vmatpush.msra.mxu1 %v14489_v41  ;;  %4039 = vmatpush.msrb.mxu0 %v14659_v37  ;;  %v4098_v41 = vsub.f32 %v14685_v31, %v21654_v5  ;;  %v15004_v6 = vand.u32 4294901760, %v205_v38 }
 0x208   :  { %3920 = vmatmul.f32.vlgmr.msra.gmra.mxu1 %v3723_v56  ;;  %4180 = vmatpush.msrb.mxu2 %v14665_v27  ;;  %v562_v56 = vld.sshfl [vmem:[#allocation1 + $0x10] sm:$0xff pattern:$0x73625140]  ;;  %v4110_v54 = vsub.f32 %v14728_v34, %v21651_v4  ;;  %v14792_v8 = vsub.f32 %v188_v28, %v14756_v12  ;;  %v14838_v28 = vsub.f32 %v185_v20, %v14800_v51 }
 0x209   :  { %4076 = vmatpush.msrb.mxu1 %v4075_v62  ;;  %4229 = vmatpush.msrb.mxu3 %v14625_v46  ;;  %v4099_v59 = vand.u32 4294901760, %v4098_v41  ;;  %v14782_v11 = vand.u32 4294901760, %v562_v56  ;;  %v4128_v62 = vsub.f32 %v14775_v26, %v21647_v29  ;;  %v213_v41 = vld [vmem:[%s21527_s1 + $0x5f0] sm:$0xff]  ;;  %v4140_v20 = vsub.f32 %v14804_v48, %v21644_v19 }
 0x20a   :  { %4041 = vmatpush.msrb.mxu0 %v14670_v7  ;;  %4183 = vmatpush.msrb.mxu2 %v14679_v21  ;;  %v4111_v36 = vand.u32 4294901760, %v4110_v54  ;;  %v21645_v25 = vand.u32 4294901760, %v14792_v8  ;;  %v21650_v54 = vand.u32 4294901760, %v14838_v28 }
 0x20b   :  { %4082 = vmatpush.msrb.mxu1 %v4081_v3  ;;  %4231 = vmatpush.msrb.mxu3 %v14635_v43  ;;  %v14812_v55 = vsub.f32 %v562_v56, %v14782_v11  ;;  %v14852_v56 = vand.u32 4294901760, %v183_v23 }
 0x20c   :  { %4043 = vmatpush.msrb.mxu0 %v14695_v47  ;;  %4186 = vmatpush.msrb.mxu2 %v14685_v31 }
 0x20d   :  { %4088 = vmatpush.msrb.mxu1 %v4087_v60  ;;  %4233 = vmatpush.msrb.mxu3 %v14648_v30  ;;  %v4064_v3 = vand.u32 4294901760, %v14812_v55  ;;  %v4134_v60 = vsub.f32 %v14792_v8, %v21645_v25  ;;  %22016 = vst [vmem:[#allocation5_spill] sm:$0xff] %v14852_v56  ;;  %v210_v25 = vld [vmem:[%s21527_s1 + $0x5d8] sm:$0xff] }
 0x20e   :  { %4045 = vmatpush.msrb.mxu0 %v14711_v39  ;;  %4189 = vmatpush.msrb.mxu2 %v14701_v17  ;;  %v14908_v22 = vand.u32 4294901760, %v210_v25 }
 0x20f   :  { %4094 = vmatpush.msrb.mxu1 %v4093_v16  ;;  %4235 = vmatpush.msrb.mxu3 %v14659_v37  ;;  %v212_v16 = vld [vmem:[%s21527_s1 + $0x5e8] sm:$0xff]  ;;  %v4065_v49 = vsub.f32 %v14812_v55, %v4064_v3  ;;  %v4135_v58 = vand.u32 4294901760, %v4134_v60  ;;  %v4141_v60 = vand.u32 4294901760, %v4140_v20 }
 0x210   :  { %4047 = vmatpush.msrb.mxu0 %v14725_v13  ;;  %4192 = vmatpush.msrb.mxu2 %v14728_v34  ;;  %v14888_v19 = vand.u32 4294901760, %v212_v16 }
 0x211   :  { %4100 = vmatpush.msrb.mxu1 %v4099_v59  ;;  %4237 = vmatpush.msrb.mxu3 %v14670_v7  ;;  %v4129_v59 = vand.u32 4294901760, %v4128_v62  ;;  %v14886_v62 = vsub.f32 %v183_v23, %v14852_v56  ;;  %v4152_v23 = vsub.f32 %v14838_v28, %v21650_v54  ;;  %v4066_v29 = vand.u32 4294901760, %v4065_v49 }
 0x212   :  { %4049 = vmatpush.msrb.mxu0 %v14741_v42  ;;  %4195 = vmatpush.msrb.mxu2 %v14744_v35  ;;  %v14916_v54 = vsub.f32 %v212_v16, %v14888_v19 }
 0x213   :  { %4106 = vmatpush.msrb.mxu1 %v4105_v44  ;;  %4239 = vmatpush.msrb.mxu3 %v14695_v47  ;;  %v14868_v44 = vand.u32 4294901760, %v213_v41  ;;  %v4153_v16 = vand.u32 4294901760, %v4152_v23 }
 0x214   :  { %4051 = vmatpush.msrb.mxu0 %v14756_v12  ;;  %4198 = vmatpush.msrb.mxu2 %v14760_v52  ;;  %v21658_v23 = vand.u32 4294901760, %v14916_v54 }
 0x215   :  { %4112 = vmatpush.msrb.mxu1 %v4111_v36  ;;  %4241 = vmatpush.msrb.mxu3 %v14711_v39  ;;  %v14879_v36 = vsub.f32 %v214_v0, %v14843_v57  ;;  %v21653_v0 = vand.u32 4294901760, %v14858_v10 }
 0x216   :  { %4053 = vmatpush.msrb.mxu0 %v14771_v2  ;;  %4201 = vmatpush.msrb.mxu2 %v14775_v26 }
 0x217   :  { %4118 = vmatpush.msrb.mxu1 %v4117_v53  ;;  %4243 = vmatpush.msrb.mxu3 %v14725_v13  ;;  %v4146_v53 = vsub.f32 %v14820_v24, %v21646_v50  ;;  %v14903_v50 = vsub.f32 %v213_v41, %v14868_v44  ;;  %v21655_v40 = vand.u32 4294901760, %v14879_v36  ;;  %v21656_v41 = vand.u32 4294901760, %v14886_v62 }
 0x218   :  { %4055 = vmatpush.msrb.mxu0 %v14788_v61  ;;  %4204 = vmatpush.msrb.mxu2 %v14792_v8  ;;  %v4158_v49 = vsub.f32 %v14858_v10, %v21653_v0  ;;  %v14938_v0 = vsub.f32 %v210_v25, %v14908_v22 }
 0x219   :  { %4124 = vmatpush.msrb.mxu1 %v4123_v14  ;;  %4245 = vmatpush.msrb.mxu3 %v14741_v42  ;;  %v14896_v14 = vand.u32 4294901760, %v211_v1  ;;  %v4147_v20 = vand.u32 4294901760, %v4146_v53  ;;  %v21659_v53 = vand.u32 4294901760, %v14903_v50 }
 0x21a   :  { %4057 = vmatpush.msrb.mxu0 %v14800_v51  ;;  %4207 = vmatpush.msrb.mxu2 %v14804_v48  ;;  %v4159_v25 = vand.u32 4294901760, %v4158_v49 }
 0x21b   :  { %4130 = vmatpush.msrb.mxu1 %v4129_v59  ;;  %4247 = vmatpush.msrb.mxu3 %v14756_v12  ;;  %v209_v59 = vld [vmem:[%s21527_s1 + $0x5d0] sm:$0xff]  ;;  %v14924_v4 = vsub.f32 %v211_v1, %v14896_v14  ;;  %v4415_v1 = vsub.f32 %v14879_v36, %v21655_v40 }
 0x21c   :  { %4059 = vmatpush.msrb.mxu0 %v14827_v15  ;;  %4210 = vmatpush.msrb.mxu2 %v14820_v24  ;;  %v14931_v18 = vand.u32 4294901760, %v209_v59 }
 0x21d   :  { %4136 = vmatpush.msrb.mxu1 %v4135_v58  ;;  %4249 = vmatpush.msrb.mxu3 %v14771_v2  ;;  %v208_v58 = vld [vmem:[%s21527_s1 + $0x5c8] sm:$0xff]  ;;  %v21660_v40 = vand.u32 4294901760, %v14924_v4  ;;  %v4416_v49 = vand.u32 4294901760, %v4415_v1  ;;  %v14982_v1 = vand.u32 4294901760, %v206_v45 }
 0x21e   :  { %4061 = vmatpush.msrb.mxu0 %v14852_v56  ;;  %4213 = vmatpush.msrb.mxu2 %v14838_v28  ;;  %v14949_v5 = vand.u32 4294901760, %v208_v58 }
 0x21f   :  { %4142 = vmatpush.msrb.mxu1 %v4141_v60  ;;  %4251 = vmatpush.msrb.mxu3 %v14788_v61  ;;  %v207_v60 = vld [vmem:[%s21527_s1 + $0x5c0] sm:$0xff]  ;;  %v4433_v27 = vsub.f32 %v14924_v4, %v21660_v40 }
 0x220   :  { %4067 = vmatmul.f32.vlgmr.msrb.gmra.mxu0 %v4066_v29  ;;  %4216 = vmatpush.msrb.mxu2 %v14858_v10  ;;  %v4164_v29 = vsub.f32 %v14886_v62, %v21656_v41  ;;  %v14965_v41 = vand.u32 4294901760, %v207_v60 }
 0x221   :  { %4268 = vmatpush.msra.mxu0 %v4073_v33  ;;  %4148 = vmatpush.msrb.mxu1 %v4147_v20  ;;  %v4421_v33 = vsub.f32 %v14903_v50, %v21659_v53  ;;  %v14963_v20 = vsub.f32 %v209_v59, %v14931_v18  ;;  %v4427_v59 = vsub.f32 %v14916_v54, %v21658_v23  ;;  %v14994_v23 = vld.sshfl [vmem:[#allocation1 + $0x18] sm:$0xff pattern:$0x73625140] }
 0x222   :  { %4253 = vmatpush.msrb.mxu3 %v14800_v51  ;;  %4219 = vmatpush.msrb.mxu2 %v14886_v62  ;;  %v15002_v40 = vsub.f32 %v207_v60, %v14965_v41 }
 0x223   :  { %4272 = vmatpush.msra.mxu0 %v4079_v63  ;;  %4154 = vmatpush.msrb.mxu1 %v4153_v16  ;;  %v4165_v63 = vand.u32 4294901760, %v4164_v29  ;;  %v14980_v16 = vsub.f32 %v208_v58, %v14949_v5  ;;  %v19_v29 = vld [vmem:[%s21526_s0 + $0x20] sm:$0xff]  ;;  %v22017_v58 = vand.u32 4294901760, %v14679_v21  ;;  %v21662_v53 = vand.u32 4294901760, %v14963_v20 }
 0x224   :  { %4255 = vmatpush.msrb.mxu3 %v14827_v15  ;;  %4222 = vmatmul.f32.vlgmr.msrb.gmra.mxu2 %v14812_v55  ;;  %568 = vst [vmem:[#allocation1] ss:$4 sm:$0xff] %v19_v29  ;;  %v203_v21 = vld [vmem:[%s21527_s1 + $0x5a0] sm:$0xff]  ;;  %v4428_v60 = vand.u32 4294901760, %v4427_v59  ;;  %v15017_v29 = vsub.f32 %v206_v45, %v14982_v1  ;;  %v21663_v45 = vand.u32 4294901760, %v15002_v40 }
 0x225   :  { %4276 = vmatpush.msra.mxu0 %v4085_v9  ;;  %4372 = vmatpush.msra.mxu2 %v14843_v57  ;;  %v204_v9 = vld [vmem:[%s21527_s1 + $0x5a8] sm:$0xff]  ;;  %v15034_v59 = vand.u32 4294901760, %v203_v21 }
 0x226   :  { %4160 = vmatpush.msrb.mxu1 %v4159_v25  ;;  %4257 = vmatpush.msrb.mxu3 %v14852_v56  ;;  %v4422_v25 = vand.u32 4294901760, %v4421_v33  ;;  %v22018_v56 = vand.u32 4294901760, %v14938_v0  ;;  %v21665_v33 = vand.u32 4294901760, %v14980_v16 }
 0x227   :  { %4261 = vmatmul.f32.vlgmr.msrb.gmra.mxu3 %v4064_v3  ;;  %4280 = vmatpush.msra.mxu0 %v22017_v58  ;;  %v22019_v3 = vand.u32 4294901760, %v14685_v31  ;;  %v15019_v58 = vand.u32 4294901760, %v204_v9  ;;  %v4445_v31 = vsub.f32 %v14963_v20, %v21662_v53 }
 0x228   :  { %4374 = vmatpush.msra.mxu2 %v14868_v44  ;;  %4417 = vmatpush.msra.mxu3 %v4416_v49  ;;  %v4439_v55 = vsub.f32 %v14938_v0, %v22018_v56  ;;  %v4434_v56 = vand.u32 4294901760, %v4433_v27  ;;  %v202_v49 = vld [vmem:[%s21527_s1 + $0x598] sm:$0xff]  ;;  %v22020_v27 = vand.u32 4294901760, %v14701_v17  ;;  %v201_v17 = vld [vmem:[%s21527_s1 + $0x590] sm:$0xff] }
 0x229   :  { %4166 = vmatpush.msrb.mxu1 %v4165_v63  ;;  %4284 = vmatpush.msra.mxu0 %v22019_v3  ;;  %v15032_v63 = vsub.f32 %v205_v38, %v15004_v6  ;;  %v15045_v38 = vsub.f32 %v204_v9, %v15019_v58  ;;  %v15047_v53 = vand.u32 4294901760, %v202_v49  ;;  %v4457_v9 = vsub.f32 %v15002_v40, %v21663_v45 }
 0x22a   :  { %4168 = vmatmul.f32.vlgmr.msrb.gmra.mxu1 %v14782_v11  ;;  %4376 = vmatpush.msra.mxu2 %v14888_v19  ;;  %v4440_v3 = vand.u32 4294901760, %v4439_v55  ;;  %v22021_v55 = vand.u32 4294901760, %v14728_v34  ;;  %v200_v34 = vld [vmem:[%s21527_s1 + $0x588] sm:$0xff] }
 0x22b   :  { %4335 = vmatpush.msra.mxu1 %v14615_v32  ;;  %4423 = vmatpush.msra.mxu3 %v4422_v25  ;;  %v4451_v32 = vsub.f32 %v14980_v16, %v21665_v33  ;;  %v21664_v25 = vand.u32 4294901760, %v15017_v29  ;;  %v15077_v45 = vsub.f32 %v202_v49, %v15047_v53 }
 0x22c   :  { %4288 = vmatpush.msra.mxu0 %v22020_v27  ;;  %4378 = vmatpush.msra.mxu2 %v14896_v14  ;;  %v15061_v27 = vsub.f32 %v203_v21, %v15034_v59 }
 0x22d   :  { %4337 = vmatpush.msra.mxu1 %v14625_v46  ;;  %4429 = vmatpush.msra.mxu3 %v4428_v60  ;;  %v4446_v46 = vand.u32 4294901760, %v4445_v31  ;;  %v4468_v60 = vand.u32 4294901760, %v15032_v63  ;;  %v4463_v21 = vsub.f32 %v15017_v29, %v21664_v25  ;;  %v4474_v31 = vand.u32 4294901760, %v15045_v38 }
 0x22e   :  { %4292 = vmatpush.msra.mxu0 %v22021_v55  ;;  %4380 = vmatpush.msra.mxu2 %v14908_v22  ;;  %v22022_v55 = vand.u32 4294901760, %v14744_v35  ;;  %v199_v35 = vld [vmem:[%s21527_s1 + $0x580] sm:$0xff]  ;;  %v4480_v25 = vand.u32 4294901760, %v15061_v27 }
 0x22f   :  { %4339 = vmatpush.msra.mxu1 %v14635_v43  ;;  %4435 = vmatpush.msra.mxu3 %v4434_v56  ;;  %v15069_v43 = vand.u32 4294901760, %v201_v17  ;;  %v4452_v56 = vand.u32 4294901760, %v4451_v32  ;;  %v4458_v32 = vand.u32 4294901760, %v4457_v9  ;;  %v4469_v49 = vsub.f32 %v15032_v63, %v4468_v60 }
 0x230   :  { %4296 = vmatpush.msra.mxu0 %v22022_v55  ;;  %4382 = vmatpush.msra.mxu2 %v14931_v18  ;;  %v22023_v55 = vand.u32 4294901760, %v14760_v52  ;;  %v22024_v52 = vand.u32 4294901760, %v14775_v26  ;;  %v15101_v33 = vand.u32 4294901760, %v199_v35  ;;  %v4486_v9 = vand.u32 4294901760, %v15077_v45 }
 0x231   :  { %4341 = vmatpush.msra.mxu1 %v14648_v30  ;;  %4441 = vmatpush.msra.mxu3 %v4440_v3  ;;  %v15085_v30 = vand.u32 4294901760, %v200_v34  ;;  %v15088_v3 = vand.u32 4294901760, %v14994_v23  ;;  %v22025_v26 = vand.u32 4294901760, %v14792_v8  ;;  %v22026_v8 = vand.u32 4294901760, %v14804_v48 }
 0x232   :  { %4300 = vmatpush.msra.mxu0 %v22023_v55  ;;  %4384 = vmatpush.msra.mxu2 %v14949_v5  ;;  %v15099_v55 = vsub.f32 %v201_v17, %v15069_v43 }
 0x233   :  { %4343 = vmatpush.msra.mxu1 %v14659_v37  ;;  %4447 = vmatpush.msra.mxu3 %v4446_v46  ;;  %v4464_v37 = vand.u32 4294901760, %v4463_v21  ;;  %v4475_v46 = vsub.f32 %v15045_v38, %v4474_v31  ;;  %v15112_v17 = vsub.f32 %v200_v34, %v15085_v30  ;;  %v15127_v21 = vsub.f32 %v199_v35, %v15101_v33 }
 0x234   :  { %4304 = vmatpush.msra.mxu0 %v22024_v52  ;;  %4386 = vmatpush.msra.mxu2 %v14965_v41  ;;  %v15116_v52 = vsub.f32 %v14994_v23, %v15088_v3  ;;  %v4492_v34 = vand.u32 4294901760, %v15099_v55  ;;  %v4487_v23 = vsub.f32 %v15077_v45, %v4486_v9 }
 0x235   :  { %4345 = vmatpush.msra.mxu1 %v14670_v7  ;;  %4453 = vmatpush.msra.mxu3 %v4452_v56  ;;  %v4470_v7 = vand.u32 4294901760, %v4469_v49  ;;  %v4481_v56 = vsub.f32 %v15061_v27, %v4480_v25  ;;  %v4498_v48 = vand.u32 4294901760, %v15112_v17 }
 0x236   :  { %4308 = vmatpush.msra.mxu0 %v22025_v26  ;;  %4388 = vmatpush.msra.mxu2 %v14982_v1  ;;  %v4405_v49 = vand.u32 4294901760, %v15116_v52  ;;  %v22029_v26 = vand.u32 4294901760, %v14858_v10 }
 0x237   :  { %4347 = vmatpush.msra.mxu1 %v14695_v47  ;;  %4459 = vmatpush.msra.mxu3 %v4458_v32  ;;  %v4476_v47 = vand.u32 4294901760, %v4475_v46  ;;  %v22027_v32 = vand.u32 4294901760, %v14820_v24  ;;  %v4482_v35 = vand.u32 4294901760, %v4481_v56  ;;  %v4493_v24 = vsub.f32 %v15099_v55, %v4492_v34 }
 0x238   :  { %4312 = vmatpush.msra.mxu0 %v22026_v8  ;;  %4390 = vmatpush.msra.mxu2 %v15004_v6  ;;  %v4488_v46 = vand.u32 4294901760, %v4487_v23 }
 0x239   :  { %4349 = vmatpush.msra.mxu1 %v14711_v39  ;;  %4465 = vmatpush.msra.mxu3 %v4464_v37  ;;  %v22028_v39 = vand.u32 4294901760, %v14838_v28  ;;  %v4504_v37 = vand.u32 4294901760, %v15127_v21  ;;  %v4406_v28 = vsub.f32 %v15116_v52, %v4405_v49  ;;  %v4494_v10 = vand.u32 4294901760, %v4493_v24 }
 0x23a   :  { %4316 = vmatpush.msra.mxu0 %v22027_v32  ;;  %4392 = vmatpush.msra.mxu2 %v15019_v58 }
 0x23b   :  { %4351 = vmatpush.msra.mxu1 %v14725_v13  ;;  %4471 = vmatpush.msra.mxu3 %v4470_v7  ;;  %v4499_v13 = vsub.f32 %v15112_v17, %v4498_v48  ;;  %v4505_v7 = vsub.f32 %v15127_v21, %v4504_v37 }
 0x23c   :  { %4320 = vmatpush.msra.mxu0 %v22028_v39  ;;  %4394 = vmatpush.msra.mxu2 %v15034_v59 }
 0x23d   :  { %4353 = vmatpush.msra.mxu1 %v14741_v42  ;;  %4477 = vmatpush.msra.mxu3 %v4476_v47  ;;  %v22030_v42 = vand.u32 4294901760, %v14886_v62  ;;  %v4500_v56 = vand.u32 4294901760, %v4499_v13  ;;  %v4506_v62 = vand.u32 4294901760, %v4505_v7 }
 0x23e   :  { %4324 = vmatpush.msra.mxu0 %v22029_v26  ;;  %4396 = vmatpush.msra.mxu2 %v15047_v53 }
 0x23f   :  { %4355 = vmatpush.msra.mxu1 %v14756_v12  ;;  %4483 = vmatpush.msra.mxu3 %v4482_v35  ;;  %v4407_v12 = vand.u32 4294901760, %v4406_v28 }
 0x240   :  { %4328 = vmatpush.msra.mxu0 %v22030_v42  ;;  %4398 = vmatpush.msra.mxu2 %v15069_v43 }
 0x241   :  { %4357 = vmatpush.msra.mxu1 %v14771_v2  ;;  %4489 = vmatpush.msra.mxu3 %v4488_v46  ;;  %v22031_v2 = vand.u32 4294901760, %v14879_v36  ;;  %v219_v46 = vld [vmem:[%s21527_s1 + $0x620] sm:$0xff] }
 0x242   :  { %4330 = vmatmul.f32.vlgmr.msra.gmra.mxu0 %v14782_v11  ;;  %4400 = vmatpush.msra.mxu2 %v15085_v30 }
 0x243   :  { %4515 = vmatpush.msrb.mxu0 %v14879_v36  ;;  %4359 = vmatpush.msra.mxu1 %v14788_v61  ;;  %v22032_v61 = vand.u32 4294901760, %v14903_v50  ;;  %v22034_v36 = vand.u32 4294901760, %v14916_v54 }
 0x244   :  { %4495 = vmatpush.msra.mxu3 %v4494_v10  ;;  %4402 = vmatpush.msra.mxu2 %v15101_v33  ;;  %v218_v10 = vld [vmem:[%s21527_s1 + $0x618] sm:$0xff] }
 0x245   :  { %4518 = vmatpush.msrb.mxu0 %v14903_v50  ;;  %4361 = vmatpush.msra.mxu1 %v14800_v51  ;;  %v22033_v51 = vld [vmem:[#allocation5_spill] sm:$0xff]  ;;  %v22040_v50 = vand.u32 4294901760, %v15017_v29 }
 0x246   :  { %4501 = vmatpush.msra.mxu3 %v4500_v56  ;;  %4408 = vmatmul.f32.vlgmr.msra.gmra.mxu2 %v4407_v12  ;;  %v15384_v56 = vand.u32 4294901760, %v219_v46 }
 0x247   :  { %4521 = vmatpush.msrb.mxu0 %v14916_v54  ;;  %4609 = vmatpush.msrb.mxu2 %v22031_v2 }
 0x248   :  { %4363 = vmatpush.msra.mxu1 %v14827_v15  ;;  %4507 = vmatpush.msra.mxu3 %v4506_v62  ;;  %v22035_v15 = vand.u32 4294901760, %v14924_v4 }
 0x249   :  { %4509 = vmatmul.f32.vlgmr.msra.gmra.mxu3 %v15088_v3  ;;  %4524 = vmatpush.msrb.mxu0 %v14924_v4  ;;  %v22038_v4 = vand.u32 4294901760, %v14980_v16 }
 0x24a   :  { %4613 = vmatpush.msrb.mxu2 %v22032_v61  ;;  %4676 = vmatpush.msrb.mxu3 %v14843_v57  ;;  %v217_v61 = vld [vmem:[%s21527_s1 + $0x610] sm:$0xff] }
 0x24b   :  { %4365 = vmatpush.msra.mxu1 %v22033_v51  ;;  %4527 = vmatpush.msrb.mxu0 %v14938_v0 }
 0x24c   :  { %4367 = vmatmul.f32.vlgmr.msra.gmra.mxu1 %v14782_v11  ;;  %4617 = vmatpush.msrb.mxu2 %v22034_v36  ;;  %v22036_v11 = vand.u32 4294901760, %v14938_v0 }
 0x24d   :  { %4568 = vmatpush.msrb.mxu1 %v14843_v57  ;;  %4678 = vmatpush.msrb.mxu3 %v14868_v44  ;;  %v22037_v57 = vand.u32 4294901760, %v14963_v20 }
 0x24e   :  { %4530 = vmatpush.msrb.mxu0 %v14963_v20  ;;  %4621 = vmatpush.msrb.mxu2 %v22035_v15  ;;  %v15401_v15 = vand.u32 4294901760, %v218_v10 }
 0x24f   :  { %4570 = vmatpush.msrb.mxu1 %v14868_v44  ;;  %4680 = vmatpush.msrb.mxu3 %v14888_v19  ;;  %v227_v44 = vld [vmem:[%s21527_s1 + $0x660] sm:$0xff] }
 0x250   :  { %4533 = vmatpush.msrb.mxu0 %v14980_v16  ;;  %4625 = vmatpush.msrb.mxu2 %v22036_v11  ;;  %v225_v16 = vld [vmem:[%s21527_s1 + $0x650] sm:$0xff] }
 0x251   :  { %4572 = vmatpush.msrb.mxu1 %v14888_v19  ;;  %4682 = vmatpush.msrb.mxu3 %v14896_v14  ;;  %v22039_v19 = vand.u32 4294901760, %v15002_v40 }
 0x252   :  { %4536 = vmatpush.msrb.mxu0 %v15002_v40  ;;  %4629 = vmatpush.msrb.mxu2 %v22037_v57 }
 0x253   :  { %4574 = vmatpush.msrb.mxu1 %v14896_v14  ;;  %4684 = vmatpush.msrb.mxu3 %v14908_v22 }
 0x254   :  { %4539 = vmatpush.msrb.mxu0 %v15017_v29  ;;  %4633 = vmatpush.msrb.mxu2 %v22038_v4 }
 0x255   :  { %4576 = vmatpush.msrb.mxu1 %v14908_v22  ;;  %4686 = vmatpush.msrb.mxu3 %v14931_v18  ;;  %v230_v22 = vld [vmem:[%s21527_s1 + $0x678] sm:$0xff] }
 0x256   :  { %4542 = vmatpush.msrb.mxu0 %v15032_v63  ;;  %4637 = vmatpush.msrb.mxu2 %v22039_v19  ;;  %v15228_v40 = vand.u32 4294901760, %v230_v22  ;;  %v224_v63 = vld [vmem:[%s21527_s1 + $0x648] sm:$0xff] }
 0x257   :  { %4578 = vmatpush.msrb.mxu1 %v14931_v18  ;;  %4688 = vmatpush.msrb.mxu3 %v14949_v5  ;;  %v229_v18 = vld [vmem:[%s21527_s1 + $0x670] sm:$0xff] }
 0x258   :  { %4545 = vmatpush.msrb.mxu0 %v15045_v38  ;;  %4641 = vmatpush.msrb.mxu2 %v22040_v50  ;;  %v15238_v54 = vand.u32 4294901760, %v229_v18  ;;  %v15251_v14 = vsub.f32 %v230_v22, %v15228_v40  ;;  %v15413_v50 = vand.u32 4294901760, %v217_v61 }
 0x259   :  { %4580 = vmatpush.msrb.mxu1 %v14949_v5  ;;  %4690 = vmatpush.msrb.mxu3 %v14965_v41  ;;  %v228_v5 = vld [vmem:[%s21527_s1 + $0x668] sm:$0xff] }
 0x25a   :  { %4548 = vmatpush.msrb.mxu0 %v15061_v27  ;;  %4645 = vmatpush.msrb.mxu2 %v4468_v60  ;;  %v15248_v0 = vand.u32 4294901760, %v228_v5  ;;  %v15264_v20 = vsub.f32 %v229_v18, %v15238_v54  ;;  %v4755_v29 = vand.u32 4294901760, %v15251_v14  ;;  %v223_v60 = vld [vmem:[%s21527_s1 + $0x640] sm:$0xff]  ;;  %v15308_v27 = vand.u32 4294901760, %v224_v63 }
 0x25b   :  { %4582 = vmatpush.msrb.mxu1 %v14965_v41  ;;  %4692 = vmatpush.msrb.mxu3 %v14982_v1  ;;  %v226_v41 = vld [vmem:[%s21527_s1 + $0x658] sm:$0xff]  ;;  %v15417_v18 = vsub.f32 %v219_v46, %v15384_v56 }
 0x25c   :  { %4551 = vmatpush.msrb.mxu0 %v15077_v45  ;;  %4649 = vmatpush.msrb.mxu2 %v4474_v31  ;;  %v15283_v45 = vand.u32 4294901760, %v225_v16 }
 0x25d   :  { %4584 = vmatpush.msrb.mxu1 %v14982_v1  ;;  %4694 = vmatpush.msrb.mxu3 %v15004_v6  ;;  %v15272_v1 = vand.u32 4294901760, %v226_v41 }
 0x25e   :  { %4554 = vmatpush.msrb.mxu0 %v15099_v55  ;;  %4653 = vmatpush.msrb.mxu2 %v4480_v25  ;;  %v15314_v55 = vsub.f32 %v225_v16, %v15283_v45 }
 0x25f   :  { %4586 = vmatpush.msrb.mxu1 %v15004_v6  ;;  %4696 = vmatpush.msrb.mxu3 %v15019_v58  ;;  %v15261_v6 = vand.u32 4294901760, %v227_v44  ;;  %v15298_v38 = vsub.f32 %v226_v41, %v15272_v1 }
 0x260   :  { %4557 = vmatpush.msrb.mxu0 %v15112_v17  ;;  %4657 = vmatpush.msrb.mxu2 %v4486_v9  ;;  %v222_v9 = vld [vmem:[%s21527_s1 + $0x638] sm:$0xff]  ;;  %v15324_v17 = vand.u32 4294901760, %v223_v60 }
 0x261   :  { %4588 = vmatpush.msrb.mxu1 %v15019_v58  ;;  %4698 = vmatpush.msrb.mxu3 %v15034_v59  ;;  %v15278_v58 = vsub.f32 %v228_v5, %v15248_v0  ;;  %v15292_v25 = vsub.f32 %v227_v44, %v15261_v6  ;;  %v15338_v32 = vand.u32 4294901760, %v222_v9  ;;  %v216_v5 = vld [vmem:[%s21527_s1 + $0x608] sm:$0xff] }
 0x262   :  { %4560 = vmatpush.msrb.mxu0 %v15127_v21  ;;  %4661 = vmatpush.msrb.mxu2 %v4492_v34  ;;  %v21676_v34 = vand.u32 4294901760, %v15298_v38  ;;  %v221_v21 = vld [vmem:[%s21527_s1 + $0x630] sm:$0xff] }
 0x263   :  { %4590 = vmatpush.msrb.mxu1 %v15034_v59  ;;  %4700 = vmatpush.msrb.mxu3 %v15047_v53  ;;  %v4761_v59 = vand.u32 4294901760, %v15264_v20  ;;  %v4767_v31 = vand.u32 4294901760, %v15278_v58  ;;  %v21679_v8 = vand.u32 4294901760, %v15292_v25  ;;  %v15354_v24 = vand.u32 4294901760, %v221_v21 }
 0x264   :  { %4563 = vmatmul.f32.vlgmr.msrb.gmra.mxu0 %v15116_v52  ;;  %4665 = vmatpush.msrb.mxu2 %v4498_v48  ;;  %v21674_v48 = vand.u32 4294901760, %v15314_v55  ;;  %v15373_v52 = vsub.f32 %v222_v9, %v15338_v32  ;;  %v15440_v9 = vand.u32 4294901760, %v216_v5 }
 0x265   :  { %4713 = vmatpush.msra.mxu0 %v15228_v40  ;;  %4592 = vmatpush.msrb.mxu1 %v15047_v53  ;;  %v4756_v53 = vsub.f32 %v15251_v14, %v4755_v29  ;;  %v4768_v23 = vsub.f32 %v15278_v58, %v4767_v31  ;;  %v4774_v39 = vsub.f32 %v15292_v25, %v21679_v8 }
 0x266   :  { %4702 = vmatpush.msrb.mxu3 %v15069_v43  ;;  %4669 = vmatpush.msrb.mxu2 %v4504_v37  ;;  %v15357_v37 = vsub.f32 %v223_v60, %v15324_v17  ;;  %v4786_v42 = vsub.f32 %v15314_v55, %v21674_v48  ;;  %v15388_v62 = vsub.f32 %v221_v21, %v15354_v24  ;;  %v21670_v11 = vand.u32 4294901760, %v15373_v52 }
 0x267   :  { %4715 = vmatpush.msra.mxu0 %v15238_v54  ;;  %4594 = vmatpush.msrb.mxu1 %v15069_v43  ;;  %v4762_v43 = vsub.f32 %v15264_v20, %v4761_v59  ;;  %v4757_v47 = vand.u32 4294901760, %v4756_v53  ;;  %v4769_v26 = vand.u32 4294901760, %v4768_v23  ;;  %v4775_v7 = vand.u32 4294901760, %v4774_v39  ;;  %v246_v53 = vld [vmem:[%s21527_s1 + $0x6f8] sm:$0xff] }
 0x268   :  { %4704 = vmatpush.msrb.mxu3 %v15085_v30  ;;  %4671 = vmatmul.f32.vlgmr.msrb.gmra.mxu2 %v15088_v3  ;;  %v21671_v12 = vand.u32 4294901760, %v15357_v37  ;;  %v4787_v4 = vand.u32 4294901760, %v4786_v42  ;;  %v21669_v22 = vand.u32 4294901760, %v15388_v62  ;;  %v4804_v16 = vsub.f32 %v15373_v52, %v21670_v11 }
 0x269   :  { %4717 = vmatpush.msra.mxu0 %v15248_v0  ;;  %4856 = vmatpush.msra.mxu2 %v15251_v14  ;;  %v4763_v35 = vand.u32 4294901760, %v4762_v43  ;;  %v15433_v60 = vsub.f32 %v218_v10, %v15401_v15  ;;  %v215_v43 = vld [vmem:[%s21527_s1 + $0x600] sm:$0xff]  ;;  %v21666_v23 = vand.u32 4294901760, %v15417_v18  ;;  %v15456_v39 = vand.u32 4294901760, %v246_v53  ;;  %v238_v14 = vld [vmem:[%s21527_s1 + $0x6b8] sm:$0xff] }
 0x26a   :  { %4596 = vmatpush.msrb.mxu1 %v15085_v30  ;;  %4706 = vmatpush.msrb.mxu3 %v15101_v33  ;;  %v15341_v30 = vsub.f32 %v224_v63, %v15308_v27  ;;  %v4798_v19 = vsub.f32 %v15357_v37, %v21671_v12  ;;  %v4805_v46 = vand.u32 4294901760, %v4804_v16  ;;  %v15471_v10 = vsub.f32 %v216_v5, %v15440_v9 }
 0x26b   :  { %4708 = vmatmul.f32.vlgmr.msrb.gmra.mxu3 %v15088_v3  ;;  %4719 = vmatpush.msra.mxu0 %v15261_v6  ;;  %v220_v3 = vld [vmem:[%s21527_s1 + $0x628] sm:$0xff]  ;;  %v21668_v42 = vand.u32 4294901760, %v15433_v60 }
 0x26c   :  { %4859 = vmatpush.msra.mxu2 %v15264_v20  ;;  %4909 = vmatpush.msra.mxu3 %v15228_v40  ;;  %v15369_v13 = vand.u32 4294901760, %v220_v3  ;;  %v21673_v28 = vand.u32 4294901760, %v15341_v30  ;;  %v4799_v21 = vand.u32 4294901760, %v4798_v19  ;;  %v243_v19 = vld [vmem:[%s21527_s1 + $0x6e0] sm:$0xff]  ;;  %v237_v20 = vld [vmem:[%s21527_s1 + $0x6b0] sm:$0xff] }
 0x26d   :  { %4598 = vmatpush.msrb.mxu1 %v15101_v33  ;;  %4721 = vmatpush.msra.mxu0 %v15272_v1  ;;  %v4780_v33 = vsub.f32 %v15298_v38, %v21676_v34 }
 0x26e   :  { %4602 = vmatmul.f32.vlgmr.msrb.gmra.mxu1 %v4405_v49  ;;  %4862 = vmatpush.msra.mxu2 %v15278_v58  ;;  %v564_v49 = vld.sshfl [vmem:[#allocation1 + $0x20] sm:$0xff pattern:$0x73625140]  ;;  %v4792_v36 = vsub.f32 %v15341_v30, %v21673_v28  ;;  %v15405_v57 = vsub.f32 %v220_v3, %v15369_v13  ;;  %v15451_v3 = vsub.f32 %v217_v61, %v15413_v50 }
 0x26f   :  { %4758 = vmatpush.msra.mxu1 %v4757_v47  ;;  %4911 = vmatpush.msra.mxu3 %v15238_v54  ;;  %v4781_v2 = vand.u32 4294901760, %v4780_v33  ;;  %v15395_v51 = vand.u32 4294901760, %v564_v49  ;;  %v4810_v47 = vsub.f32 %v15388_v62, %v21669_v22  ;;  %v245_v33 = vld [vmem:[%s21527_s1 + $0x6f0] sm:$0xff]  ;;  %v4822_v61 = vsub.f32 %v15417_v18, %v21666_v23 }
 0x270   :  { %4723 = vmatpush.msra.mxu0 %v15283_v45  ;;  %4865 = vmatpush.msra.mxu2 %v15292_v25  ;;  %v4793_v41 = vand.u32 4294901760, %v4792_v36  ;;  %v21667_v63 = vand.u32 4294901760, %v15405_v57  ;;  %v21672_v36 = vand.u32 4294901760, %v15451_v3 }
 0x271   :  { %4764 = vmatpush.msra.mxu1 %v4763_v35  ;;  %4913 = vmatpush.msra.mxu3 %v15248_v0  ;;  %v15425_v44 = vsub.f32 %v564_v49, %v15395_v51  ;;  %v15465_v49 = vand.u32 4294901760, %v215_v43 }
 0x272   :  { %4725 = vmatpush.msra.mxu0 %v15308_v27  ;;  %4868 = vmatpush.msra.mxu2 %v15298_v38 }
 0x273   :  { %4770 = vmatpush.msra.mxu1 %v4769_v26  ;;  %4915 = vmatpush.msra.mxu3 %v15261_v6  ;;  %v4746_v35 = vand.u32 4294901760, %v15425_v44  ;;  %v4816_v26 = vsub.f32 %v15405_v57, %v21667_v63  ;;  %v242_v63 = vld [vmem:[%s21527_s1 + $0x6d8] sm:$0xff] }
 0x274   :  { %4727 = vmatpush.msra.mxu0 %v15324_v17  ;;  %4871 = vmatpush.msra.mxu2 %v15314_v55  ;;  %v15521_v12 = vand.u32 4294901760, %v242_v63 }
 0x275   :  { %4776 = vmatpush.msra.mxu1 %v4775_v7  ;;  %4917 = vmatpush.msra.mxu3 %v15272_v1  ;;  %v244_v7 = vld [vmem:[%s21527_s1 + $0x6e8] sm:$0xff]  ;;  %v4747_v5 = vsub.f32 %v15425_v44, %v4746_v35  ;;  %v4817_v16 = vand.u32 4294901760, %v4816_v26  ;;  %v4823_v26 = vand.u32 4294901760, %v4822_v61 }
 0x276   :  { %4729 = vmatpush.msra.mxu0 %v15338_v32  ;;  %4874 = vmatpush.msra.mxu2 %v15341_v30  ;;  %v15501_v23 = vand.u32 4294901760, %v244_v7 }
 0x277   :  { %4782 = vmatpush.msra.mxu1 %v4781_v2  ;;  %4919 = vmatpush.msra.mxu3 %v15283_v45  ;;  %v4811_v2 = vand.u32 4294901760, %v4810_v47  ;;  %v15499_v47 = vsub.f32 %v215_v43, %v15465_v49  ;;  %v4834_v43 = vsub.f32 %v15451_v3, %v21672_v36  ;;  %v4748_v22 = vand.u32 4294901760, %v4747_v5 }
 0x278   :  { %4731 = vmatpush.msra.mxu0 %v15354_v24  ;;  %4877 = vmatpush.msra.mxu2 %v15357_v37  ;;  %v15529_v36 = vsub.f32 %v244_v7, %v15501_v23 }
 0x279   :  { %4788 = vmatpush.msra.mxu1 %v4787_v4  ;;  %4921 = vmatpush.msra.mxu3 %v15308_v27  ;;  %v15481_v4 = vand.u32 4294901760, %v245_v33  ;;  %v4835_v7 = vand.u32 4294901760, %v4834_v43 }
 0x27a   :  { %4733 = vmatpush.msra.mxu0 %v15369_v13  ;;  %4880 = vmatpush.msra.mxu2 %v15373_v52  ;;  %v21680_v43 = vand.u32 4294901760, %v15529_v36 }
 0x27b   :  { %4794 = vmatpush.msra.mxu1 %v4793_v41  ;;  %4923 = vmatpush.msra.mxu3 %v15324_v17  ;;  %v15492_v41 = vsub.f32 %v246_v53, %v15456_v39  ;;  %v21675_v53 = vand.u32 4294901760, %v15471_v10 }
 0x27c   :  { %4735 = vmatpush.msra.mxu0 %v15384_v56  ;;  %4883 = vmatpush.msra.mxu2 %v15388_v62 }
 0x27d   :  { %4800 = vmatpush.msra.mxu1 %v4799_v21  ;;  %4925 = vmatpush.msra.mxu3 %v15338_v32  ;;  %v4828_v21 = vsub.f32 %v15433_v60, %v21668_v42  ;;  %v15516_v42 = vsub.f32 %v245_v33, %v15481_v4  ;;  %v21677_v11 = vand.u32 4294901760, %v15492_v41  ;;  %v21678_v33 = vand.u32 4294901760, %v15499_v47 }
 0x27e   :  { %4737 = vmatpush.msra.mxu0 %v15401_v15  ;;  %4886 = vmatpush.msra.mxu2 %v15405_v57  ;;  %v4840_v5 = vsub.f32 %v15471_v10, %v21675_v53  ;;  %v15551_v53 = vsub.f32 %v242_v63, %v15521_v12 }
 0x27f   :  { %4806 = vmatpush.msra.mxu1 %v4805_v46  ;;  %4927 = vmatpush.msra.mxu3 %v15354_v24  ;;  %v15509_v46 = vand.u32 4294901760, %v243_v19  ;;  %v4829_v61 = vand.u32 4294901760, %v4828_v21  ;;  %v21681_v21 = vand.u32 4294901760, %v15516_v42 }
 0x280   :  { %4739 = vmatpush.msra.mxu0 %v15413_v50  ;;  %4889 = vmatpush.msra.mxu2 %v15417_v18  ;;  %v4841_v63 = vand.u32 4294901760, %v4840_v5  ;;  %v21683_v8 = vand.u32 4294901760, %v15551_v53 }
 0x281   :  { %4812 = vmatpush.msra.mxu1 %v4811_v2  ;;  %4929 = vmatpush.msra.mxu3 %v15369_v13  ;;  %v241_v2 = vld [vmem:[%s21527_s1 + $0x6d0] sm:$0xff]  ;;  %v15537_v28 = vsub.f32 %v243_v19, %v15509_v46  ;;  %v5097_v19 = vsub.f32 %v15492_v41, %v21677_v11 }
 0x282   :  { %4741 = vmatpush.msra.mxu0 %v15440_v9  ;;  %4892 = vmatpush.msra.mxu2 %v15433_v60  ;;  %v15544_v48 = vand.u32 4294901760, %v241_v2 }
 0x283   :  { %4818 = vmatpush.msra.mxu1 %v4817_v16  ;;  %4931 = vmatpush.msra.mxu3 %v15384_v56  ;;  %v240_v16 = vld [vmem:[%s21527_s1 + $0x6c8] sm:$0xff]  ;;  %v21682_v11 = vand.u32 4294901760, %v15537_v28  ;;  %v5098_v5 = vand.u32 4294901760, %v5097_v19  ;;  %v15595_v19 = vand.u32 4294901760, %v238_v14 }
 0x284   :  { %4743 = vmatpush.msra.mxu0 %v15465_v49  ;;  %4895 = vmatpush.msra.mxu2 %v15451_v3  ;;  %v15562_v34 = vand.u32 4294901760, %v240_v16 }
 0x285   :  { %4824 = vmatpush.msra.mxu1 %v4823_v26  ;;  %4933 = vmatpush.msra.mxu3 %v15401_v15  ;;  %v239_v26 = vld [vmem:[%s21527_s1 + $0x6c0] sm:$0xff]  ;;  %v5115_v58 = vsub.f32 %v15537_v28, %v21682_v11  ;;  %v5121_v11 = vsub.f32 %v15551_v53, %v21683_v8 }
 0x286   :  { %4749 = vmatmul.f32.vlgmr.msra.gmra.mxu0 %v4748_v22  ;;  %4898 = vmatpush.msra.mxu2 %v15471_v10  ;;  %v4846_v22 = vsub.f32 %v15499_v47, %v21678_v33  ;;  %v15578_v33 = vand.u32 4294901760, %v239_v26 }
 0x287   :  { %4950 = vmatpush.msrb.mxu0 %v4755_v29  ;;  %4830 = vmatpush.msra.mxu1 %v4829_v61  ;;  %v5103_v29 = vsub.f32 %v15516_v42, %v21681_v21  ;;  %v15576_v61 = vsub.f32 %v241_v2, %v15544_v48  ;;  %v5109_v2 = vsub.f32 %v15529_v36, %v21680_v43  ;;  %v15612_v21 = vand.u32 4294901760, %v237_v20 }
 0x288   :  { %4935 = vmatpush.msra.mxu3 %v15413_v50  ;;  %4901 = vmatpush.msra.mxu2 %v15499_v47  ;;  %v5122_v8 = vand.u32 4294901760, %v5121_v11  ;;  %v22044_v11 = vand.u32 4294901760, %v15341_v30  ;;  %v232_v30 = vld [vmem:[%s21527_s1 + $0x688] sm:$0xff] }
 0x289   :  { %4954 = vmatpush.msrb.mxu0 %v4761_v59  ;;  %4836 = vmatpush.msra.mxu1 %v4835_v7  ;;  %v4847_v59 = vand.u32 4294901760, %v4846_v22  ;;  %v15593_v7 = vsub.f32 %v240_v16, %v15562_v34  ;;  %v22041_v22 = vand.u32 4294901760, %v15292_v25  ;;  %v5104_v16 = vand.u32 4294901760, %v5103_v29  ;;  %v235_v25 = vld [vmem:[%s21527_s1 + $0x6a0] sm:$0xff] }
 0x28a   :  { %4937 = vmatpush.msra.mxu3 %v15440_v9  ;;  %4904 = vmatmul.f32.vlgmr.msra.gmra.mxu2 %v15425_v44  ;;  %v21684_v43 = vand.u32 4294901760, %v15576_v61  ;;  %v22042_v44 = vand.u32 4294901760, %v15298_v38  ;;  %v15625_v29 = vsub.f32 %v238_v14, %v15595_v19 }
 0x28b   :  { %4958 = vmatpush.msrb.mxu0 %v4767_v31  ;;  %5054 = vmatpush.msrb.mxu2 %v15456_v39  ;;  %v236_v31 = vld [vmem:[%s21527_s1 + $0x6a8] sm:$0xff] }
 0x28c   :  { %4842 = vmatpush.msra.mxu1 %v4841_v63  ;;  %4939 = vmatpush.msra.mxu3 %v15465_v49  ;;  %v15610_v63 = vsub.f32 %v239_v26, %v15578_v33  ;;  %v21685_v26 = vand.u32 4294901760, %v15593_v7  ;;  %v5127_v38 = vsub.f32 %v15576_v61, %v21684_v43 }
 0x28d   :  { %4943 = vmatmul.f32.vlgmr.msra.gmra.mxu3 %v4746_v35  ;;  %4962 = vmatpush.msrb.mxu0 %v22041_v22  ;;  %v5110_v35 = vand.u32 4294901760, %v5109_v2  ;;  %v15627_v22 = vand.u32 4294901760, %v236_v31  ;;  %v15640_v2 = vsub.f32 %v237_v20, %v15612_v21 }
 0x28e   :  { %5056 = vmatpush.msrb.mxu2 %v15481_v4  ;;  %5099 = vmatpush.msrb.mxu3 %v5098_v5  ;;  %v5116_v5 = vand.u32 4294901760, %v5115_v58  ;;  %v21686_v14 = vand.u32 4294901760, %v15610_v63  ;;  %v22043_v58 = vand.u32 4294901760, %v15314_v55  ;;  %v233_v55 = vld [vmem:[%s21527_s1 + $0x690] sm:$0xff] }
 0x28f   :  { %4848 = vmatpush.msra.mxu1 %v4847_v59  ;;  %4966 = vmatpush.msrb.mxu0 %v22042_v44  ;;  %v234_v59 = vld [vmem:[%s21527_s1 + $0x698] sm:$0xff]  ;;  %v15642_v44 = vand.u32 4294901760, %v235_v25  ;;  %v15653_v20 = vsub.f32 %v236_v31, %v15627_v22 }
 0x290   :  { %4850 = vmatmul.f32.vlgmr.msra.gmra.mxu1 %v15395_v51  ;;  %5058 = vmatpush.msrb.mxu2 %v15501_v23  ;;  %v15655_v43 = vand.u32 4294901760, %v234_v59  ;;  %v5139_v31 = vsub.f32 %v15610_v63, %v21686_v14 }
 0x291   :  { %5017 = vmatpush.msrb.mxu1 %v15228_v40  ;;  %5105 = vmatpush.msrb.mxu3 %v5104_v16  ;;  %v5133_v40 = vsub.f32 %v15593_v7, %v21685_v26  ;;  %v21687_v16 = vand.u32 4294901760, %v15625_v29  ;;  %v22045_v26 = vand.u32 4294901760, %v15357_v37  ;;  %v231_v37 = vld [vmem:[%s21527_s1 + $0x680] sm:$0xff] }
 0x292   :  { %4970 = vmatpush.msrb.mxu0 %v22043_v58  ;;  %5060 = vmatpush.msrb.mxu2 %v15509_v46  ;;  %v15669_v58 = vsub.f32 %v235_v25, %v15642_v44  ;;  %v15685_v14 = vsub.f32 %v234_v59, %v15655_v43 }
 0x293   :  { %5019 = vmatpush.msrb.mxu1 %v15238_v54  ;;  %5111 = vmatpush.msrb.mxu3 %v5110_v35  ;;  %v5128_v54 = vand.u32 4294901760, %v5127_v38  ;;  %v21688_v35 = vand.u32 4294901760, %v15640_v2  ;;  %v5145_v25 = vsub.f32 %v15625_v29, %v21687_v16  ;;  %v22047_v38 = vand.u32 4294901760, %v15388_v62 }
 0x294   :  { %4974 = vmatpush.msrb.mxu0 %v22044_v11  ;;  %5062 = vmatpush.msrb.mxu2 %v15521_v12  ;;  %v565_v11 = vld.sshfl [vmem:[#allocation1 + $0x28] sm:$0xff pattern:$0x73625140]  ;;  %v5162_v16 = vand.u32 4294901760, %v15669_v58  ;;  %v22049_v62 = vand.u32 4294901760, %v15405_v57 }
 0x295   :  { %5021 = vmatpush.msrb.mxu1 %v15248_v0  ;;  %5117 = vmatpush.msrb.mxu3 %v5116_v5  ;;  %v15677_v0 = vand.u32 4294901760, %v233_v55  ;;  %v5134_v5 = vand.u32 4294901760, %v5133_v40  ;;  %v5140_v40 = vand.u32 4294901760, %v5139_v31  ;;  %v5151_v59 = vsub.f32 %v15640_v2, %v21688_v35 }
 0x296   :  { %4978 = vmatpush.msrb.mxu0 %v22045_v26  ;;  %5064 = vmatpush.msrb.mxu2 %v15544_v48  ;;  %v22046_v26 = vand.u32 4294901760, %v15373_v52  ;;  %v5168_v35 = vand.u32 4294901760, %v15685_v14 }
 0x297   :  { %5023 = vmatpush.msrb.mxu1 %v15261_v6  ;;  %5123 = vmatpush.msrb.mxu3 %v5122_v8  ;;  %v15693_v6 = vand.u32 4294901760, %v232_v30  ;;  %v15695_v8 = vand.u32 4294901760, %v565_v11  ;;  %v15706_v52 = vsub.f32 %v233_v55, %v15677_v0 }
 0x298   :  { %4982 = vmatpush.msrb.mxu0 %v22046_v26  ;;  %5066 = vmatpush.msrb.mxu2 %v15562_v34  ;;  %v15708_v26 = vand.u32 4294901760, %v231_v37 }
 0x299   :  { %5025 = vmatpush.msrb.mxu1 %v15272_v1  ;;  %5129 = vmatpush.msrb.mxu3 %v5128_v54  ;;  %v5146_v1 = vand.u32 4294901760, %v5145_v25  ;;  %v22048_v54 = vand.u32 4294901760, %v15653_v20  ;;  %v15719_v55 = vsub.f32 %v232_v30, %v15693_v6  ;;  %v22050_v25 = vand.u32 4294901760, %v15417_v18 }
 0x29a   :  { %4986 = vmatpush.msrb.mxu0 %v22047_v38  ;;  %5068 = vmatpush.msrb.mxu2 %v15578_v33  ;;  %v15722_v38 = vsub.f32 %v565_v11, %v15695_v8  ;;  %v5174_v57 = vand.u32 4294901760, %v15706_v52  ;;  %v15733_v30 = vsub.f32 %v231_v37, %v15708_v26  ;;  %v5169_v11 = vsub.f32 %v15685_v14, %v5168_v35 }
 0x29b   :  { %5027 = vmatpush.msrb.mxu1 %v15283_v45  ;;  %5135 = vmatpush.msrb.mxu3 %v5134_v5  ;;  %v5157_v31 = vsub.f32 %v15653_v20, %v22048_v54  ;;  %v5152_v45 = vand.u32 4294901760, %v5151_v59  ;;  %v5163_v5 = vsub.f32 %v15669_v58, %v5162_v16  ;;  %v5180_v18 = vand.u32 4294901760, %v15719_v55 }
 0x29c   :  { %4990 = vmatpush.msrb.mxu0 %v22049_v62  ;;  %5070 = vmatpush.msrb.mxu2 %v15595_v19  ;;  %v5087_v59 = vand.u32 4294901760, %v15722_v38  ;;  %v5170_v54 = vand.u32 4294901760, %v5169_v11 }
 0x29d   :  { %5029 = vmatpush.msrb.mxu1 %v15308_v27  ;;  %5141 = vmatpush.msrb.mxu3 %v5140_v40  ;;  %v5158_v27 = vand.u32 4294901760, %v5157_v31  ;;  %v22051_v40 = vand.u32 4294901760, %v15433_v60  ;;  %v5164_v37 = vand.u32 4294901760, %v5163_v5  ;;  %v5175_v60 = vsub.f32 %v15706_v52, %v5174_v57  ;;  %v254_v5 = vld [vmem:[%s21527_s1 + $0x738] sm:$0xff] }
 0x29e   :  { %4994 = vmatpush.msrb.mxu0 %v22050_v25  ;;  %5072 = vmatpush.msrb.mxu2 %v15612_v21  ;;  %v22053_v31 = vand.u32 4294901760, %v15471_v10 }
 0x29f   :  { %5031 = vmatpush.msrb.mxu1 %v15324_v17  ;;  %5147 = vmatpush.msrb.mxu3 %v5146_v1  ;;  %v22052_v17 = vand.u32 4294901760, %v15451_v3  ;;  %v5186_v1 = vand.u32 4294901760, %v15733_v30  ;;  %v5088_v3 = vsub.f32 %v15722_v38, %v5087_v59  ;;  %v5176_v10 = vand.u32 4294901760, %v5175_v60 }
 0x2a0   :  { %4998 = vmatpush.msrb.mxu0 %v22051_v40  ;;  %5074 = vmatpush.msrb.mxu2 %v15627_v22 }
 0x2a1   :  { %5033 = vmatpush.msrb.mxu1 %v15338_v32  ;;  %5153 = vmatpush.msrb.mxu3 %v5152_v45  ;;  %v5181_v32 = vsub.f32 %v15719_v55, %v5180_v18  ;;  %v5187_v62 = vsub.f32 %v15733_v30, %v5186_v1 }
 0x2a2   :  { %5002 = vmatpush.msrb.mxu0 %v22052_v17  ;;  %5076 = vmatpush.msrb.mxu2 %v15642_v44 }
 0x2a3   :  { %5035 = vmatpush.msrb.mxu1 %v15354_v24  ;;  %5159 = vmatpush.msrb.mxu3 %v5158_v27  ;;  %v22054_v24 = vand.u32 4294901760, %v15499_v47  ;;  %v5182_v45 = vand.u32 4294901760, %v5181_v32  ;;  %v5188_v47 = vand.u32 4294901760, %v5187_v62  ;;  %v253_v27 = vld [vmem:[%s21527_s1 + $0x730] sm:$0xff]  ;;  %v250_v62 = vld [vmem:[%s21527_s1 + $0x718] sm:$0xff] }
 0x2a4   :  { %5006 = vmatpush.msrb.mxu0 %v22053_v31  ;;  %5078 = vmatpush.msrb.mxu2 %v15655_v43  ;;  %v251_v31 = vld [vmem:[%s21527_s1 + $0x720] sm:$0xff] }
 0x2a5   :  { %5037 = vmatpush.msrb.mxu1 %v15369_v13  ;;  %5165 = vmatpush.msrb.mxu3 %v5164_v37  ;;  %v5089_v13 = vand.u32 4294901760, %v5088_v3 }
 0x2a6   :  { %5010 = vmatpush.msrb.mxu0 %v22054_v24  ;;  %5080 = vmatpush.msrb.mxu2 %v15677_v0 }
 0x2a7   :  { %5039 = vmatpush.msrb.mxu1 %v15384_v56  ;;  %5171 = vmatpush.msrb.mxu3 %v5170_v54  ;;  %v22055_v56 = vand.u32 4294901760, %v15492_v41 }
 0x2a8   :  { %5012 = vmatmul.f32.vlgmr.msrb.gmra.mxu0 %v15395_v51  ;;  %5082 = vmatpush.msrb.mxu2 %v15693_v6 }
 0x2a9   :  { %5197 = vmatpush.msra.mxu0 %v15492_v41  ;;  %5041 = vmatpush.msrb.mxu1 %v15401_v15  ;;  %v22056_v15 = vand.u32 4294901760, %v15516_v42 }
 0x2aa   :  { %5177 = vmatpush.msrb.mxu3 %v5176_v10  ;;  %5084 = vmatpush.msrb.mxu2 %v15708_v26 }
 0x2ab   :  { %5200 = vmatpush.msra.mxu0 %v15516_v42  ;;  %5043 = vmatpush.msrb.mxu1 %v15413_v50  ;;  %v22057_v50 = vand.u32 4294901760, %v15529_v36  ;;  %v22064_v42 = vand.u32 4294901760, %v15640_v2 }
 0x2ac   :  { %5183 = vmatpush.msrb.mxu3 %v5182_v45  ;;  %5090 = vmatmul.f32.vlgmr.msrb.gmra.mxu2 %v5089_v13  ;;  %v15990_v13 = vand.u32 4294901760, %v251_v31 }
 0x2ad   :  { %5203 = vmatpush.msra.mxu0 %v15529_v36  ;;  %5291 = vmatpush.msra.mxu2 %v22055_v56 }
 0x2ae   :  { %5045 = vmatpush.msrb.mxu1 %v15440_v9  ;;  %5189 = vmatpush.msrb.mxu3 %v5188_v47  ;;  %v22058_v9 = vand.u32 4294901760, %v15537_v28 }
 0x2af   :  { %5191 = vmatmul.f32.vlgmr.msrb.gmra.mxu3 %v15695_v8  ;;  %5206 = vmatpush.msra.mxu0 %v15537_v28  ;;  %v22061_v28 = vand.u32 4294901760, %v15593_v7 }
 0x2b0   :  { %5295 = vmatpush.msra.mxu2 %v22056_v15  ;;  %5358 = vmatpush.msra.mxu3 %v15456_v39 }
 0x2b1   :  { %5047 = vmatpush.msrb.mxu1 %v15465_v49  ;;  %5209 = vmatpush.msra.mxu0 %v15551_v53  ;;  %v22063_v49 = vand.u32 4294901760, %v15625_v29 }
 0x2b2   :  { %5049 = vmatmul.f32.vlgmr.msrb.gmra.mxu1 %v15395_v51  ;;  %5299 = vmatpush.msra.mxu2 %v22057_v50  ;;  %v22059_v51 = vand.u32 4294901760, %v15551_v53  ;;  %v259_v53 = vld [vmem:[%s21527_s1 + $0x760] sm:$0xff]  ;;  %v249_v50 = vld [vmem:[%s21527_s1 + $0x710] sm:$0xff] }
 0x2b3   :  { %5250 = vmatpush.msra.mxu1 %v15456_v39  ;;  %5360 = vmatpush.msra.mxu3 %v15481_v4  ;;  %v22060_v39 = vand.u32 4294901760, %v15576_v61 }
 0x2b4   :  { %5212 = vmatpush.msra.mxu0 %v15576_v61  ;;  %5303 = vmatpush.msra.mxu2 %v22058_v9  ;;  %v258_v61 = vld [vmem:[%s21527_s1 + $0x758] sm:$0xff] }
 0x2b5   :  { %5252 = vmatpush.msra.mxu1 %v15481_v4  ;;  %5362 = vmatpush.msra.mxu3 %v15501_v23  ;;  %v260_v4 = vld [vmem:[%s21527_s1 + $0x768] sm:$0xff] }
 0x2b6   :  { %5215 = vmatpush.msra.mxu0 %v15593_v7  ;;  %5307 = vmatpush.msra.mxu2 %v22059_v51 }
 0x2b7   :  { %5254 = vmatpush.msra.mxu1 %v15501_v23  ;;  %5364 = vmatpush.msra.mxu3 %v15509_v46  ;;  %v22062_v23 = vand.u32 4294901760, %v15610_v63 }
 0x2b8   :  { %5218 = vmatpush.msra.mxu0 %v15610_v63  ;;  %5311 = vmatpush.msra.mxu2 %v22060_v39  ;;  %v15878_v63 = vand.u32 4294901760, %v258_v61  ;;  %v16007_v39 = vand.u32 4294901760, %v250_v62 }
 0x2b9   :  { %5256 = vmatpush.msra.mxu1 %v15509_v46  ;;  %5366 = vmatpush.msra.mxu3 %v15521_v12  ;;  %v15854_v46 = vand.u32 4294901760, %v260_v4 }
 0x2ba   :  { %5221 = vmatpush.msra.mxu0 %v15625_v29  ;;  %5315 = vmatpush.msra.mxu2 %v22061_v28 }
 0x2bb   :  { %5258 = vmatpush.msra.mxu1 %v15521_v12  ;;  %5368 = vmatpush.msra.mxu3 %v15544_v48  ;;  %v262_v12 = vld [vmem:[%s21527_s1 + $0x778] sm:$0xff] }
 0x2bc   :  { %5224 = vmatpush.msra.mxu0 %v15640_v2  ;;  %5319 = vmatpush.msra.mxu2 %v22062_v23  ;;  %v15834_v36 = vand.u32 4294901760, %v262_v12  ;;  %v256_v2 = vld [vmem:[%s21527_s1 + $0x748] sm:$0xff] }
 0x2bd   :  { %5260 = vmatpush.msra.mxu1 %v15544_v48  ;;  %5370 = vmatpush.msra.mxu3 %v15562_v34  ;;  %v261_v48 = vld [vmem:[%s21527_s1 + $0x770] sm:$0xff] }
 0x2be   :  { %5227 = vmatpush.msra.mxu0 %v15653_v20  ;;  %5323 = vmatpush.msra.mxu2 %v22063_v49  ;;  %v15844_v41 = vand.u32 4294901760, %v261_v48 }
 0x2bf   :  { %5262 = vmatpush.msra.mxu1 %v15562_v34  ;;  %5372 = vmatpush.msra.mxu3 %v15578_v33  ;;  %v22065_v34 = vand.u32 4294901760, %v15653_v20  ;;  %v15904_v20 = vsub.f32 %v258_v61, %v15878_v63 }
 0x2c0   :  { %5230 = vmatpush.msra.mxu0 %v15669_v58  ;;  %5327 = vmatpush.msra.mxu2 %v22064_v42  ;;  %v15870_v7 = vsub.f32 %v261_v48, %v15844_v41  ;;  %v15914_v58 = vand.u32 4294901760, %v256_v2  ;;  %v16019_v42 = vand.u32 4294901760, %v249_v50 }
 0x2c1   :  { %5264 = vmatpush.msra.mxu1 %v15578_v33  ;;  %5374 = vmatpush.msra.mxu3 %v15595_v19  ;;  %v15857_v33 = vsub.f32 %v262_v12, %v15834_v36 }
 0x2c2   :  { %5233 = vmatpush.msra.mxu0 %v15685_v14  ;;  %5331 = vmatpush.msra.mxu2 %v22065_v34  ;;  %v16023_v34 = vsub.f32 %v251_v31, %v15990_v13 }
 0x2c3   :  { %5266 = vmatpush.msra.mxu1 %v15595_v19  ;;  %5376 = vmatpush.msra.mxu3 %v15612_v21  ;;  %v257_v19 = vld [vmem:[%s21527_s1 + $0x750] sm:$0xff]  ;;  %v5437_v29 = vand.u32 4294901760, %v15857_v33 }
 0x2c4   :  { %5236 = vmatpush.msra.mxu0 %v15706_v52  ;;  %5335 = vmatpush.msra.mxu2 %v5162_v16  ;;  %v15889_v14 = vand.u32 4294901760, %v257_v19 }
 0x2c5   :  { %5268 = vmatpush.msra.mxu1 %v15612_v21  ;;  %5378 = vmatpush.msra.mxu3 %v15627_v22  ;;  %v15867_v21 = vand.u32 4294901760, %v259_v53 }
 0x2c6   :  { %5239 = vmatpush.msra.mxu0 %v15719_v55  ;;  %5339 = vmatpush.msra.mxu2 %v5168_v35  ;;  %v255_v35 = vld [vmem:[%s21527_s1 + $0x740] sm:$0xff]  ;;  %v15920_v55 = vsub.f32 %v257_v19, %v15889_v14 }
 0x2c7   :  { %5270 = vmatpush.msra.mxu1 %v15627_v22  ;;  %5380 = vmatpush.msra.mxu3 %v15642_v44  ;;  %v15884_v22 = vsub.f32 %v260_v4, %v15854_v46  ;;  %v15898_v16 = vsub.f32 %v259_v53, %v15867_v21  ;;  %v15930_v25 = vand.u32 4294901760, %v255_v35  ;;  %v248_v4 = vld [vmem:[%s21527_s1 + $0x708] sm:$0xff] }
 0x2c8   :  { %5242 = vmatpush.msra.mxu0 %v15733_v30  ;;  %5343 = vmatpush.msra.mxu2 %v5174_v57  ;;  %v21699_v30 = vand.u32 4294901760, %v15904_v20  ;;  %v21697_v37 = vand.u32 4294901760, %v15920_v55 }
 0x2c9   :  { %5272 = vmatpush.msra.mxu1 %v15642_v44  ;;  %5382 = vmatpush.msra.mxu3 %v15655_v43  ;;  %v5443_v44 = vand.u32 4294901760, %v15870_v7  ;;  %v5449_v52 = vand.u32 4294901760, %v15884_v22  ;;  %v21702_v57 = vand.u32 4294901760, %v15898_v16  ;;  %v15963_v54 = vsub.f32 %v255_v35, %v15930_v25 }
 0x2ca   :  { %5245 = vmatmul.f32.vlgmr.msra.gmra.mxu0 %v15722_v38  ;;  %5347 = vmatpush.msra.mxu2 %v5180_v18  ;;  %v15944_v18 = vand.u32 4294901760, %v254_v5  ;;  %v5468_v10 = vsub.f32 %v15920_v55, %v21697_v37  ;;  %v16039_v35 = vsub.f32 %v250_v62, %v16007_v39 }
 0x2cb   :  { %5395 = vmatpush.msrb.mxu0 %v15834_v36  ;;  %5274 = vmatpush.msra.mxu1 %v15655_v43  ;;  %v5438_v43 = vsub.f32 %v15857_v33, %v5437_v29  ;;  %v5450_v40 = vsub.f32 %v15884_v22, %v5449_v52  ;;  %v5456_v60 = vsub.f32 %v15898_v16, %v21702_v57  ;;  %v21694_v47 = vand.u32 4294901760, %v15963_v54 }
 0x2cc   :  { %5384 = vmatpush.msra.mxu3 %v15677_v0  ;;  %5351 = vmatpush.msra.mxu2 %v5186_v1  ;;  %v15960_v1 = vand.u32 4294901760, %v253_v27  ;;  %v15979_v38 = vsub.f32 %v254_v5, %v15944_v18  ;;  %v5469_v49 = vand.u32 4294901760, %v5468_v10  ;;  %v16046_v5 = vand.u32 4294901760, %v248_v4 }
 0x2cd   :  { %5397 = vmatpush.msrb.mxu0 %v15844_v41  ;;  %5276 = vmatpush.msra.mxu1 %v15677_v0  ;;  %v5444_v0 = vsub.f32 %v15870_v7, %v5443_v44  ;;  %v5439_v11 = vand.u32 4294901760, %v5438_v43  ;;  %v5451_v32 = vand.u32 4294901760, %v5450_v40  ;;  %v5457_v45 = vand.u32 4294901760, %v5456_v60  ;;  %v278_v43 = vld [vmem:[%s21527_s1 + $0x7f8] sm:$0xff] }
 0x2ce   :  { %5386 = vmatpush.msra.mxu3 %v15693_v6  ;;  %5353 = vmatmul.f32.vlgmr.msra.gmra.mxu2 %v15695_v8  ;;  %v15994_v56 = vsub.f32 %v253_v27, %v15960_v1  ;;  %v21693_v28 = vand.u32 4294901760, %v15979_v38  ;;  %v5480_v12 = vsub.f32 %v15963_v54, %v21694_v47  ;;  %v21689_v40 = vand.u32 4294901760, %v16023_v34 }
 0x2cf   :  { %5399 = vmatpush.msrb.mxu0 %v15854_v46  ;;  %5538 = vmatpush.msrb.mxu2 %v15857_v33  ;;  %v5445_v17 = vand.u32 4294901760, %v5444_v0  ;;  %v247_v0 = vld [vmem:[%s21527_s1 + $0x700] sm:$0xff]  ;;  %v16062_v60 = vand.u32 4294901760, %v278_v43  ;;  %v21691_v10 = vand.u32 4294901760, %v16039_v35  ;;  %v16077_v62 = vsub.f32 %v248_v4, %v16046_v5  ;;  %v270_v33 = vld [vmem:[%s21527_s1 + $0x7b8] sm:$0xff] }
 0x2d0   :  { %5278 = vmatpush.msra.mxu1 %v15693_v6  ;;  %5388 = vmatpush.msra.mxu3 %v15708_v26  ;;  %v15947_v6 = vsub.f32 %v256_v2, %v15914_v58  ;;  %v21692_v48 = vand.u32 4294901760, %v15994_v56  ;;  %v5486_v19 = vsub.f32 %v15979_v38, %v21693_v28  ;;  %v5481_v27 = vand.u32 4294901760, %v5480_v12  ;;  %v275_v12 = vld [vmem:[%s21527_s1 + $0x7e0] sm:$0xff] }
 0x2d1   :  { %5390 = vmatmul.f32.vlgmr.msra.gmra.mxu3 %v15695_v8  ;;  %5401 = vmatpush.msrb.mxu0 %v15867_v21  ;;  %v252_v8 = vld [vmem:[%s21527_s1 + $0x728] sm:$0xff] }
 0x2d2   :  { %5541 = vmatpush.msrb.mxu2 %v15870_v7  ;;  %5591 = vmatpush.msrb.mxu3 %v15834_v36  ;;  %v15975_v3 = vand.u32 4294901760, %v252_v8  ;;  %v21696_v24 = vand.u32 4294901760, %v15947_v6  ;;  %v5487_v31 = vand.u32 4294901760, %v5486_v19  ;;  %v269_v7 = vld [vmem:[%s21527_s1 + $0x7b0] sm:$0xff] }
 0x2d3   :  { %5280 = vmatpush.msra.mxu1 %v15708_v26  ;;  %5403 = vmatpush.msrb.mxu0 %v15878_v63  ;;  %v5462_v26 = vsub.f32 %v15904_v20, %v21699_v30  ;;  %v16223_v57 = vand.u32 4294901760, %v269_v7 }
 0x2d4   :  { %5284 = vmatmul.f32.vlgmr.msra.gmra.mxu1 %v5087_v59  ;;  %5544 = vmatpush.msrb.mxu2 %v15884_v22  ;;  %v566_v59 = vld.sshfl [vmem:[#allocation1 + $0x30] sm:$0xff pattern:$0x73625140]  ;;  %v5474_v51 = vsub.f32 %v15947_v6, %v21696_v24  ;;  %v16011_v23 = vsub.f32 %v252_v8, %v15975_v3  ;;  %v16057_v8 = vsub.f32 %v249_v50, %v16019_v42 }
 0x2d5   :  { %5440 = vmatpush.msrb.mxu1 %v5439_v11  ;;  %5593 = vmatpush.msrb.mxu3 %v15844_v41  ;;  %v5463_v15 = vand.u32 4294901760, %v5462_v26  ;;  %v16001_v9 = vand.u32 4294901760, %v566_v59  ;;  %v5492_v11 = vsub.f32 %v15994_v56, %v21692_v48  ;;  %v277_v26 = vld [vmem:[%s21527_s1 + $0x7f0] sm:$0xff]  ;;  %v5504_v50 = vsub.f32 %v16023_v34, %v21689_v40 }
 0x2d6   :  { %5405 = vmatpush.msrb.mxu0 %v15889_v14  ;;  %5547 = vmatpush.msrb.mxu2 %v15898_v16  ;;  %v5475_v61 = vand.u32 4294901760, %v5474_v51  ;;  %v21690_v2 = vand.u32 4294901760, %v16011_v23  ;;  %v21695_v51 = vand.u32 4294901760, %v16057_v8 }
 0x2d7   :  { %5446 = vmatpush.msrb.mxu1 %v5445_v17  ;;  %5595 = vmatpush.msrb.mxu3 %v15854_v46  ;;  %v16031_v53 = vsub.f32 %v566_v59, %v16001_v9  ;;  %v16071_v59 = vand.u32 4294901760, %v247_v0 }
 0x2d8   :  { %5407 = vmatpush.msrb.mxu0 %v15914_v58  ;;  %5550 = vmatpush.msrb.mxu2 %v15904_v20 }
 0x2d9   :  { %5452 = vmatpush.msrb.mxu1 %v5451_v32  ;;  %5597 = vmatpush.msrb.mxu3 %v15867_v21  ;;  %v5428_v17 = vand.u32 4294901760, %v16031_v53  ;;  %v5498_v32 = vsub.f32 %v16011_v23, %v21690_v2  ;;  %22066 = vst [vmem:[#allocation5_spill] sm:$0xff] %v16071_v59  ;;  %v274_v2 = vld [vmem:[%s21527_s1 + $0x7d8] sm:$0xff] }
 0x2da   :  { %5409 = vmatpush.msrb.mxu0 %v15930_v25  ;;  %5553 = vmatpush.msrb.mxu2 %v15920_v55  ;;  %v16127_v47 = vand.u32 4294901760, %v274_v2 }
 0x2db   :  { %5458 = vmatpush.msrb.mxu1 %v5457_v45  ;;  %5599 = vmatpush.msrb.mxu3 %v15878_v63  ;;  %v276_v45 = vld [vmem:[%s21527_s1 + $0x7e8] sm:$0xff]  ;;  %v5429_v4 = vsub.f32 %v16031_v53, %v5428_v17  ;;  %v5499_v19 = vand.u32 4294901760, %v5498_v32  ;;  %v5505_v32 = vand.u32 4294901760, %v5504_v50 }
 0x2dc   :  { %5411 = vmatpush.msrb.mxu0 %v15944_v18  ;;  %5556 = vmatpush.msrb.mxu2 %v15947_v6  ;;  %v16107_v40 = vand.u32 4294901760, %v276_v45 }
 0x2dd   :  { %5464 = vmatpush.msrb.mxu1 %v5463_v15  ;;  %5601 = vmatpush.msrb.mxu3 %v15889_v14  ;;  %v5493_v15 = vand.u32 4294901760, %v5492_v11  ;;  %v16105_v11 = vsub.f32 %v247_v0, %v16071_v59  ;;  %v5516_v0 = vsub.f32 %v16057_v8, %v21695_v51  ;;  %v5430_v48 = vand.u32 4294901760, %v5429_v4 }
 0x2de   :  { %5413 = vmatpush.msrb.mxu0 %v15960_v1  ;;  %5559 = vmatpush.msrb.mxu2 %v15963_v54  ;;  %v16135_v51 = vsub.f32 %v276_v45, %v16107_v40 }
 0x2df   :  { %5470 = vmatpush.msrb.mxu1 %v5469_v49  ;;  %5603 = vmatpush.msrb.mxu3 %v15914_v58  ;;  %v16087_v49 = vand.u32 4294901760, %v277_v26  ;;  %v5517_v45 = vand.u32 4294901760, %v5516_v0 }
 0x2e0   :  { %5415 = vmatpush.msrb.mxu0 %v15975_v3  ;;  %5562 = vmatpush.msrb.mxu2 %v15979_v38  ;;  %v21703_v0 = vand.u32 4294901760, %v16135_v51 }
 0x2e1   :  { %5476 = vmatpush.msrb.mxu1 %v5475_v61  ;;  %5605 = vmatpush.msrb.mxu3 %v15930_v25  ;;  %v16098_v61 = vsub.f32 %v278_v43, %v16062_v60  ;;  %v21698_v43 = vand.u32 4294901760, %v16077_v62 }
 0x2e2   :  { %5417 = vmatpush.msrb.mxu0 %v15990_v13  ;;  %5565 = vmatpush.msrb.mxu2 %v15994_v56 }
 0x2e3   :  { %5482 = vmatpush.msrb.mxu1 %v5481_v27  ;;  %5607 = vmatpush.msrb.mxu3 %v15944_v18  ;;  %v5510_v27 = vsub.f32 %v16039_v35, %v21691_v10  ;;  %v16122_v10 = vsub.f32 %v277_v26, %v16087_v49  ;;  %v21700_v28 = vand.u32 4294901760, %v16098_v61  ;;  %v21701_v26 = vand.u32 4294901760, %v16105_v11 }
 0x2e4   :  { %5419 = vmatpush.msrb.mxu0 %v16007_v39  ;;  %5568 = vmatpush.msrb.mxu2 %v16011_v23  ;;  %v5522_v4 = vsub.f32 %v16077_v62, %v21698_v43  ;;  %v16157_v43 = vsub.f32 %v274_v2, %v16127_v47 }
 0x2e5   :  { %5488 = vmatpush.msrb.mxu1 %v5487_v31  ;;  %5609 = vmatpush.msrb.mxu3 %v15960_v1  ;;  %v16115_v31 = vand.u32 4294901760, %v275_v12  ;;  %v5511_v50 = vand.u32 4294901760, %v5510_v27  ;;  %v21704_v27 = vand.u32 4294901760, %v16122_v10 }
 0x2e6   :  { %5421 = vmatpush.msrb.mxu0 %v16019_v42  ;;  %5571 = vmatpush.msrb.mxu2 %v16023_v34  ;;  %v5523_v2 = vand.u32 4294901760, %v5522_v4 }
 0x2e7   :  { %5494 = vmatpush.msrb.mxu1 %v5493_v15  ;;  %5611 = vmatpush.msrb.mxu3 %v15975_v3  ;;  %v273_v15 = vld [vmem:[%s21527_s1 + $0x7d0] sm:$0xff]  ;;  %v16143_v24 = vsub.f32 %v275_v12, %v16115_v31  ;;  %v5779_v12 = vsub.f32 %v16098_v61, %v21700_v28 }
 0x2e8   :  { %5423 = vmatpush.msrb.mxu0 %v16046_v5  ;;  %5574 = vmatpush.msrb.mxu2 %v16039_v35  ;;  %v16150_v37 = vand.u32 4294901760, %v273_v15 }
 0x2e9   :  { %5500 = vmatpush.msrb.mxu1 %v5499_v19  ;;  %5613 = vmatpush.msrb.mxu3 %v15990_v13  ;;  %v272_v19 = vld [vmem:[%s21527_s1 + $0x7c8] sm:$0xff]  ;;  %v21705_v28 = vand.u32 4294901760, %v16143_v24  ;;  %v5780_v4 = vand.u32 4294901760, %v5779_v12  ;;  %v16201_v12 = vand.u32 4294901760, %v270_v33 }
 0x2ea   :  { %5425 = vmatpush.msrb.mxu0 %v16071_v59  ;;  %5577 = vmatpush.msrb.mxu2 %v16057_v8  ;;  %v16168_v30 = vand.u32 4294901760, %v272_v19 }
 0x2eb   :  { %5506 = vmatpush.msrb.mxu1 %v5505_v32  ;;  %5615 = vmatpush.msrb.mxu3 %v16007_v39  ;;  %v271_v32 = vld [vmem:[%s21527_s1 + $0x7c0] sm:$0xff]  ;;  %v5797_v22 = vsub.f32 %v16143_v24, %v21705_v28 }
 0x2ec   :  { %5431 = vmatmul.f32.vlgmr.msrb.gmra.mxu0 %v5430_v48  ;;  %5580 = vmatpush.msrb.mxu2 %v16077_v62  ;;  %v5528_v48 = vsub.f32 %v16105_v11, %v21701_v26  ;;  %v16184_v26 = vand.u32 4294901760, %v271_v32 }
 0x2ed   :  { %5632 = vmatpush.msra.mxu0 %v5437_v29  ;;  %5512 = vmatpush.msrb.mxu1 %v5511_v50  ;;  %v5785_v29 = vsub.f32 %v16122_v10, %v21704_v27  ;;  %v16182_v50 = vsub.f32 %v273_v15, %v16150_v37  ;;  %v5791_v15 = vsub.f32 %v16135_v51, %v21703_v0  ;;  %v16213_v0 = vld.sshfl [vmem:[#allocation1 + $0x38] sm:$0xff pattern:$0x73625140] }
 0x2ee   :  { %5617 = vmatpush.msrb.mxu3 %v16019_v42  ;;  %5583 = vmatpush.msrb.mxu2 %v16105_v11  ;;  %v16221_v28 = vsub.f32 %v271_v32, %v16184_v26 }
 0x2ef   :  { %5636 = vmatpush.msra.mxu0 %v5443_v44  ;;  %5518 = vmatpush.msrb.mxu1 %v5517_v45  ;;  %v5529_v44 = vand.u32 4294901760, %v5528_v48  ;;  %v16199_v45 = vsub.f32 %v272_v19, %v16168_v30  ;;  %v20_v48 = vld [vmem:[%s21526_s0 + $0x28] sm:$0xff]  ;;  %v22067_v19 = vand.u32 4294901760, %v15898_v16  ;;  %v21707_v27 = vand.u32 4294901760, %v16182_v50  ;;  %v267_v16 = vld [vmem:[%s21527_s1 + $0x7a0] sm:$0xff] }
 0x2f0   :  { %5619 = vmatpush.msrb.mxu3 %v16046_v5  ;;  %5586 = vmatmul.f32.vlgmr.msrb.gmra.mxu2 %v16031_v53  ;;  %569 = vst [vmem:[#allocation1 + $0x20] ss:$4 sm:$0xff] %v20_v48  ;;  %v5792_v32 = vand.u32 4294901760, %v5791_v15  ;;  %v16236_v48 = vsub.f32 %v270_v33, %v16201_v12  ;;  %v21708_v33 = vand.u32 4294901760, %v16221_v28  ;;  %v16253_v15 = vand.u32 4294901760, %v267_v16 }
 0x2f1   :  { %5640 = vmatpush.msra.mxu0 %v5449_v52  ;;  %5736 = vmatpush.msra.mxu2 %v16062_v60  ;;  %v268_v52 = vld [vmem:[%s21527_s1 + $0x7a8] sm:$0xff] }
 0x2f2   :  { %5524 = vmatpush.msrb.mxu1 %v5523_v2  ;;  %5621 = vmatpush.msrb.mxu3 %v16071_v59  ;;  %v5786_v2 = vand.u32 4294901760, %v5785_v29  ;;  %v22068_v59 = vand.u32 4294901760, %v16157_v43  ;;  %v21710_v29 = vand.u32 4294901760, %v16199_v45 }
 0x2f3   :  { %5625 = vmatmul.f32.vlgmr.msrb.gmra.mxu3 %v5428_v17  ;;  %5644 = vmatpush.msra.mxu0 %v22067_v19  ;;  %v22069_v17 = vand.u32 4294901760, %v15904_v20  ;;  %v16238_v19 = vand.u32 4294901760, %v268_v52  ;;  %v5809_v20 = vsub.f32 %v16182_v50, %v21707_v27 }
 0x2f4   :  { %5738 = vmatpush.msra.mxu2 %v16087_v49  ;;  %5781 = vmatpush.msra.mxu3 %v5780_v4  ;;  %v5803_v53 = vsub.f32 %v16157_v43, %v22068_v59  ;;  %v5798_v59 = vand.u32 4294901760, %v5797_v22  ;;  %v266_v4 = vld [vmem:[%s21527_s1 + $0x798] sm:$0xff]  ;;  %v22070_v22 = vand.u32 4294901760, %v15920_v55  ;;  %v265_v55 = vld [vmem:[%s21527_s1 + $0x790] sm:$0xff] }
 0x2f5   :  { %5530 = vmatpush.msrb.mxu1 %v5529_v44  ;;  %5648 = vmatpush.msra.mxu0 %v22069_v17  ;;  %v16251_v44 = vsub.f32 %v269_v7, %v16223_v57  ;;  %v16264_v7 = vsub.f32 %v268_v52, %v16238_v19  ;;  %v16266_v27 = vand.u32 4294901760, %v266_v4  ;;  %v5821_v52 = vsub.f32 %v16221_v28, %v21708_v33 }
 0x2f6   :  { %5532 = vmatmul.f32.vlgmr.msrb.gmra.mxu1 %v16001_v9  ;;  %5740 = vmatpush.msra.mxu2 %v16107_v40  ;;  %v5804_v17 = vand.u32 4294901760, %v5803_v53  ;;  %v22071_v53 = vand.u32 4294901760, %v15947_v6  ;;  %v264_v6 = vld [vmem:[%s21527_s1 + $0x788] sm:$0xff] }
 0x2f7   :  { %5699 = vmatpush.msra.mxu1 %v15834_v36  ;;  %5787 = vmatpush.msra.mxu3 %v5786_v2  ;;  %v5815_v36 = vsub.f32 %v16199_v45, %v21710_v29  ;;  %v21709_v2 = vand.u32 4294901760, %v16236_v48  ;;  %v16296_v33 = vsub.f32 %v266_v4, %v16266_v27 }
 0x2f8   :  { %5652 = vmatpush.msra.mxu0 %v22070_v22  ;;  %5742 = vmatpush.msra.mxu2 %v16115_v31  ;;  %v16280_v22 = vsub.f32 %v267_v16, %v16253_v15 }
 0x2f9   :  { %5701 = vmatpush.msra.mxu1 %v15844_v41  ;;  %5793 = vmatpush.msra.mxu3 %v5792_v32  ;;  %v5810_v41 = vand.u32 4294901760, %v5809_v20  ;;  %v5832_v32 = vand.u32 4294901760, %v16251_v44  ;;  %v5827_v16 = vsub.f32 %v16236_v48, %v21709_v2  ;;  %v5838_v20 = vand.u32 4294901760, %v16264_v7 }
 0x2fa   :  { %5656 = vmatpush.msra.mxu0 %v22071_v53  ;;  %5744 = vmatpush.msra.mxu2 %v16127_v47  ;;  %v22072_v53 = vand.u32 4294901760, %v15963_v54  ;;  %v263_v54 = vld [vmem:[%s21527_s1 + $0x780] sm:$0xff]  ;;  %v5844_v2 = vand.u32 4294901760, %v16280_v22 }
 0x2fb   :  { %5703 = vmatpush.msra.mxu1 %v15854_v46  ;;  %5799 = vmatpush.msra.mxu3 %v5798_v59  ;;  %v16288_v46 = vand.u32 4294901760, %v265_v55  ;;  %v5816_v59 = vand.u32 4294901760, %v5815_v36  ;;  %v5822_v36 = vand.u32 4294901760, %v5821_v52  ;;  %v5833_v4 = vsub.f32 %v16251_v44, %v5832_v32 }
 0x2fc   :  { %5660 = vmatpush.msra.mxu0 %v22072_v53  ;;  %5746 = vmatpush.msra.mxu2 %v16150_v37  ;;  %v22073_v53 = vand.u32 4294901760, %v15979_v38  ;;  %v22074_v38 = vand.u32 4294901760, %v15994_v56  ;;  %v16320_v29 = vand.u32 4294901760, %v263_v54  ;;  %v5850_v52 = vand.u32 4294901760, %v16296_v33 }
 0x2fd   :  { %5705 = vmatpush.msra.mxu1 %v15867_v21  ;;  %5805 = vmatpush.msra.mxu3 %v5804_v17  ;;  %v16304_v21 = vand.u32 4294901760, %v264_v6  ;;  %v16307_v17 = vand.u32 4294901760, %v16213_v0  ;;  %v22075_v56 = vand.u32 4294901760, %v16011_v23  ;;  %v22076_v23 = vand.u32 4294901760, %v16023_v34 }
 0x2fe   :  { %5664 = vmatpush.msra.mxu0 %v22073_v53  ;;  %5748 = vmatpush.msra.mxu2 %v16168_v30  ;;  %v16318_v53 = vsub.f32 %v265_v55, %v16288_v46 }
 0x2ff   :  { %5707 = vmatpush.msra.mxu1 %v15878_v63  ;;  %5811 = vmatpush.msra.mxu3 %v5810_v41  ;;  %v5828_v63 = vand.u32 4294901760, %v5827_v16  ;;  %v5839_v41 = vsub.f32 %v16264_v7, %v5838_v20  ;;  %v16331_v55 = vsub.f32 %v264_v6, %v16304_v21  ;;  %v16346_v16 = vsub.f32 %v263_v54, %v16320_v29 }
 0x300   :  { %5668 = vmatpush.msra.mxu0 %v22074_v38  ;;  %5750 = vmatpush.msra.mxu2 %v16184_v26  ;;  %v16335_v38 = vsub.f32 %v16213_v0, %v16307_v17  ;;  %v5856_v6 = vand.u32 4294901760, %v16318_v53  ;;  %v5851_v0 = vsub.f32 %v16296_v33, %v5850_v52 }
 0x301   :  { %5709 = vmatpush.msra.mxu1 %v15889_v14  ;;  %5817 = vmatpush.msra.mxu3 %v5816_v59  ;;  %v5834_v14 = vand.u32 4294901760, %v5833_v4  ;;  %v5845_v59 = vsub.f32 %v16280_v22, %v5844_v2  ;;  %v5862_v34 = vand.u32 4294901760, %v16331_v55 }
 0x302   :  { %5672 = vmatpush.msra.mxu0 %v22075_v56  ;;  %5752 = vmatpush.msra.mxu2 %v16201_v12  ;;  %v5769_v4 = vand.u32 4294901760, %v16335_v38  ;;  %v22079_v56 = vand.u32 4294901760, %v16077_v62 }
 0x303   :  { %5711 = vmatpush.msra.mxu1 %v15914_v58  ;;  %5823 = vmatpush.msra.mxu3 %v5822_v36  ;;  %v5840_v58 = vand.u32 4294901760, %v5839_v41  ;;  %v22077_v36 = vand.u32 4294901760, %v16039_v35  ;;  %v5846_v54 = vand.u32 4294901760, %v5845_v59  ;;  %v5857_v35 = vsub.f32 %v16318_v53, %v5856_v6 }
 0x304   :  { %5676 = vmatpush.msra.mxu0 %v22076_v23  ;;  %5754 = vmatpush.msra.mxu2 %v16223_v57  ;;  %v5852_v41 = vand.u32 4294901760, %v5851_v0 }
 0x305   :  { %5713 = vmatpush.msra.mxu1 %v15930_v25  ;;  %5829 = vmatpush.msra.mxu3 %v5828_v63  ;;  %v22078_v25 = vand.u32 4294901760, %v16057_v8  ;;  %v5868_v63 = vand.u32 4294901760, %v16346_v16  ;;  %v5770_v8 = vsub.f32 %v16335_v38, %v5769_v4  ;;  %v5858_v62 = vand.u32 4294901760, %v5857_v35 }
 0x306   :  { %5680 = vmatpush.msra.mxu0 %v22077_v36  ;;  %5756 = vmatpush.msra.mxu2 %v16238_v19 }
 0x307   :  { %5715 = vmatpush.msra.mxu1 %v15944_v18  ;;  %5835 = vmatpush.msra.mxu3 %v5834_v14  ;;  %v5863_v18 = vsub.f32 %v16331_v55, %v5862_v34  ;;  %v5869_v14 = vsub.f32 %v16346_v16, %v5868_v63 }
 0x308   :  { %5684 = vmatpush.msra.mxu0 %v22078_v25  ;;  %5758 = vmatpush.msra.mxu2 %v16253_v15 }
 0x309   :  { %5717 = vmatpush.msra.mxu1 %v15960_v1  ;;  %5841 = vmatpush.msra.mxu3 %v5840_v58  ;;  %v22080_v1 = vand.u32 4294901760, %v16105_v11  ;;  %v5864_v59 = vand.u32 4294901760, %v5863_v18  ;;  %v5870_v11 = vand.u32 4294901760, %v5869_v14 }
 0x30a   :  { %5688 = vmatpush.msra.mxu0 %v22079_v56  ;;  %5760 = vmatpush.msra.mxu2 %v16266_v27 }
 0x30b   :  { %5719 = vmatpush.msra.mxu1 %v15975_v3  ;;  %5847 = vmatpush.msra.mxu3 %v5846_v54  ;;  %v5771_v3 = vand.u32 4294901760, %v5770_v8 }
 0x30c   :  { %5692 = vmatpush.msra.mxu0 %v22080_v1  ;;  %5762 = vmatpush.msra.mxu2 %v16288_v46 }
 0x30d   :  { %5721 = vmatpush.msra.mxu1 %v15990_v13  ;;  %5853 = vmatpush.msra.mxu3 %v5852_v41  ;;  %v22081_v13 = vand.u32 4294901760, %v16098_v61  ;;  %v283_v41 = vld [vmem:[%s21527_s1 + $0x820] sm:$0xff] }
 0x30e   :  { %5694 = vmatmul.f32.vlgmr.msra.gmra.mxu0 %v16001_v9  ;;  %5764 = vmatpush.msra.mxu2 %v16304_v21 }
 0x30f   :  { %5879 = vmatpush.msrb.mxu0 %v16098_v61  ;;  %5723 = vmatpush.msra.mxu1 %v16007_v39  ;;  %v22082_v39 = vand.u32 4294901760, %v16122_v10  ;;  %v22084_v61 = vand.u32 4294901760, %v16135_v51 }
 0x310   :  { %5859 = vmatpush.msra.mxu3 %v5858_v62  ;;  %5766 = vmatpush.msra.mxu2 %v16320_v29  ;;  %v282_v62 = vld [vmem:[%s21527_s1 + $0x818] sm:$0xff] }
 0x311   :  { %5882 = vmatpush.msrb.mxu0 %v16122_v10  ;;  %5725 = vmatpush.msra.mxu1 %v16019_v42  ;;  %v22083_v42 = vld [vmem:[#allocation5_spill] sm:$0xff]  ;;  %v22090_v10 = vand.u32 4294901760, %v16236_v48 }
 0x312   :  { %5865 = vmatpush.msra.mxu3 %v5864_v59  ;;  %5772 = vmatmul.f32.vlgmr.msra.gmra.mxu2 %v5771_v3  ;;  %v16603_v59 = vand.u32 4294901760, %v283_v41 }
 0x313   :  { %5885 = vmatpush.msrb.mxu0 %v16135_v51  ;;  %5973 = vmatpush.msrb.mxu2 %v22081_v13 }
 0x314   :  { %5727 = vmatpush.msra.mxu1 %v16046_v5  ;;  %5871 = vmatpush.msra.mxu3 %v5870_v11  ;;  %v22085_v5 = vand.u32 4294901760, %v16143_v24 }
 0x315   :  { %5873 = vmatmul.f32.vlgmr.msra.gmra.mxu3 %v16307_v17  ;;  %5888 = vmatpush.msrb.mxu0 %v16143_v24  ;;  %v22088_v24 = vand.u32 4294901760, %v16199_v45 }
 0x316   :  { %5977 = vmatpush.msrb.mxu2 %v22082_v39  ;;  %6040 = vmatpush.msrb.mxu3 %v16062_v60  ;;  %v281_v39 = vld [vmem:[%s21527_s1 + $0x810] sm:$0xff] }
 0x317   :  { %5729 = vmatpush.msra.mxu1 %v22083_v42  ;;  %5891 = vmatpush.msrb.mxu0 %v16157_v43 }
 0x318   :  { %5731 = vmatmul.f32.vlgmr.msra.gmra.mxu1 %v16001_v9  ;;  %5981 = vmatpush.msrb.mxu2 %v22084_v61  ;;  %v22086_v9 = vand.u32 4294901760, %v16157_v43 }
 0x319   :  { %5932 = vmatpush.msrb.mxu1 %v16062_v60  ;;  %6042 = vmatpush.msrb.mxu3 %v16087_v49  ;;  %v22087_v60 = vand.u32 4294901760, %v16182_v50 }
 0x31a   :  { %5894 = vmatpush.msrb.mxu0 %v16182_v50  ;;  %5985 = vmatpush.msrb.mxu2 %v22085_v5  ;;  %v16620_v5 = vand.u32 4294901760, %v282_v62 }
 0x31b   :  { %5934 = vmatpush.msrb.mxu1 %v16087_v49  ;;  %6044 = vmatpush.msrb.mxu3 %v16107_v40  ;;  %v291_v49 = vld [vmem:[%s21527_s1 + $0x860] sm:$0xff] }
 0x31c   :  { %5897 = vmatpush.msrb.mxu0 %v16199_v45  ;;  %5989 = vmatpush.msrb.mxu2 %v22086_v9  ;;  %v289_v45 = vld [vmem:[%s21527_s1 + $0x850] sm:$0xff] }
 0x31d   :  { %5936 = vmatpush.msrb.mxu1 %v16107_v40  ;;  %6046 = vmatpush.msrb.mxu3 %v16115_v31  ;;  %v22089_v40 = vand.u32 4294901760, %v16221_v28 }
 0x31e   :  { %5900 = vmatpush.msrb.mxu0 %v16221_v28  ;;  %5993 = vmatpush.msrb.mxu2 %v22087_v60 }
 0x31f   :  { %5938 = vmatpush.msrb.mxu1 %v16115_v31  ;;  %6048 = vmatpush.msrb.mxu3 %v16127_v47 }
 0x320   :  { %5903 = vmatpush.msrb.mxu0 %v16236_v48  ;;  %5997 = vmatpush.msrb.mxu2 %v22088_v24 }
 0x321   :  { %5940 = vmatpush.msrb.mxu1 %v16127_v47  ;;  %6050 = vmatpush.msrb.mxu3 %v16150_v37  ;;  %v294_v47 = vld [vmem:[%s21527_s1 + $0x878] sm:$0xff] }
 0x322   :  { %5906 = vmatpush.msrb.mxu0 %v16251_v44  ;;  %6001 = vmatpush.msrb.mxu2 %v22089_v40  ;;  %v16447_v28 = vand.u32 4294901760, %v294_v47  ;;  %v288_v44 = vld [vmem:[%s21527_s1 + $0x848] sm:$0xff] }
 0x323   :  { %5942 = vmatpush.msrb.mxu1 %v16150_v37  ;;  %6052 = vmatpush.msrb.mxu3 %v16168_v30  ;;  %v293_v37 = vld [vmem:[%s21527_s1 + $0x870] sm:$0xff] }
 0x324   :  { %5909 = vmatpush.msrb.mxu0 %v16264_v7  ;;  %6005 = vmatpush.msrb.mxu2 %v22090_v10  ;;  %v16457_v51 = vand.u32 4294901760, %v293_v37  ;;  %v16470_v31 = vsub.f32 %v294_v47, %v16447_v28  ;;  %v16632_v10 = vand.u32 4294901760, %v281_v39 }
 0x325   :  { %5944 = vmatpush.msrb.mxu1 %v16168_v30  ;;  %6054 = vmatpush.msrb.mxu3 %v16184_v26  ;;  %v292_v30 = vld [vmem:[%s21527_s1 + $0x868] sm:$0xff] }
 0x326   :  { %5912 = vmatpush.msrb.mxu0 %v16280_v22  ;;  %6009 = vmatpush.msrb.mxu2 %v5832_v32  ;;  %v16467_v43 = vand.u32 4294901760, %v292_v30  ;;  %v16483_v50 = vsub.f32 %v293_v37, %v16457_v51  ;;  %v6119_v48 = vand.u32 4294901760, %v16470_v31  ;;  %v287_v32 = vld [vmem:[%s21527_s1 + $0x840] sm:$0xff]  ;;  %v16527_v22 = vand.u32 4294901760, %v288_v44 }
 0x327   :  { %5946 = vmatpush.msrb.mxu1 %v16184_v26  ;;  %6056 = vmatpush.msrb.mxu3 %v16201_v12  ;;  %v290_v26 = vld [vmem:[%s21527_s1 + $0x858] sm:$0xff]  ;;  %v16636_v37 = vsub.f32 %v283_v41, %v16603_v59 }
 0x328   :  { %5915 = vmatpush.msrb.mxu0 %v16296_v33  ;;  %6013 = vmatpush.msrb.mxu2 %v5838_v20  ;;  %v16502_v33 = vand.u32 4294901760, %v289_v45 }
 0x329   :  { %5948 = vmatpush.msrb.mxu1 %v16201_v12  ;;  %6058 = vmatpush.msrb.mxu3 %v16223_v57  ;;  %v16491_v12 = vand.u32 4294901760, %v290_v26 }
 0x32a   :  { %5918 = vmatpush.msrb.mxu0 %v16318_v53  ;;  %6017 = vmatpush.msrb.mxu2 %v5844_v2  ;;  %v16533_v53 = vsub.f32 %v289_v45, %v16502_v33 }
 0x32b   :  { %5950 = vmatpush.msrb.mxu1 %v16223_v57  ;;  %6060 = vmatpush.msrb.mxu3 %v16238_v19  ;;  %v16480_v57 = vand.u32 4294901760, %v291_v49  ;;  %v16517_v7 = vsub.f32 %v290_v26, %v16491_v12 }
 0x32c   :  { %5921 = vmatpush.msrb.mxu0 %v16331_v55  ;;  %6021 = vmatpush.msrb.mxu2 %v5850_v52  ;;  %v286_v52 = vld [vmem:[%s21527_s1 + $0x838] sm:$0xff]  ;;  %v16543_v55 = vand.u32 4294901760, %v287_v32 }
 0x32d   :  { %5952 = vmatpush.msrb.mxu1 %v16238_v19  ;;  %6062 = vmatpush.msrb.mxu3 %v16253_v15  ;;  %v16497_v19 = vsub.f32 %v292_v30, %v16467_v43  ;;  %v16511_v2 = vsub.f32 %v291_v49, %v16480_v57  ;;  %v16557_v36 = vand.u32 4294901760, %v286_v52  ;;  %v280_v30 = vld [vmem:[%s21527_s1 + $0x808] sm:$0xff] }
 0x32e   :  { %5924 = vmatpush.msrb.mxu0 %v16346_v16  ;;  %6025 = vmatpush.msrb.mxu2 %v5856_v6  ;;  %v21720_v6 = vand.u32 4294901760, %v16517_v7  ;;  %v285_v16 = vld [vmem:[%s21527_s1 + $0x830] sm:$0xff] }
 0x32f   :  { %5954 = vmatpush.msrb.mxu1 %v16253_v15  ;;  %6064 = vmatpush.msrb.mxu3 %v16266_v27  ;;  %v6125_v15 = vand.u32 4294901760, %v16483_v50  ;;  %v6131_v20 = vand.u32 4294901760, %v16497_v19  ;;  %v21722_v23 = vand.u32 4294901760, %v16511_v2  ;;  %v16573_v35 = vand.u32 4294901760, %v285_v16 }
 0x330   :  { %5927 = vmatmul.f32.vlgmr.msrb.gmra.mxu0 %v16335_v38  ;;  %6029 = vmatpush.msrb.mxu2 %v5862_v34  ;;  %v21719_v34 = vand.u32 4294901760, %v16533_v53  ;;  %v16592_v38 = vsub.f32 %v286_v52, %v16557_v36  ;;  %v16659_v52 = vand.u32 4294901760, %v280_v30 }
 0x331   :  { %6077 = vmatpush.msra.mxu0 %v16447_v28  ;;  %5956 = vmatpush.msrb.mxu1 %v16266_v27  ;;  %v6120_v27 = vsub.f32 %v16470_v31, %v6119_v48  ;;  %v6132_v0 = vsub.f32 %v16497_v19, %v6131_v20  ;;  %v6138_v25 = vsub.f32 %v16511_v2, %v21722_v23 }
 0x332   :  { %6066 = vmatpush.msrb.mxu3 %v16288_v46  ;;  %6033 = vmatpush.msrb.mxu2 %v5868_v63  ;;  %v16576_v63 = vsub.f32 %v287_v32, %v16543_v55  ;;  %v6150_v1 = vsub.f32 %v16533_v53, %v21719_v34  ;;  %v16607_v11 = vsub.f32 %v285_v16, %v16573_v35  ;;  %v21715_v9 = vand.u32 4294901760, %v16592_v38 }
 0x333   :  { %6079 = vmatpush.msra.mxu0 %v16457_v51  ;;  %5958 = vmatpush.msrb.mxu1 %v16288_v46  ;;  %v6126_v46 = vsub.f32 %v16483_v50, %v6125_v15  ;;  %v6121_v58 = vand.u32 4294901760, %v6120_v27  ;;  %v6133_v56 = vand.u32 4294901760, %v6132_v0  ;;  %v6139_v14 = vand.u32 4294901760, %v6138_v25  ;;  %v310_v27 = vld [vmem:[%s21527_s1 + $0x8f8] sm:$0xff] }
 0x334   :  { %6068 = vmatpush.msrb.mxu3 %v16304_v21  ;;  %6035 = vmatmul.f32.vlgmr.msrb.gmra.mxu2 %v16307_v17  ;;  %v21716_v3 = vand.u32 4294901760, %v16576_v63  ;;  %v6151_v24 = vand.u32 4294901760, %v6150_v1  ;;  %v21714_v47 = vand.u32 4294901760, %v16607_v11  ;;  %v6168_v45 = vsub.f32 %v16592_v38, %v21715_v9 }
 0x335   :  { %6081 = vmatpush.msra.mxu0 %v16467_v43  ;;  %6220 = vmatpush.msra.mxu2 %v16470_v31  ;;  %v6127_v54 = vand.u32 4294901760, %v6126_v46  ;;  %v16652_v32 = vsub.f32 %v282_v62, %v16620_v5  ;;  %v279_v46 = vld [vmem:[%s21527_s1 + $0x800] sm:$0xff]  ;;  %v21711_v0 = vand.u32 4294901760, %v16636_v37  ;;  %v16675_v25 = vand.u32 4294901760, %v310_v27  ;;  %v302_v31 = vld [vmem:[%s21527_s1 + $0x8b8] sm:$0xff] }
 0x336   :  { %5960 = vmatpush.msrb.mxu1 %v16304_v21  ;;  %6070 = vmatpush.msrb.mxu3 %v16320_v29  ;;  %v16560_v21 = vsub.f32 %v288_v44, %v16527_v22  ;;  %v6162_v40 = vsub.f32 %v16576_v63, %v21716_v3  ;;  %v6169_v41 = vand.u32 4294901760, %v6168_v45  ;;  %v16690_v62 = vsub.f32 %v280_v30, %v16659_v52 }
 0x337   :  { %6072 = vmatmul.f32.vlgmr.msrb.gmra.mxu3 %v16307_v17  ;;  %6083 = vmatpush.msra.mxu0 %v16480_v57  ;;  %v284_v17 = vld [vmem:[%s21527_s1 + $0x828] sm:$0xff]  ;;  %v21713_v1 = vand.u32 4294901760, %v16652_v32 }
 0x338   :  { %6223 = vmatpush.msra.mxu2 %v16483_v50  ;;  %6273 = vmatpush.msra.mxu3 %v16447_v28  ;;  %v16588_v18 = vand.u32 4294901760, %v284_v17  ;;  %v21718_v8 = vand.u32 4294901760, %v16560_v21  ;;  %v6163_v16 = vand.u32 4294901760, %v6162_v40  ;;  %v307_v40 = vld [vmem:[%s21527_s1 + $0x8e0] sm:$0xff] }
 0x339   :  { %5962 = vmatpush.msrb.mxu1 %v16320_v29  ;;  %6085 = vmatpush.msra.mxu0 %v16491_v12  ;;  %v6144_v29 = vsub.f32 %v16517_v7, %v21720_v6  ;;  %v16765_v6 = vpop.f32.mrf.mxu0 }
 0x33a   :  { %5966 = vmatmul.f32.vlgmr.msrb.gmra.mxu1 %v5769_v4  ;;  %6226 = vmatpush.msra.mxu2 %v16497_v19  ;;  %v570_v4 = vld.sshfl [vmem:[#allocation1] sm:$0xff pattern:$0x73625140]  ;;  %v6156_v61 = vsub.f32 %v16560_v21, %v21718_v8  ;;  %v16624_v60 = vsub.f32 %v284_v17, %v16588_v18  ;;  %v16670_v17 = vsub.f32 %v281_v39, %v16632_v10 }
 0x33b   :  { %6122 = vmatpush.msra.mxu1 %v6121_v58  ;;  %6275 = vmatpush.msra.mxu3 %v16457_v51  ;;  %v6145_v13 = vand.u32 4294901760, %v6144_v29  ;;  %v16614_v42 = vand.u32 4294901760, %v570_v4  ;;  %v6174_v58 = vsub.f32 %v16607_v11, %v21714_v47  ;;  %v309_v29 = vld [vmem:[%s21527_s1 + $0x8f0] sm:$0xff]  ;;  %v6186_v39 = vsub.f32 %v16636_v37, %v21711_v0  ;;  %22091 = vst [vmem:[#allocation5_spill] sm:$0xff] %v16765_v6 }
 0x33c   :  { %6087 = vmatpush.msra.mxu0 %v16502_v33  ;;  %6229 = vmatpush.msra.mxu2 %v16511_v2  ;;  %v6157_v26 = vand.u32 4294901760, %v6156_v61  ;;  %v21712_v44 = vand.u32 4294901760, %v16624_v60  ;;  %v21717_v61 = vand.u32 4294901760, %v16670_v17 }
 0x33d   :  { %6128 = vmatpush.msra.mxu1 %v6127_v54  ;;  %6277 = vmatpush.msra.mxu3 %v16467_v43  ;;  %v16644_v49 = vsub.f32 %v570_v4, %v16614_v42  ;;  %v16684_v4 = vand.u32 4294901760, %v279_v46 }
 0x33e   :  { %6089 = vmatpush.msra.mxu0 %v16527_v22  ;;  %6232 = vmatpush.msra.mxu2 %v16517_v7 }
 0x33f   :  { %6134 = vmatpush.msra.mxu1 %v6133_v56  ;;  %6279 = vmatpush.msra.mxu3 %v16480_v57  ;;  %v21725_v54 = vand.u32 4294901760, %v16644_v49  ;;  %v6180_v56 = vsub.f32 %v16624_v60, %v21712_v44  ;;  %v306_v44 = vld [vmem:[%s21527_s1 + $0x8d8] sm:$0xff] }
 0x340   :  { %6091 = vmatpush.msra.mxu0 %v16543_v55  ;;  %6235 = vmatpush.msra.mxu2 %v16533_v53  ;;  %v16740_v3 = vand.u32 4294901760, %v306_v44 }
 0x341   :  { %6140 = vmatpush.msra.mxu1 %v6139_v14  ;;  %6281 = vmatpush.msra.mxu3 %v16491_v12  ;;  %v308_v14 = vld [vmem:[%s21527_s1 + $0x8e8] sm:$0xff]  ;;  %v6111_v30 = vsub.f32 %v16644_v49, %v21725_v54  ;;  %v6181_v45 = vand.u32 4294901760, %v6180_v56  ;;  %v6187_v56 = vand.u32 4294901760, %v6186_v39 }
 0x342   :  { %6093 = vmatpush.msra.mxu0 %v16557_v36  ;;  %6238 = vmatpush.msra.mxu2 %v16560_v21  ;;  %v16720_v0 = vand.u32 4294901760, %v308_v14 }
 0x343   :  { %6146 = vmatpush.msra.mxu1 %v6145_v13  ;;  %6283 = vmatpush.msra.mxu3 %v16502_v33  ;;  %v6175_v13 = vand.u32 4294901760, %v6174_v58  ;;  %v16718_v58 = vsub.f32 %v279_v46, %v16684_v4  ;;  %v6198_v46 = vsub.f32 %v16670_v17, %v21717_v61  ;;  %v6112_v47 = vand.u32 4294901760, %v6111_v30 }
 0x344   :  { %6095 = vmatpush.msra.mxu0 %v16573_v35  ;;  %6241 = vmatpush.msra.mxu2 %v16576_v63  ;;  %v16748_v61 = vsub.f32 %v308_v14, %v16720_v0 }
 0x345   :  { %6152 = vmatpush.msra.mxu1 %v6151_v24  ;;  %6285 = vmatpush.msra.mxu3 %v16527_v22  ;;  %v16700_v24 = vand.u32 4294901760, %v309_v29  ;;  %v6199_v14 = vand.u32 4294901760, %v6198_v46 }
 0x346   :  { %6097 = vmatpush.msra.mxu0 %v16588_v18  ;;  %6244 = vmatpush.msra.mxu2 %v16592_v38  ;;  %v21727_v46 = vand.u32 4294901760, %v16748_v61 }
 0x347   :  { %6158 = vmatpush.msra.mxu1 %v6157_v26  ;;  %6287 = vmatpush.msra.mxu3 %v16543_v55  ;;  %v16711_v26 = vsub.f32 %v310_v27, %v16675_v25  ;;  %v21721_v27 = vand.u32 4294901760, %v16690_v62 }
 0x348   :  { %6099 = vmatpush.msra.mxu0 %v16603_v59  ;;  %6247 = vmatpush.msra.mxu2 %v16607_v11 }
 0x349   :  { %6164 = vmatpush.msra.mxu1 %v6163_v16  ;;  %6289 = vmatpush.msra.mxu3 %v16557_v36  ;;  %v6192_v16 = vsub.f32 %v16652_v32, %v21713_v1  ;;  %v16735_v1 = vsub.f32 %v309_v29, %v16700_v24  ;;  %v21723_v9 = vand.u32 4294901760, %v16711_v26  ;;  %v21724_v29 = vand.u32 4294901760, %v16718_v58 }
 0x34a   :  { %6101 = vmatpush.msra.mxu0 %v16620_v5  ;;  %6250 = vmatpush.msra.mxu2 %v16624_v60  ;;  %v6204_v30 = vsub.f32 %v16690_v62, %v21721_v27  ;;  %v16772_v27 = vsub.f32 %v306_v44, %v16740_v3 }
 0x34b   :  { %6170 = vmatpush.msra.mxu1 %v6169_v41  ;;  %6291 = vmatpush.msra.mxu3 %v16573_v35  ;;  %v16728_v41 = vand.u32 4294901760, %v307_v40  ;;  %v6193_v39 = vand.u32 4294901760, %v6192_v16  ;;  %v21726_v16 = vand.u32 4294901760, %v16735_v1 }
 0x34c   :  { %6103 = vmatpush.msra.mxu0 %v16632_v10  ;;  %6253 = vmatpush.msra.mxu2 %v16636_v37  ;;  %v6205_v44 = vand.u32 4294901760, %v6204_v30  ;;  %v16801_v30 = vpop.f32.mrf.mxu2 }
 0x34d   :  { %6176 = vmatpush.msra.mxu1 %v6175_v13  ;;  %6293 = vmatpush.msra.mxu3 %v16588_v18  ;;  %v305_v13 = vld [vmem:[%s21527_s1 + $0x8d0] sm:$0xff]  ;;  %v16756_v8 = vsub.f32 %v307_v40, %v16728_v41  ;;  %v6461_v40 = vsub.f32 %v16711_v26, %v21723_v9  ;;  %22092 = vst [vmem:[#allocation6_spill] sm:$0xff] %v16801_v30 }
 0x34e   :  { %6105 = vmatpush.msra.mxu0 %v16659_v52  ;;  %6256 = vmatpush.msra.mxu2 %v16652_v32  ;;  %v16763_v34 = vand.u32 4294901760, %v305_v13 }
 0x34f   :  { %6182 = vmatpush.msra.mxu1 %v6181_v45  ;;  %6295 = vmatpush.msra.mxu3 %v16603_v59  ;;  %v304_v45 = vld [vmem:[%s21527_s1 + $0x8c8] sm:$0xff]  ;;  %v21728_v9 = vand.u32 4294901760, %v16756_v8  ;;  %v6462_v54 = vand.u32 4294901760, %v6461_v40  ;;  %v16818_v40 = vand.u32 4294901760, %v302_v31 }
 0x350   :  { %6107 = vmatpush.msra.mxu0 %v16684_v4  ;;  %6259 = vmatpush.msra.mxu2 %v16670_v17  ;;  %v16783_v23 = vand.u32 4294901760, %v304_v45 }
 0x351   :  { %6188 = vmatpush.msra.mxu1 %v6187_v56  ;;  %6297 = vmatpush.msra.mxu3 %v16620_v5  ;;  %v303_v56 = vld [vmem:[%s21527_s1 + $0x8c0] sm:$0xff]  ;;  %v6479_v19 = vsub.f32 %v16756_v8, %v21728_v9  ;;  %v22096_v9 = vand.u32 4294901760, %v16772_v27 }
 0x352   :  { %6113 = vmatmul.f32.vlgmr.msra.gmra.mxu0 %v6112_v47  ;;  %6262 = vmatpush.msra.mxu2 %v16690_v62  ;;  %v6210_v47 = vsub.f32 %v16718_v58, %v21724_v29  ;;  %v16799_v29 = vand.u32 4294901760, %v303_v56 }
 0x353   :  { %6314 = vmatpush.msrb.mxu0 %v6119_v48  ;;  %6194 = vmatpush.msra.mxu1 %v6193_v39  ;;  %v6467_v48 = vsub.f32 %v16735_v1, %v21726_v16  ;;  %v16797_v39 = vsub.f32 %v305_v13, %v16763_v34  ;;  %v16816_v16 = vsub.f32 %v304_v45, %v16783_v23  ;;  %v22095_v45 = vand.u32 4294901760, %v16511_v2  ;;  %v299_v2 = vld [vmem:[%s21527_s1 + $0x8a0] sm:$0xff] }
 0x354   :  { %6299 = vmatpush.msra.mxu3 %v16632_v10  ;;  %6265 = vmatpush.msra.mxu2 %v16718_v58  ;;  %v6211_v13 = vand.u32 4294901760, %v6210_v47  ;;  %v16827_v47 = vpop.f32.mrf.mxu3  ;;  %v16835_v30 = vsub.f32 %v303_v56, %v16799_v29 }
 0x355   :  { %6318 = vmatpush.msrb.mxu0 %v6125_v15  ;;  %6200 = vmatpush.msra.mxu1 %v6199_v14  ;;  %v301_v15 = vld [vmem:[%s21527_s1 + $0x8b0] sm:$0xff]  ;;  %v6473_v14 = vsub.f32 %v16748_v61, %v21727_v46  ;;  %22093 = vst [vmem:[#allocation7_spill] sm:$0xff] %v16827_v47  ;;  %v22094_v46 = vand.u32 4294901760, %v16644_v49  ;;  %v6468_v50 = vand.u32 4294901760, %v6467_v48  ;;  %v6485_v47 = vsub.f32 %v16772_v27, %v22096_v9 }
 0x356   :  { %6301 = vmatpush.msra.mxu3 %v16659_v52  ;;  %6268 = vmatmul.f32.vlgmr.msra.gmra.mxu2 %v16644_v49  ;;  %v16837_v6 = vand.u32 4294901760, %v301_v15  ;;  %v22097_v49 = vand.u32 4294901760, %v16517_v7  ;;  %v16850_v48 = vsub.f32 %v302_v31, %v16818_v40  ;;  %v6480_v9 = vand.u32 4294901760, %v6479_v19  ;;  %v298_v7 = vld [vmem:[%s21527_s1 + $0x898] sm:$0xff] }
 0x357   :  { %6322 = vmatpush.msrb.mxu0 %v6131_v20  ;;  %6418 = vmatpush.msrb.mxu2 %v16675_v25  ;;  %v300_v20 = vld [vmem:[%s21527_s1 + $0x8a8] sm:$0xff]  ;;  %v22099_v19 = vand.u32 4294901760, %v16533_v53  ;;  %v6486_v56 = vand.u32 4294901760, %v6485_v47  ;;  %v297_v53 = vld [vmem:[%s21527_s1 + $0x890] sm:$0xff]  ;;  %v22101_v47 = vand.u32 4294901760, %v16560_v21 }
 0x358   :  { %6206 = vmatpush.msra.mxu1 %v6205_v44  ;;  %6303 = vmatpush.msra.mxu3 %v16684_v4  ;;  %v21729_v44 = vand.u32 4294901760, %v16797_v39  ;;  %v296_v21 = vld [vmem:[%s21527_s1 + $0x888] sm:$0xff] }
 0x359   :  { %6307 = vmatmul.f32.vlgmr.msra.gmra.mxu3 %v22094_v46  ;;  %6326 = vmatpush.msrb.mxu0 %v22095_v45  ;;  %v6474_v46 = vand.u32 4294901760, %v6473_v14  ;;  %v16852_v45 = vand.u32 4294901760, %v300_v20  ;;  %v16867_v14 = vsub.f32 %v301_v15, %v16837_v6 }
 0x35a   :  { %6420 = vmatpush.msrb.mxu2 %v16700_v24  ;;  %6463 = vmatpush.msrb.mxu3 %v6462_v54  ;;  %v16854_v54 = vpop.f32.mrf.mxu1  ;;  %v6491_v31 = vsub.f32 %v16797_v39, %v21729_v44  ;;  %v22103_v44 = vand.u32 4294901760, %v16576_v63  ;;  %v295_v63 = vld [vmem:[%s21527_s1 + $0x880] sm:$0xff] }
 0x35b   :  { %6212 = vmatpush.msra.mxu1 %v6211_v13  ;;  %6330 = vmatpush.msrb.mxu0 %v22097_v49  ;;  %22098 = vst [vmem:[#allocation8_spill] sm:$0xff] %v16854_v54  ;;  %v16869_v49 = vand.u32 4294901760, %v299_v2  ;;  %v16880_v15 = vsub.f32 %v300_v20, %v16852_v45  ;;  %v16882_v13 = vand.u32 4294901760, %v298_v7  ;;  %v22107_v54 = vand.u32 4294901760, %v16607_v11 }
 0x35c   :  { %6214 = vmatmul.f32.vlgmr.msra.gmra.mxu1 %v16614_v42  ;;  %6422 = vmatpush.msrb.mxu2 %v16720_v0  ;;  %v22109_v11 = vand.u32 4294901760, %v16624_v60 }
 0x35d   :  { %6381 = vmatpush.msrb.mxu1 %v16447_v28  ;;  %6469 = vmatpush.msrb.mxu3 %v6468_v50  ;;  %v22100_v28 = vand.u32 4294901760, %v16816_v16 }
 0x35e   :  { %6334 = vmatpush.msrb.mxu0 %v22099_v19  ;;  %6424 = vmatpush.msrb.mxu2 %v16728_v41  ;;  %v16912_v19 = vsub.f32 %v298_v7, %v16882_v13  ;;  %v22106_v7 = vand.u32 4294901760, %v16867_v14 }
 0x35f   :  { %6383 = vmatpush.msrb.mxu1 %v16457_v51  ;;  %6475 = vmatpush.msrb.mxu3 %v6474_v46  ;;  %v6497_v50 = vsub.f32 %v16816_v16, %v22100_v28  ;;  %v6492_v51 = vand.u32 4294901760, %v6491_v31  ;;  %v22102_v46 = vand.u32 4294901760, %v16835_v30  ;;  %v16896_v28 = vsub.f32 %v299_v2, %v16869_v49 }
 0x360   :  { %6338 = vmatpush.msrb.mxu0 %v22101_v47  ;;  %6426 = vmatpush.msrb.mxu2 %v16740_v3  ;;  %v571_v47 = vld.sshfl [vmem:[#allocation1 + $0x8] sm:$0xff pattern:$0x73625140]  ;;  %v22104_v31 = vand.u32 4294901760, %v16850_v48 }
 0x361   :  { %6385 = vmatpush.msrb.mxu1 %v16467_v43  ;;  %6481 = vmatpush.msrb.mxu3 %v6480_v9  ;;  %v6503_v20 = vsub.f32 %v16835_v30, %v22102_v46  ;;  %v16904_v43 = vand.u32 4294901760, %v297_v53  ;;  %v6498_v9 = vand.u32 4294901760, %v6497_v50  ;;  %v6526_v46 = vand.u32 4294901760, %v16896_v28 }
 0x362   :  { %6342 = vmatpush.msrb.mxu0 %v22103_v44  ;;  %6428 = vmatpush.msrb.mxu2 %v16763_v34  ;;  %v6509_v2 = vsub.f32 %v16850_v48, %v22104_v31  ;;  %v22105_v44 = vand.u32 4294901760, %v16592_v38  ;;  %v6515_v31 = vsub.f32 %v16867_v14, %v22106_v7  ;;  %v6532_v7 = vand.u32 4294901760, %v16912_v19 }
 0x363   :  { %6387 = vmatpush.msrb.mxu1 %v16480_v57  ;;  %6487 = vmatpush.msrb.mxu3 %v6486_v56  ;;  %v16920_v57 = vand.u32 4294901760, %v296_v21  ;;  %v16922_v56 = vand.u32 4294901760, %v571_v47  ;;  %v6504_v50 = vand.u32 4294901760, %v6503_v20  ;;  %v16933_v38 = vsub.f32 %v297_v53, %v16904_v43 }
 0x364   :  { %6346 = vmatpush.msrb.mxu0 %v22105_v44  ;;  %6430 = vmatpush.msrb.mxu2 %v16783_v23  ;;  %v16935_v44 = vand.u32 4294901760, %v295_v63 }
 0x365   :  { %6389 = vmatpush.msrb.mxu1 %v16491_v12  ;;  %6493 = vmatpush.msrb.mxu3 %v6492_v51  ;;  %v6510_v12 = vand.u32 4294901760, %v6509_v2  ;;  %v22108_v51 = vand.u32 4294901760, %v16880_v15  ;;  %v16949_v53 = vsub.f32 %v571_v47, %v16922_v56  ;;  %v22110_v2 = vand.u32 4294901760, %v16636_v37 }
 0x366   :  { %6350 = vmatpush.msrb.mxu0 %v22107_v54  ;;  %6432 = vmatpush.msrb.mxu2 %v16799_v29  ;;  %v16946_v54 = vsub.f32 %v296_v21, %v16920_v57  ;;  %v6538_v60 = vand.u32 4294901760, %v16933_v38  ;;  %v16960_v21 = vsub.f32 %v295_v63, %v16935_v44  ;;  %v6533_v47 = vsub.f32 %v16912_v19, %v6532_v7 }
 0x367   :  { %6391 = vmatpush.msrb.mxu1 %v16502_v33  ;;  %6499 = vmatpush.msrb.mxu3 %v6498_v9  ;;  %v6521_v20 = vsub.f32 %v16880_v15, %v22108_v51  ;;  %v6516_v33 = vand.u32 4294901760, %v6515_v31  ;;  %v6527_v9 = vsub.f32 %v16896_v28, %v6526_v46  ;;  %v6451_v31 = vand.u32 4294901760, %v16949_v53 }
 0x368   :  { %6354 = vmatpush.msrb.mxu0 %v22109_v11  ;;  %6434 = vmatpush.msrb.mxu2 %v16818_v40  ;;  %v6544_v37 = vand.u32 4294901760, %v16946_v54  ;;  %v6534_v51 = vand.u32 4294901760, %v6533_v47 }
 0x369   :  { %6393 = vmatpush.msrb.mxu1 %v16527_v22  ;;  %6505 = vmatpush.msrb.mxu3 %v6504_v50  ;;  %v6522_v22 = vand.u32 4294901760, %v6521_v20  ;;  %v22111_v50 = vand.u32 4294901760, %v16652_v32  ;;  %v6528_v63 = vand.u32 4294901760, %v6527_v9  ;;  %v6539_v32 = vsub.f32 %v16933_v38, %v6538_v60 }
 0x36a   :  { %6358 = vmatpush.msrb.mxu0 %v22110_v2  ;;  %6436 = vmatpush.msrb.mxu2 %v16837_v6  ;;  %v22113_v20 = vand.u32 4294901760, %v16690_v62  ;;  %v22117_v2 = vand.u32 4294901760, %v16711_v26 }
 0x36b   :  { %6395 = vmatpush.msrb.mxu1 %v16543_v55  ;;  %6511 = vmatpush.msrb.mxu3 %v6510_v12  ;;  %v22112_v55 = vand.u32 4294901760, %v16670_v17  ;;  %v6550_v12 = vand.u32 4294901760, %v16960_v21  ;;  %v6452_v17 = vsub.f32 %v16949_v53, %v6451_v31  ;;  %v6540_v62 = vand.u32 4294901760, %v6539_v32  ;;  %v317_v32 = vld [vmem:[%s21527_s1 + $0x930] sm:$0xff] }
 0x36c   :  { %6362 = vmatpush.msrb.mxu0 %v22111_v50  ;;  %6438 = vmatpush.msrb.mxu2 %v16852_v45 }
 0x36d   :  { %6397 = vmatpush.msrb.mxu1 %v16557_v36  ;;  %6517 = vmatpush.msrb.mxu3 %v6516_v33  ;;  %v6545_v36 = vsub.f32 %v16946_v54, %v6544_v37  ;;  %v6551_v11 = vsub.f32 %v16960_v21, %v6550_v12  ;;  %v16997_v33 = vpop.f32.mrf.mxu0  ;;  %v6453_v9 = vand.u32 4294901760, %v6452_v17 }
 0x36e   :  { %6366 = vmatpush.msrb.mxu0 %v22112_v55  ;;  %6440 = vmatpush.msrb.mxu2 %v16869_v49  ;;  %22115 = vst [vmem:[#allocation9_spill] sm:$0xff] %v16997_v33 }
 0x36f   :  { %6399 = vmatpush.msrb.mxu1 %v16573_v35  ;;  %6523 = vmatpush.msrb.mxu3 %v6522_v22  ;;  %v22114_v35 = vand.u32 4294901760, %v16718_v58  ;;  %v6552_v58 = vand.u32 4294901760, %v6551_v11  ;;  %v17201_v11 = vand.u32 4294901760, %v317_v32 }
 0x370   :  { %6370 = vmatpush.msrb.mxu0 %v22113_v20  ;;  %6442 = vmatpush.msrb.mxu2 %v16882_v13 }
 0x371   :  { %6401 = vmatpush.msrb.mxu1 %v16588_v18  ;;  %6529 = vmatpush.msrb.mxu3 %v6528_v63  ;;  %v6546_v18 = vand.u32 4294901760, %v6545_v36 }
 0x372   :  { %6374 = vmatpush.msrb.mxu0 %v22114_v35  ;;  %6444 = vmatpush.msrb.mxu2 %v16904_v43 }
 0x373   :  { %6403 = vmatpush.msrb.mxu1 %v16603_v59  ;;  %6535 = vmatpush.msrb.mxu3 %v6534_v51  ;;  %v17006_v59 = vpop.f32.mrf.mxu2 }
 0x374   :  { %6376 = vmatmul.f32.vlgmr.msrb.gmra.mxu0 %v16614_v42  ;;  %6446 = vmatpush.msrb.mxu2 %v16920_v57  ;;  %22116 = vst [vmem:[#allocation10_spill] sm:$0xff] %v17006_v59 }
 0x375   :  { %6561 = vmatpush.msra.mxu0 %v16711_v26  ;;  %6405 = vmatpush.msrb.mxu1 %v16620_v5  ;;  %v17012_v5 = vpop.f32.mrf.mxu3  ;;  %v17021_v26 = vpop.f32.mrf.mxu1 }
 0x376   :  { %6541 = vmatpush.msrb.mxu3 %v6540_v62  ;;  %6448 = vmatpush.msrb.mxu2 %v16935_v44  ;;  %22118 = vst [vmem:[#allocation11_spill] sm:$0xff] %v17012_v5 }
 0x377   :  { %6564 = vmatpush.msra.mxu0 %v16735_v1  ;;  %6407 = vmatpush.msrb.mxu1 %v16632_v10  ;;  %v22119_v10 = vand.u32 4294901760, %v16735_v1  ;;  %22120 = vst [vmem:[#allocation12_spill] sm:$0xff] %v17021_v26  ;;  %v22122_v1 = vand.u32 4294901760, %v16756_v8 }
 0x378   :  { %6547 = vmatpush.msrb.mxu3 %v6546_v18  ;;  %6454 = vmatmul.f32.vlgmr.msrb.gmra.mxu2 %v6453_v9 }
 0x379   :  { %6567 = vmatpush.msra.mxu0 %v16748_v61  ;;  %6655 = vmatpush.msra.mxu2 %v22117_v2 }
 0x37a   :  { %6409 = vmatpush.msrb.mxu1 %v16659_v52  ;;  %6553 = vmatpush.msrb.mxu3 %v6552_v58  ;;  %v22121_v52 = vand.u32 4294901760, %v16748_v61  ;;  %v22128_v61 = vand.u32 4294901760, %v16867_v14  ;;  %v315_v58 = vld [vmem:[%s21527_s1 + $0x920] sm:$0xff] }
 0x37b   :  { %6555 = vmatmul.f32.vlgmr.msrb.gmra.mxu3 %v16922_v56  ;;  %6570 = vmatpush.msra.mxu0 %v16756_v8  ;;  %v22125_v8 = vand.u32 4294901760, %v16816_v16  ;;  %v17154_v22 = vpop.f32.mrf.mxu2 }
 0x37c   :  { %6659 = vmatpush.msra.mxu2 %v22119_v10  ;;  %6722 = vmatpush.msra.mxu3 %v16675_v25  ;;  %22131 = vst [vmem:[#allocation14_spill] sm:$0xff] %v17154_v22 }
 0x37d   :  { %6411 = vmatpush.msrb.mxu1 %v16684_v4  ;;  %6573 = vmatpush.msra.mxu0 %v16772_v27  ;;  %v22127_v4 = vand.u32 4294901760, %v16850_v48  ;;  %v17206_v9 = vpop.f32.mrf.mxu1 }
 0x37e   :  { %6413 = vmatmul.f32.vlgmr.msrb.gmra.mxu1 %v16614_v42  ;;  %6663 = vmatpush.msra.mxu2 %v22121_v52  ;;  %v22123_v42 = vand.u32 4294901760, %v16772_v27  ;;  %v324_v27 = vld [vmem:[%s21527_s1 + $0x968] sm:$0xff]  ;;  %22133 = vst [vmem:[#allocation16_spill] sm:$0xff] %v17206_v9 }
 0x37f   :  { %6614 = vmatpush.msra.mxu1 %v16675_v25  ;;  %6724 = vmatpush.msra.mxu3 %v16700_v24  ;;  %v22124_v25 = vand.u32 4294901760, %v16797_v39 }
 0x380   :  { %6576 = vmatpush.msra.mxu0 %v16797_v39  ;;  %6667 = vmatpush.msra.mxu2 %v22122_v1 }
 0x381   :  { %6616 = vmatpush.msra.mxu1 %v16700_v24  ;;  %6726 = vmatpush.msra.mxu3 %v16720_v0 }
 0x382   :  { %6579 = vmatpush.msra.mxu0 %v16816_v16  ;;  %6671 = vmatpush.msra.mxu2 %v22123_v42  ;;  %v17089_v16 = vand.u32 4294901760, %v324_v27  ;;  %v314_v42 = vld [vmem:[%s21527_s1 + $0x918] sm:$0xff] }
 0x383   :  { %6618 = vmatpush.msra.mxu1 %v16720_v0  ;;  %6728 = vmatpush.msra.mxu3 %v16728_v41  ;;  %v22126_v0 = vand.u32 4294901760, %v16835_v30 }
 0x384   :  { %6582 = vmatpush.msra.mxu0 %v16835_v30  ;;  %6675 = vmatpush.msra.mxu2 %v22124_v25  ;;  %v322_v30 = vld [vmem:[%s21527_s1 + $0x958] sm:$0xff] }
 0x385   :  { %6620 = vmatpush.msra.mxu1 %v16728_v41  ;;  %6730 = vmatpush.msra.mxu3 %v16740_v3 }
 0x386   :  { %6585 = vmatpush.msra.mxu0 %v16850_v48  ;;  %6679 = vmatpush.msra.mxu2 %v22125_v8  ;;  %v321_v48 = vld [vmem:[%s21527_s1 + $0x950] sm:$0xff]  ;;  %v17233_v8 = vand.u32 4294901760, %v315_v58 }
 0x387   :  { %6622 = vmatpush.msra.mxu1 %v16740_v3  ;;  %6732 = vmatpush.msra.mxu3 %v16763_v34  ;;  %v326_v3 = vld [vmem:[%s21527_s1 + $0x978] sm:$0xff] }
 0x388   :  { %6588 = vmatpush.msra.mxu0 %v16867_v14  ;;  %6683 = vmatpush.msra.mxu2 %v22126_v0  ;;  %v17069_v24 = vand.u32 4294901760, %v326_v3  ;;  %v17113_v14 = vand.u32 4294901760, %v322_v30 }
 0x389   :  { %6624 = vmatpush.msra.mxu1 %v16763_v34  ;;  %6734 = vmatpush.msra.mxu3 %v16783_v23  ;;  %v325_v34 = vld [vmem:[%s21527_s1 + $0x970] sm:$0xff] }
 0x38a   :  { %6591 = vmatpush.msra.mxu0 %v16880_v15  ;;  %6687 = vmatpush.msra.mxu2 %v22127_v4  ;;  %v17079_v41 = vand.u32 4294901760, %v325_v34  ;;  %v17092_v39 = vsub.f32 %v326_v3, %v17069_v24  ;;  %v17237_v4 = vsub.f32 %v317_v32, %v17201_v11 }
 0x38b   :  { %6626 = vmatpush.msra.mxu1 %v16783_v23  ;;  %6736 = vmatpush.msra.mxu3 %v16799_v29  ;;  %v22129_v23 = vand.u32 4294901760, %v16880_v15  ;;  %v17119_v15 = vsub.f32 %v324_v27, %v17089_v16  ;;  %v17250_v27 = vand.u32 4294901760, %v314_v42 }
 0x38c   :  { %6594 = vmatpush.msra.mxu0 %v16896_v28  ;;  %6691 = vmatpush.msra.mxu2 %v22128_v61  ;;  %v17126_v28 = vand.u32 4294901760, %v321_v48  ;;  %v313_v61 = vld [vmem:[%s21527_s1 + $0x910] sm:$0xff] }
 0x38d   :  { %6628 = vmatpush.msra.mxu1 %v16799_v29  ;;  %6738 = vmatpush.msra.mxu3 %v16818_v40  ;;  %v323_v29 = vld [vmem:[%s21527_s1 + $0x960] sm:$0xff] }
 0x38e   :  { %6597 = vmatpush.msra.mxu0 %v16912_v19  ;;  %6695 = vmatpush.msra.mxu2 %v22129_v23  ;;  %v17121_v19 = vpop.f32.mrf.mxu0  ;;  %v17159_v47 = vsub.f32 %v321_v48, %v17126_v28 }
 0x38f   :  { %6630 = vmatpush.msra.mxu1 %v16818_v40  ;;  %6740 = vmatpush.msra.mxu3 %v16837_v6  ;;  %v17105_v40 = vsub.f32 %v325_v34, %v17079_v41  ;;  %22130 = vst [vmem:[#allocation13_spill] sm:$0xff] %v17121_v19 }
 0x390   :  { %6600 = vmatpush.msra.mxu0 %v16933_v38  ;;  %6699 = vmatpush.msra.mxu2 %v6526_v46  ;;  %v21736_v17 = vand.u32 4294901760, %v17159_v47 }
 0x391   :  { %6632 = vmatpush.msra.mxu1 %v16837_v6  ;;  %6742 = vmatpush.msra.mxu3 %v16852_v45  ;;  %v17102_v6 = vand.u32 4294901760, %v323_v29  ;;  %v21742_v46 = vand.u32 4294901760, %v17105_v40 }
 0x392   :  { %6603 = vmatpush.msra.mxu0 %v16946_v54  ;;  %6703 = vmatpush.msra.mxu2 %v6532_v7  ;;  %v17141_v7 = vsub.f32 %v322_v30, %v17113_v14  ;;  %v319_v54 = vld [vmem:[%s21527_s1 + $0x940] sm:$0xff]  ;;  %v6832_v1 = vsub.f32 %v17159_v47, %v21736_v17 }
 0x393   :  { %6634 = vmatpush.msra.mxu1 %v16852_v45  ;;  %6744 = vmatpush.msra.mxu3 %v16869_v49  ;;  %v21743_v45 = vand.u32 4294901760, %v17092_v39  ;;  %v17135_v38 = vsub.f32 %v323_v29, %v17102_v6  ;;  %v6808_v50 = vsub.f32 %v17105_v40, %v21742_v46 }
 0x394   :  { %6606 = vmatpush.msra.mxu0 %v16960_v21  ;;  %6707 = vmatpush.msra.mxu2 %v6538_v60  ;;  %v21741_v21 = vand.u32 4294901760, %v17119_v15  ;;  %v21737_v55 = vand.u32 4294901760, %v17141_v7  ;;  %v6833_v48 = vand.u32 4294901760, %v6832_v1 }
 0x395   :  { %6636 = vmatpush.msra.mxu1 %v16869_v49  ;;  %6746 = vmatpush.msra.mxu3 %v16882_v13  ;;  %v320_v49 = vld [vmem:[%s21527_s1 + $0x948] sm:$0xff]  ;;  %v21738_v63 = vand.u32 4294901760, %v17135_v38  ;;  %v6809_v35 = vand.u32 4294901760, %v6808_v50 }
 0x396   :  { %6609 = vmatmul.f32.vlgmr.msra.gmra.mxu0 %v16949_v53  ;;  %6711 = vmatpush.msra.mxu2 %v6544_v37  ;;  %v17151_v60 = vand.u32 4294901760, %v320_v49  ;;  %v17169_v37 = vand.u32 4294901760, %v319_v54  ;;  %v6814_v20 = vsub.f32 %v17119_v15, %v21741_v21  ;;  %v312_v50 = vld [vmem:[%s21527_s1 + $0x908] sm:$0xff] }
 0x397   :  { %6759 = vmatpush.msrb.mxu0 %v17069_v24  ;;  %6638 = vmatpush.msra.mxu1 %v16882_v13  ;;  %v6802_v13 = vsub.f32 %v17092_v39, %v21743_v45  ;;  %v6820_v62 = vsub.f32 %v17135_v38, %v21738_v63 }
 0x398   :  { %6748 = vmatpush.msra.mxu3 %v16904_v43  ;;  %6715 = vmatpush.msra.mxu2 %v6550_v12  ;;  %v17178_v12 = vpop.f32.mrf.mxu3  ;;  %v17188_v36 = vsub.f32 %v320_v49, %v17151_v60  ;;  %v17204_v18 = vsub.f32 %v319_v54, %v17169_v37  ;;  %v6815_v2 = vand.u32 4294901760, %v6814_v20  ;;  %v17262_v54 = vand.u32 4294901760, %v313_v61 }
 0x399   :  { %6761 = vmatpush.msrb.mxu0 %v17079_v41  ;;  %6640 = vmatpush.msra.mxu1 %v16904_v43  ;;  %v318_v43 = vld [vmem:[%s21527_s1 + $0x938] sm:$0xff]  ;;  %22132 = vst [vmem:[#allocation15_spill] sm:$0xff] %v17178_v12  ;;  %v6803_v51 = vand.u32 4294901760, %v6802_v13  ;;  %v6821_v25 = vand.u32 4294901760, %v6820_v62  ;;  %v21730_v13 = vand.u32 4294901760, %v17237_v4  ;;  %v17395_v12 = vpop.f32.mrf.mxu0 }
 0x39a   :  { %6750 = vmatpush.msra.mxu3 %v16920_v57  ;;  %6717 = vmatmul.f32.vlgmr.msra.gmra.mxu2 %v16922_v56  ;;  %v21734_v52 = vand.u32 4294901760, %v17188_v36  ;;  %v21733_v0 = vand.u32 4294901760, %v17204_v18  ;;  %v342_v62 = vld [vmem:[%s21527_s1 + $0x9f8] sm:$0xff]  ;;  %22134 = vst [vmem:[#allocation17_spill] sm:$0xff] %v17395_v12 }
 0x39b   :  { %6763 = vmatpush.msrb.mxu0 %v17089_v16  ;;  %6902 = vmatpush.msrb.mxu2 %v17092_v39 }
 0x39c   :  { %6642 = vmatpush.msra.mxu1 %v16920_v57  ;;  %6752 = vmatpush.msra.mxu3 %v16935_v44  ;;  %v17185_v57 = vand.u32 4294901760, %v318_v43  ;;  %v6838_v23 = vsub.f32 %v17188_v36, %v21734_v52  ;;  %v6844_v49 = vsub.f32 %v17204_v18, %v21733_v0 }
 0x39d   :  { %6754 = vmatmul.f32.vlgmr.msra.gmra.mxu3 %v16922_v56  ;;  %6765 = vmatpush.msrb.mxu0 %v17102_v6  ;;  %v316_v56 = vld [vmem:[%s21527_s1 + $0x928] sm:$0xff] }
 0x39e   :  { %6905 = vmatpush.msrb.mxu2 %v17105_v40  ;;  %6955 = vmatpush.msrb.mxu3 %v17069_v24  ;;  %v17218_v10 = vand.u32 4294901760, %v316_v56  ;;  %v17222_v53 = vsub.f32 %v318_v43, %v17185_v57  ;;  %v17266_v43 = vsub.f32 %v315_v58, %v17233_v8  ;;  %v311_v58 = vld [vmem:[%s21527_s1 + $0x900] sm:$0xff] }
 0x39f   :  { %6644 = vmatpush.msra.mxu1 %v16935_v44  ;;  %6767 = vmatpush.msrb.mxu0 %v17113_v14  ;;  %v6826_v44 = vsub.f32 %v17141_v7, %v21737_v55 }
 0x3a0   :  { %6648 = vmatmul.f32.vlgmr.msra.gmra.mxu1 %v6451_v31  ;;  %6908 = vmatpush.msrb.mxu2 %v17119_v15  ;;  %v572_v31 = vld.sshfl [vmem:[#allocation1 + $0x10] sm:$0xff pattern:$0x73625140]  ;;  %v21731_v29 = vand.u32 4294901760, %v17222_v53  ;;  %v17254_v30 = vsub.f32 %v316_v56, %v17218_v10  ;;  %v21735_v1 = vand.u32 4294901760, %v17266_v43 }
 0x3a1   :  { %6804 = vmatpush.msrb.mxu1 %v6803_v51  ;;  %6957 = vmatpush.msrb.mxu3 %v17079_v41  ;;  %v6827_v3 = vand.u32 4294901760, %v6826_v44  ;;  %v17244_v34 = vand.u32 4294901760, %v572_v31  ;;  %v6839_v51 = vand.u32 4294901760, %v6838_v23  ;;  %v17289_v44 = vand.u32 4294901760, %v312_v50  ;;  %v341_v23 = vld [vmem:[%s21527_s1 + $0x9f0] sm:$0xff] }
 0x3a2   :  { %6769 = vmatpush.msrb.mxu0 %v17126_v28  ;;  %6911 = vmatpush.msrb.mxu2 %v17135_v38  ;;  %v6850_v20 = vsub.f32 %v17222_v53, %v21731_v29  ;;  %v21732_v56 = vand.u32 4294901760, %v17254_v30  ;;  %v17330_v52 = vand.u32 4294901760, %v341_v23 }
 0x3a3   :  { %6810 = vmatpush.msrb.mxu1 %v6809_v35  ;;  %6959 = vmatpush.msrb.mxu3 %v17089_v16  ;;  %v17274_v32 = vsub.f32 %v572_v31, %v17244_v34  ;;  %v17282_v35 = vsub.f32 %v314_v42, %v17250_v27  ;;  %v6856_v31 = vsub.f32 %v17237_v4, %v21730_v13 }
 0x3a4   :  { %6771 = vmatpush.msrb.mxu0 %v17151_v60  ;;  %6914 = vmatpush.msrb.mxu2 %v17141_v7  ;;  %v17300_v42 = vsub.f32 %v313_v61, %v17262_v54  ;;  %v6862_v61 = vsub.f32 %v17254_v30, %v21732_v56  ;;  %v17320_v29 = vsub.f32 %v312_v50, %v17289_v44  ;;  %v339_v50 = vld [vmem:[%s21527_s1 + $0x9e0] sm:$0xff] }
 0x3a5   :  { %6816 = vmatpush.msrb.mxu1 %v6815_v2  ;;  %6961 = vmatpush.msrb.mxu3 %v17102_v6  ;;  %v6845_v2 = vand.u32 4294901760, %v6844_v49  ;;  %v17314_v49 = vand.u32 4294901760, %v311_v58  ;;  %v21740_v13 = vand.u32 4294901760, %v17282_v35  ;;  %v6868_v56 = vsub.f32 %v17266_v43, %v21735_v1 }
 0x3a6   :  { %6773 = vmatpush.msrb.mxu0 %v17169_v37  ;;  %6917 = vmatpush.msrb.mxu2 %v17159_v47  ;;  %v21744_v0 = vand.u32 4294901760, %v17300_v42  ;;  %v6863_v1 = vand.u32 4294901760, %v6862_v61 }
 0x3a7   :  { %6822 = vmatpush.msrb.mxu1 %v6821_v25  ;;  %6963 = vmatpush.msrb.mxu3 %v17113_v14  ;;  %v21739_v25 = vand.u32 4294901760, %v17274_v32  ;;  %v6874_v17 = vsub.f32 %v17282_v35, %v21740_v13  ;;  %v17348_v55 = vsub.f32 %v311_v58, %v17314_v49  ;;  %v6869_v61 = vand.u32 4294901760, %v6868_v56  ;;  %v337_v56 = vld [vmem:[%s21527_s1 + $0x9d0] sm:$0xff] }
 0x3a8   :  { %6775 = vmatpush.msrb.mxu0 %v17185_v57  ;;  %6920 = vmatpush.msrb.mxu2 %v17188_v36  ;;  %v6880_v58 = vsub.f32 %v17300_v42, %v21744_v0  ;;  %v17365_v13 = vsub.f32 %v341_v23, %v17330_v52  ;;  %v17393_v23 = vand.u32 4294901760, %v337_v56 }
 0x3a9   :  { %6828 = vmatpush.msrb.mxu1 %v6827_v3  ;;  %6965 = vmatpush.msrb.mxu3 %v17126_v28  ;;  %v17305_v3 = vand.u32 4294901760, %v342_v62 }
 0x3aa   :  { %6777 = vmatpush.msrb.mxu0 %v17201_v11  ;;  %6923 = vmatpush.msrb.mxu2 %v17204_v18  ;;  %v17427_v12 = vsub.f32 %v337_v56, %v17393_v23 }
 0x3ab   :  { %6834 = vmatpush.msrb.mxu1 %v6833_v48  ;;  %6967 = vmatpush.msrb.mxu3 %v17151_v60  ;;  %v6851_v48 = vand.u32 4294901760, %v6850_v20  ;;  %v6857_v20 = vand.u32 4294901760, %v6856_v31  ;;  %v17341_v31 = vsub.f32 %v342_v62, %v17305_v3  ;;  %v21745_v62 = vand.u32 4294901760, %v17320_v29 }
 0x3ac   :  { %6779 = vmatpush.msrb.mxu0 %v17218_v10  ;;  %6926 = vmatpush.msrb.mxu2 %v17222_v53 }
 0x3ad   :  { %6840 = vmatpush.msrb.mxu1 %v6839_v51  ;;  %6969 = vmatpush.msrb.mxu3 %v17169_v37  ;;  %v340_v51 = vld [vmem:[%s21527_s1 + $0x9e8] sm:$0xff] }
 0x3ae   :  { %6781 = vmatpush.msrb.mxu0 %v17233_v8  ;;  %6929 = vmatpush.msrb.mxu2 %v17237_v4  ;;  %v17350_v63 = vand.u32 4294901760, %v340_v51 }
 0x3af   :  { %6846 = vmatpush.msrb.mxu1 %v6845_v2  ;;  %6971 = vmatpush.msrb.mxu3 %v17185_v57  ;;  %v6793_v2 = vsub.f32 %v17274_v32, %v21739_v25  ;;  %v338_v25 = vld [vmem:[%s21527_s1 + $0x9d8] sm:$0xff] }
 0x3b0   :  { %6783 = vmatpush.msrb.mxu0 %v17250_v27  ;;  %6932 = vmatpush.msrb.mxu2 %v17254_v30  ;;  %v17370_v45 = vand.u32 4294901760, %v338_v25  ;;  %v17378_v0 = vsub.f32 %v340_v51, %v17350_v63  ;;  %v22137_v51 = vand.u32 4294901760, %v17348_v55 }
 0x3b1   :  { %6852 = vmatpush.msrb.mxu1 %v6851_v48  ;;  %6973 = vmatpush.msrb.mxu3 %v17201_v11  ;;  %v17358_v48 = vand.u32 4294901760, %v339_v50  ;;  %v6794_v21 = vand.u32 4294901760, %v6793_v2  ;;  %v6886_v2 = vsub.f32 %v17320_v29, %v21745_v62 }
 0x3b2   :  { %6785 = vmatpush.msrb.mxu0 %v17262_v54  ;;  %6935 = vmatpush.msrb.mxu2 %v17266_v43  ;;  %v17402_v22 = vsub.f32 %v338_v25, %v17370_v45 }
 0x3b3   :  { %6858 = vmatpush.msrb.mxu1 %v6857_v20  ;;  %6975 = vmatpush.msrb.mxu3 %v17218_v10  ;;  %v6875_v20 = vand.u32 4294901760, %v6874_v17  ;;  %v17386_v46 = vsub.f32 %v339_v50, %v17358_v48  ;;  %v336_v17 = vld [vmem:[%s21527_s1 + $0x9c8] sm:$0xff]  ;;  %v22135_v50 = vand.u32 4294901760, %v17341_v31  ;;  %v6887_v25 = vand.u32 4294901760, %v6886_v2  ;;  %v17431_v2 = vpop.f32.mrf.mxu2 }
 0x3b4   :  { %6787 = vmatpush.msrb.mxu0 %v17289_v44  ;;  %6938 = vmatpush.msrb.mxu2 %v17282_v35  ;;  %v17413_v9 = vand.u32 4294901760, %v336_v17  ;;  %22140 = vst [vmem:[#allocation18_spill] sm:$0xff] %v17431_v2 }
 0x3b5   :  { %6864 = vmatpush.msrb.mxu1 %v6863_v1  ;;  %6977 = vmatpush.msrb.mxu3 %v17233_v8  ;;  %v6881_v1 = vand.u32 4294901760, %v6880_v58  ;;  %v7143_v62 = vsub.f32 %v17341_v31, %v22135_v50  ;;  %v22136_v58 = vand.u32 4294901760, %v17092_v39  ;;  %v334_v39 = vld [vmem:[%s21527_s1 + $0x9b8] sm:$0xff] }
 0x3b6   :  { %6789 = vmatpush.msrb.mxu0 %v17314_v49  ;;  %6941 = vmatpush.msrb.mxu2 %v17300_v42  ;;  %v17446_v5 = vsub.f32 %v336_v17, %v17413_v9  ;;  %v22146_v17 = vand.u32 4294901760, %v17135_v38  ;;  %v331_v38 = vld [vmem:[%s21527_s1 + $0x9a0] sm:$0xff] }
 0x3b7   :  { %6870 = vmatpush.msrb.mxu1 %v6869_v61  ;;  %6979 = vmatpush.msrb.mxu3 %v17250_v27  ;;  %v335_v61 = vld [vmem:[%s21527_s1 + $0x9c0] sm:$0xff]  ;;  %v7144_v50 = vand.u32 4294901760, %v7143_v62  ;;  %v17448_v62 = vand.u32 4294901760, %v334_v39 }
 0x3b8   :  { %6795 = vmatmul.f32.vlgmr.msrb.gmra.mxu0 %v6794_v21  ;;  %6944 = vmatpush.msrb.mxu2 %v17320_v29  ;;  %v6892_v21 = vsub.f32 %v17348_v55, %v22137_v51  ;;  %v22139_v51 = vand.u32 4294901760, %v17365_v13  ;;  %v17429_v19 = vand.u32 4294901760, %v335_v61 }
 0x3b9   :  { %6996 = vmatpush.msra.mxu0 %v22136_v58  ;;  %6876 = vmatpush.msrb.mxu1 %v6875_v20  ;;  %v22138_v20 = vand.u32 4294901760, %v17105_v40  ;;  %v22143_v40 = vand.u32 4294901760, %v17386_v46 }
 0x3ba   :  { %6981 = vmatpush.msrb.mxu3 %v17262_v54  ;;  %6947 = vmatpush.msrb.mxu2 %v17348_v55  ;;  %v7149_v58 = vsub.f32 %v17365_v13, %v22139_v51  ;;  %v6893_v56 = vand.u32 4294901760, %v6892_v21  ;;  %v22142_v51 = vand.u32 4294901760, %v17378_v0  ;;  %v332_v21 = vld [vmem:[%s21527_s1 + $0x9a8] sm:$0xff]  ;;  %v17465_v26 = vsub.f32 %v335_v61, %v17429_v19 }
 0x3bb   :  { %7000 = vmatpush.msra.mxu0 %v22138_v20  ;;  %6882 = vmatpush.msrb.mxu1 %v6881_v1  ;;  %v333_v1 = vld [vmem:[%s21527_s1 + $0x9b0] sm:$0xff]  ;;  %v22141_v20 = vand.u32 4294901760, %v17119_v15  ;;  %v7161_v15 = vsub.f32 %v17386_v46, %v22143_v40  ;;  %v22147_v40 = vand.u32 4294901760, %v17402_v22 }
 0x3bc   :  { %6983 = vmatpush.msrb.mxu3 %v17289_v44  ;;  %6950 = vmatmul.f32.vlgmr.msrb.gmra.mxu2 %v17274_v32  ;;  %v7155_v2 = vsub.f32 %v17378_v0, %v22142_v51  ;;  %v22145_v51 = vand.u32 4294901760, %v17274_v32  ;;  %v7150_v59 = vand.u32 4294901760, %v7149_v58  ;;  %v17467_v33 = vand.u32 4294901760, %v333_v1 }
 0x3bd   :  { %7004 = vmatpush.msra.mxu0 %v22141_v20  ;;  %7100 = vmatpush.msra.mxu2 %v17305_v3  ;;  %v17457_v20 = vpop.f32.mrf.mxu3  ;;  %v22148_v32 = vand.u32 4294901760, %v17141_v7  ;;  %v330_v7 = vld [vmem:[%s21527_s1 + $0x998] sm:$0xff] }
 0x3be   :  { %6888 = vmatpush.msrb.mxu1 %v6887_v25  ;;  %6985 = vmatpush.msrb.mxu3 %v17314_v49  ;;  %22144 = vst [vmem:[#allocation19_spill] sm:$0xff] %v17457_v20  ;;  %v21746_v25 = vand.u32 4294901760, %v17427_v12  ;;  %v7167_v20 = vsub.f32 %v17402_v22, %v22147_v40  ;;  %v7156_v58 = vand.u32 4294901760, %v7155_v2  ;;  %v7162_v40 = vand.u32 4294901760, %v7161_v15 }
 0x3bf   :  { %6989 = vmatmul.f32.vlgmr.msrb.gmra.mxu3 %v22145_v51  ;;  %7008 = vmatpush.msra.mxu0 %v22146_v17  ;;  %v17480_v51 = vsub.f32 %v334_v39, %v17448_v62  ;;  %v17482_v17 = vand.u32 4294901760, %v332_v21  ;;  %v22150_v15 = vand.u32 4294901760, %v17159_v47  ;;  %v17512_v2 = vand.u32 4294901760, %v330_v7  ;;  %v329_v47 = vld [vmem:[%s21527_s1 + $0x990] sm:$0xff] }
 0x3c0   :  { %7102 = vmatpush.msra.mxu2 %v17330_v52  ;;  %7145 = vmatpush.msra.mxu3 %v7144_v50  ;;  %v17484_v50 = vpop.f32.mrf.mxu1  ;;  %v7173_v39 = vsub.f32 %v17427_v12, %v21746_v25  ;;  %v7168_v61 = vand.u32 4294901760, %v7167_v20  ;;  %v22152_v20 = vand.u32 4294901760, %v17188_v36  ;;  %v328_v36 = vld [vmem:[%s21527_s1 + $0x988] sm:$0xff]  ;;  %v22154_v25 = vand.u32 4294901760, %v17204_v18  ;;  %v327_v18 = vld [vmem:[%s21527_s1 + $0x980] sm:$0xff] }
 0x3c1   :  { %6894 = vmatpush.msrb.mxu1 %v6893_v56  ;;  %7012 = vmatpush.msra.mxu0 %v22148_v32  ;;  %22149 = vst [vmem:[#allocation20_spill] sm:$0xff] %v17484_v50  ;;  %v17497_v56 = vsub.f32 %v333_v1, %v17467_v33  ;;  %v17499_v32 = vand.u32 4294901760, %v331_v38  ;;  %v17510_v1 = vsub.f32 %v332_v21, %v17482_v17  ;;  %v22158_v50 = vand.u32 4294901760, %v17237_v4 }
 0x3c2   :  { %6896 = vmatmul.f32.vlgmr.msrb.gmra.mxu1 %v17244_v34  ;;  %7104 = vmatpush.msra.mxu2 %v17350_v63  ;;  %v22160_v4 = vand.u32 4294901760, %v17254_v30 }
 0x3c3   :  { %7063 = vmatpush.msra.mxu1 %v17069_v24  ;;  %7151 = vmatpush.msra.mxu3 %v7150_v59  ;;  %v22151_v59 = vand.u32 4294901760, %v17446_v5 }
 0x3c4   :  { %7016 = vmatpush.msra.mxu0 %v22150_v15  ;;  %7106 = vmatpush.msra.mxu2 %v17358_v48  ;;  %v17542_v15 = vsub.f32 %v330_v7, %v17512_v2  ;;  %v22157_v7 = vand.u32 4294901760, %v17497_v56 }
 0x3c5   :  { %7065 = vmatpush.msra.mxu1 %v17079_v41  ;;  %7157 = vmatpush.msra.mxu3 %v7156_v58  ;;  %v7179_v24 = vsub.f32 %v17446_v5, %v22151_v59  ;;  %v7174_v41 = vand.u32 4294901760, %v7173_v39  ;;  %v22153_v58 = vand.u32 4294901760, %v17465_v26  ;;  %v17526_v59 = vsub.f32 %v331_v38, %v17499_v32 }
 0x3c6   :  { %7020 = vmatpush.msra.mxu0 %v22152_v20  ;;  %7108 = vmatpush.msra.mxu2 %v17370_v45  ;;  %v573_v20 = vld.sshfl [vmem:[#allocation1 + $0x18] sm:$0xff pattern:$0x73625140]  ;;  %v22155_v39 = vand.u32 4294901760, %v17480_v51 }
 0x3c7   :  { %7067 = vmatpush.msra.mxu1 %v17089_v16  ;;  %7163 = vmatpush.msra.mxu3 %v7162_v40  ;;  %v7185_v21 = vsub.f32 %v17465_v26, %v22153_v58  ;;  %v17534_v16 = vand.u32 4294901760, %v329_v47  ;;  %v7180_v40 = vand.u32 4294901760, %v7179_v24  ;;  %v7208_v58 = vand.u32 4294901760, %v17526_v59 }
 0x3c8   :  { %7024 = vmatpush.msra.mxu0 %v22154_v25  ;;  %7110 = vmatpush.msra.mxu2 %v17393_v23  ;;  %v7191_v38 = vsub.f32 %v17480_v51, %v22155_v39  ;;  %v22156_v25 = vand.u32 4294901760, %v17222_v53  ;;  %v7197_v39 = vsub.f32 %v17497_v56, %v22157_v7  ;;  %v7214_v7 = vand.u32 4294901760, %v17542_v15 }
 0x3c9   :  { %7069 = vmatpush.msra.mxu1 %v17102_v6  ;;  %7169 = vmatpush.msra.mxu3 %v7168_v61  ;;  %v17550_v6 = vand.u32 4294901760, %v328_v36  ;;  %v17552_v61 = vand.u32 4294901760, %v573_v20  ;;  %v7186_v24 = vand.u32 4294901760, %v7185_v21  ;;  %v17563_v53 = vsub.f32 %v329_v47, %v17534_v16 }
 0x3ca   :  { %7028 = vmatpush.msra.mxu0 %v22156_v25  ;;  %7112 = vmatpush.msra.mxu2 %v17413_v9  ;;  %v17565_v25 = vand.u32 4294901760, %v327_v18 }
 0x3cb   :  { %7071 = vmatpush.msra.mxu1 %v17113_v14  ;;  %7175 = vmatpush.msra.mxu3 %v7174_v41  ;;  %v7192_v14 = vand.u32 4294901760, %v7191_v38  ;;  %v22159_v41 = vand.u32 4294901760, %v17510_v1  ;;  %v17579_v47 = vsub.f32 %v573_v20, %v17552_v61  ;;  %v22161_v38 = vand.u32 4294901760, %v17266_v43 }
 0x3cc   :  { %7032 = vmatpush.msra.mxu0 %v22158_v50  ;;  %7114 = vmatpush.msra.mxu2 %v17429_v19  ;;  %v17576_v50 = vsub.f32 %v328_v36, %v17550_v6  ;;  %v7220_v30 = vand.u32 4294901760, %v17563_v53  ;;  %v17590_v36 = vsub.f32 %v327_v18, %v17565_v25  ;;  %v7215_v20 = vsub.f32 %v17542_v15, %v7214_v7 }
 0x3cd   :  { %7073 = vmatpush.msra.mxu1 %v17126_v28  ;;  %7181 = vmatpush.msra.mxu3 %v7180_v40  ;;  %v7203_v21 = vsub.f32 %v17510_v1, %v22159_v41  ;;  %v7198_v28 = vand.u32 4294901760, %v7197_v39  ;;  %v7209_v40 = vsub.f32 %v17526_v59, %v7208_v58  ;;  %v7133_v39 = vand.u32 4294901760, %v17579_v47 }
 0x3ce   :  { %7036 = vmatpush.msra.mxu0 %v22160_v4  ;;  %7116 = vmatpush.msra.mxu2 %v17448_v62  ;;  %v7226_v43 = vand.u32 4294901760, %v17576_v50  ;;  %v7216_v41 = vand.u32 4294901760, %v7215_v20 }
 0x3cf   :  { %7075 = vmatpush.msra.mxu1 %v17151_v60  ;;  %7187 = vmatpush.msra.mxu3 %v7186_v24  ;;  %v7204_v60 = vand.u32 4294901760, %v7203_v21  ;;  %v22162_v24 = vand.u32 4294901760, %v17282_v35  ;;  %v7210_v18 = vand.u32 4294901760, %v7209_v40  ;;  %v7221_v35 = vsub.f32 %v17563_v53, %v7220_v30 }
 0x3d0   :  { %7040 = vmatpush.msra.mxu0 %v22161_v38  ;;  %7118 = vmatpush.msra.mxu2 %v17467_v33  ;;  %v22164_v21 = vand.u32 4294901760, %v17320_v29  ;;  %v22168_v38 = vand.u32 4294901760, %v17341_v31 }
 0x3d1   :  { %7077 = vmatpush.msra.mxu1 %v17169_v37  ;;  %7193 = vmatpush.msra.mxu3 %v7192_v14  ;;  %v22163_v37 = vand.u32 4294901760, %v17300_v42  ;;  %v7232_v14 = vand.u32 4294901760, %v17590_v36  ;;  %v7134_v42 = vsub.f32 %v17579_v47, %v7133_v39  ;;  %v7222_v29 = vand.u32 4294901760, %v7221_v35  ;;  %v349_v35 = vld [vmem:[%s21527_s1 + $0xa30] sm:$0xff] }
 0x3d2   :  { %7044 = vmatpush.msra.mxu0 %v22162_v24  ;;  %7120 = vmatpush.msra.mxu2 %v17482_v17 }
 0x3d3   :  { %7079 = vmatpush.msra.mxu1 %v17185_v57  ;;  %7199 = vmatpush.msra.mxu3 %v7198_v28  ;;  %v7227_v57 = vsub.f32 %v17576_v50, %v7226_v43  ;;  %v7233_v4 = vsub.f32 %v17590_v36, %v7232_v14  ;;  %v17627_v28 = vpop.f32.mrf.mxu0  ;;  %v7135_v40 = vand.u32 4294901760, %v7134_v42 }
 0x3d4   :  { %7048 = vmatpush.msra.mxu0 %v22163_v37  ;;  %7122 = vmatpush.msra.mxu2 %v17499_v32  ;;  %22166 = vst [vmem:[#allocation21_spill] sm:$0xff] %v17627_v28 }
 0x3d5   :  { %7081 = vmatpush.msra.mxu1 %v17201_v11  ;;  %7205 = vmatpush.msra.mxu3 %v7204_v60  ;;  %v22165_v11 = vand.u32 4294901760, %v17348_v55  ;;  %v7234_v55 = vand.u32 4294901760, %v7233_v4  ;;  %v17831_v4 = vand.u32 4294901760, %v349_v35 }
 0x3d6   :  { %7052 = vmatpush.msra.mxu0 %v22164_v21  ;;  %7124 = vmatpush.msra.mxu2 %v17512_v2 }
 0x3d7   :  { %7083 = vmatpush.msra.mxu1 %v17218_v10  ;;  %7211 = vmatpush.msra.mxu3 %v7210_v18  ;;  %v7228_v10 = vand.u32 4294901760, %v7227_v57 }
 0x3d8   :  { %7056 = vmatpush.msra.mxu0 %v22165_v11  ;;  %7126 = vmatpush.msra.mxu2 %v17534_v16 }
 0x3d9   :  { %7085 = vmatpush.msra.mxu1 %v17233_v8  ;;  %7217 = vmatpush.msra.mxu3 %v7216_v41  ;;  %v17636_v8 = vpop.f32.mrf.mxu2 }
 0x3da   :  { %7058 = vmatmul.f32.vlgmr.msra.gmra.mxu0 %v17244_v34  ;;  %7128 = vmatpush.msra.mxu2 %v17550_v6  ;;  %22167 = vst [vmem:[#allocation22_spill] sm:$0xff] %v17636_v8 }
 0x3db   :  { %7243 = vmatpush.msrb.mxu0 %v17341_v31  ;;  %7087 = vmatpush.msra.mxu1 %v17250_v27  ;;  %v17642_v27 = vpop.f32.mrf.mxu3  ;;  %v17651_v31 = vpop.f32.mrf.mxu1 }
 0x3dc   :  { %7223 = vmatpush.msra.mxu3 %v7222_v29  ;;  %7130 = vmatpush.msra.mxu2 %v17565_v25  ;;  %22169 = vst [vmem:[#allocation23_spill] sm:$0xff] %v17642_v27 }
 0x3dd   :  { %7246 = vmatpush.msrb.mxu0 %v17365_v13  ;;  %7089 = vmatpush.msra.mxu1 %v17262_v54  ;;  %v22170_v54 = vand.u32 4294901760, %v17365_v13  ;;  %22171 = vst [vmem:[#allocation24_spill] sm:$0xff] %v17651_v31  ;;  %v22173_v13 = vand.u32 4294901760, %v17386_v46 }
 0x3de   :  { %7229 = vmatpush.msra.mxu3 %v7228_v10  ;;  %7136 = vmatmul.f32.vlgmr.msra.gmra.mxu2 %v7135_v40 }
 0x3df   :  { %7249 = vmatpush.msrb.mxu0 %v17378_v0  ;;  %7337 = vmatpush.msrb.mxu2 %v22168_v38 }
 0x3e0   :  { %7091 = vmatpush.msra.mxu1 %v17289_v44  ;;  %7235 = vmatpush.msra.mxu3 %v7234_v55  ;;  %v22172_v44 = vand.u32 4294901760, %v17378_v0  ;;  %v22175_v0 = vand.u32 4294901760, %v17427_v12  ;;  %v347_v55 = vld [vmem:[%s21527_s1 + $0xa20] sm:$0xff] }
 0x3e1   :  { %7237 = vmatmul.f32.vlgmr.msra.gmra.mxu3 %v17552_v61  ;;  %7252 = vmatpush.msrb.mxu0 %v17386_v46  ;;  %v22176_v46 = vand.u32 4294901760, %v17446_v5  ;;  %v17784_v60 = vpop.f32.mrf.mxu2 }
 0x3e2   :  { %7341 = vmatpush.msrb.mxu2 %v22170_v54  ;;  %7404 = vmatpush.msrb.mxu3 %v17305_v3  ;;  %22182 = vst [vmem:[#allocation26_spill] sm:$0xff] %v17784_v60 }
 0x3e3   :  { %7093 = vmatpush.msra.mxu1 %v17314_v49  ;;  %7255 = vmatpush.msrb.mxu0 %v17402_v22  ;;  %v17836_v40 = vpop.f32.mrf.mxu1 }
 0x3e4   :  { %7095 = vmatmul.f32.vlgmr.msra.gmra.mxu1 %v17244_v34  ;;  %7345 = vmatpush.msrb.mxu2 %v22172_v44  ;;  %v22174_v34 = vand.u32 4294901760, %v17402_v22  ;;  %v22177_v22 = vand.u32 4294901760, %v17465_v26  ;;  %22184 = vst [vmem:[#allocation28_spill] sm:$0xff] %v17836_v40 }
 0x3e5   :  { %7296 = vmatpush.msrb.mxu1 %v17305_v3  ;;  %7406 = vmatpush.msrb.mxu3 %v17330_v52 }
 0x3e6   :  { %7258 = vmatpush.msrb.mxu0 %v17427_v12  ;;  %7349 = vmatpush.msrb.mxu2 %v22173_v13 }
 0x3e7   :  { %7298 = vmatpush.msrb.mxu1 %v17330_v52  ;;  %7408 = vmatpush.msrb.mxu3 %v17350_v63  ;;  %v356_v52 = vld [vmem:[%s21527_s1 + $0xa68] sm:$0xff] }
 0x3e8   :  { %7261 = vmatpush.msrb.mxu0 %v17446_v5  ;;  %7353 = vmatpush.msrb.mxu2 %v22174_v34  ;;  %v358_v5 = vld [vmem:[%s21527_s1 + $0xa78] sm:$0xff]  ;;  %v17719_v49 = vand.u32 4294901760, %v356_v52 }
 0x3e9   :  { %7300 = vmatpush.msrb.mxu1 %v17350_v63  ;;  %7410 = vmatpush.msrb.mxu3 %v17358_v48  ;;  %v22178_v63 = vand.u32 4294901760, %v17480_v51  ;;  %v17699_v12 = vand.u32 4294901760, %v358_v5  ;;  %v346_v34 = vld [vmem:[%s21527_s1 + $0xa18] sm:$0xff] }
 0x3ea   :  { %7264 = vmatpush.msrb.mxu0 %v17465_v26  ;;  %7357 = vmatpush.msrb.mxu2 %v22175_v0  ;;  %v22179_v26 = vand.u32 4294901760, %v17497_v56 }
 0x3eb   :  { %7302 = vmatpush.msrb.mxu1 %v17358_v48  ;;  %7412 = vmatpush.msrb.mxu3 %v17370_v45  ;;  %v17722_v48 = vsub.f32 %v358_v5, %v17699_v12 }
 0x3ec   :  { %7267 = vmatpush.msrb.mxu0 %v17480_v51  ;;  %7361 = vmatpush.msrb.mxu2 %v22176_v46  ;;  %v353_v51 = vld [vmem:[%s21527_s1 + $0xa50] sm:$0xff]  ;;  %v17863_v46 = vand.u32 4294901760, %v347_v55 }
 0x3ed   :  { %7304 = vmatpush.msrb.mxu1 %v17370_v45  ;;  %7414 = vmatpush.msrb.mxu3 %v17393_v23  ;;  %v357_v45 = vld [vmem:[%s21527_s1 + $0xa70] sm:$0xff] }
 0x3ee   :  { %7270 = vmatpush.msrb.mxu0 %v17497_v56  ;;  %7365 = vmatpush.msrb.mxu2 %v22177_v22  ;;  %v17709_v3 = vand.u32 4294901760, %v357_v45 }
 0x3ef   :  { %7306 = vmatpush.msrb.mxu1 %v17393_v23  ;;  %7416 = vmatpush.msrb.mxu3 %v17413_v9  ;;  %v354_v23 = vld [vmem:[%s21527_s1 + $0xa58] sm:$0xff] }
 0x3f0   :  { %7273 = vmatpush.msrb.mxu0 %v17510_v1  ;;  %7369 = vmatpush.msrb.mxu2 %v22178_v63  ;;  %v17743_v56 = vand.u32 4294901760, %v354_v23  ;;  %v17867_v63 = vsub.f32 %v349_v35, %v17831_v4 }
 0x3f1   :  { %7308 = vmatpush.msrb.mxu1 %v17413_v9  ;;  %7418 = vmatpush.msrb.mxu3 %v17429_v19  ;;  %v22180_v9 = vand.u32 4294901760, %v17510_v1  ;;  %v17749_v1 = vsub.f32 %v356_v52, %v17719_v49  ;;  %v17880_v52 = vand.u32 4294901760, %v346_v34 }
 0x3f2   :  { %7276 = vmatpush.msrb.mxu0 %v17526_v59  ;;  %7373 = vmatpush.msrb.mxu2 %v22179_v26  ;;  %v17756_v59 = vand.u32 4294901760, %v353_v51  ;;  %v345_v26 = vld [vmem:[%s21527_s1 + $0xa10] sm:$0xff] }
 0x3f3   :  { %7310 = vmatpush.msrb.mxu1 %v17429_v19  ;;  %7420 = vmatpush.msrb.mxu3 %v17448_v62  ;;  %v355_v19 = vld [vmem:[%s21527_s1 + $0xa60] sm:$0xff] }
 0x3f4   :  { %7279 = vmatpush.msrb.mxu0 %v17542_v15  ;;  %7377 = vmatpush.msrb.mxu2 %v22180_v9  ;;  %v17751_v15 = vpop.f32.mrf.mxu0  ;;  %v17789_v20 = vsub.f32 %v353_v51, %v17756_v59 }
 0x3f5   :  { %7312 = vmatpush.msrb.mxu1 %v17448_v62  ;;  %7422 = vmatpush.msrb.mxu3 %v17467_v33  ;;  %v17735_v62 = vsub.f32 %v357_v45, %v17709_v3  ;;  %22181 = vst [vmem:[#allocation25_spill] sm:$0xff] %v17751_v15 }
 0x3f6   :  { %7282 = vmatpush.msrb.mxu0 %v17563_v53  ;;  %7381 = vmatpush.msrb.mxu2 %v7208_v58  ;;  %v21753_v42 = vand.u32 4294901760, %v17789_v20 }
 0x3f7   :  { %7314 = vmatpush.msrb.mxu1 %v17467_v33  ;;  %7424 = vmatpush.msrb.mxu3 %v17482_v17  ;;  %v17732_v33 = vand.u32 4294901760, %v355_v19  ;;  %v21759_v58 = vand.u32 4294901760, %v17735_v62 }
 0x3f8   :  { %7285 = vmatpush.msrb.mxu0 %v17576_v50  ;;  %7385 = vmatpush.msrb.mxu2 %v7214_v7  ;;  %v17771_v7 = vsub.f32 %v354_v23, %v17743_v56  ;;  %v351_v50 = vld [vmem:[%s21527_s1 + $0xa40] sm:$0xff]  ;;  %v7514_v13 = vsub.f32 %v17789_v20, %v21753_v42 }
 0x3f9   :  { %7316 = vmatpush.msrb.mxu1 %v17482_v17  ;;  %7426 = vmatpush.msrb.mxu3 %v17499_v32  ;;  %v21760_v17 = vand.u32 4294901760, %v17722_v48  ;;  %v17765_v53 = vsub.f32 %v355_v19, %v17732_v33  ;;  %v7490_v24 = vsub.f32 %v17735_v62, %v21759_v58 }
 0x3fa   :  { %7288 = vmatpush.msrb.mxu0 %v17590_v36  ;;  %7389 = vmatpush.msrb.mxu2 %v7220_v30  ;;  %v21758_v36 = vand.u32 4294901760, %v17749_v1  ;;  %v21754_v37 = vand.u32 4294901760, %v17771_v7  ;;  %v7515_v51 = vand.u32 4294901760, %v7514_v13 }
 0x3fb   :  { %7318 = vmatpush.msrb.mxu1 %v17499_v32  ;;  %7428 = vmatpush.msrb.mxu3 %v17512_v2  ;;  %v352_v32 = vld [vmem:[%s21527_s1 + $0xa48] sm:$0xff]  ;;  %v21755_v18 = vand.u32 4294901760, %v17765_v53  ;;  %v7491_v11 = vand.u32 4294901760, %v7490_v24 }
 0x3fc   :  { %7291 = vmatmul.f32.vlgmr.msrb.gmra.mxu0 %v17579_v47  ;;  %7393 = vmatpush.msrb.mxu2 %v7226_v43  ;;  %v17781_v30 = vand.u32 4294901760, %v352_v32  ;;  %v17799_v43 = vand.u32 4294901760, %v351_v50  ;;  %v7496_v21 = vsub.f32 %v17749_v1, %v21758_v36  ;;  %v344_v24 = vld [vmem:[%s21527_s1 + $0xa08] sm:$0xff] }
 0x3fd   :  { %7441 = vmatpush.msra.mxu0 %v17699_v12  ;;  %7320 = vmatpush.msrb.mxu1 %v17512_v2  ;;  %v7484_v2 = vsub.f32 %v17722_v48, %v21760_v17  ;;  %v7502_v29 = vsub.f32 %v17765_v53, %v21755_v18 }
 0x3fe   :  { %7430 = vmatpush.msrb.mxu3 %v17534_v16  ;;  %7397 = vmatpush.msrb.mxu2 %v7232_v14  ;;  %v17808_v14 = vpop.f32.mrf.mxu3  ;;  %v17818_v57 = vsub.f32 %v352_v32, %v17781_v30  ;;  %v17834_v10 = vsub.f32 %v351_v50, %v17799_v43  ;;  %v7497_v38 = vand.u32 4294901760, %v7496_v21  ;;  %v17892_v50 = vand.u32 4294901760, %v345_v26 }
 0x3ff   :  { %7443 = vmatpush.msra.mxu0 %v17709_v3  ;;  %7322 = vmatpush.msrb.mxu1 %v17534_v16  ;;  %v350_v16 = vld [vmem:[%s21527_s1 + $0xa38] sm:$0xff]  ;;  %22183 = vst [vmem:[#allocation27_spill] sm:$0xff] %v17808_v14  ;;  %v7485_v41 = vand.u32 4294901760, %v7484_v2  ;;  %v7503_v0 = vand.u32 4294901760, %v7502_v29  ;;  %v21747_v2 = vand.u32 4294901760, %v17867_v63  ;;  %v18025_v14 = vpop.f32.mrf.mxu0 }
 0x400   :  { %7432 = vmatpush.msrb.mxu3 %v17550_v6  ;;  %7399 = vmatmul.f32.vlgmr.msrb.gmra.mxu2 %v17552_v61  ;;  %v21751_v44 = vand.u32 4294901760, %v17818_v57  ;;  %v21750_v22 = vand.u32 4294901760, %v17834_v10  ;;  %v374_v29 = vld [vmem:[%s21527_s1 + $0xaf8] sm:$0xff]  ;;  %22185 = vst [vmem:[#allocation29_spill] sm:$0xff] %v18025_v14 }
 0x401   :  { %7445 = vmatpush.msra.mxu0 %v17719_v49  ;;  %7584 = vmatpush.msra.mxu2 %v17722_v48 }
 0x402   :  { %7324 = vmatpush.msrb.mxu1 %v17550_v6  ;;  %7434 = vmatpush.msrb.mxu3 %v17565_v25  ;;  %v17815_v6 = vand.u32 4294901760, %v350_v16  ;;  %v7520_v9 = vsub.f32 %v17818_v57, %v21751_v44  ;;  %v7526_v32 = vsub.f32 %v17834_v10, %v21750_v22 }
 0x403   :  { %7436 = vmatmul.f32.vlgmr.msrb.gmra.mxu3 %v17552_v61  ;;  %7447 = vmatpush.msra.mxu0 %v17732_v33  ;;  %v348_v61 = vld [vmem:[%s21527_s1 + $0xa28] sm:$0xff] }
 0x404   :  { %7587 = vmatpush.msra.mxu2 %v17735_v62  ;;  %7637 = vmatpush.msra.mxu3 %v17699_v12  ;;  %v17848_v54 = vand.u32 4294901760, %v348_v61  ;;  %v17852_v47 = vsub.f32 %v350_v16, %v17815_v6  ;;  %v17896_v16 = vsub.f32 %v347_v55, %v17863_v46  ;;  %v343_v55 = vld [vmem:[%s21527_s1 + $0xa00] sm:$0xff] }
 0x405   :  { %7326 = vmatpush.msrb.mxu1 %v17565_v25  ;;  %7449 = vmatpush.msra.mxu0 %v17743_v56  ;;  %v7508_v25 = vsub.f32 %v17771_v7, %v21754_v37 }
 0x406   :  { %7330 = vmatmul.f32.vlgmr.msrb.gmra.mxu1 %v7133_v39  ;;  %7590 = vmatpush.msra.mxu2 %v17749_v1  ;;  %v574_v39 = vld.sshfl [vmem:[#allocation1 + $0x20] sm:$0xff pattern:$0x73625140]  ;;  %v21748_v19 = vand.u32 4294901760, %v17852_v47  ;;  %v17884_v23 = vsub.f32 %v348_v61, %v17848_v54  ;;  %v21752_v13 = vand.u32 4294901760, %v17896_v16 }
 0x407   :  { %7486 = vmatpush.msra.mxu1 %v7485_v41  ;;  %7639 = vmatpush.msra.mxu3 %v17709_v3  ;;  %v7509_v5 = vand.u32 4294901760, %v7508_v25  ;;  %v17874_v45 = vand.u32 4294901760, %v574_v39  ;;  %v7521_v41 = vand.u32 4294901760, %v7520_v9  ;;  %v17919_v25 = vand.u32 4294901760, %v344_v24  ;;  %v373_v9 = vld [vmem:[%s21527_s1 + $0xaf0] sm:$0xff] }
 0x408   :  { %7451 = vmatpush.msra.mxu0 %v17756_v59  ;;  %7593 = vmatpush.msra.mxu2 %v17765_v53  ;;  %v7532_v21 = vsub.f32 %v17852_v47, %v21748_v19  ;;  %v21749_v61 = vand.u32 4294901760, %v17884_v23  ;;  %v17960_v44 = vand.u32 4294901760, %v373_v9 }
 0x409   :  { %7492 = vmatpush.msra.mxu1 %v7491_v11  ;;  %7641 = vmatpush.msra.mxu3 %v17719_v49  ;;  %v17904_v35 = vsub.f32 %v574_v39, %v17874_v45  ;;  %v17912_v11 = vsub.f32 %v346_v34, %v17880_v52  ;;  %v7538_v39 = vsub.f32 %v17867_v63, %v21747_v2 }
 0x40a   :  { %7453 = vmatpush.msra.mxu0 %v17781_v30  ;;  %7596 = vmatpush.msra.mxu2 %v17771_v7  ;;  %v17930_v34 = vsub.f32 %v345_v26, %v17892_v50  ;;  %v7544_v26 = vsub.f32 %v17884_v23, %v21749_v61  ;;  %v17950_v19 = vsub.f32 %v344_v24, %v17919_v25  ;;  %v371_v24 = vld [vmem:[%s21527_s1 + $0xae0] sm:$0xff] }
 0x40b   :  { %7498 = vmatpush.msra.mxu1 %v7497_v38  ;;  %7643 = vmatpush.msra.mxu3 %v17732_v33  ;;  %v7527_v38 = vand.u32 4294901760, %v7526_v32  ;;  %v17944_v32 = vand.u32 4294901760, %v343_v55  ;;  %v21757_v2 = vand.u32 4294901760, %v17912_v11  ;;  %v7550_v61 = vsub.f32 %v17896_v16, %v21752_v13 }
 0x40c   :  { %7455 = vmatpush.msra.mxu0 %v17799_v43  ;;  %7599 = vmatpush.msra.mxu2 %v17789_v20  ;;  %v21761_v22 = vand.u32 4294901760, %v17930_v34  ;;  %v7545_v13 = vand.u32 4294901760, %v7544_v26 }
 0x40d   :  { %7504 = vmatpush.msra.mxu1 %v7503_v0  ;;  %7645 = vmatpush.msra.mxu3 %v17743_v56  ;;  %v21756_v0 = vand.u32 4294901760, %v17904_v35  ;;  %v7556_v42 = vsub.f32 %v17912_v11, %v21757_v2  ;;  %v17978_v37 = vsub.f32 %v343_v55, %v17944_v32  ;;  %v7551_v26 = vand.u32 4294901760, %v7550_v61  ;;  %v369_v61 = vld [vmem:[%s21527_s1 + $0xad0] sm:$0xff] }
 0x40e   :  { %7457 = vmatpush.msra.mxu0 %v17815_v6  ;;  %7602 = vmatpush.msra.mxu2 %v17818_v57  ;;  %v7562_v55 = vsub.f32 %v17930_v34, %v21761_v22  ;;  %v17995_v2 = vsub.f32 %v373_v9, %v17960_v44  ;;  %v18023_v9 = vand.u32 4294901760, %v369_v61 }
 0x40f   :  { %7510 = vmatpush.msra.mxu1 %v7509_v5  ;;  %7647 = vmatpush.msra.mxu3 %v17756_v59  ;;  %v17935_v5 = vand.u32 4294901760, %v374_v29 }
 0x410   :  { %7459 = vmatpush.msra.mxu0 %v17831_v4  ;;  %7605 = vmatpush.msra.mxu2 %v17834_v10  ;;  %v18057_v14 = vsub.f32 %v369_v61, %v18023_v9 }
 0x411   :  { %7516 = vmatpush.msra.mxu1 %v7515_v51  ;;  %7649 = vmatpush.msra.mxu3 %v17781_v30  ;;  %v7533_v51 = vand.u32 4294901760, %v7532_v21  ;;  %v7539_v21 = vand.u32 4294901760, %v7538_v39  ;;  %v17971_v39 = vsub.f32 %v374_v29, %v17935_v5  ;;  %v21762_v29 = vand.u32 4294901760, %v17950_v19 }
 0x412   :  { %7461 = vmatpush.msra.mxu0 %v17848_v54  ;;  %7608 = vmatpush.msra.mxu2 %v17852_v47 }
 0x413   :  { %7522 = vmatpush.msra.mxu1 %v7521_v41  ;;  %7651 = vmatpush.msra.mxu3 %v17799_v43  ;;  %v372_v41 = vld [vmem:[%s21527_s1 + $0xae8] sm:$0xff] }
 0x414   :  { %7463 = vmatpush.msra.mxu0 %v17863_v46  ;;  %7611 = vmatpush.msra.mxu2 %v17867_v63  ;;  %v17980_v18 = vand.u32 4294901760, %v372_v41 }
 0x415   :  { %7528 = vmatpush.msra.mxu1 %v7527_v38  ;;  %7653 = vmatpush.msra.mxu3 %v17815_v6  ;;  %v7475_v38 = vsub.f32 %v17904_v35, %v21756_v0  ;;  %v370_v0 = vld [vmem:[%s21527_s1 + $0xad8] sm:$0xff] }
 0x416   :  { %7465 = vmatpush.msra.mxu0 %v17880_v52  ;;  %7614 = vmatpush.msra.mxu2 %v17884_v23  ;;  %v18000_v17 = vand.u32 4294901760, %v370_v0  ;;  %v18008_v22 = vsub.f32 %v372_v41, %v17980_v18  ;;  %v22188_v41 = vand.u32 4294901760, %v17978_v37 }
 0x417   :  { %7534 = vmatpush.msra.mxu1 %v7533_v51  ;;  %7655 = vmatpush.msra.mxu3 %v17831_v4  ;;  %v17988_v51 = vand.u32 4294901760, %v371_v24  ;;  %v7476_v36 = vand.u32 4294901760, %v7475_v38  ;;  %v7568_v38 = vsub.f32 %v17950_v19, %v21762_v29 }
 0x418   :  { %7467 = vmatpush.msra.mxu0 %v17892_v50  ;;  %7617 = vmatpush.msra.mxu2 %v17896_v16  ;;  %v18032_v60 = vsub.f32 %v370_v0, %v18000_v17 }
 0x419   :  { %7540 = vmatpush.msra.mxu1 %v7539_v21  ;;  %7657 = vmatpush.msra.mxu3 %v17848_v54  ;;  %v7557_v21 = vand.u32 4294901760, %v7556_v42  ;;  %v18016_v58 = vsub.f32 %v371_v24, %v17988_v51  ;;  %v368_v42 = vld [vmem:[%s21527_s1 + $0xac8] sm:$0xff]  ;;  %v22186_v24 = vand.u32 4294901760, %v17971_v39  ;;  %v7569_v0 = vand.u32 4294901760, %v7568_v38  ;;  %v18061_v38 = vpop.f32.mrf.mxu2 }
 0x41a   :  { %7469 = vmatpush.msra.mxu0 %v17919_v25  ;;  %7620 = vmatpush.msra.mxu2 %v17912_v11  ;;  %v18043_v40 = vand.u32 4294901760, %v368_v42  ;;  %22191 = vst [vmem:[#allocation30_spill] sm:$0xff] %v18061_v38 }
 0x41b   :  { %7546 = vmatpush.msra.mxu1 %v7545_v13  ;;  %7659 = vmatpush.msra.mxu3 %v17863_v46  ;;  %v7563_v13 = vand.u32 4294901760, %v7562_v55  ;;  %v7825_v29 = vsub.f32 %v17971_v39, %v22186_v24  ;;  %v22187_v55 = vand.u32 4294901760, %v17722_v48  ;;  %v366_v48 = vld [vmem:[%s21527_s1 + $0xab8] sm:$0xff] }
 0x41c   :  { %7471 = vmatpush.msra.mxu0 %v17944_v32  ;;  %7623 = vmatpush.msra.mxu2 %v17930_v34  ;;  %v18076_v27 = vsub.f32 %v368_v42, %v18043_v40  ;;  %v22197_v42 = vand.u32 4294901760, %v17765_v53  ;;  %v363_v53 = vld [vmem:[%s21527_s1 + $0xaa0] sm:$0xff] }
 0x41d   :  { %7552 = vmatpush.msra.mxu1 %v7551_v26  ;;  %7661 = vmatpush.msra.mxu3 %v17880_v52  ;;  %v367_v26 = vld [vmem:[%s21527_s1 + $0xac0] sm:$0xff]  ;;  %v7826_v24 = vand.u32 4294901760, %v7825_v29  ;;  %v18078_v29 = vand.u32 4294901760, %v366_v48 }
 0x41e   :  { %7477 = vmatmul.f32.vlgmr.msra.gmra.mxu0 %v7476_v36  ;;  %7626 = vmatpush.msra.mxu2 %v17950_v19  ;;  %v7574_v36 = vsub.f32 %v17978_v37, %v22188_v41  ;;  %v22190_v41 = vand.u32 4294901760, %v17995_v2  ;;  %v18059_v15 = vand.u32 4294901760, %v367_v26 }
 0x41f   :  { %7678 = vmatpush.msrb.mxu0 %v22187_v55  ;;  %7558 = vmatpush.msra.mxu1 %v7557_v21  ;;  %v22189_v21 = vand.u32 4294901760, %v17735_v62  ;;  %v22194_v62 = vand.u32 4294901760, %v18016_v58 }
 0x420   :  { %7663 = vmatpush.msra.mxu3 %v17892_v50  ;;  %7629 = vmatpush.msra.mxu2 %v17978_v37  ;;  %v7831_v55 = vsub.f32 %v17995_v2, %v22190_v41  ;;  %v7575_v61 = vand.u32 4294901760, %v7574_v36  ;;  %v22193_v41 = vand.u32 4294901760, %v18008_v22  ;;  %v364_v36 = vld [vmem:[%s21527_s1 + $0xaa8] sm:$0xff]  ;;  %v18095_v31 = vsub.f32 %v367_v26, %v18059_v15 }
 0x421   :  { %7682 = vmatpush.msrb.mxu0 %v22189_v21  ;;  %7564 = vmatpush.msra.mxu1 %v7563_v13  ;;  %v365_v13 = vld [vmem:[%s21527_s1 + $0xab0] sm:$0xff]  ;;  %v22192_v21 = vand.u32 4294901760, %v17749_v1  ;;  %v7843_v1 = vsub.f32 %v18016_v58, %v22194_v62  ;;  %v22198_v62 = vand.u32 4294901760, %v18032_v60 }
 0x422   :  { %7665 = vmatpush.msra.mxu3 %v17919_v25  ;;  %7632 = vmatmul.f32.vlgmr.msra.gmra.mxu2 %v17904_v35  ;;  %v7837_v38 = vsub.f32 %v18008_v22, %v22193_v41  ;;  %v22196_v41 = vand.u32 4294901760, %v17904_v35  ;;  %v7832_v8 = vand.u32 4294901760, %v7831_v55  ;;  %v18097_v28 = vand.u32 4294901760, %v365_v13 }
 0x423   :  { %7686 = vmatpush.msrb.mxu0 %v22192_v21  ;;  %7782 = vmatpush.msrb.mxu2 %v17935_v5  ;;  %v18087_v21 = vpop.f32.mrf.mxu3  ;;  %v22199_v35 = vand.u32 4294901760, %v17771_v7  ;;  %v362_v7 = vld [vmem:[%s21527_s1 + $0xa98] sm:$0xff] }
 0x424   :  { %7570 = vmatpush.msra.mxu1 %v7569_v0  ;;  %7667 = vmatpush.msra.mxu3 %v17944_v32  ;;  %22195 = vst [vmem:[#allocation31_spill] sm:$0xff] %v18087_v21  ;;  %v21763_v0 = vand.u32 4294901760, %v18057_v14  ;;  %v7849_v21 = vsub.f32 %v18032_v60, %v22198_v62  ;;  %v7838_v55 = vand.u32 4294901760, %v7837_v38  ;;  %v7844_v62 = vand.u32 4294901760, %v7843_v1 }
 0x425   :  { %7671 = vmatmul.f32.vlgmr.msra.gmra.mxu3 %v22196_v41  ;;  %7690 = vmatpush.msrb.mxu0 %v22197_v42  ;;  %v18110_v41 = vsub.f32 %v366_v48, %v18078_v29  ;;  %v18112_v42 = vand.u32 4294901760, %v364_v36  ;;  %v22201_v1 = vand.u32 4294901760, %v17789_v20  ;;  %v18142_v38 = vand.u32 4294901760, %v362_v7  ;;  %v361_v20 = vld [vmem:[%s21527_s1 + $0xa90] sm:$0xff] }
 0x426   :  { %7784 = vmatpush.msrb.mxu2 %v17960_v44  ;;  %7827 = vmatpush.msrb.mxu3 %v7826_v24  ;;  %v18114_v24 = vpop.f32.mrf.mxu1  ;;  %v7855_v48 = vsub.f32 %v18057_v14, %v21763_v0  ;;  %v7850_v26 = vand.u32 4294901760, %v7849_v21  ;;  %v22203_v21 = vand.u32 4294901760, %v17818_v57  ;;  %v360_v57 = vld [vmem:[%s21527_s1 + $0xa88] sm:$0xff]  ;;  %v22205_v0 = vand.u32 4294901760, %v17834_v10  ;;  %v359_v10 = vld [vmem:[%s21527_s1 + $0xa80] sm:$0xff] }
 0x427   :  { %7576 = vmatpush.msra.mxu1 %v7575_v61  ;;  %7694 = vmatpush.msrb.mxu0 %v22199_v35  ;;  %22200 = vst [vmem:[#allocation32_spill] sm:$0xff] %v18114_v24  ;;  %v18127_v61 = vsub.f32 %v365_v13, %v18097_v28  ;;  %v18129_v35 = vand.u32 4294901760, %v363_v53  ;;  %v18140_v13 = vsub.f32 %v364_v36, %v18112_v42  ;;  %v22209_v24 = vand.u32 4294901760, %v17867_v63 }
 0x428   :  { %7578 = vmatmul.f32.vlgmr.msra.gmra.mxu1 %v17874_v45  ;;  %7786 = vmatpush.msrb.mxu2 %v17980_v18  ;;  %v22211_v63 = vand.u32 4294901760, %v17884_v23 }
 0x429   :  { %7745 = vmatpush.msrb.mxu1 %v17699_v12  ;;  %7833 = vmatpush.msrb.mxu3 %v7832_v8  ;;  %v22202_v8 = vand.u32 4294901760, %v18076_v27 }
 0x42a   :  { %7698 = vmatpush.msrb.mxu0 %v22201_v1  ;;  %7788 = vmatpush.msrb.mxu2 %v17988_v51  ;;  %v18172_v1 = vsub.f32 %v362_v7, %v18142_v38  ;;  %v22208_v7 = vand.u32 4294901760, %v18127_v61 }
 0x42b   :  { %7747 = vmatpush.msrb.mxu1 %v17709_v3  ;;  %7839 = vmatpush.msrb.mxu3 %v7838_v55  ;;  %v7861_v12 = vsub.f32 %v18076_v27, %v22202_v8  ;;  %v7856_v3 = vand.u32 4294901760, %v7855_v48  ;;  %v22204_v55 = vand.u32 4294901760, %v18095_v31  ;;  %v18156_v8 = vsub.f32 %v363_v53, %v18129_v35 }
 0x42c   :  { %7702 = vmatpush.msrb.mxu0 %v22203_v21  ;;  %7790 = vmatpush.msrb.mxu2 %v18000_v17  ;;  %v575_v21 = vld.sshfl [vmem:[#allocation1 + $0x28] sm:$0xff pattern:$0x73625140]  ;;  %v22206_v48 = vand.u32 4294901760, %v18110_v41 }
 0x42d   :  { %7749 = vmatpush.msrb.mxu1 %v17719_v49  ;;  %7845 = vmatpush.msrb.mxu3 %v7844_v62  ;;  %v7867_v36 = vsub.f32 %v18095_v31, %v22204_v55  ;;  %v18164_v49 = vand.u32 4294901760, %v361_v20  ;;  %v7862_v62 = vand.u32 4294901760, %v7861_v12  ;;  %v7890_v55 = vand.u32 4294901760, %v18156_v8 }
 0x42e   :  { %7706 = vmatpush.msrb.mxu0 %v22205_v0  ;;  %7792 = vmatpush.msrb.mxu2 %v18023_v9  ;;  %v7873_v53 = vsub.f32 %v18110_v41, %v22206_v48  ;;  %v22207_v0 = vand.u32 4294901760, %v17852_v47  ;;  %v7879_v48 = vsub.f32 %v18127_v61, %v22208_v7  ;;  %v7896_v7 = vand.u32 4294901760, %v18172_v1 }
 0x42f   :  { %7751 = vmatpush.msrb.mxu1 %v17732_v33  ;;  %7851 = vmatpush.msrb.mxu3 %v7850_v26  ;;  %v18180_v33 = vand.u32 4294901760, %v360_v57  ;;  %v18182_v26 = vand.u32 4294901760, %v575_v21  ;;  %v7868_v12 = vand.u32 4294901760, %v7867_v36  ;;  %v18193_v47 = vsub.f32 %v361_v20, %v18164_v49 }
 0x430   :  { %7710 = vmatpush.msrb.mxu0 %v22207_v0  ;;  %7794 = vmatpush.msrb.mxu2 %v18043_v40  ;;  %v18195_v0 = vand.u32 4294901760, %v359_v10 }
 0x431   :  { %7753 = vmatpush.msrb.mxu1 %v17743_v56  ;;  %7857 = vmatpush.msrb.mxu3 %v7856_v3  ;;  %v7874_v56 = vand.u32 4294901760, %v7873_v53  ;;  %v22210_v3 = vand.u32 4294901760, %v18140_v13  ;;  %v18209_v20 = vsub.f32 %v575_v21, %v18182_v26  ;;  %v22212_v53 = vand.u32 4294901760, %v17896_v16 }
 0x432   :  { %7714 = vmatpush.msrb.mxu0 %v22209_v24  ;;  %7796 = vmatpush.msrb.mxu2 %v18059_v15  ;;  %v18206_v24 = vsub.f32 %v360_v57, %v18180_v33  ;;  %v7902_v23 = vand.u32 4294901760, %v18193_v47  ;;  %v18220_v57 = vsub.f32 %v359_v10, %v18195_v0  ;;  %v7897_v21 = vsub.f32 %v18172_v1, %v7896_v7 }
 0x433   :  { %7755 = vmatpush.msrb.mxu1 %v17756_v59  ;;  %7863 = vmatpush.msrb.mxu3 %v7862_v62  ;;  %v7885_v36 = vsub.f32 %v18140_v13, %v22210_v3  ;;  %v7880_v59 = vand.u32 4294901760, %v7879_v48  ;;  %v7891_v62 = vsub.f32 %v18156_v8, %v7890_v55  ;;  %v7815_v48 = vand.u32 4294901760, %v18209_v20 }
 0x434   :  { %7718 = vmatpush.msrb.mxu0 %v22211_v63  ;;  %7798 = vmatpush.msrb.mxu2 %v18078_v29  ;;  %v7908_v16 = vand.u32 4294901760, %v18206_v24  ;;  %v7898_v3 = vand.u32 4294901760, %v7897_v21 }
 0x435   :  { %7757 = vmatpush.msrb.mxu1 %v17781_v30  ;;  %7869 = vmatpush.msrb.mxu3 %v7868_v12  ;;  %v7886_v30 = vand.u32 4294901760, %v7885_v36  ;;  %v22213_v12 = vand.u32 4294901760, %v17912_v11  ;;  %v7892_v10 = vand.u32 4294901760, %v7891_v62  ;;  %v7903_v11 = vsub.f32 %v18193_v47, %v7902_v23 }
 0x436   :  { %7722 = vmatpush.msrb.mxu0 %v22212_v53  ;;  %7800 = vmatpush.msrb.mxu2 %v18097_v28  ;;  %v22215_v36 = vand.u32 4294901760, %v17950_v19  ;;  %v22219_v53 = vand.u32 4294901760, %v17971_v39 }
 0x437   :  { %7759 = vmatpush.msrb.mxu1 %v17799_v43  ;;  %7875 = vmatpush.msrb.mxu3 %v7874_v56  ;;  %v22214_v43 = vand.u32 4294901760, %v17930_v34  ;;  %v7914_v56 = vand.u32 4294901760, %v18220_v57  ;;  %v7816_v34 = vsub.f32 %v18209_v20, %v7815_v48  ;;  %v7904_v19 = vand.u32 4294901760, %v7903_v11  ;;  %v381_v11 = vld [vmem:[%s21527_s1 + $0xb30] sm:$0xff] }
 0x438   :  { %7726 = vmatpush.msrb.mxu0 %v22213_v12  ;;  %7802 = vmatpush.msrb.mxu2 %v18112_v42 }
 0x439   :  { %7761 = vmatpush.msrb.mxu1 %v17815_v6  ;;  %7881 = vmatpush.msrb.mxu3 %v7880_v59  ;;  %v7909_v6 = vsub.f32 %v18206_v24, %v7908_v16  ;;  %v7915_v63 = vsub.f32 %v18220_v57, %v7914_v56  ;;  %v18257_v59 = vpop.f32.mrf.mxu0  ;;  %v7817_v62 = vand.u32 4294901760, %v7816_v34 }
 0x43a   :  { %7730 = vmatpush.msrb.mxu0 %v22214_v43  ;;  %7804 = vmatpush.msrb.mxu2 %v18129_v35  ;;  %22217 = vst [vmem:[#allocation33_spill] sm:$0xff] %v18257_v59 }
 0x43b   :  { %7763 = vmatpush.msrb.mxu1 %v17831_v4  ;;  %7887 = vmatpush.msrb.mxu3 %v7886_v30  ;;  %v22216_v4 = vand.u32 4294901760, %v17978_v37  ;;  %v7916_v37 = vand.u32 4294901760, %v7915_v63  ;;  %v18461_v63 = vand.u32 4294901760, %v381_v11 }
 0x43c   :  { %7734 = vmatpush.msrb.mxu0 %v22215_v36  ;;  %7806 = vmatpush.msrb.mxu2 %v18142_v38 }
 0x43d   :  { %7765 = vmatpush.msrb.mxu1 %v17848_v54  ;;  %7893 = vmatpush.msrb.mxu3 %v7892_v10  ;;  %v7910_v54 = vand.u32 4294901760, %v7909_v6 }
 0x43e   :  { %7738 = vmatpush.msrb.mxu0 %v22216_v4  ;;  %7808 = vmatpush.msrb.mxu2 %v18164_v49 }
 0x43f   :  { %7767 = vmatpush.msrb.mxu1 %v17863_v46  ;;  %7899 = vmatpush.msrb.mxu3 %v7898_v3  ;;  %v18266_v46 = vpop.f32.mrf.mxu2 }
 0x440   :  { %7740 = vmatmul.f32.vlgmr.msrb.gmra.mxu0 %v17874_v45  ;;  %7810 = vmatpush.msrb.mxu2 %v18180_v33  ;;  %22218 = vst [vmem:[#allocation34_spill] sm:$0xff] %v18266_v46 }
 0x441   :  { %7925 = vmatpush.msra.mxu0 %v17971_v39  ;;  %7769 = vmatpush.msrb.mxu1 %v17880_v52  ;;  %v18272_v52 = vpop.f32.mrf.mxu3  ;;  %v18281_v39 = vpop.f32.mrf.mxu1 }
 0x442   :  { %7905 = vmatpush.msrb.mxu3 %v7904_v19  ;;  %7812 = vmatpush.msrb.mxu2 %v18195_v0  ;;  %22220 = vst [vmem:[#allocation35_spill] sm:$0xff] %v18272_v52 }
 0x443   :  { %7928 = vmatpush.msra.mxu0 %v17995_v2  ;;  %7771 = vmatpush.msrb.mxu1 %v17892_v50  ;;  %v22221_v50 = vand.u32 4294901760, %v17995_v2  ;;  %22222 = vst [vmem:[#allocation36_spill] sm:$0xff] %v18281_v39  ;;  %v22224_v2 = vand.u32 4294901760, %v18016_v58 }
 0x444   :  { %7911 = vmatpush.msrb.mxu3 %v7910_v54  ;;  %7818 = vmatmul.f32.vlgmr.msrb.gmra.mxu2 %v7817_v62 }
 0x445   :  { %7931 = vmatpush.msra.mxu0 %v18008_v22  ;;  %8019 = vmatpush.msra.mxu2 %v22219_v53 }
 0x446   :  { %7773 = vmatpush.msrb.mxu1 %v17919_v25  ;;  %7917 = vmatpush.msrb.mxu3 %v7916_v37  ;;  %v22223_v25 = vand.u32 4294901760, %v18008_v22  ;;  %v22226_v22 = vand.u32 4294901760, %v18057_v14  ;;  %v379_v37 = vld [vmem:[%s21527_s1 + $0xb20] sm:$0xff] }
 0x447   :  { %7919 = vmatmul.f32.vlgmr.msrb.gmra.mxu3 %v18182_v26  ;;  %7934 = vmatpush.msra.mxu0 %v18016_v58  ;;  %v22227_v58 = vand.u32 4294901760, %v18076_v27  ;;  %v18414_v30 = vpop.f32.mrf.mxu2 }
 0x448   :  { %8023 = vmatpush.msra.mxu2 %v22221_v50  ;;  %8086 = vmatpush.msra.mxu3 %v17935_v5  ;;  %22233 = vst [vmem:[#allocation38_spill] sm:$0xff] %v18414_v30 }
 0x449   :  { %7775 = vmatpush.msrb.mxu1 %v17944_v32  ;;  %7937 = vmatpush.msra.mxu0 %v18032_v60  ;;  %v18466_v62 = vpop.f32.mrf.mxu1 }
 0x44a   :  { %7777 = vmatmul.f32.vlgmr.msrb.gmra.mxu1 %v17874_v45  ;;  %8027 = vmatpush.msra.mxu2 %v22223_v25  ;;  %v22225_v45 = vand.u32 4294901760, %v18032_v60  ;;  %v22228_v60 = vand.u32 4294901760, %v18095_v31  ;;  %22235 = vst [vmem:[#allocation40_spill] sm:$0xff] %v18466_v62 }
 0x44b   :  { %7978 = vmatpush.msra.mxu1 %v17935_v5  ;;  %8088 = vmatpush.msra.mxu3 %v17960_v44 }
 0x44c   :  { %7940 = vmatpush.msra.mxu0 %v18057_v14  ;;  %8031 = vmatpush.msra.mxu2 %v22224_v2 }
 0x44d   :  { %7980 = vmatpush.msra.mxu1 %v17960_v44  ;;  %8090 = vmatpush.msra.mxu3 %v17980_v18  ;;  %v388_v44 = vld [vmem:[%s21527_s1 + $0xb68] sm:$0xff] }
 0x44e   :  { %7943 = vmatpush.msra.mxu0 %v18076_v27  ;;  %8035 = vmatpush.msra.mxu2 %v22225_v45  ;;  %v390_v27 = vld [vmem:[%s21527_s1 + $0xb78] sm:$0xff]  ;;  %v18349_v32 = vand.u32 4294901760, %v388_v44 }
 0x44f   :  { %7982 = vmatpush.msra.mxu1 %v17980_v18  ;;  %8092 = vmatpush.msra.mxu3 %v17988_v51  ;;  %v22229_v18 = vand.u32 4294901760, %v18110_v41  ;;  %v18329_v14 = vand.u32 4294901760, %v390_v27  ;;  %v378_v45 = vld [vmem:[%s21527_s1 + $0xb18] sm:$0xff] }
 0x450   :  { %7946 = vmatpush.msra.mxu0 %v18095_v31  ;;  %8039 = vmatpush.msra.mxu2 %v22226_v22  ;;  %v22230_v31 = vand.u32 4294901760, %v18127_v61 }
 0x451   :  { %7984 = vmatpush.msra.mxu1 %v17988_v51  ;;  %8094 = vmatpush.msra.mxu3 %v18000_v17  ;;  %v18352_v51 = vsub.f32 %v390_v27, %v18329_v14 }
 0x452   :  { %7949 = vmatpush.msra.mxu0 %v18110_v41  ;;  %8043 = vmatpush.msra.mxu2 %v22227_v58  ;;  %v385_v41 = vld [vmem:[%s21527_s1 + $0xb50] sm:$0xff]  ;;  %v18493_v58 = vand.u32 4294901760, %v379_v37 }
 0x453   :  { %7986 = vmatpush.msra.mxu1 %v18000_v17  ;;  %8096 = vmatpush.msra.mxu3 %v18023_v9  ;;  %v389_v17 = vld [vmem:[%s21527_s1 + $0xb70] sm:$0xff] }
 0x454   :  { %7952 = vmatpush.msra.mxu0 %v18127_v61  ;;  %8047 = vmatpush.msra.mxu2 %v22228_v60  ;;  %v18339_v5 = vand.u32 4294901760, %v389_v17 }
 0x455   :  { %7988 = vmatpush.msra.mxu1 %v18023_v9  ;;  %8098 = vmatpush.msra.mxu3 %v18043_v40  ;;  %v386_v9 = vld [vmem:[%s21527_s1 + $0xb58] sm:$0xff] }
 0x456   :  { %7955 = vmatpush.msra.mxu0 %v18140_v13  ;;  %8051 = vmatpush.msra.mxu2 %v22229_v18  ;;  %v18373_v61 = vand.u32 4294901760, %v386_v9  ;;  %v18497_v18 = vsub.f32 %v381_v11, %v18461_v63 }
 0x457   :  { %7990 = vmatpush.msra.mxu1 %v18043_v40  ;;  %8100 = vmatpush.msra.mxu3 %v18059_v15  ;;  %v22231_v40 = vand.u32 4294901760, %v18140_v13  ;;  %v18379_v13 = vsub.f32 %v388_v44, %v18349_v32  ;;  %v18510_v44 = vand.u32 4294901760, %v378_v45 }
 0x458   :  { %7958 = vmatpush.msra.mxu0 %v18156_v8  ;;  %8055 = vmatpush.msra.mxu2 %v22230_v31  ;;  %v18386_v8 = vand.u32 4294901760, %v385_v41  ;;  %v377_v31 = vld [vmem:[%s21527_s1 + $0xb10] sm:$0xff] }
 0x459   :  { %7992 = vmatpush.msra.mxu1 %v18059_v15  ;;  %8102 = vmatpush.msra.mxu3 %v18078_v29  ;;  %v387_v15 = vld [vmem:[%s21527_s1 + $0xb60] sm:$0xff] }
 0x45a   :  { %7961 = vmatpush.msra.mxu0 %v18172_v1  ;;  %8059 = vmatpush.msra.mxu2 %v22231_v40  ;;  %v18381_v1 = vpop.f32.mrf.mxu0  ;;  %v18419_v21 = vsub.f32 %v385_v41, %v18386_v8 }
 0x45b   :  { %7994 = vmatpush.msra.mxu1 %v18078_v29  ;;  %8104 = vmatpush.msra.mxu3 %v18097_v28  ;;  %v18365_v29 = vsub.f32 %v389_v17, %v18339_v5  ;;  %22232 = vst [vmem:[#allocation37_spill] sm:$0xff] %v18381_v1 }
 0x45c   :  { %7964 = vmatpush.msra.mxu0 %v18193_v47  ;;  %8063 = vmatpush.msra.mxu2 %v7890_v55  ;;  %v21770_v34 = vand.u32 4294901760, %v18419_v21 }
 0x45d   :  { %7996 = vmatpush.msra.mxu1 %v18097_v28  ;;  %8106 = vmatpush.msra.mxu3 %v18112_v42  ;;  %v18362_v28 = vand.u32 4294901760, %v387_v15  ;;  %v21776_v55 = vand.u32 4294901760, %v18365_v29 }
 0x45e   :  { %7967 = vmatpush.msra.mxu0 %v18206_v24  ;;  %8067 = vmatpush.msra.mxu2 %v7896_v7  ;;  %v18401_v7 = vsub.f32 %v386_v9, %v18373_v61  ;;  %v383_v24 = vld [vmem:[%s21527_s1 + $0xb40] sm:$0xff]  ;;  %v8196_v2 = vsub.f32 %v18419_v21, %v21770_v34 }
 0x45f   :  { %7998 = vmatpush.msra.mxu1 %v18112_v42  ;;  %8108 = vmatpush.msra.mxu3 %v18129_v35  ;;  %v21777_v42 = vand.u32 4294901760, %v18352_v51  ;;  %v18395_v47 = vsub.f32 %v387_v15, %v18362_v28  ;;  %v8172_v12 = vsub.f32 %v18365_v29, %v21776_v55 }
 0x460   :  { %7970 = vmatpush.msra.mxu0 %v18220_v57  ;;  %8071 = vmatpush.msra.mxu2 %v7902_v23  ;;  %v21775_v57 = vand.u32 4294901760, %v18379_v13  ;;  %v21771_v43 = vand.u32 4294901760, %v18401_v7  ;;  %v8197_v41 = vand.u32 4294901760, %v8196_v2 }
 0x461   :  { %8000 = vmatpush.msra.mxu1 %v18129_v35  ;;  %8110 = vmatpush.msra.mxu3 %v18142_v38  ;;  %v384_v35 = vld [vmem:[%s21527_s1 + $0xb48] sm:$0xff]  ;;  %v21772_v10 = vand.u32 4294901760, %v18395_v47  ;;  %v8173_v4 = vand.u32 4294901760, %v8172_v12 }
 0x462   :  { %7973 = vmatmul.f32.vlgmr.msra.gmra.mxu0 %v18209_v20  ;;  %8075 = vmatpush.msra.mxu2 %v7908_v16  ;;  %v18411_v23 = vand.u32 4294901760, %v384_v35  ;;  %v18429_v16 = vand.u32 4294901760, %v383_v24  ;;  %v8178_v36 = vsub.f32 %v18379_v13, %v21775_v57  ;;  %v376_v12 = vld [vmem:[%s21527_s1 + $0xb08] sm:$0xff] }
 0x463   :  { %8123 = vmatpush.msrb.mxu0 %v18329_v14  ;;  %8002 = vmatpush.msra.mxu1 %v18142_v38  ;;  %v8166_v38 = vsub.f32 %v18352_v51, %v21777_v42  ;;  %v8184_v19 = vsub.f32 %v18395_v47, %v21772_v10 }
 0x464   :  { %8112 = vmatpush.msra.mxu3 %v18164_v49  ;;  %8079 = vmatpush.msra.mxu2 %v7914_v56  ;;  %v18438_v56 = vpop.f32.mrf.mxu3  ;;  %v18448_v6 = vsub.f32 %v384_v35, %v18411_v23  ;;  %v18464_v54 = vsub.f32 %v383_v24, %v18429_v16  ;;  %v8179_v53 = vand.u32 4294901760, %v8178_v36  ;;  %v18522_v24 = vand.u32 4294901760, %v377_v31 }
 0x465   :  { %8125 = vmatpush.msrb.mxu0 %v18339_v5  ;;  %8004 = vmatpush.msra.mxu1 %v18164_v49  ;;  %v382_v49 = vld [vmem:[%s21527_s1 + $0xb38] sm:$0xff]  ;;  %22234 = vst [vmem:[#allocation39_spill] sm:$0xff] %v18438_v56  ;;  %v8167_v3 = vand.u32 4294901760, %v8166_v38  ;;  %v8185_v22 = vand.u32 4294901760, %v8184_v19  ;;  %v21764_v38 = vand.u32 4294901760, %v18497_v18  ;;  %v18655_v56 = vpop.f32.mrf.mxu0 }
 0x466   :  { %8114 = vmatpush.msra.mxu3 %v18180_v33  ;;  %8081 = vmatmul.f32.vlgmr.msra.gmra.mxu2 %v18182_v26  ;;  %v21768_v25 = vand.u32 4294901760, %v18448_v6  ;;  %v21767_v60 = vand.u32 4294901760, %v18464_v54  ;;  %v406_v19 = vld [vmem:[%s21527_s1 + $0xbf8] sm:$0xff]  ;;  %22236 = vst [vmem:[#allocation41_spill] sm:$0xff] %v18655_v56 }
 0x467   :  { %8127 = vmatpush.msrb.mxu0 %v18349_v32  ;;  %8266 = vmatpush.msrb.mxu2 %v18352_v51 }
 0x468   :  { %8006 = vmatpush.msra.mxu1 %v18180_v33  ;;  %8116 = vmatpush.msra.mxu3 %v18195_v0  ;;  %v18445_v33 = vand.u32 4294901760, %v382_v49  ;;  %v8202_v40 = vsub.f32 %v18448_v6, %v21768_v25  ;;  %v8208_v35 = vsub.f32 %v18464_v54, %v21767_v60 }
 0x469   :  { %8118 = vmatmul.f32.vlgmr.msra.gmra.mxu3 %v18182_v26  ;;  %8129 = vmatpush.msrb.mxu0 %v18362_v28  ;;  %v380_v26 = vld [vmem:[%s21527_s1 + $0xb28] sm:$0xff] }
 0x46a   :  { %8269 = vmatpush.msrb.mxu2 %v18365_v29  ;;  %8319 = vmatpush.msrb.mxu3 %v18329_v14  ;;  %v18478_v50 = vand.u32 4294901760, %v380_v26  ;;  %v18482_v20 = vsub.f32 %v382_v49, %v18445_v33  ;;  %v18526_v49 = vsub.f32 %v379_v37, %v18493_v58  ;;  %v375_v37 = vld [vmem:[%s21527_s1 + $0xb00] sm:$0xff] }
 0x46b   :  { %8008 = vmatpush.msra.mxu1 %v18195_v0  ;;  %8131 = vmatpush.msrb.mxu0 %v18373_v61  ;;  %v8190_v0 = vsub.f32 %v18401_v7, %v21771_v43 }
 0x46c   :  { %8012 = vmatmul.f32.vlgmr.msra.gmra.mxu1 %v7815_v48  ;;  %8272 = vmatpush.msrb.mxu2 %v18379_v13  ;;  %v576_v48 = vld.sshfl [vmem:[#allocation1 + $0x30] sm:$0xff pattern:$0x73625140]  ;;  %v21765_v15 = vand.u32 4294901760, %v18482_v20  ;;  %v18514_v9 = vsub.f32 %v380_v26, %v18478_v50  ;;  %v21769_v2 = vand.u32 4294901760, %v18526_v49 }
 0x46d   :  { %8168 = vmatpush.msrb.mxu1 %v8167_v3  ;;  %8321 = vmatpush.msrb.mxu3 %v18339_v5  ;;  %v8191_v27 = vand.u32 4294901760, %v8190_v0  ;;  %v18504_v17 = vand.u32 4294901760, %v576_v48  ;;  %v8203_v3 = vand.u32 4294901760, %v8202_v40  ;;  %v18549_v0 = vand.u32 4294901760, %v376_v12  ;;  %v405_v40 = vld [vmem:[%s21527_s1 + $0xbf0] sm:$0xff] }
 0x46e   :  { %8133 = vmatpush.msrb.mxu0 %v18386_v8  ;;  %8275 = vmatpush.msrb.mxu2 %v18395_v47  ;;  %v8214_v36 = vsub.f32 %v18482_v20, %v21765_v15  ;;  %v21766_v26 = vand.u32 4294901760, %v18514_v9  ;;  %v18590_v25 = vand.u32 4294901760, %v405_v40 }
 0x46f   :  { %8174 = vmatpush.msrb.mxu1 %v8173_v4  ;;  %8323 = vmatpush.msrb.mxu3 %v18349_v32  ;;  %v18534_v11 = vsub.f32 %v576_v48, %v18504_v17  ;;  %v18542_v4 = vsub.f32 %v378_v45, %v18510_v44  ;;  %v8220_v48 = vsub.f32 %v18497_v18, %v21764_v38 }
 0x470   :  { %8135 = vmatpush.msrb.mxu0 %v18411_v23  ;;  %8278 = vmatpush.msrb.mxu2 %v18401_v7  ;;  %v18560_v45 = vsub.f32 %v377_v31, %v18522_v24  ;;  %v8226_v31 = vsub.f32 %v18514_v9, %v21766_v26  ;;  %v18580_v15 = vsub.f32 %v376_v12, %v18549_v0  ;;  %v403_v12 = vld [vmem:[%s21527_s1 + $0xbe0] sm:$0xff] }
 0x471   :  { %8180 = vmatpush.msrb.mxu1 %v8179_v53  ;;  %8325 = vmatpush.msrb.mxu3 %v18362_v28  ;;  %v8209_v53 = vand.u32 4294901760, %v8208_v35  ;;  %v18574_v35 = vand.u32 4294901760, %v375_v37  ;;  %v21774_v38 = vand.u32 4294901760, %v18542_v4  ;;  %v8232_v26 = vsub.f32 %v18526_v49, %v21769_v2 }
 0x472   :  { %8137 = vmatpush.msrb.mxu0 %v18429_v16  ;;  %8281 = vmatpush.msrb.mxu2 %v18419_v21  ;;  %v21778_v60 = vand.u32 4294901760, %v18560_v45  ;;  %v8227_v2 = vand.u32 4294901760, %v8226_v31 }
 0x473   :  { %8186 = vmatpush.msrb.mxu1 %v8185_v22  ;;  %8327 = vmatpush.msrb.mxu3 %v18373_v61  ;;  %v21773_v22 = vand.u32 4294901760, %v18534_v11  ;;  %v8238_v34 = vsub.f32 %v18542_v4, %v21774_v38  ;;  %v18608_v43 = vsub.f32 %v375_v37, %v18574_v35  ;;  %v8233_v31 = vand.u32 4294901760, %v8232_v26  ;;  %v401_v26 = vld [vmem:[%s21527_s1 + $0xbd0] sm:$0xff] }
 0x474   :  { %8139 = vmatpush.msrb.mxu0 %v18445_v33  ;;  %8284 = vmatpush.msrb.mxu2 %v18448_v6  ;;  %v8244_v37 = vsub.f32 %v18560_v45, %v21778_v60  ;;  %v18625_v38 = vsub.f32 %v405_v40, %v18590_v25  ;;  %v18653_v40 = vand.u32 4294901760, %v401_v26 }
 0x475   :  { %8192 = vmatpush.msrb.mxu1 %v8191_v27  ;;  %8329 = vmatpush.msrb.mxu3 %v18386_v8  ;;  %v18565_v27 = vand.u32 4294901760, %v406_v19 }
 0x476   :  { %8141 = vmatpush.msrb.mxu0 %v18461_v63  ;;  %8287 = vmatpush.msrb.mxu2 %v18464_v54  ;;  %v18687_v56 = vsub.f32 %v401_v26, %v18653_v40 }
 0x477   :  { %8198 = vmatpush.msrb.mxu1 %v8197_v41  ;;  %8331 = vmatpush.msrb.mxu3 %v18411_v23  ;;  %v8215_v41 = vand.u32 4294901760, %v8214_v36  ;;  %v8221_v36 = vand.u32 4294901760, %v8220_v48  ;;  %v18601_v48 = vsub.f32 %v406_v19, %v18565_v27  ;;  %v21779_v19 = vand.u32 4294901760, %v18580_v15 }
 0x478   :  { %8143 = vmatpush.msrb.mxu0 %v18478_v50  ;;  %8290 = vmatpush.msrb.mxu2 %v18482_v20 }
 0x479   :  { %8204 = vmatpush.msrb.mxu1 %v8203_v3  ;;  %8333 = vmatpush.msrb.mxu3 %v18429_v16  ;;  %v404_v3 = vld [vmem:[%s21527_s1 + $0xbe8] sm:$0xff] }
 0x47a   :  { %8145 = vmatpush.msrb.mxu0 %v18493_v58  ;;  %8293 = vmatpush.msrb.mxu2 %v18497_v18  ;;  %v18610_v10 = vand.u32 4294901760, %v404_v3 }
 0x47b   :  { %8210 = vmatpush.msrb.mxu1 %v8209_v53  ;;  %8335 = vmatpush.msrb.mxu3 %v18445_v33  ;;  %v8157_v53 = vsub.f32 %v18534_v11, %v21773_v22  ;;  %v402_v22 = vld [vmem:[%s21527_s1 + $0xbd8] sm:$0xff] }
 0x47c   :  { %8147 = vmatpush.msrb.mxu0 %v18510_v44  ;;  %8296 = vmatpush.msrb.mxu2 %v18514_v9  ;;  %v18630_v42 = vand.u32 4294901760, %v402_v22  ;;  %v18638_v60 = vsub.f32 %v404_v3, %v18610_v10  ;;  %v22239_v3 = vand.u32 4294901760, %v18608_v43 }
 0x47d   :  { %8216 = vmatpush.msrb.mxu1 %v8215_v41  ;;  %8337 = vmatpush.msrb.mxu3 %v18461_v63  ;;  %v18618_v41 = vand.u32 4294901760, %v403_v12  ;;  %v8158_v57 = vand.u32 4294901760, %v8157_v53  ;;  %v8250_v53 = vsub.f32 %v18580_v15, %v21779_v19 }
 0x47e   :  { %8149 = vmatpush.msrb.mxu0 %v18522_v24  ;;  %8299 = vmatpush.msrb.mxu2 %v18526_v49  ;;  %v18662_v30 = vsub.f32 %v402_v22, %v18630_v42 }
 0x47f   :  { %8222 = vmatpush.msrb.mxu1 %v8221_v36  ;;  %8339 = vmatpush.msrb.mxu3 %v18478_v50  ;;  %v8239_v36 = vand.u32 4294901760, %v8238_v34  ;;  %v18646_v55 = vsub.f32 %v403_v12, %v18618_v41  ;;  %v400_v34 = vld [vmem:[%s21527_s1 + $0xbc8] sm:$0xff]  ;;  %v22237_v12 = vand.u32 4294901760, %v18601_v48  ;;  %v8251_v22 = vand.u32 4294901760, %v8250_v53  ;;  %v18691_v53 = vpop.f32.mrf.mxu2 }
 0x480   :  { %8151 = vmatpush.msrb.mxu0 %v18549_v0  ;;  %8302 = vmatpush.msrb.mxu2 %v18542_v4  ;;  %v18673_v62 = vand.u32 4294901760, %v400_v34  ;;  %22242 = vst [vmem:[#allocation42_spill] sm:$0xff] %v18691_v53 }
 0x481   :  { %8228 = vmatpush.msrb.mxu1 %v8227_v2  ;;  %8341 = vmatpush.msrb.mxu3 %v18493_v58  ;;  %v8245_v2 = vand.u32 4294901760, %v8244_v37  ;;  %v8507_v19 = vsub.f32 %v18601_v48, %v22237_v12  ;;  %v22238_v37 = vand.u32 4294901760, %v18352_v51  ;;  %v398_v51 = vld [vmem:[%s21527_s1 + $0xbb8] sm:$0xff] }
 0x482   :  { %8153 = vmatpush.msrb.mxu0 %v18574_v35  ;;  %8305 = vmatpush.msrb.mxu2 %v18560_v45  ;;  %v18706_v52 = vsub.f32 %v400_v34, %v18673_v62  ;;  %v22248_v34 = vand.u32 4294901760, %v18395_v47  ;;  %v395_v47 = vld [vmem:[%s21527_s1 + $0xba0] sm:$0xff] }
 0x483   :  { %8234 = vmatpush.msrb.mxu1 %v8233_v31  ;;  %8343 = vmatpush.msrb.mxu3 %v18510_v44  ;;  %v399_v31 = vld [vmem:[%s21527_s1 + $0xbc0] sm:$0xff]  ;;  %v8508_v12 = vand.u32 4294901760, %v8507_v19  ;;  %v18708_v19 = vand.u32 4294901760, %v398_v51 }
 0x484   :  { %8159 = vmatmul.f32.vlgmr.msrb.gmra.mxu0 %v8158_v57  ;;  %8308 = vmatpush.msrb.mxu2 %v18580_v15  ;;  %v8256_v57 = vsub.f32 %v18608_v43, %v22239_v3  ;;  %v22241_v3 = vand.u32 4294901760, %v18625_v38  ;;  %v18689_v1 = vand.u32 4294901760, %v399_v31 }
 0x485   :  { %8360 = vmatpush.msra.mxu0 %v22238_v37  ;;  %8240 = vmatpush.msrb.mxu1 %v8239_v36  ;;  %v22240_v36 = vand.u32 4294901760, %v18365_v29  ;;  %v22245_v29 = vand.u32 4294901760, %v18646_v55 }
 0x486   :  { %8345 = vmatpush.msrb.mxu3 %v18522_v24  ;;  %8311 = vmatpush.msrb.mxu2 %v18608_v43  ;;  %v8513_v37 = vsub.f32 %v18625_v38, %v22241_v3  ;;  %v8257_v26 = vand.u32 4294901760, %v8256_v57  ;;  %v22244_v3 = vand.u32 4294901760, %v18638_v60  ;;  %v396_v57 = vld [vmem:[%s21527_s1 + $0xba8] sm:$0xff]  ;;  %v18725_v39 = vsub.f32 %v399_v31, %v18689_v1 }
 0x487   :  { %8364 = vmatpush.msra.mxu0 %v22240_v36  ;;  %8246 = vmatpush.msrb.mxu1 %v8245_v2  ;;  %v397_v2 = vld [vmem:[%s21527_s1 + $0xbb0] sm:$0xff]  ;;  %v22243_v36 = vand.u32 4294901760, %v18379_v13  ;;  %v8525_v13 = vsub.f32 %v18646_v55, %v22245_v29  ;;  %v22249_v29 = vand.u32 4294901760, %v18662_v30 }
 0x488   :  { %8347 = vmatpush.msrb.mxu3 %v18549_v0  ;;  %8314 = vmatmul.f32.vlgmr.msrb.gmra.mxu2 %v18534_v11  ;;  %v8519_v53 = vsub.f32 %v18638_v60, %v22244_v3  ;;  %v22247_v3 = vand.u32 4294901760, %v18534_v11  ;;  %v8514_v46 = vand.u32 4294901760, %v8513_v37  ;;  %v18727_v59 = vand.u32 4294901760, %v397_v2 }
 0x489   :  { %8368 = vmatpush.msra.mxu0 %v22243_v36  ;;  %8464 = vmatpush.msra.mxu2 %v18565_v27  ;;  %v18717_v36 = vpop.f32.mrf.mxu3  ;;  %v22250_v11 = vand.u32 4294901760, %v18401_v7  ;;  %v394_v7 = vld [vmem:[%s21527_s1 + $0xb98] sm:$0xff] }
 0x48a   :  { %8252 = vmatpush.msrb.mxu1 %v8251_v22  ;;  %8349 = vmatpush.msrb.mxu3 %v18574_v35  ;;  %22246 = vst [vmem:[#allocation43_spill] sm:$0xff] %v18717_v36  ;;  %v21780_v22 = vand.u32 4294901760, %v18687_v56  ;;  %v8531_v36 = vsub.f32 %v18662_v30, %v22249_v29  ;;  %v8520_v37 = vand.u32 4294901760, %v8519_v53  ;;  %v8526_v29 = vand.u32 4294901760, %v8525_v13 }
 0x48b   :  { %8353 = vmatmul.f32.vlgmr.msrb.gmra.mxu3 %v22247_v3  ;;  %8372 = vmatpush.msra.mxu0 %v22248_v34  ;;  %v18740_v3 = vsub.f32 %v398_v51, %v18708_v19  ;;  %v18742_v34 = vand.u32 4294901760, %v396_v57  ;;  %v22252_v13 = vand.u32 4294901760, %v18419_v21  ;;  %v18772_v53 = vand.u32 4294901760, %v394_v7  ;;  %v393_v21 = vld [vmem:[%s21527_s1 + $0xb90] sm:$0xff] }
 0x48c   :  { %8466 = vmatpush.msra.mxu2 %v18590_v25  ;;  %8509 = vmatpush.msra.mxu3 %v8508_v12  ;;  %v18744_v12 = vpop.f32.mrf.mxu1  ;;  %v8537_v51 = vsub.f32 %v18687_v56, %v21780_v22  ;;  %v8532_v31 = vand.u32 4294901760, %v8531_v36  ;;  %v22254_v36 = vand.u32 4294901760, %v18448_v6  ;;  %v392_v6 = vld [vmem:[%s21527_s1 + $0xb88] sm:$0xff]  ;;  %v22256_v22 = vand.u32 4294901760, %v18464_v54  ;;  %v391_v54 = vld [vmem:[%s21527_s1 + $0xb80] sm:$0xff] }
 0x48d   :  { %8258 = vmatpush.msrb.mxu1 %v8257_v26  ;;  %8376 = vmatpush.msra.mxu0 %v22250_v11  ;;  %22251 = vst [vmem:[#allocation44_spill] sm:$0xff] %v18744_v12  ;;  %v18757_v26 = vsub.f32 %v397_v2, %v18727_v59  ;;  %v18759_v11 = vand.u32 4294901760, %v395_v47  ;;  %v18770_v2 = vsub.f32 %v396_v57, %v18742_v34  ;;  %v22260_v12 = vand.u32 4294901760, %v18497_v18 }
 0x48e   :  { %8260 = vmatmul.f32.vlgmr.msrb.gmra.mxu1 %v18504_v17  ;;  %8468 = vmatpush.msra.mxu2 %v18610_v10  ;;  %v22262_v18 = vand.u32 4294901760, %v18514_v9 }
 0x48f   :  { %8427 = vmatpush.msra.mxu1 %v18329_v14  ;;  %8515 = vmatpush.msra.mxu3 %v8514_v46  ;;  %v22253_v46 = vand.u32 4294901760, %v18706_v52 }
 0x490   :  { %8380 = vmatpush.msra.mxu0 %v22252_v13  ;;  %8470 = vmatpush.msra.mxu2 %v18618_v41  ;;  %v18802_v13 = vsub.f32 %v394_v7, %v18772_v53  ;;  %v22259_v7 = vand.u32 4294901760, %v18757_v26 }
 0x491   :  { %8429 = vmatpush.msra.mxu1 %v18339_v5  ;;  %8521 = vmatpush.msra.mxu3 %v8520_v37  ;;  %v8543_v14 = vsub.f32 %v18706_v52, %v22253_v46  ;;  %v8538_v5 = vand.u32 4294901760, %v8537_v51  ;;  %v22255_v37 = vand.u32 4294901760, %v18725_v39  ;;  %v18786_v46 = vsub.f32 %v395_v47, %v18759_v11 }
 0x492   :  { %8384 = vmatpush.msra.mxu0 %v22254_v36  ;;  %8472 = vmatpush.msra.mxu2 %v18630_v42  ;;  %v577_v36 = vld.sshfl [vmem:[#allocation1 + $0x38] sm:$0xff pattern:$0x73625140]  ;;  %v22257_v51 = vand.u32 4294901760, %v18740_v3 }
 0x493   :  { %8431 = vmatpush.msra.mxu1 %v18349_v32  ;;  %8527 = vmatpush.msra.mxu3 %v8526_v29  ;;  %v8549_v57 = vsub.f32 %v18725_v39, %v22255_v37  ;;  %v18794_v32 = vand.u32 4294901760, %v393_v21  ;;  %v8544_v29 = vand.u32 4294901760, %v8543_v14  ;;  %v8572_v37 = vand.u32 4294901760, %v18786_v46 }
 0x494   :  { %8388 = vmatpush.msra.mxu0 %v22256_v22  ;;  %8474 = vmatpush.msra.mxu2 %v18653_v40  ;;  %v8555_v47 = vsub.f32 %v18740_v3, %v22257_v51  ;;  %v22258_v22 = vand.u32 4294901760, %v18482_v20  ;;  %v8561_v51 = vsub.f32 %v18757_v26, %v22259_v7  ;;  %v8578_v7 = vand.u32 4294901760, %v18802_v13 }
 0x495   :  { %8433 = vmatpush.msra.mxu1 %v18362_v28  ;;  %8533 = vmatpush.msra.mxu3 %v8532_v31  ;;  %v18810_v28 = vand.u32 4294901760, %v392_v6  ;;  %v18812_v31 = vand.u32 4294901760, %v577_v36  ;;  %v8550_v14 = vand.u32 4294901760, %v8549_v57  ;;  %v18823_v20 = vsub.f32 %v393_v21, %v18794_v32 }
 0x496   :  { %8392 = vmatpush.msra.mxu0 %v22258_v22  ;;  %8476 = vmatpush.msra.mxu2 %v18673_v62  ;;  %v18825_v22 = vand.u32 4294901760, %v391_v54 }
 0x497   :  { %8435 = vmatpush.msra.mxu1 %v18373_v61  ;;  %8539 = vmatpush.msra.mxu3 %v8538_v5  ;;  %v8556_v61 = vand.u32 4294901760, %v8555_v47  ;;  %v22261_v5 = vand.u32 4294901760, %v18770_v2  ;;  %v18839_v21 = vsub.f32 %v577_v36, %v18812_v31  ;;  %v22263_v47 = vand.u32 4294901760, %v18526_v49 }
 0x498   :  { %8396 = vmatpush.msra.mxu0 %v22260_v12  ;;  %8478 = vmatpush.msra.mxu2 %v18689_v1  ;;  %v18836_v12 = vsub.f32 %v392_v6, %v18810_v28  ;;  %v8584_v9 = vand.u32 4294901760, %v18823_v20  ;;  %v18850_v6 = vsub.f32 %v391_v54, %v18825_v22  ;;  %v8579_v36 = vsub.f32 %v18802_v13, %v8578_v7 }
 0x499   :  { %8437 = vmatpush.msra.mxu1 %v18386_v8  ;;  %8545 = vmatpush.msra.mxu3 %v8544_v29  ;;  %v8567_v57 = vsub.f32 %v18770_v2, %v22261_v5  ;;  %v8562_v8 = vand.u32 4294901760, %v8561_v51  ;;  %v8573_v29 = vsub.f32 %v18786_v46, %v8572_v37  ;;  %v8497_v51 = vand.u32 4294901760, %v18839_v21 }
 0x49a   :  { %8400 = vmatpush.msra.mxu0 %v22262_v18  ;;  %8480 = vmatpush.msra.mxu2 %v18708_v19  ;;  %v8590_v49 = vand.u32 4294901760, %v18836_v12  ;;  %v8580_v5 = vand.u32 4294901760, %v8579_v36  ;;  %v18900_v36 = vpop.f32.mrf.mxu2 }
 0x49b   :  { %8439 = vmatpush.msra.mxu1 %v18411_v23  ;;  %8551 = vmatpush.msra.mxu3 %v8550_v14  ;;  %v8568_v23 = vand.u32 4294901760, %v8567_v57  ;;  %v22264_v14 = vand.u32 4294901760, %v18542_v4  ;;  %v8574_v54 = vand.u32 4294901760, %v8573_v29  ;;  %v8585_v4 = vsub.f32 %v18823_v20, %v8584_v9  ;;  %v18890_v29 = vpop.f32.mrf.mxu0 }
 0x49c   :  { %8404 = vmatpush.msra.mxu0 %v22263_v47  ;;  %8482 = vmatpush.msra.mxu2 %v18727_v59  ;;  %v22266_v57 = vand.u32 4294901760, %v18580_v15  ;;  %22268 = vst [vmem:[#allocation45_spill] sm:$0xff] %v18890_v29  ;;  %v22269_v47 = vld [vmem:[#allocation5_spill] sm:$0xff] }
 0x49d   :  { %8441 = vmatpush.msra.mxu1 %v18429_v16  ;;  %8557 = vmatpush.msra.mxu3 %v8556_v61  ;;  %v22265_v16 = vand.u32 4294901760, %v18560_v45  ;;  %v8596_v61 = vand.u32 4294901760, %v18850_v6  ;;  %v8498_v45 = vsub.f32 %v18839_v21, %v8497_v51  ;;  %v8586_v15 = vand.u32 4294901760, %v8585_v4  ;;  %22270 = vst [vmem:[#allocation5_spill] sm:$0xff] %v18900_v36  ;;  %v22277_v4 = vld [vmem:[#allocation6_spill] sm:$0xff] }
 0x49e   :  { %8408 = vmatpush.msra.mxu0 %v22264_v14  ;;  %8484 = vmatpush.msra.mxu2 %v18742_v34  ;;  %v22271_v14 = vand.u32 4294901760, %v18601_v48 }
 0x49f   :  { %8443 = vmatpush.msra.mxu1 %v18445_v33  ;;  %8563 = vmatpush.msra.mxu3 %v8562_v8  ;;  %v8591_v33 = vsub.f32 %v18836_v12, %v8590_v49  ;;  %v8597_v18 = vsub.f32 %v18850_v6, %v8596_v61  ;;  %v11551_v8 = vld [vmem:[%s21528_s2] ss:$0 sm:$0xff] }
 0x4a0   :  { %8412 = vmatpush.msra.mxu0 %v22265_v16  ;;  %8486 = vmatpush.msra.mxu2 %v18759_v11  ;;  %v22274_v16 = vand.u32 4294901760, %v18625_v38 }
 0x4a1   :  { %8445 = vmatpush.msra.mxu1 %v18461_v63  ;;  %8569 = vmatpush.msra.mxu3 %v8568_v23  ;;  %v22267_v63 = vand.u32 4294901760, %v18608_v43  ;;  %v8592_v43 = vand.u32 4294901760, %v8591_v33  ;;  %v659_v23 = vadd.f32 %v11551_v8, %v22269_v47 }
 0x4a2   :  { %8416 = vmatpush.msra.mxu0 %v22266_v57  ;;  %8488 = vmatpush.msra.mxu2 %v18772_v53 }
 0x4a3   :  { %8447 = vmatpush.msra.mxu1 %v18478_v50  ;;  %8575 = vmatpush.msra.mxu3 %v8574_v54  ;;  %v8499_v50 = vand.u32 4294901760, %v8498_v45 }
 0x4a4   :  { %8420 = vmatpush.msra.mxu0 %v22267_v63  ;;  %8490 = vmatpush.msra.mxu2 %v18794_v32 }
 0x4a5   :  { %8449 = vmatpush.msra.mxu1 %v18493_v58  ;;  %8581 = vmatpush.msra.mxu3 %v8580_v5  ;;  %v8598_v58 = vand.u32 4294901760, %v8597_v18  ;;  %v22278_v5 = vand.u32 4294901760, %v18646_v55  ;;  %v22290_v18 = vld [vmem:[#allocation11_spill] sm:$0xff] }
 0x4a6   :  { %8422 = vmatmul.f32.vlgmr.msra.gmra.mxu0 %v18504_v17  ;;  %8492 = vmatpush.msra.mxu2 %v18810_v28 }
 0x4a7   :  { %8607 = vmatpush.msrb.mxu0 %v18601_v48  ;;  %8451 = vmatpush.msra.mxu1 %v18510_v44  ;;  %v18906_v44 = vpop.f32.mrf.mxu3  ;;  %v18916_v48 = vpop.f32.mrf.mxu1 }
 0x4a8   :  { %8587 = vmatpush.msra.mxu3 %v8586_v15  ;;  %8494 = vmatpush.msra.mxu2 %v18825_v22  ;;  %22272 = vst [vmem:[#allocation46_spill] sm:$0xff] %v18906_v44  ;;  %v418_v15 = vld [vmem:[%s21527_s1 + $0xc58] sm:$0xff] }
 0x4a9   :  { %8610 = vmatpush.msrb.mxu0 %v18625_v38  ;;  %8453 = vmatpush.msra.mxu1 %v18522_v24  ;;  %v22273_v24 = vld [vmem:[#allocation8_spill] sm:$0xff] }
 0x4aa   :  { %8593 = vmatpush.msra.mxu3 %v8592_v43  ;;  %8500 = vmatmul.f32.vlgmr.msra.gmra.mxu2 %v8499_v50  ;;  %v760_v54 = vadd.f32 %v22273_v24, %v659_v23  ;;  %22275 = vst [vmem:[#allocation8_spill] sm:$0xff] %v18916_v48  ;;  %v22291_v43 = vld [vmem:[#allocation13_spill] sm:$0xff]  ;;  %v22293_v23 = vld [vmem:[#allocation16_spill] sm:$0xff] }
 0x4ab   :  { %8613 = vmatpush.msrb.mxu0 %v18638_v60  ;;  %8701 = vmatpush.msrb.mxu2 %v22271_v14 }
 0x4ac   :  { %8455 = vmatpush.msra.mxu1 %v18549_v0  ;;  %8599 = vmatpush.msra.mxu3 %v8598_v58  ;;  %v22276_v0 = vand.u32 4294901760, %v18638_v60  ;;  %v814_v38 = vadd.f32 %v22277_v4, %v760_v54  ;;  %v22279_v60 = vand.u32 4294901760, %v18662_v30  ;;  %v19026_v58 = vpop.f32.mrf.mxu0 }
 0x4ad   :  { %8601 = vmatmul.f32.vlgmr.msra.gmra.mxu3 %v18812_v31  ;;  %8616 = vmatpush.msrb.mxu0 %v18646_v55  ;;  %v22281_v55 = vand.u32 4294901760, %v18687_v56  ;;  %22292 = vst [vmem:[#allocation6_spill] sm:$0xff] %v19026_v58 }
 0x4ae   :  { %8705 = vmatpush.msrb.mxu2 %v22274_v16  ;;  %8768 = vmatpush.msrb.mxu3 %v18565_v27 }
 0x4af   :  { %8457 = vmatpush.msra.mxu1 %v18574_v35  ;;  %8619 = vmatpush.msrb.mxu0 %v18662_v30  ;;  %v21_v30 = vld [vmem:[%s21526_s0 + $0x30] sm:$0xff]  ;;  %v22284_v35 = vand.u32 4294901760, %v18725_v39 }
 0x4b0   :  { %8459 = vmatmul.f32.vlgmr.msra.gmra.mxu1 %v18504_v17  ;;  %8709 = vmatpush.msrb.mxu2 %v22276_v0  ;;  %v22280_v17 = vld [vmem:[#allocation7_spill] sm:$0xff]  ;;  %578 = vst [vmem:[#allocation1] ss:$4 sm:$0xff] %v21_v30 }
 0x4b1   :  { %8660 = vmatpush.msrb.mxu1 %v18565_v27  ;;  %8770 = vmatpush.msrb.mxu3 %v18590_v25  ;;  %v853_v27 = vadd.f32 %v22280_v17, %v814_v38  ;;  %v22295_v38 = vld [vmem:[#allocation14_spill] sm:$0xff] }
 0x4b2   :  { %8622 = vmatpush.msrb.mxu0 %v18687_v56  ;;  %8713 = vmatpush.msrb.mxu2 %v22278_v5  ;;  %v22283_v56 = vld [vmem:[#allocation9_spill] sm:$0xff] }
 0x4b3   :  { %8662 = vmatpush.msrb.mxu1 %v18590_v25  ;;  %8772 = vmatpush.msrb.mxu3 %v18610_v10  ;;  %v922_v25 = vadd.f32 %v22283_v56, %v853_v27  ;;  %v413_v17 = vld [vmem:[%s21527_s1 + $0xc30] sm:$0xff]  ;;  %v19085_v27 = vpop.f32.mrf.mxu3 }
 0x4b4   :  { %8625 = vmatpush.msrb.mxu0 %v18706_v52  ;;  %8717 = vmatpush.msrb.mxu2 %v22279_v60  ;;  %22296 = vst [vmem:[#allocation9_spill] sm:$0xff] %v19085_v27  ;;  %v19311_v58 = vpop.f32.mrf.mxu0 }
 0x4b5   :  { %8664 = vmatpush.msrb.mxu1 %v18610_v10  ;;  %8774 = vmatpush.msrb.mxu3 %v18618_v41  ;;  %v22282_v10 = vand.u32 4294901760, %v18706_v52  ;;  %v22285_v52 = vand.u32 4294901760, %v18740_v3  ;;  %22310 = vst [vmem:[#allocation13_spill] sm:$0xff] %v19311_v58 }
 0x4b6   :  { %8628 = vmatpush.msrb.mxu0 %v18725_v39  ;;  %8721 = vmatpush.msrb.mxu2 %v22281_v55 }
 0x4b7   :  { %8666 = vmatpush.msrb.mxu1 %v18618_v41  ;;  %8776 = vmatpush.msrb.mxu3 %v18630_v42  ;;  %v22286_v41 = vld [vmem:[#allocation12_spill] sm:$0xff] }
 0x4b8   :  { %8631 = vmatpush.msrb.mxu0 %v18740_v3  ;;  %8725 = vmatpush.msrb.mxu2 %v22282_v10  ;;  %v959_v39 = vadd.f32 %v22286_v41, %v922_v25  ;;  %v421_v3 = vld [vmem:[%s21527_s1 + $0xc70] sm:$0xff]  ;;  %v22297_v41 = vld [vmem:[#allocation15_spill] sm:$0xff] }
 0x4b9   :  { %8668 = vmatpush.msrb.mxu1 %v18630_v42  ;;  %8778 = vmatpush.msrb.mxu3 %v18653_v40  ;;  %v422_v42 = vld [vmem:[%s21527_s1 + $0xc78] sm:$0xff]  ;;  %v18981_v33 = vand.u32 4294901760, %v421_v3 }
 0x4ba   :  { %8634 = vmatpush.msrb.mxu0 %v18757_v26  ;;  %8729 = vmatpush.msrb.mxu2 %v22284_v35  ;;  %v18971_v57 = vand.u32 4294901760, %v422_v42 }
 0x4bb   :  { %8670 = vmatpush.msrb.mxu1 %v18653_v40  ;;  %8780 = vmatpush.msrb.mxu3 %v18673_v62  ;;  %v22287_v40 = vand.u32 4294901760, %v18757_v26  ;;  %v420_v26 = vld [vmem:[%s21527_s1 + $0xc68] sm:$0xff] }
 0x4bc   :  { %8637 = vmatpush.msrb.mxu0 %v18770_v2  ;;  %8733 = vmatpush.msrb.mxu2 %v22285_v52  ;;  %v18995_v63 = vsub.f32 %v422_v42, %v18971_v57  ;;  %v19108_v52 = vand.u32 4294901760, %v413_v17 }
 0x4bd   :  { %8672 = vmatpush.msrb.mxu1 %v18673_v62  ;;  %8782 = vmatpush.msrb.mxu3 %v18689_v1  ;;  %v22288_v62 = vand.u32 4294901760, %v18770_v2  ;;  %v419_v2 = vld [vmem:[%s21527_s1 + $0xc60] sm:$0xff] }
 0x4be   :  { %8640 = vmatpush.msrb.mxu0 %v18786_v46  ;;  %8737 = vmatpush.msrb.mxu2 %v22287_v40  ;;  %v19008_v46 = vsub.f32 %v421_v3, %v18981_v33  ;;  %v19114_v40 = vpop.f32.mrf.mxu1  ;;  %v411_v3 = vld [vmem:[%s21527_s1 + $0xc20] sm:$0xff] }
 0x4bf   :  { %8674 = vmatpush.msrb.mxu1 %v18689_v1  ;;  %8784 = vmatpush.msrb.mxu3 %v18708_v19  ;;  %v22289_v1 = vld [vmem:[#allocation10_spill] sm:$0xff]  ;;  %22298 = vst [vmem:[#allocation12_spill] sm:$0xff] %v19114_v40 }
 0x4c0   :  { %8643 = vmatpush.msrb.mxu0 %v18802_v13  ;;  %8741 = vmatpush.msrb.mxu2 %v22288_v62  ;;  %v1000_v45 = vadd.f32 %v22289_v1, %v959_v39  ;;  %v19017_v13 = vand.u32 4294901760, %v418_v15 }
 0x4c1   :  { %8676 = vmatpush.msrb.mxu1 %v18708_v19  ;;  %8786 = vmatpush.msrb.mxu3 %v18727_v59  ;;  %v18992_v19 = vand.u32 4294901760, %v420_v26 }
 0x4c2   :  { %8646 = vmatpush.msrb.mxu0 %v18823_v20  ;;  %8745 = vmatpush.msrb.mxu2 %v8572_v37  ;;  %v417_v37 = vld [vmem:[%s21527_s1 + $0xc50] sm:$0xff]  ;;  %v1101_v8 = vadd.f32 %v22290_v18, %v1000_v45 }
 0x4c3   :  { %8678 = vmatpush.msrb.mxu1 %v18727_v59  ;;  %8788 = vmatpush.msrb.mxu3 %v18742_v34  ;;  %v19005_v59 = vand.u32 4294901760, %v419_v2  ;;  %v19031_v20 = vand.u32 4294901760, %v417_v37  ;;  %v22299_v45 = vld [vmem:[#allocation17_spill] sm:$0xff] }
 0x4c4   :  { %8649 = vmatpush.msrb.mxu0 %v18836_v12  ;;  %8749 = vmatpush.msrb.mxu2 %v8578_v7  ;;  %v19023_v7 = vsub.f32 %v420_v26, %v18992_v19  ;;  %v1155_v50 = vadd.f32 %v22291_v43, %v1101_v8  ;;  %v19047_v12 = vsub.f32 %v418_v15, %v19017_v13  ;;  %v19142_v8 = vand.u32 4294901760, %v411_v3 }
 0x4c5   :  { %8680 = vmatpush.msrb.mxu1 %v18742_v34  ;;  %8790 = vmatpush.msrb.mxu3 %v18759_v11  ;;  %v21794_v34 = vand.u32 4294901760, %v18995_v63  ;;  %v19040_v47 = vsub.f32 %v419_v2, %v19005_v59  ;;  %v19065_v54 = vsub.f32 %v417_v37, %v19031_v20  ;;  %v410_v37 = vld [vmem:[%s21527_s1 + $0xc18] sm:$0xff] }
 0x4c6   :  { %8652 = vmatpush.msrb.mxu0 %v18850_v6  ;;  %8753 = vmatpush.msrb.mxu2 %v8584_v9  ;;  %v21793_v9 = vand.u32 4294901760, %v19008_v46  ;;  %v1194_v14 = vadd.f32 %v22293_v23, %v1155_v50  ;;  %v21790_v6 = vand.u32 4294901760, %v19023_v7  ;;  %v21787_v60 = vand.u32 4294901760, %v19047_v12 }
 0x4c7   :  { %8682 = vmatpush.msrb.mxu1 %v18759_v11  ;;  %8792 = vmatpush.msrb.mxu3 %v18772_v53  ;;  %v416_v11 = vld [vmem:[%s21527_s1 + $0xc48] sm:$0xff]  ;;  %v21788_v4 = vand.u32 4294901760, %v19040_v47  ;;  %v21785_v56 = vand.u32 4294901760, %v19065_v54  ;;  %v19146_v50 = vsub.f32 %v413_v17, %v19108_v52 }
 0x4c8   :  { %8655 = vmatmul.f32.vlgmr.msrb.gmra.mxu0 %v18839_v21  ;;  %8757 = vmatpush.msrb.mxu2 %v8590_v49  ;;  %v415_v49 = vld [vmem:[%s21527_s1 + $0xc40] sm:$0xff]  ;;  %v19057_v24 = vand.u32 4294901760, %v416_v11  ;;  %v8854_v16 = vsub.f32 %v19008_v46, %v21793_v9  ;;  %v1263_v5 = vadd.f32 %v22295_v38, %v1194_v14  ;;  %v8860_v30 = vsub.f32 %v19023_v7, %v21790_v6  ;;  %v22307_v9 = vld [vmem:[#allocation22_spill] sm:$0xff] }
 0x4c9   :  { %8805 = vmatpush.msra.mxu0 %v18971_v57  ;;  %8684 = vmatpush.msrb.mxu1 %v18772_v53  ;;  %v8848_v53 = vsub.f32 %v18995_v63, %v21794_v34  ;;  %v19075_v0 = vand.u32 4294901760, %v415_v49  ;;  %v8866_v35 = vsub.f32 %v19040_v47, %v21788_v4  ;;  %v8878_v15 = vsub.f32 %v19065_v54, %v21785_v56 }
 0x4ca   :  { %8794 = vmatpush.msrb.mxu3 %v18794_v32  ;;  %8761 = vmatpush.msrb.mxu2 %v8596_v61  ;;  %v19060_v61 = vpop.f32.mrf.mxu2  ;;  %v19095_v10 = vsub.f32 %v416_v11, %v19057_v24  ;;  %v8855_v25 = vand.u32 4294901760, %v8854_v16  ;;  %v1300_v39 = vadd.f32 %v22297_v41, %v1263_v5  ;;  %v8861_v62 = vand.u32 4294901760, %v8860_v30  ;;  %v22300_v11 = vld [vmem:[#allocation20_spill] sm:$0xff]  ;;  %v22301_v41 = vld [vmem:[#allocation18_spill] sm:$0xff] }
 0x4cb   :  { %8807 = vmatpush.msra.mxu0 %v18981_v33  ;;  %8686 = vmatpush.msrb.mxu1 %v18794_v32  ;;  %22294 = vst [vmem:[#allocation7_spill] sm:$0xff] %v19060_v61  ;;  %v414_v32 = vld [vmem:[%s21527_s1 + $0xc38] sm:$0xff]  ;;  %v8849_v55 = vand.u32 4294901760, %v8848_v53  ;;  %v19111_v42 = vsub.f32 %v415_v49, %v19075_v0  ;;  %v8867_v18 = vand.u32 4294901760, %v8866_v35  ;;  %v409_v49 = vld [vmem:[%s21527_s1 + $0xc10] sm:$0xff]  ;;  %v19160_v16 = vand.u32 4294901760, %v410_v37 }
 0x4cc   :  { %8796 = vmatpush.msrb.mxu3 %v18810_v28  ;;  %8763 = vmatmul.f32.vlgmr.msrb.gmra.mxu2 %v18812_v31  ;;  %v21784_v1 = vand.u32 4294901760, %v19095_v10  ;;  %v1341_v2 = vadd.f32 %v22299_v45, %v1300_v39  ;;  %v8879_v17 = vand.u32 4294901760, %v8878_v15  ;;  %v19172_v30 = vand.u32 4294901760, %v409_v49  ;;  %v438_v15 = vld [vmem:[%s21527_s1 + $0xcf8] sm:$0xff] }
 0x4cd   :  { %8809 = vmatpush.msra.mxu0 %v18992_v19  ;;  %8948 = vmatpush.msra.mxu2 %v18995_v63  ;;  %v21783_v43 = vand.u32 4294901760, %v19111_v42  ;;  %v19176_v35 = vsub.f32 %v411_v3, %v19142_v8  ;;  %v22309_v61 = vld [vmem:[#allocation23_spill] sm:$0xff] }
 0x4ce   :  { %8688 = vmatpush.msrb.mxu1 %v18810_v28  ;;  %8798 = vmatpush.msrb.mxu3 %v18825_v22  ;;  %v19092_v28 = vand.u32 4294901760, %v414_v32  ;;  %v1442_v23 = vadd.f32 %v22300_v11, %v1341_v2  ;;  %v19193_v2 = vsub.f32 %v410_v37, %v19160_v16 }
 0x4cf   :  { %8800 = vmatmul.f32.vlgmr.msrb.gmra.mxu3 %v18812_v31  ;;  %8811 = vmatpush.msra.mxu0 %v19005_v59  ;;  %v412_v31 = vld [vmem:[%s21527_s1 + $0xc28] sm:$0xff] }
 0x4d0   :  { %8951 = vmatpush.msra.mxu2 %v19008_v46  ;;  %9001 = vmatpush.msra.mxu3 %v18971_v57  ;;  %v19126_v26 = vand.u32 4294901760, %v412_v31  ;;  %v19130_v21 = vsub.f32 %v414_v32, %v19092_v28  ;;  %v8884_v32 = vsub.f32 %v19095_v10, %v21784_v1  ;;  %v1496_v39 = vadd.f32 %v22301_v41, %v1442_v23 }
 0x4d1   :  { %8690 = vmatpush.msrb.mxu1 %v18825_v22  ;;  %8813 = vmatpush.msra.mxu0 %v19017_v13  ;;  %v8872_v22 = vsub.f32 %v19047_v12, %v21787_v60  ;;  %v21789_v23 = vand.u32 4294901760, %v19176_v35  ;;  %v22306_v60 = vld [vmem:[#allocation24_spill] sm:$0xff] }
 0x4d2   :  { %8694 = vmatmul.f32.vlgmr.msrb.gmra.mxu1 %v8497_v51  ;;  %8954 = vmatpush.msra.mxu2 %v19023_v7  ;;  %v580_v51 = vld.sshfl [vmem:[#allocation1] sm:$0xff pattern:$0x73625140]  ;;  %v21781_v38 = vand.u32 4294901760, %v19130_v21  ;;  %v19164_v5 = vsub.f32 %v412_v31, %v19126_v26  ;;  %v408_v31 = vld [vmem:[%s21527_s1 + $0xc08] sm:$0xff]  ;;  %v19349_v36 = vpop.f32.mrf.mxu2 }
 0x4d3   :  { %8850 = vmatpush.msra.mxu1 %v8849_v55  ;;  %9003 = vmatpush.msra.mxu3 %v18981_v33  ;;  %v8873_v14 = vand.u32 4294901760, %v8872_v22  ;;  %v19154_v53 = vand.u32 4294901760, %v580_v51  ;;  %v8890_v55 = vsub.f32 %v19111_v42, %v21783_v43  ;;  %v22305_v43 = vld [vmem:[#allocation21_spill] sm:$0xff]  ;;  %22319 = vst [vmem:[#allocation14_spill] sm:$0xff] %v19349_v36 }
 0x4d4   :  { %8815 = vmatpush.msra.mxu0 %v19031_v20  ;;  %8957 = vmatpush.msra.mxu2 %v19040_v47  ;;  %v8896_v3 = vsub.f32 %v19130_v21, %v21781_v38  ;;  %v21786_v45 = vand.u32 4294901760, %v19164_v5  ;;  %v19217_v38 = vand.u32 4294901760, %v438_v15 }
 0x4d5   :  { %8856 = vmatpush.msra.mxu1 %v8855_v25  ;;  %9005 = vmatpush.msra.mxu3 %v18992_v19  ;;  %v21782_v25 = vand.u32 4294901760, %v19146_v50  ;;  %v19185_v22 = vsub.f32 %v580_v51, %v19154_v53  ;;  %v19200_v51 = vand.u32 4294901760, %v408_v31  ;;  %v8891_v11 = vand.u32 4294901760, %v8890_v55  ;;  %v437_v55 = vld [vmem:[%s21527_s1 + $0xcf0] sm:$0xff] }
 0x4d6   :  { %8817 = vmatpush.msra.mxu0 %v19057_v24  ;;  %8960 = vmatpush.msra.mxu2 %v19047_v12  ;;  %22303 = vst [vmem:[#allocation10_spill] sm:$0xff] %v19217_v38 }
 0x4d7   :  { %8862 = vmatpush.msra.mxu1 %v8861_v62  ;;  %9007 = vmatpush.msra.mxu3 %v19005_v59  ;;  %v8885_v62 = vand.u32 4294901760, %v8884_v32  ;;  %v8902_v37 = vsub.f32 %v19146_v50, %v21782_v25  ;;  %v22302_v32 = vld [vmem:[#allocation19_spill] sm:$0xff]  ;;  %v8897_v25 = vand.u32 4294901760, %v8896_v3  ;;  %v19233_v56 = vsub.f32 %v408_v31, %v19200_v51 }
 0x4d8   :  { %8819 = vmatpush.msra.mxu0 %v19075_v0  ;;  %8963 = vmatpush.msra.mxu2 %v19065_v54  ;;  %v1535_v41 = vadd.f32 %v22302_v32, %v1496_v39  ;;  %v21792_v32 = vand.u32 4294901760, %v19193_v2  ;;  %v435_v31 = vld [vmem:[%s21527_s1 + $0xce0] sm:$0xff] }
 0x4d9   :  { %8868 = vmatpush.msra.mxu1 %v8867_v18  ;;  %9009 = vmatpush.msra.mxu3 %v19017_v13  ;;  %v407_v18 = vld [vmem:[%s21527_s1 + $0xc00] sm:$0xff]  ;;  %v8903_v3 = vand.u32 4294901760, %v8902_v37  ;;  %v19255_v37 = vsub.f32 %v438_v15, %v19217_v38  ;;  %v19272_v15 = vand.u32 4294901760, %v435_v31 }
 0x4da   :  { %8821 = vmatpush.msra.mxu0 %v19092_v28  ;;  %8966 = vmatpush.msra.mxu2 %v19095_v10  ;;  %v19226_v39 = vand.u32 4294901760, %v407_v18  ;;  %v1604_v1 = vadd.f32 %v22305_v43, %v1535_v41  ;;  %v19243_v41 = vand.u32 4294901760, %v437_v55  ;;  %v8920_v6 = vsub.f32 %v19193_v2, %v21792_v32 }
 0x4db   :  { %8874 = vmatpush.msra.mxu1 %v8873_v14  ;;  %9011 = vmatpush.msra.mxu3 %v19031_v20  ;;  %v19211_v14 = vsub.f32 %v409_v49, %v19172_v30  ;;  %v8908_v49 = vsub.f32 %v19164_v5, %v21786_v45  ;;  %v8914_v45 = vsub.f32 %v19176_v35, %v21789_v23 }
 0x4dc   :  { %8823 = vmatpush.msra.mxu0 %v19108_v52  ;;  %8969 = vmatpush.msra.mxu2 %v19111_v42  ;;  %22304 = vst [vmem:[#allocation11_spill] sm:$0xff] %v19226_v39  ;;  %v1641_v4 = vadd.f32 %v22306_v60, %v1604_v1  ;;  %v19262_v60 = vsub.f32 %v407_v18, %v19226_v39 }
 0x4dd   :  { %8880 = vmatpush.msra.mxu1 %v8879_v17  ;;  %9013 = vmatpush.msra.mxu3 %v19057_v24  ;;  %v21791_v17 = vand.u32 4294901760, %v19185_v22  ;;  %v21795_v43 = vand.u32 4294901760, %v19211_v14  ;;  %v8909_v23 = vand.u32 4294901760, %v8908_v49  ;;  %v8915_v49 = vand.u32 4294901760, %v8914_v45  ;;  %v433_v45 = vld [vmem:[%s21527_s1 + $0xcd0] sm:$0xff] }
 0x4de   :  { %8825 = vmatpush.msra.mxu0 %v19126_v26  ;;  %8972 = vmatpush.msra.mxu2 %v19130_v21  ;;  %v19279_v32 = vsub.f32 %v437_v55, %v19243_v41  ;;  %v1682_v34 = vadd.f32 %v22307_v9, %v1641_v4  ;;  %v8921_v55 = vand.u32 4294901760, %v8920_v6  ;;  %v22308_v4 = vand.u32 4294901760, %v19233_v56  ;;  %v432_v6 = vld [vmem:[%s21527_s1 + $0xcc8] sm:$0xff] }
 0x4df   :  { %8886 = vmatpush.msra.mxu1 %v8885_v62  ;;  %9015 = vmatpush.msra.mxu3 %v19075_v0  ;;  %v436_v62 = vld [vmem:[%s21527_s1 + $0xce8] sm:$0xff]  ;;  %v8926_v18 = vsub.f32 %v19211_v14, %v21795_v43  ;;  %v19301_v27 = vsub.f32 %v435_v31, %v19272_v15  ;;  %v19308_v43 = vand.u32 4294901760, %v433_v45  ;;  %v22311_v31 = vand.u32 4294901760, %v19255_v37 }
 0x4e0   :  { %8827 = vmatpush.msra.mxu0 %v19142_v8  ;;  %8975 = vmatpush.msra.mxu2 %v19146_v50  ;;  %v19264_v1 = vand.u32 4294901760, %v436_v62  ;;  %v1783_v40 = vadd.f32 %v22309_v61, %v1682_v34  ;;  %v22313_v34 = vand.u32 4294901760, %v19262_v60  ;;  %v19329_v58 = vand.u32 4294901760, %v432_v6 }
 0x4e1   :  { %8892 = vmatpush.msra.mxu1 %v8891_v11  ;;  %9017 = vmatpush.msra.mxu3 %v19092_v28  ;;  %v8839_v11 = vsub.f32 %v19185_v22, %v21791_v17  ;;  %v434_v17 = vld [vmem:[%s21527_s1 + $0xcd8] sm:$0xff] }
 0x4e2   :  { %8829 = vmatpush.msra.mxu0 %v19160_v16  ;;  %8978 = vmatpush.msra.mxu2 %v19164_v5  ;;  %v19293_v9 = vsub.f32 %v436_v62, %v19264_v1  ;;  %v22312_v62 = vand.u32 4294901760, %v18995_v63  ;;  %v8938_v61 = vsub.f32 %v19262_v60, %v22313_v34  ;;  %22314 = vst [vmem:[#allocation16_spill] sm:$0xff] %v19329_v58  ;;  %v430_v63 = vld [vmem:[%s21527_s1 + $0xcb8] sm:$0xff] }
 0x4e3   :  { %8898 = vmatpush.msra.mxu1 %v8897_v25  ;;  %9019 = vmatpush.msra.mxu3 %v19108_v52  ;;  %v8840_v25 = vand.u32 4294901760, %v8839_v11  ;;  %v8932_v11 = vsub.f32 %v19233_v56, %v22308_v4  ;;  %v9189_v4 = vsub.f32 %v19255_v37, %v22311_v31  ;;  %v22315_v31 = vld [vmem:[#allocation25_spill] sm:$0xff]  ;;  %v19364_v36 = vsub.f32 %v432_v6, %v19329_v58 }
 0x4e4   :  { %8831 = vmatpush.msra.mxu0 %v19172_v30  ;;  %8981 = vmatpush.msra.mxu2 %v19176_v35  ;;  %v1837_v44 = vadd.f32 %v22315_v31, %v1783_v40  ;;  %v19344_v40 = vsub.f32 %v433_v45, %v19308_v43  ;;  %v22320_v45 = vand.u32 4294901760, %v19023_v7  ;;  %v22325_v6 = vand.u32 4294901760, %v19040_v47  ;;  %v427_v47 = vld [vmem:[%s21527_s1 + $0xca0] sm:$0xff] }
 0x4e5   :  { %8904 = vmatpush.msra.mxu1 %v8903_v3  ;;  %9021 = vmatpush.msra.mxu3 %v19126_v26  ;;  %v19285_v3 = vand.u32 4294901760, %v434_v17 }
 0x4e6   :  { %8833 = vmatpush.msra.mxu0 %v19200_v51  ;;  %8984 = vmatpush.msra.mxu2 %v19193_v2 }
 0x4e7   :  { %8910 = vmatpush.msra.mxu1 %v8909_v23  ;;  %9023 = vmatpush.msra.mxu3 %v19142_v8  ;;  %v8927_v23 = vand.u32 4294901760, %v8926_v18  ;;  %v431_v18 = vld [vmem:[%s21527_s1 + $0xcc0] sm:$0xff] }
 0x4e8   :  { %8835 = vmatpush.msra.mxu0 %v19226_v39  ;;  %8987 = vmatpush.msra.mxu2 %v19211_v14  ;;  %v19346_v31 = vand.u32 4294901760, %v431_v18 }
 0x4e9   :  { %8916 = vmatpush.msra.mxu1 %v8915_v49  ;;  %9025 = vmatpush.msra.mxu3 %v19160_v16  ;;  %v19318_v49 = vsub.f32 %v434_v17, %v19285_v3  ;;  %v8933_v17 = vand.u32 4294901760, %v8932_v11  ;;  %v22318_v11 = vld [vmem:[#allocation28_spill] sm:$0xff] }
 0x4ea   :  { %8841 = vmatmul.f32.vlgmr.msra.gmra.mxu0 %v8840_v25  ;;  %8990 = vmatpush.msra.mxu2 %v19233_v56  ;;  %v1876_v25 = vadd.f32 %v22318_v11, %v1837_v44  ;;  %v22321_v44 = vand.u32 4294901760, %v19293_v9  ;;  %v19383_v29 = vsub.f32 %v431_v18, %v19346_v31 }
 0x4eb   :  { %9042 = vmatpush.msrb.mxu0 %v22312_v62  ;;  %8922 = vmatpush.msra.mxu1 %v8921_v55  ;;  %v22316_v55 = vand.u32 4294901760, %v19008_v46  ;;  %v22317_v62 = vand.u32 4294901760, %v19279_v32  ;;  %v9190_v46 = vand.u32 4294901760, %v9189_v4  ;;  %v19366_v4 = vand.u32 4294901760, %v430_v63 }
 0x4ec   :  { %9027 = vmatpush.msra.mxu3 %v19172_v30  ;;  %8993 = vmatpush.msra.mxu2 %v19262_v60  ;;  %v9201_v11 = vsub.f32 %v19293_v9, %v22321_v44  ;;  %v22324_v44 = vand.u32 4294901760, %v19185_v22 }
 0x4ed   :  { %9046 = vmatpush.msrb.mxu0 %v22316_v55  ;;  %8928 = vmatpush.msra.mxu1 %v8927_v23  ;;  %v9195_v34 = vsub.f32 %v19279_v32, %v22317_v62  ;;  %v429_v55 = vld [vmem:[%s21527_s1 + $0xcb0] sm:$0xff]  ;;  %v8939_v62 = vand.u32 4294901760, %v8938_v61  ;;  %v22322_v23 = vand.u32 4294901760, %v19301_v27  ;;  %v428_v61 = vld [vmem:[%s21527_s1 + $0xca8] sm:$0xff] }
 0x4ee   :  { %9029 = vmatpush.msra.mxu3 %v19200_v51  ;;  %8996 = vmatmul.f32.vlgmr.msra.gmra.mxu2 %v19185_v22  ;;  %v9202_v18 = vand.u32 4294901760, %v9201_v11 }
 0x4ef   :  { %9050 = vmatpush.msrb.mxu0 %v22320_v45  ;;  %9146 = vmatpush.msrb.mxu2 %v19217_v38  ;;  %v9207_v7 = vsub.f32 %v19301_v27, %v22322_v23  ;;  %v19375_v45 = vpop.f32.mrf.mxu3  ;;  %v9196_v48 = vand.u32 4294901760, %v9195_v34  ;;  %v22326_v23 = vld [vmem:[#allocation26_spill] sm:$0xff]  ;;  %v22328_v34 = vand.u32 4294901760, %v19047_v12 }
 0x4f0   :  { %8934 = vmatpush.msra.mxu1 %v8933_v17  ;;  %9031 = vmatpush.msra.mxu3 %v19226_v39  ;;  %22323 = vst [vmem:[#allocation15_spill] sm:$0xff] %v19375_v45  ;;  %v21799_v17 = vand.u32 4294901760, %v19344_v40  ;;  %v19385_v39 = vand.u32 4294901760, %v429_v55  ;;  %v1945_v38 = vadd.f32 %v22326_v23, %v1876_v25  ;;  %v22327_v45 = vand.u32 4294901760, %v19318_v49  ;;  %v426_v12 = vld [vmem:[%s21527_s1 + $0xc98] sm:$0xff] }
 0x4f1   :  { %9035 = vmatmul.f32.vlgmr.msra.gmra.mxu3 %v22324_v44  ;;  %9054 = vmatpush.msrb.mxu0 %v22325_v6  ;;  %v19399_v25 = vsub.f32 %v430_v63, %v19366_v4  ;;  %v19401_v6 = vand.u32 4294901760, %v428_v61  ;;  %v19418_v23 = vand.u32 4294901760, %v427_v47  ;;  %v22331_v44 = vand.u32 4294901760, %v19065_v54  ;;  %v425_v54 = vld [vmem:[%s21527_s1 + $0xc90] sm:$0xff] }
 0x4f2   :  { %9148 = vmatpush.msrb.mxu2 %v19243_v41  ;;  %9191 = vmatpush.msrb.mxu3 %v9190_v46  ;;  %v9213_v22 = vsub.f32 %v19318_v49, %v22327_v45  ;;  %v19403_v46 = vpop.f32.mrf.mxu1  ;;  %v9208_v45 = vand.u32 4294901760, %v9207_v7  ;;  %v9219_v63 = vsub.f32 %v19344_v40, %v21799_v17  ;;  %v19416_v11 = vsub.f32 %v429_v55, %v19385_v39 }
 0x4f3   :  { %8940 = vmatpush.msra.mxu1 %v8939_v62  ;;  %9058 = vmatpush.msrb.mxu0 %v22328_v34  ;;  %22329 = vst [vmem:[#allocation17_spill] sm:$0xff] %v19403_v46  ;;  %v22330_v34 = vld [vmem:[#allocation27_spill] sm:$0xff]  ;;  %v21800_v55 = vand.u32 4294901760, %v19399_v25  ;;  %v19430_v62 = vsub.f32 %v428_v61, %v19401_v6  ;;  %v19432_v46 = vand.u32 4294901760, %v426_v12  ;;  %v22335_v61 = vand.u32 4294901760, %v19383_v29 }
 0x4f4   :  { %8942 = vmatmul.f32.vlgmr.msra.gmra.mxu1 %v19154_v53  ;;  %9150 = vmatpush.msrb.mxu2 %v19264_v1  ;;  %v1982_v7 = vadd.f32 %v22330_v34, %v1945_v38  ;;  %v22333_v38 = vld [vmem:[#allocation29_spill] sm:$0xff] }
 0x4f5   :  { %9109 = vmatpush.msrb.mxu1 %v18971_v57  ;;  %9197 = vmatpush.msrb.mxu3 %v9196_v48  ;;  %v9214_v57 = vand.u32 4294901760, %v9213_v22  ;;  %v22332_v48 = vand.u32 4294901760, %v19364_v36  ;;  %v19464_v34 = vsub.f32 %v426_v12, %v19432_v46  ;;  %v22339_v12 = vand.u32 4294901760, %v19416_v11 }
 0x4f6   :  { %9062 = vmatpush.msrb.mxu0 %v22331_v44  ;;  %9152 = vmatpush.msrb.mxu2 %v19272_v15  ;;  %v2023_v22 = vadd.f32 %v22333_v38, %v1982_v7  ;;  %v9231_v44 = vsub.f32 %v19383_v29, %v22335_v61  ;;  %v581_v7 = vld.sshfl [vmem:[#allocation1 + $0x8] sm:$0xff pattern:$0x73625140] }
 0x4f7   :  { %9111 = vmatpush.msrb.mxu1 %v18981_v33  ;;  %9203 = vmatpush.msrb.mxu3 %v9202_v18  ;;  %v9225_v17 = vsub.f32 %v19364_v36, %v22332_v48  ;;  %v22334_v33 = vand.u32 4294901760, %v19095_v10  ;;  %v9220_v18 = vand.u32 4294901760, %v9219_v63  ;;  %v19447_v48 = vsub.f32 %v427_v47, %v19418_v23  ;;  %v424_v10 = vld [vmem:[%s21527_s1 + $0xc88] sm:$0xff] }
 0x4f8   :  { %9154 = vmatpush.msrb.mxu2 %v19285_v3  ;;  %v22336_v38 = vld [vmem:[#allocation32_spill] sm:$0xff]  ;;  %v9237_v47 = vsub.f32 %v19399_v25, %v21800_v55  ;;  %v22340_v55 = vld [vmem:[#allocation30_spill] sm:$0xff] }
 0x4f9   :  { %9066 = vmatpush.msrb.mxu0 %v22334_v33  ;;  %9113 = vmatpush.msrb.mxu1 %v18992_v19  ;;  %v2124_v33 = vadd.f32 %v22336_v38, %v2023_v22  ;;  %v22337_v19 = vand.u32 4294901760, %v19111_v42  ;;  %v9226_v63 = vand.u32 4294901760, %v9225_v17  ;;  %v423_v42 = vld [vmem:[%s21527_s1 + $0xc80] sm:$0xff]  ;;  %v22338_v22 = vand.u32 4294901760, %v19130_v21 }
 0x4fa   :  { %9209 = vmatpush.msrb.mxu3 %v9208_v45  ;;  %9156 = vmatpush.msrb.mxu2 %v19308_v43  ;;  %v19456_v45 = vand.u32 4294901760, %v425_v54  ;;  %v19474_v17 = vand.u32 4294901760, %v581_v7  ;;  %v9243_v38 = vsub.f32 %v19416_v11, %v22339_v12  ;;  %v22341_v21 = vand.u32 4294901760, %v19146_v50 }
 0x4fb   :  { %9070 = vmatpush.msrb.mxu0 %v22337_v19  ;;  %9115 = vmatpush.msrb.mxu1 %v19005_v59  ;;  %v19472_v59 = vand.u32 4294901760, %v424_v10  ;;  %v9254_v19 = vand.u32 4294901760, %v19447_v48  ;;  %v2178_v61 = vadd.f32 %v22340_v55, %v2124_v33  ;;  %v9260_v55 = vand.u32 4294901760, %v19464_v34 }
 0x4fc   :  { %9215 = vmatpush.msrb.mxu3 %v9214_v57  ;;  %9158 = vmatpush.msrb.mxu2 %v19329_v58  ;;  %v9232_v57 = vand.u32 4294901760, %v9231_v44  ;;  %v19488_v58 = vand.u32 4294901760, %v423_v42  ;;  %v22343_v50 = vand.u32 4294901760, %v19164_v5  ;;  %v19502_v33 = vsub.f32 %v581_v7, %v19474_v17 }
 0x4fd   :  { %9074 = vmatpush.msrb.mxu0 %v22338_v22  ;;  %9117 = vmatpush.msrb.mxu1 %v19017_v13  ;;  %v19486_v22 = vsub.f32 %v425_v54, %v19456_v45  ;;  %v9238_v13 = vand.u32 4294901760, %v9237_v47  ;;  %v19499_v54 = vsub.f32 %v424_v10, %v19472_v59  ;;  %v22344_v47 = vld [vmem:[#allocation31_spill] sm:$0xff]  ;;  %v22345_v5 = vand.u32 4294901760, %v19176_v35 }
 0x4fe   :  { %9221 = vmatpush.msrb.mxu3 %v9220_v18  ;;  %9160 = vmatpush.msrb.mxu2 %v19346_v31  ;;  %v22342_v18 = vand.u32 4294901760, %v19430_v62  ;;  %v2217_v12 = vadd.f32 %v22344_v47, %v2178_v61  ;;  %v19514_v7 = vsub.f32 %v423_v42, %v19488_v58  ;;  %v22347_v35 = vand.u32 4294901760, %v19193_v2 }
 0x4ff   :  { %9078 = vmatpush.msrb.mxu0 %v22341_v21  ;;  %9119 = vmatpush.msrb.mxu1 %v19031_v20  ;;  %v9244_v20 = vand.u32 4294901760, %v9243_v38  ;;  %v9266_v10 = vand.u32 4294901760, %v19486_v22  ;;  %v22346_v38 = vld [vmem:[#allocation33_spill] sm:$0xff]  ;;  %v9272_v21 = vand.u32 4294901760, %v19499_v54  ;;  %v9179_v42 = vand.u32 4294901760, %v19502_v33 }
 0x500   :  { %9227 = vmatpush.msrb.mxu3 %v9226_v63  ;;  %v9249_v44 = vsub.f32 %v19430_v62, %v22342_v18  ;;  %9162 = vmatpush.msrb.mxu2 %v19366_v4  ;;  %v9255_v63 = vsub.f32 %v19447_v48, %v9254_v19  ;;  %v2286_v61 = vadd.f32 %v22346_v38, %v2217_v12  ;;  %v22352_v12 = vand.u32 4294901760, %v19262_v60  ;;  %v22353_v60 = vld [vmem:[#allocation35_spill] sm:$0xff] }
 0x501   :  { %9082 = vmatpush.msrb.mxu0 %v22343_v50  ;;  %9121 = vmatpush.msrb.mxu1 %v19057_v24  ;;  %v9267_v2 = vsub.f32 %v19486_v22, %v9266_v10  ;;  %v9278_v50 = vand.u32 4294901760, %v19514_v7 }
 0x502   :  { %9233 = vmatpush.msrb.mxu3 %v9232_v57  ;;  %9164 = vmatpush.msrb.mxu2 %v19385_v39  ;;  %v9250_v24 = vand.u32 4294901760, %v9249_v44  ;;  %v9261_v57 = vsub.f32 %v19464_v34, %v9260_v55  ;;  %v22349_v44 = vand.u32 4294901760, %v19211_v14  ;;  %v9273_v14 = vsub.f32 %v19499_v54, %v9272_v21 }
 0x503   :  { %9086 = vmatpush.msrb.mxu0 %v22345_v5  ;;  %9123 = vmatpush.msrb.mxu1 %v19075_v0  ;;  %v9256_v0 = vand.u32 4294901760, %v9255_v63  ;;  %v22351_v63 = vld [vmem:[#allocation34_spill] sm:$0xff]  ;;  %v9279_v5 = vsub.f32 %v19514_v7, %v9278_v50 }
 0x504   :  { %9239 = vmatpush.msrb.mxu3 %v9238_v13  ;;  %9166 = vmatpush.msrb.mxu2 %v19401_v6  ;;  %v22348_v13 = vld [vmem:[#allocation36_spill] sm:$0xff]  ;;  %v9262_v47 = vand.u32 4294901760, %v9261_v57 }
 0x505   :  { %9090 = vmatpush.msrb.mxu0 %v22347_v35  ;;  %9125 = vmatpush.msrb.mxu1 %v19092_v28  ;;  %v2323_v18 = vadd.f32 %v22348_v13, %v2286_v61  ;;  %v22350_v28 = vand.u32 4294901760, %v19233_v56  ;;  %v9268_v56 = vand.u32 4294901760, %v9267_v2  ;;  %v9280_v61 = vand.u32 4294901760, %v9279_v5  ;;  %v22356_v13 = vld [vmem:[#allocation40_spill] sm:$0xff]  ;;  %v22358_v2 = vld [vmem:[#allocation10_spill] sm:$0xff]  ;;  %v22374_v5 = vld [vmem:[#allocation43_spill] sm:$0xff] }
 0x506   :  { %9245 = vmatpush.msrb.mxu3 %v9244_v20  ;;  %9168 = vmatpush.msrb.mxu2 %v19418_v23  ;;  %v9180_v20 = vsub.f32 %v19502_v33, %v9179_v42 }
 0x507   :  { %9094 = vmatpush.msrb.mxu0 %v22349_v44  ;;  %9127 = vmatpush.msrb.mxu1 %v19108_v52  ;;  %v2364_v52 = vadd.f32 %v22351_v63, %v2323_v18  ;;  %v19572_v44 = vpop.f32.mrf.mxu3 }
 0x508   :  { %9251 = vmatpush.msrb.mxu3 %v9250_v24  ;;  %9170 = vmatpush.msrb.mxu2 %v19432_v46  ;;  %v19554_v24 = vpop.f32.mrf.mxu0  ;;  %v9181_v57 = vand.u32 4294901760, %v9180_v20  ;;  %v22363_v20 = vld [vmem:[#allocation39_spill] sm:$0xff] }
 0x509   :  { %9098 = vmatpush.msrb.mxu0 %v22350_v28  ;;  %9129 = vmatpush.msrb.mxu1 %v19126_v26  ;;  %v9274_v26 = vand.u32 4294901760, %v9273_v14  ;;  %v2465_v38 = vadd.f32 %v22353_v60, %v2364_v52  ;;  %v19582_v14 = vpop.f32.mrf.mxu1  ;;  %v22376_v60 = vld [vmem:[#allocation45_spill] sm:$0xff] }
 0x50a   :  { %9257 = vmatpush.msrb.mxu3 %v9256_v0  ;;  %9172 = vmatpush.msrb.mxu2 %v19456_v45  ;;  %v19565_v0 = vpop.f32.mrf.mxu2 }
 0x50b   :  { %9102 = vmatpush.msrb.mxu0 %v22352_v12  ;;  %9131 = vmatpush.msrb.mxu1 %v19142_v8  ;;  %v22354_v8 = vld [vmem:[#allocation37_spill] sm:$0xff] }
 0x50c   :  { %9263 = vmatpush.msrb.mxu3 %v9262_v47  ;;  %9104 = vmatmul.f32.vlgmr.msrb.gmra.mxu0 %v19154_v53  ;;  %v2519_v35 = vadd.f32 %v22354_v8, %v2465_v38  ;;  %v22359_v47 = vld [vmem:[#allocation11_spill] sm:$0xff] }
 0x50d   :  { %9174 = vmatpush.msrb.mxu2 %v19472_v59  ;;  %9289 = vmatpush.msra.mxu0 %v19255_v37  ;;  %v450_v8 = vld [vmem:[%s21527_s1 + $0xd58] sm:$0xff] }
 0x50e   :  { %9133 = vmatpush.msrb.mxu1 %v19160_v16  ;;  %9269 = vmatpush.msrb.mxu3 %v9268_v56  ;;  %v22355_v16 = vand.u32 4294901760, %v19255_v37  ;;  %v2558_v18 = vadd.f32 %v22356_v13, %v2519_v35  ;;  %v22360_v37 = vld [vmem:[#allocation38_spill] sm:$0xff]  ;;  %v22377_v35 = vld [vmem:[#allocation8_spill] sm:$0xff]  ;;  %v22378_v13 = vld [vmem:[#allocation5_spill] sm:$0xff] }
 0x50f   :  { %9176 = vmatpush.msrb.mxu2 %v19488_v58  ;;  %9292 = vmatpush.msra.mxu0 %v19279_v32 }
 0x510   :  { %9135 = vmatpush.msrb.mxu1 %v19172_v30  ;;  %9275 = vmatpush.msrb.mxu3 %v9274_v26  ;;  %v22357_v30 = vand.u32 4294901760, %v19279_v32  ;;  %v2627_v28 = vadd.f32 %v22360_v37, %v2558_v18  ;;  %v22362_v32 = vand.u32 4294901760, %v19301_v27 }
 0x511   :  { %9182 = vmatmul.f32.vlgmr.msrb.gmra.mxu2 %v9181_v57  ;;  %9295 = vmatpush.msra.mxu0 %v19293_v9  ;;  %v22375_v57 = vand.u32 4294901760, %v19430_v62 }
 0x512   :  { %9383 = vmatpush.msra.mxu2 %v22355_v16  ;;  %9137 = vmatpush.msrb.mxu1 %v19200_v51  ;;  %v22361_v51 = vand.u32 4294901760, %v19293_v9  ;;  %v2664_v63 = vadd.f32 %v22363_v20, %v2627_v28  ;;  %v22365_v9 = vld [vmem:[#allocation41_spill] sm:$0xff]  ;;  %v19724_v28 = vpop.f32.mrf.mxu2 }
 0x513   :  { %9281 = vmatpush.msrb.mxu3 %v9280_v61  ;;  %9298 = vmatpush.msra.mxu0 %v19301_v27  ;;  %v22366_v27 = vand.u32 4294901760, %v19344_v40  ;;  %v449_v16 = vld [vmem:[%s21527_s1 + $0xd50] sm:$0xff] }
 0x514   :  { %9283 = vmatmul.f32.vlgmr.msrb.gmra.mxu3 %v19474_v17  ;;  %9387 = vmatpush.msra.mxu2 %v22357_v30  ;;  %v2705_v52 = vadd.f32 %v22365_v9, %v2664_v63  ;;  %v19690_v30 = vpop.f32.mrf.mxu0 }
 0x515   :  { %9450 = vmatpush.msra.mxu3 %v22358_v2  ;;  %9139 = vmatpush.msrb.mxu1 %v22359_v47 }
 0x516   :  { %9301 = vmatpush.msra.mxu0 %v19318_v49  ;;  %9141 = vmatmul.f32.vlgmr.msrb.gmra.mxu1 %v19154_v53  ;;  %v22364_v53 = vand.u32 4294901760, %v19318_v49  ;;  %v22368_v49 = vand.u32 4294901760, %v19364_v36 }
 0x517   :  { %9391 = vmatpush.msra.mxu2 %v22361_v51  ;;  %9342 = vmatpush.msra.mxu1 %v22358_v2 }
 0x518   :  { %9452 = vmatpush.msra.mxu3 %v19243_v41  ;;  %9304 = vmatpush.msra.mxu0 %v19344_v40  ;;  %v22371_v40 = vld [vmem:[#allocation42_spill] sm:$0xff] }
 0x519   :  { %9395 = vmatpush.msra.mxu2 %v22362_v32  ;;  %9344 = vmatpush.msra.mxu1 %v19243_v41  ;;  %v22367_v41 = vld [vmem:[#allocation44_spill] sm:$0xff] }
 0x51a   :  { %9454 = vmatpush.msra.mxu3 %v19264_v1  ;;  %9307 = vmatpush.msra.mxu0 %v19364_v36  ;;  %v2806_v12 = vadd.f32 %v22367_v41, %v2705_v52  ;;  %v22372_v36 = vand.u32 4294901760, %v19399_v25  ;;  %v19749_v41 = vpop.f32.mrf.mxu3 }
 0x51b   :  { %9399 = vmatpush.msra.mxu2 %v22364_v53  ;;  %9346 = vmatpush.msra.mxu1 %v19264_v1  ;;  %v22369_v1 = vand.u32 4294901760, %v19383_v29  ;;  %v22380_v53 = vld [vmem:[#allocation6_spill] sm:$0xff] }
 0x51c   :  { %9456 = vmatpush.msra.mxu3 %v19272_v15  ;;  %9310 = vmatpush.msra.mxu0 %v19383_v29  ;;  %v2860_v56 = vadd.f32 %v22371_v40, %v2806_v12  ;;  %v22373_v29 = vand.u32 4294901760, %v19416_v11 }
 0x51d   :  { %9403 = vmatpush.msra.mxu2 %v22366_v27  ;;  %9348 = vmatpush.msra.mxu1 %v19272_v15  ;;  %v22370_v15 = vld [vmem:[#allocation16_spill] sm:$0xff]  ;;  %v445_v27 = vld [vmem:[%s21527_s1 + $0xd30] sm:$0xff] }
 0x51e   :  { %9458 = vmatpush.msra.mxu3 %v19285_v3  ;;  %9313 = vmatpush.msra.mxu0 %v19399_v25  ;;  %v2899_v26 = vadd.f32 %v22374_v5, %v2860_v56  ;;  %v444_v56 = vld [vmem:[%s21527_s1 + $0xd28] sm:$0xff]  ;;  %v19778_v5 = vpop.f32.mrf.mxu1 }
 0x51f   :  { %9407 = vmatpush.msra.mxu2 %v22368_v49  ;;  %9350 = vmatpush.msra.mxu1 %v19285_v3  ;;  %v454_v3 = vld [vmem:[%s21527_s1 + $0xd78] sm:$0xff] }
 0x520   :  { %9460 = vmatpush.msra.mxu3 %v19308_v43  ;;  %9316 = vmatpush.msra.mxu0 %v19416_v11  ;;  %v19634_v25 = vand.u32 4294901760, %v454_v3  ;;  %v452_v11 = vld [vmem:[%s21527_s1 + $0xd68] sm:$0xff]  ;;  %v2968_v38 = vadd.f32 %v22376_v60, %v2899_v26  ;;  %v443_v26 = vld [vmem:[%s21527_s1 + $0xd20] sm:$0xff] }
 0x521   :  { %9411 = vmatpush.msra.mxu2 %v22369_v1  ;;  %9352 = vmatpush.msra.mxu1 %v19308_v43  ;;  %v453_v43 = vld [vmem:[%s21527_s1 + $0xd70] sm:$0xff] }
 0x522   :  { %9462 = vmatpush.msra.mxu3 %v22370_v15  ;;  %9319 = vmatpush.msra.mxu0 %v19430_v62  ;;  %v451_v62 = vld [vmem:[%s21527_s1 + $0xd60] sm:$0xff]  ;;  %v19659_v61 = vsub.f32 %v454_v3, %v19634_v25 }
 0x523   :  { %9415 = vmatpush.msra.mxu2 %v22372_v36  ;;  %9354 = vmatpush.msra.mxu1 %v22370_v15  ;;  %v22381_v15 = vld [vmem:[#allocation12_spill] sm:$0xff] }
 0x524   :  { %9464 = vmatpush.msra.mxu3 %v19346_v31  ;;  %9322 = vmatpush.msra.mxu0 %v19447_v48  ;;  %v3005_v48 = vadd.f32 %v22377_v35, %v2968_v38  ;;  %v22383_v38 = vld [vmem:[#allocation7_spill] sm:$0xff] }
 0x525   :  { %9419 = vmatpush.msra.mxu2 %v22373_v29  ;;  %9356 = vmatpush.msra.mxu1 %v19346_v31  ;;  %v19645_v31 = vand.u32 4294901760, %v453_v43  ;;  %v19773_v29 = vand.u32 4294901760, %v445_v27  ;;  %v442_v35 = vld [vmem:[%s21527_s1 + $0xd18] sm:$0xff] }
 0x526   :  { %9466 = vmatpush.msra.mxu3 %v19366_v4  ;;  %9325 = vmatpush.msra.mxu0 %v19464_v34  ;;  %v19681_v34 = vand.u32 4294901760, %v450_v8  ;;  %v3046_v18 = vadd.f32 %v22378_v13, %v3005_v48 }
 0x527   :  { %9423 = vmatpush.msra.mxu2 %v22375_v57  ;;  %9358 = vmatpush.msra.mxu1 %v19366_v4  ;;  %v19656_v4 = vand.u32 4294901760, %v452_v11 }
 0x528   :  { %9468 = vmatpush.msra.mxu3 %v19385_v39  ;;  %9328 = vmatpush.msra.mxu0 %v19486_v22  ;;  %v19695_v22 = vand.u32 4294901760, %v449_v16 }
 0x529   :  { %9427 = vmatpush.msra.mxu2 %v9254_v19  ;;  %9360 = vmatpush.msra.mxu1 %v19385_v39  ;;  %v19670_v39 = vand.u32 4294901760, %v451_v62  ;;  %v19673_v19 = vsub.f32 %v453_v43, %v19645_v31 }
 0x52a   :  { %9470 = vmatpush.msra.mxu3 %v19401_v6  ;;  %9331 = vmatpush.msra.mxu0 %v19499_v54  ;;  %v19710_v54 = vsub.f32 %v450_v8, %v19681_v34  ;;  %v19729_v51 = vsub.f32 %v449_v16, %v19695_v22  ;;  %v19806_v16 = vand.u32 4294901760, %v443_v26 }
 0x52b   :  { %9431 = vmatpush.msra.mxu2 %v9260_v55  ;;  %9362 = vmatpush.msra.mxu1 %v19401_v6  ;;  %v21816_v6 = vand.u32 4294901760, %v19659_v61  ;;  %v19687_v55 = vsub.f32 %v452_v11, %v19656_v4  ;;  %v19704_v2 = vsub.f32 %v451_v62, %v19670_v39  ;;  %v19790_v11 = vand.u32 4294901760, %v444_v56 }
 0x52c   :  { %9472 = vmatpush.msra.mxu3 %v19418_v23  ;;  %9334 = vmatpush.msra.mxu0 %v19514_v7  ;;  %v21810_v52 = vand.u32 4294901760, %v19710_v54  ;;  %22384 = vst [vmem:[#allocation18_spill] sm:$0xff] %v19806_v16 }
 0x52d   :  { %9435 = vmatpush.msra.mxu2 %v9266_v10  ;;  %9364 = vmatpush.msra.mxu1 %v19418_v23  ;;  %v448_v23 = vld [vmem:[%s21527_s1 + $0xd48] sm:$0xff]  ;;  %v21814_v10 = vand.u32 4294901760, %v19673_v19  ;;  %v21812_v7 = vand.u32 4294901760, %v19687_v55  ;;  %v21811_v63 = vand.u32 4294901760, %v19704_v2  ;;  %22382 = vst [vmem:[#allocation20_spill] sm:$0xff] %v19790_v11 }
 0x52e   :  { %9474 = vmatpush.msra.mxu3 %v19432_v46  ;;  %9337 = vmatmul.f32.vlgmr.msra.gmra.mxu0 %v19502_v33  ;;  %v19720_v47 = vand.u32 4294901760, %v448_v23 }
 0x52f   :  { %9439 = vmatpush.msra.mxu2 %v9272_v21  ;;  %9487 = vmatpush.msrb.mxu0 %v19634_v25  ;;  %v447_v21 = vld [vmem:[%s21527_s1 + $0xd40] sm:$0xff]  ;;  %v9536_v32 = vsub.f32 %v19673_v19, %v21814_v10  ;;  %v9542_v49 = vsub.f32 %v19687_v55, %v21812_v7  ;;  %v9548_v3 = vsub.f32 %v19704_v2, %v21811_v63 }
 0x530   :  { %9366 = vmatpush.msra.mxu1 %v19432_v46  ;;  %9476 = vmatpush.msra.mxu3 %v19456_v45  ;;  %v9530_v46 = vsub.f32 %v19659_v61, %v21816_v6  ;;  %v19739_v20 = vand.u32 4294901760, %v447_v21  ;;  %v19759_v1 = vsub.f32 %v448_v23, %v19720_v47  ;;  %v22394_v10 = vld [vmem:[#allocation15_spill] sm:$0xff] }
 0x531   :  { %9443 = vmatpush.msra.mxu2 %v9278_v50  ;;  %9489 = vmatpush.msrb.mxu0 %v19645_v31  ;;  %v22379_v50 = vld [vmem:[#allocation46_spill] sm:$0xff]  ;;  %v9537_v36 = vand.u32 4294901760, %v9536_v32  ;;  %v9543_v57 = vand.u32 4294901760, %v9542_v49  ;;  %v9549_v48 = vand.u32 4294901760, %v9548_v3  ;;  %v19827_v32 = vsub.f32 %v444_v56, %v19790_v11  ;;  %v440_v56 = vld [vmem:[%s21527_s1 + $0xd08] sm:$0xff] }
 0x532   :  { %9368 = vmatpush.msra.mxu1 %v19456_v45  ;;  %v3147_v37 = vadd.f32 %v22379_v50, %v3046_v18  ;;  %9478 = vmatpush.msra.mxu3 %v19472_v59  ;;  %v446_v45 = vld [vmem:[%s21527_s1 + $0xd38] sm:$0xff]  ;;  %v9531_v12 = vand.u32 4294901760, %v9530_v46  ;;  %v19776_v43 = vsub.f32 %v447_v21, %v19739_v20  ;;  %v21806_v60 = vand.u32 4294901760, %v19759_v1  ;;  %v441_v21 = vld [vmem:[%s21527_s1 + $0xd10] sm:$0xff] }
 0x533   :  { %9445 = vmatmul.f32.vlgmr.msra.gmra.mxu2 %v19474_v17  ;;  %9491 = vmatpush.msrb.mxu0 %v19656_v4  ;;  %v19810_v18 = vsub.f32 %v445_v27, %v19773_v29  ;;  %v19836_v49 = vand.u32 4294901760, %v441_v21 }
 0x534   :  { %9630 = vmatpush.msrb.mxu2 %v19659_v61  ;;  %v3201_v9 = vadd.f32 %v22380_v53, %v3147_v37  ;;  %9370 = vmatpush.msra.mxu1 %v19472_v59  ;;  %v19756_v59 = vand.u32 4294901760, %v446_v45  ;;  %v21805_v13 = vand.u32 4294901760, %v19776_v43  ;;  %v9566_v50 = vsub.f32 %v19759_v1, %v21806_v60  ;;  %v22386_v53 = vld [vmem:[#allocation9_spill] sm:$0xff] }
 0x535   :  { %9480 = vmatpush.msra.mxu3 %v19488_v58  ;;  %9493 = vmatpush.msrb.mxu0 %v19670_v39  ;;  %v19823_v37 = vand.u32 4294901760, %v442_v35 }
 0x536   :  { %9482 = vmatmul.f32.vlgmr.msra.gmra.mxu3 %v19474_v17  ;;  %v3240_v40 = vadd.f32 %v22381_v15, %v3201_v9  ;;  %9633 = vmatpush.msrb.mxu2 %v19673_v19  ;;  %v21807_v17 = vand.u32 4294901760, %v19729_v51  ;;  %v19794_v33 = vsub.f32 %v446_v45, %v19756_v59  ;;  %v21803_v15 = vand.u32 4294901760, %v19810_v18 }
 0x537   :  { %9683 = vmatpush.msrb.mxu3 %v19634_v25  ;;  %9372 = vmatpush.msra.mxu1 %v19488_v58  ;;  %v9554_v58 = vsub.f32 %v19710_v54, %v21810_v52  ;;  %22385 = vst [vmem:[#allocation19_spill] sm:$0xff] %v19823_v37 }
 0x538   :  { %9495 = vmatpush.msrb.mxu0 %v19681_v34  ;;  %9376 = vmatmul.f32.vlgmr.msra.gmra.mxu1 %v9179_v42  ;;  %v582_v42 = vld.sshfl [vmem:[#allocation1 + $0x10] sm:$0xff pattern:$0x73625140]  ;;  %v3309_v62 = vadd.f32 %v22383_v38, %v3240_v40  ;;  %v9560_v8 = vsub.f32 %v19729_v51, %v21807_v17  ;;  %v21804_v45 = vand.u32 4294901760, %v19794_v33  ;;  %v19840_v40 = vsub.f32 %v443_v26, %v19806_v16 }
 0x539   :  { %9636 = vmatpush.msrb.mxu2 %v19687_v55  ;;  %9532 = vmatpush.msrb.mxu1 %v9531_v12  ;;  %v9555_v23 = vand.u32 4294901760, %v9554_v58  ;;  %v19817_v46 = vand.u32 4294901760, %v582_v42  ;;  %v9572_v12 = vsub.f32 %v19776_v43, %v21805_v13  ;;  %v21808_v38 = vand.u32 4294901760, %v19827_v32  ;;  %v22392_v13 = vld [vmem:[#allocation14_spill] sm:$0xff] }
 0x53a   :  { %9685 = vmatpush.msrb.mxu3 %v19645_v31  ;;  %9497 = vmatpush.msrb.mxu0 %v19695_v22  ;;  %v3346_v9 = vadd.f32 %v22386_v53, %v3309_v62  ;;  %v9561_v27 = vand.u32 4294901760, %v9560_v8  ;;  %v9578_v26 = vsub.f32 %v19794_v33, %v21804_v45  ;;  %v19857_v62 = vsub.f32 %v442_v35, %v19823_v37  ;;  %v470_v8 = vld [vmem:[%s21527_s1 + $0xdf8] sm:$0xff] }
 0x53b   :  { %9639 = vmatpush.msrb.mxu2 %v19704_v2  ;;  %9538 = vmatpush.msrb.mxu1 %v9537_v36  ;;  %v22387_v36 = vld [vmem:[#allocation13_spill] sm:$0xff]  ;;  %v19849_v58 = vsub.f32 %v582_v42, %v19817_v46  ;;  %v9573_v35 = vand.u32 4294901760, %v9572_v12  ;;  %v9584_v53 = vsub.f32 %v19810_v18, %v21803_v15 }
 0x53c   :  { %9687 = vmatpush.msrb.mxu3 %v19656_v4  ;;  %9499 = vmatpush.msrb.mxu0 %v19720_v47  ;;  %v3387_v3 = vadd.f32 %v22387_v36, %v3346_v9  ;;  %v21809_v9 = vand.u32 4294901760, %v19840_v40  ;;  %v19876_v36 = vsub.f32 %v441_v21, %v19836_v49  ;;  %v9579_v12 = vand.u32 4294901760, %v9578_v26 }
 0x53d   :  { %9642 = vmatpush.msrb.mxu2 %v19710_v54  ;;  %9544 = vmatpush.msrb.mxu1 %v9543_v57  ;;  %v9567_v57 = vand.u32 4294901760, %v9566_v50  ;;  %v439_v50 = vld [vmem:[%s21527_s1 + $0xd00] sm:$0xff]  ;;  %v9590_v21 = vsub.f32 %v19827_v32, %v21808_v38  ;;  %v21815_v45 = vand.u32 4294901760, %v19857_v62  ;;  %v9585_v26 = vand.u32 4294901760, %v9584_v53 }
 0x53e   :  { %9689 = vmatpush.msrb.mxu3 %v19670_v39  ;;  %9501 = vmatpush.msrb.mxu0 %v19739_v20  ;;  %v19890_v15 = vand.u32 4294901760, %v439_v50  ;;  %v9596_v38 = vsub.f32 %v19840_v40, %v21809_v9 }
 0x53f   :  { %9645 = vmatpush.msrb.mxu2 %v19729_v51  ;;  %9550 = vmatpush.msrb.mxu1 %v9549_v48  ;;  %v22388_v48 = vld [vmem:[#allocation17_spill] sm:$0xff]  ;;  %v9591_v9 = vand.u32 4294901760, %v9590_v21  ;;  %v9602_v52 = vsub.f32 %v19857_v62, %v21815_v45 }
 0x540   :  { %9691 = vmatpush.msrb.mxu3 %v19681_v34  ;;  %9503 = vmatpush.msrb.mxu0 %v19756_v59  ;;  %v3488_v42 = vadd.f32 %v22388_v48, %v3387_v3  ;;  %v21813_v3 = vand.u32 4294901760, %v19849_v58  ;;  %v19881_v48 = vand.u32 4294901760, %v470_v8  ;;  %22391 = vst [vmem:[#allocation22_spill] sm:$0xff] %v19890_v15  ;;  %v19925_v63 = vsub.f32 %v439_v50, %v19890_v15 }
 0x541   :  { %9648 = vmatpush.msrb.mxu2 %v19759_v1  ;;  %9556 = vmatpush.msrb.mxu1 %v9555_v23  ;;  %v19865_v23 = vand.u32 4294901760, %v440_v56  ;;  %v9597_v50 = vand.u32 4294901760, %v9596_v38  ;;  %v465_v38 = vld [vmem:[%s21527_s1 + $0xdd0] sm:$0xff] }
 0x542   :  { %9693 = vmatpush.msrb.mxu3 %v19695_v22  ;;  %9505 = vmatpush.msrb.mxu0 %v19773_v29  ;;  %22390 = vst [vmem:[#allocation24_spill] sm:$0xff] %v19881_v48  ;;  %v3542_v60 = vadd.f32 %v22392_v13, %v3488_v42  ;;  %v21817_v13 = vand.u32 4294901760, %v19876_v36  ;;  %v19918_v53 = vsub.f32 %v470_v8, %v19881_v48 }
 0x543   :  { %9651 = vmatpush.msrb.mxu2 %v19776_v43  ;;  %22389 = vst [vmem:[#allocation21_spill] sm:$0xff] %v19865_v23  ;;  %9562 = vmatpush.msrb.mxu1 %v9561_v27  ;;  %v469_v27 = vld [vmem:[%s21527_s1 + $0xdf0] sm:$0xff]  ;;  %v19897_v17 = vsub.f32 %v440_v56, %v19865_v23  ;;  %v467_v56 = vld [vmem:[%s21527_s1 + $0xde0] sm:$0xff] }
 0x544   :  { %9695 = vmatpush.msrb.mxu3 %v19720_v47  ;;  %9507 = vmatpush.msrb.mxu0 %v19790_v11  ;;  %v19907_v42 = vand.u32 4294901760, %v469_v27  ;;  %22393 = vst [vmem:[#allocation23_spill] sm:$0xff] %v19918_v53  ;;  %v3581_v8 = vadd.f32 %v22394_v10, %v3542_v60  ;;  %v19936_v21 = vand.u32 4294901760, %v467_v56  ;;  %v9608_v45 = vsub.f32 %v19876_v36, %v21817_v13  ;;  %v19975_v13 = vpop.f32.mrf.mxu0 }
 0x545   :  { %9654 = vmatpush.msrb.mxu2 %v19794_v33  ;;  %9568 = vmatpush.msrb.mxu1 %v9567_v57  ;;  %v468_v57 = vld [vmem:[%s21527_s1 + $0xde8] sm:$0xff] }
 0x546   :  { %9697 = vmatpush.msrb.mxu3 %v19739_v20  ;;  %9509 = vmatpush.msrb.mxu0 %v19806_v16  ;;  %v19927_v7 = vand.u32 4294901760, %v468_v57  ;;  %v19943_v6 = vsub.f32 %v469_v27, %v19907_v42  ;;  %v3650_v10 = vadd.f32 %v19554_v24, %v3581_v8  ;;  %v9603_v27 = vand.u32 4294901760, %v9602_v52  ;;  %v464_v52 = vld [vmem:[%s21527_s1 + $0xdc8] sm:$0xff] }
 0x547   :  { %9657 = vmatpush.msrb.mxu2 %v19810_v18  ;;  %9574 = vmatpush.msrb.mxu1 %v9573_v35  ;;  %v9521_v35 = vsub.f32 %v19849_v58, %v21813_v3  ;;  %v466_v3 = vld [vmem:[%s21527_s1 + $0xdd8] sm:$0xff] }
 0x548   :  { %9699 = vmatpush.msrb.mxu3 %v19756_v59  ;;  %9511 = vmatpush.msrb.mxu0 %v19823_v37  ;;  %v19957_v24 = vsub.f32 %v468_v57, %v19927_v7  ;;  %v3687_v8 = vadd.f32 %v19582_v14, %v3650_v10  ;;  %v9609_v57 = vand.u32 4294901760, %v9608_v45  ;;  %v19973_v10 = vand.u32 4294901760, %v465_v38  ;;  %v463_v45 = vld [vmem:[%s21527_s1 + $0xdc0] sm:$0xff] }
 0x549   :  { %9660 = vmatpush.msrb.mxu2 %v19827_v32  ;;  %9580 = vmatpush.msrb.mxu1 %v9579_v12  ;;  %v9522_v60 = vand.u32 4294901760, %v9521_v35  ;;  %v22395_v35 = vand.u32 4294901760, %v19897_v17  ;;  %v22399_v14 = vand.u32 4294901760, %v19925_v63 }
 0x54a   :  { %9701 = vmatpush.msrb.mxu3 %v19773_v29  ;;  %9513 = vmatpush.msrb.mxu0 %v19836_v49 }
 0x54b   :  { %9663 = vmatpush.msrb.mxu2 %v19840_v40  ;;  %9586 = vmatpush.msrb.mxu1 %v9585_v26  ;;  %v19949_v26 = vand.u32 4294901760, %v466_v3  ;;  %v9614_v12 = vsub.f32 %v19897_v17, %v22395_v35 }
 0x54c   :  { %9703 = vmatpush.msrb.mxu3 %v19790_v11  ;;  %9515 = vmatpush.msrb.mxu0 %v19865_v23  ;;  %v19993_v11 = vand.u32 4294901760, %v464_v52 }
 0x54d   :  { %9666 = vmatpush.msrb.mxu2 %v19857_v62  ;;  %9592 = vmatpush.msrb.mxu1 %v9591_v9  ;;  %v19966_v9 = vsub.f32 %v467_v56, %v19936_v21  ;;  %v22397_v56 = vand.u32 4294901760, %v19918_v53 }
 0x54e   :  { %9705 = vmatpush.msrb.mxu3 %v19806_v16  ;;  %9517 = vmatpush.msrb.mxu0 %v19890_v15  ;;  %v19982_v16 = vsub.f32 %v466_v3, %v19949_v26  ;;  %v9615_v3 = vand.u32 4294901760, %v9614_v12  ;;  %v20012_v12 = vpop.f32.mrf.mxu2 }
 0x54f   :  { %9669 = vmatpush.msrb.mxu2 %v19876_v36  ;;  %22396 = vst [vmem:[#allocation25_spill] sm:$0xff] %v19966_v9  ;;  %9598 = vmatpush.msrb.mxu1 %v9597_v50  ;;  %v9871_v35 = vsub.f32 %v19918_v53, %v22397_v56  ;;  %v22398_v50 = vand.u32 4294901760, %v19659_v61  ;;  %v3728_v56 = vadd.f32 %v19565_v0, %v3687_v8  ;;  %v462_v61 = vld [vmem:[%s21527_s1 + $0xdb8] sm:$0xff]  ;;  %v20010_v8 = vand.u32 4294901760, %v463_v45 }
 0x550   :  { %9707 = vmatpush.msrb.mxu3 %v19823_v37  ;;  %9523 = vmatmul.f32.vlgmr.msrb.gmra.mxu0 %v9522_v60  ;;  %v9620_v60 = vsub.f32 %v19925_v63, %v22399_v14  ;;  %v21826_v37 = vand.u32 4294901760, %v19957_v24  ;;  %v22401_v14 = vand.u32 4294901760, %v19943_v6  ;;  %v20008_v0 = vsub.f32 %v465_v38, %v19973_v10 }
 0x551   :  { %9672 = vmatpush.msrb.mxu2 %v19897_v17  ;;  %9724 = vmatpush.msra.mxu0 %v22398_v50  ;;  %v9872_v53 = vand.u32 4294901760, %v9871_v35  ;;  %v20029_v35 = vand.u32 4294901760, %v462_v61 }
 0x552   :  { %9604 = vmatpush.msrb.mxu1 %v9603_v27  ;;  %9709 = vmatpush.msrb.mxu3 %v19836_v49  ;;  %v22400_v27 = vand.u32 4294901760, %v19673_v19  ;;  %v9877_v50 = vsub.f32 %v19943_v6, %v22401_v14  ;;  %v9621_v38 = vand.u32 4294901760, %v9620_v60  ;;  %v9883_v14 = vsub.f32 %v19957_v24, %v21826_v37  ;;  %v460_v60 = vld [vmem:[%s21527_s1 + $0xda8] sm:$0xff] }
 0x553   :  { %9675 = vmatpush.msrb.mxu2 %v19925_v63  ;;  %v3829_v19 = vadd.f32 %v19572_v44, %v3728_v56  ;;  %v22405_v37 = vand.u32 4294901760, %v19704_v2  ;;  %v9900_v56 = vand.u32 4294901760, %v20008_v0  ;;  %v459_v2 = vld [vmem:[%s21527_s1 + $0xda0] sm:$0xff] }
 0x554   :  { %9728 = vmatpush.msra.mxu0 %v22400_v27  ;;  %9610 = vmatpush.msrb.mxu1 %v9609_v57  ;;  %v461_v57 = vld [vmem:[%s21527_s1 + $0xdb0] sm:$0xff]  ;;  %v22402_v27 = vand.u32 4294901760, %v19687_v55  ;;  %v22403_v55 = vand.u32 4294901760, %v19966_v9  ;;  %v9878_v44 = vand.u32 4294901760, %v9877_v50 }
 0x555   :  { %9711 = vmatpush.msrb.mxu3 %v19865_v23  ;;  %9678 = vmatmul.f32.vlgmr.msrb.gmra.mxu2 %v19849_v58  ;;  %v20027_v23 = vsub.f32 %v464_v52, %v19993_v11  ;;  %v22404_v52 = vand.u32 4294901760, %v19849_v58 }
 0x556   :  { %9732 = vmatpush.msra.mxu0 %v22402_v27  ;;  %9828 = vmatpush.msra.mxu2 %v19881_v48  ;;  %v9889_v27 = vsub.f32 %v19966_v9, %v22403_v55  ;;  %v20039_v48 = vpop.f32.mrf.mxu3  ;;  %v3883_v55 = vadd.f32 %v19690_v30, %v3829_v19  ;;  %v22406_v9 = vand.u32 4294901760, %v19982_v16  ;;  %v20063_v30 = vsub.f32 %v462_v61, %v20029_v35 }
 0x557   :  { %9616 = vmatpush.msrb.mxu1 %v9615_v3  ;;  %9713 = vmatpush.msrb.mxu3 %v19890_v15  ;;  %v20047_v3 = vsub.f32 %v463_v45, %v20010_v8  ;;  %v20049_v15 = vand.u32 4294901760, %v461_v57  ;;  %v9884_v45 = vand.u32 4294901760, %v9883_v14  ;;  %v21830_v50 = vand.u32 4294901760, %v20027_v23 }
 0x558   :  { %9717 = vmatmul.f32.vlgmr.msrb.gmra.mxu3 %v22404_v52  ;;  %9736 = vmatpush.msra.mxu0 %v22405_v37  ;;  %v9895_v58 = vsub.f32 %v19982_v16, %v22406_v9  ;;  %v22407_v37 = vand.u32 4294901760, %v19710_v54  ;;  %v20065_v19 = vand.u32 4294901760, %v460_v60  ;;  %v4169_v52 = vpop.f32.mrf.mxu1  ;;  %v9890_v9 = vand.u32 4294901760, %v9889_v27  ;;  %v458_v54 = vld [vmem:[%s21527_s1 + $0xd98] sm:$0xff] }
 0x559   :  { %9830 = vmatpush.msra.mxu2 %v19907_v42  ;;  %9873 = vmatpush.msra.mxu3 %v9872_v53  ;;  %v3922_v53 = vadd.f32 %v19778_v5, %v3883_v55  ;;  %v9901_v61 = vsub.f32 %v20008_v0, %v9900_v56  ;;  %v20079_v5 = vsub.f32 %v461_v57, %v20049_v15  ;;  %v20081_v14 = vand.u32 4294901760, %v459_v2 }
 0x55a   :  { %9622 = vmatpush.msrb.mxu1 %v9621_v38  ;;  %9740 = vmatpush.msra.mxu0 %v22407_v37  ;;  %v21831_v38 = vand.u32 4294901760, %v20047_v3  ;;  %v22408_v27 = vand.u32 4294901760, %v19729_v51  ;;  %v9896_v55 = vand.u32 4294901760, %v9895_v58  ;;  %v20092_v57 = vsub.f32 %v460_v60, %v20065_v19  ;;  %v457_v51 = vld [vmem:[%s21527_s1 + $0xd90] sm:$0xff] }
 0x55b   :  { %9624 = vmatmul.f32.vlgmr.msrb.gmra.mxu1 %v19817_v46  ;;  %9832 = vmatpush.msra.mxu2 %v19927_v7  ;;  %v20094_v37 = vand.u32 4294901760, %v458_v54  ;;  %v3991_v58 = vadd.f32 %v19724_v28, %v3922_v53  ;;  %v456_v28 = vld [vmem:[%s21527_s1 + $0xd88] sm:$0xff]  ;;  %v22410_v53 = vand.u32 4294901760, %v19776_v43  ;;  %v455_v43 = vld [vmem:[%s21527_s1 + $0xd80] sm:$0xff] }
 0x55c   :  { %9791 = vmatpush.msra.mxu1 %v19634_v25  ;;  %9879 = vmatpush.msra.mxu3 %v9878_v44  ;;  %v9907_v25 = vsub.f32 %v20027_v23, %v21830_v50  ;;  %v21832_v44 = vand.u32 4294901760, %v20063_v30  ;;  %v9913_v60 = vsub.f32 %v20047_v3, %v21831_v38  ;;  %v20109_v50 = vsub.f32 %v459_v2, %v20081_v14 }
 0x55d   :  { %9744 = vmatpush.msra.mxu0 %v22408_v27  ;;  %9834 = vmatpush.msra.mxu2 %v19936_v21  ;;  %v9924_v27 = vand.u32 4294901760, %v20079_v5  ;;  %v22411_v38 = vand.u32 4294901760, %v19794_v33  ;;  %v22412_v33 = vand.u32 4294901760, %v19810_v18  ;;  %v22413_v18 = vand.u32 4294901760, %v19827_v32 }
 0x55e   :  { %9793 = vmatpush.msra.mxu1 %v19645_v31  ;;  %9885 = vmatpush.msra.mxu3 %v9884_v45  ;;  %v22409_v31 = vand.u32 4294901760, %v19759_v1  ;;  %v9902_v45 = vand.u32 4294901760, %v9901_v61  ;;  %v583_v1 = vld.sshfl [vmem:[#allocation1 + $0x18] sm:$0xff pattern:$0x73625140]  ;;  %v9919_v2 = vsub.f32 %v20063_v30, %v21832_v44  ;;  %v9930_v61 = vand.u32 4294901760, %v20092_v57 }
 0x55f   :  { %9836 = vmatpush.msra.mxu2 %v19949_v26  ;;  %v9936_v44 = vand.u32 4294901760, %v20109_v50 }
 0x560   :  { %9748 = vmatpush.msra.mxu0 %v22409_v31  ;;  %9795 = vmatpush.msra.mxu1 %v19656_v4  ;;  %v20117_v4 = vand.u32 4294901760, %v457_v51  ;;  %v20125_v31 = vsub.f32 %v458_v54, %v20094_v37  ;;  %v9914_v54 = vand.u32 4294901760, %v9913_v60 }
 0x561   :  { %9891 = vmatpush.msra.mxu3 %v9890_v9  ;;  %9838 = vmatpush.msra.mxu2 %v19973_v10  ;;  %v9908_v9 = vand.u32 4294901760, %v9907_v25  ;;  %v9925_v25 = vsub.f32 %v20079_v5, %v9924_v27 }
 0x562   :  { %9752 = vmatpush.msra.mxu0 %v22410_v53  ;;  %9797 = vmatpush.msra.mxu1 %v19670_v39  ;;  %v4028_v53 = vadd.f32 %v19749_v41, %v3991_v58  ;;  %v20134_v39 = vand.u32 4294901760, %v456_v28  ;;  %v20150_v58 = vand.u32 4294901760, %v455_v43 }
 0x563   :  { %9897 = vmatpush.msra.mxu3 %v9896_v55  ;;  %9840 = vmatpush.msra.mxu2 %v19993_v11  ;;  %v20136_v55 = vand.u32 4294901760, %v583_v1 }
 0x564   :  { %9756 = vmatpush.msra.mxu0 %v22411_v38  ;;  %9799 = vmatpush.msra.mxu1 %v19681_v34  ;;  %v4069_v41 = vadd.f32 %v19975_v13, %v4028_v53  ;;  %v20148_v38 = vsub.f32 %v457_v51, %v20117_v4  ;;  %v9920_v34 = vand.u32 4294901760, %v9919_v2  ;;  %v9942_v13 = vand.u32 4294901760, %v20125_v31 }
 0x565   :  { %9903 = vmatpush.msra.mxu3 %v9902_v45  ;;  %9842 = vmatpush.msra.mxu2 %v20010_v8  ;;  %v9931_v45 = vsub.f32 %v20092_v57, %v9930_v61  ;;  %v20161_v51 = vsub.f32 %v456_v28, %v20134_v39  ;;  %v20164_v53 = vsub.f32 %v583_v1, %v20136_v55 }
 0x566   :  { %9760 = vmatpush.msra.mxu0 %v22412_v33  ;;  %9801 = vmatpush.msra.mxu1 %v19695_v22  ;;  %v4170_v60 = vadd.f32 %v4169_v52, %v4069_v41  ;;  %v9926_v22 = vand.u32 4294901760, %v9925_v25  ;;  %v22414_v52 = vand.u32 4294901760, %v19840_v40  ;;  %v9948_v32 = vand.u32 4294901760, %v20148_v38  ;;  %v4331_v41 = vpop.f32.mrf.mxu0 }
 0x567   :  { %9909 = vmatpush.msra.mxu3 %v9908_v9  ;;  %9844 = vmatpush.msra.mxu2 %v20029_v35  ;;  %v9937_v9 = vsub.f32 %v20109_v50, %v9936_v44  ;;  %v20175_v28 = vsub.f32 %v455_v43, %v20150_v58  ;;  %v9943_v1 = vsub.f32 %v20125_v31, %v9942_v13  ;;  %v22415_v40 = vand.u32 4294901760, %v19857_v62 }
 0x568   :  { %9764 = vmatpush.msra.mxu0 %v22413_v18  ;;  %9803 = vmatpush.msra.mxu1 %v19720_v47  ;;  %v9932_v47 = vand.u32 4294901760, %v9931_v45  ;;  %v4224_v2 = vadd.f32 %v20012_v12, %v4170_v60  ;;  %v9861_v43 = vand.u32 4294901760, %v20164_v53  ;;  %v22416_v25 = vand.u32 4294901760, %v19876_v36  ;;  %v4368_v60 = vpop.f32.mrf.mxu1  ;;  %v22418_v18 = vld [vmem:[#allocation20_spill] sm:$0xff] }
 0x569   :  { %9915 = vmatpush.msra.mxu3 %v9914_v54  ;;  %9846 = vmatpush.msra.mxu2 %v20049_v15  ;;  %v9954_v54 = vand.u32 4294901760, %v20161_v51  ;;  %v9949_v62 = vsub.f32 %v20148_v38, %v9948_v32  ;;  %v9960_v12 = vand.u32 4294901760, %v20175_v28  ;;  %v9944_v33 = vand.u32 4294901760, %v9943_v1 }
 0x56a   :  { %9768 = vmatpush.msra.mxu0 %v22414_v52  ;;  %9805 = vmatpush.msra.mxu1 %v19739_v20  ;;  %v9938_v20 = vand.u32 4294901760, %v9937_v9  ;;  %v9862_v45 = vsub.f32 %v20164_v53, %v9861_v43  ;;  %v22420_v9 = vld [vmem:[#allocation18_spill] sm:$0xff] }
 0x56b   :  { %9921 = vmatpush.msra.mxu3 %v9920_v34  ;;  %9848 = vmatpush.msra.mxu2 %v20065_v19  ;;  %v22417_v34 = vand.u32 4294901760, %v19897_v17  ;;  %v9955_v36 = vsub.f32 %v20161_v51, %v9954_v54  ;;  %v9950_v17 = vand.u32 4294901760, %v9949_v62  ;;  %v4510_v62 = vpop.f32.mrf.mxu3 }
 0x56c   :  { %9772 = vmatpush.msra.mxu0 %v22415_v40  ;;  %9807 = vmatpush.msra.mxu1 %v19756_v59  ;;  %v4263_v59 = vadd.f32 %v20039_v48, %v4224_v2  ;;  %v22419_v48 = vand.u32 4294901760, %v19925_v63  ;;  %v9863_v1 = vand.u32 4294901760, %v9862_v45  ;;  %v4409_v2 = vpop.f32.mrf.mxu2  ;;  %v22421_v63 = vld [vmem:[#allocation23_spill] sm:$0xff]  ;;  %v22427_v45 = vld [vmem:[#allocation24_spill] sm:$0xff] }
 0x56d   :  { %9927 = vmatpush.msra.mxu3 %v9926_v22  ;;  %9850 = vmatpush.msra.mxu2 %v20081_v14  ;;  %v9961_v22 = vsub.f32 %v20175_v28, %v9960_v12  ;;  %v22422_v40 = vld [vmem:[#allocation19_spill] sm:$0xff] }
 0x56e   :  { %9776 = vmatpush.msra.mxu0 %v22416_v25  ;;  %9809 = vmatpush.msra.mxu1 %v19773_v29  ;;  %v4332_v29 = vadd.f32 %v4331_v41, %v4263_v59  ;;  %v22423_v41 = vand.u32 4294901760, %v22421_v63  ;;  %v4564_v59 = vpop.f32.mrf.mxu0 }
 0x56f   :  { %9933 = vmatpush.msra.mxu3 %v9932_v47  ;;  %9852 = vmatpush.msra.mxu2 %v20094_v37  ;;  %v9956_v47 = vand.u32 4294901760, %v9955_v36 }
 0x570   :  { %9780 = vmatpush.msra.mxu0 %v22417_v34  ;;  %9811 = vmatpush.msra.mxu1 %v22418_v18  ;;  %v4369_v52 = vadd.f32 %v4368_v60, %v4332_v29  ;;  %v22425_v34 = vld [vmem:[#allocation25_spill] sm:$0xff]  ;;  %v4603_v60 = vpop.f32.mrf.mxu1  ;;  %v22428_v18 = vld [vmem:[#allocation22_spill] sm:$0xff] }
 0x571   :  { %9939 = vmatpush.msra.mxu3 %v9938_v20  ;;  %9854 = vmatpush.msra.mxu2 %v20117_v4  ;;  %v9962_v20 = vand.u32 4294901760, %v9961_v22 }
 0x572   :  { %9784 = vmatpush.msra.mxu0 %v22419_v48  ;;  %9813 = vmatpush.msra.mxu1 %v22420_v9  ;;  %v4410_v25 = vadd.f32 %v4409_v2, %v4369_v52  ;;  %v22429_v48 = vand.u32 4294901760, %v19957_v24  ;;  %v481_v2 = vld [vmem:[%s21527_s1 + $0xe50] sm:$0xff] }
 0x573   :  { %9945 = vmatpush.msra.mxu3 %v9944_v33  ;;  %9786 = vmatmul.f32.vlgmr.msra.gmra.mxu0 %v19817_v46  ;;  %v22424_v33 = vld [vmem:[#allocation21_spill] sm:$0xff]  ;;  %v4709_v9 = vpop.f32.mrf.mxu3 }
 0x574   :  { %9856 = vmatpush.msra.mxu2 %v20134_v39  ;;  %9971 = vmatpush.msrb.mxu0 %v22421_v63  ;;  %v4511_v36 = vadd.f32 %v4510_v62, %v4410_v25  ;;  %v4672_v22 = vpop.f32.mrf.mxu2 }
 0x575   :  { %9815 = vmatpush.msra.mxu1 %v22422_v40  ;;  %9951 = vmatpush.msra.mxu3 %v9950_v17 }
 0x576   :  { %9858 = vmatpush.msra.mxu2 %v20150_v58  ;;  %9974 = vmatpush.msrb.mxu0 %v19943_v6  ;;  %v4565_v29 = vadd.f32 %v4564_v59, %v4511_v36  ;;  %v478_v59 = vld [vmem:[%s21527_s1 + $0xe38] sm:$0xff] }
 0x577   :  { %9817 = vmatpush.msra.mxu1 %v19836_v49  ;;  %9957 = vmatpush.msra.mxu3 %v9956_v47  ;;  %v22426_v49 = vand.u32 4294901760, %v19943_v6  ;;  %v22430_v6 = vand.u32 4294901760, %v22425_v34 }
 0x578   :  { %9864 = vmatmul.f32.vlgmr.msra.gmra.mxu2 %v9863_v1  ;;  %9977 = vmatpush.msrb.mxu0 %v19957_v24  ;;  %v4604_v17 = vadd.f32 %v4603_v60, %v4565_v29  ;;  %v482_v1 = vld [vmem:[%s21527_s1 + $0xe58] sm:$0xff]  ;;  %v477_v60 = vld [vmem:[%s21527_s1 + $0xe30] sm:$0xff] }
 0x579   :  { %10065 = vmatpush.msrb.mxu2 %v22423_v41  ;;  %9819 = vmatpush.msra.mxu1 %v22424_v33 }
 0x57a   :  { %9963 = vmatpush.msra.mxu3 %v9962_v20  ;;  %9980 = vmatpush.msrb.mxu0 %v22425_v34  ;;  %v4673_v24 = vadd.f32 %v4672_v22, %v4604_v17  ;;  %v20391_v17 = vand.u32 4294901760, %v478_v59 }
 0x57b   :  { %9965 = vmatmul.f32.vlgmr.msra.gmra.mxu3 %v20136_v55  ;;  %10069 = vmatpush.msrb.mxu2 %v22426_v49 }
 0x57c   :  { %10132 = vmatpush.msrb.mxu3 %v22427_v45  ;;  %9821 = vmatpush.msra.mxu1 %v22428_v18 }
 0x57d   :  { %9983 = vmatpush.msrb.mxu0 %v19982_v16  ;;  %9823 = vmatmul.f32.vlgmr.msra.gmra.mxu1 %v19817_v46  ;;  %v22431_v46 = vand.u32 4294901760, %v19982_v16  ;;  %v22_v16 = vld [vmem:[%s21526_s0 + $0x38] sm:$0xff] }
 0x57e   :  { %10073 = vmatpush.msrb.mxu2 %v22429_v48  ;;  %10024 = vmatpush.msrb.mxu1 %v22427_v45  ;;  %579 = vst [vmem:[#allocation1 + $0x20] ss:$4 sm:$0xff] %v22_v16 }
 0x57f   :  { %10134 = vmatpush.msrb.mxu3 %v19907_v42  ;;  %9986 = vmatpush.msrb.mxu0 %v20008_v0  ;;  %v4710_v0 = vadd.f32 %v4709_v9, %v4673_v24  ;;  %v20407_v9 = vand.u32 4294901760, %v477_v60 }
 0x580   :  { %10077 = vmatpush.msrb.mxu2 %v22430_v6  ;;  %10026 = vmatpush.msrb.mxu1 %v19907_v42  ;;  %v4750_v42 = vpop.f32.mrf.mxu0 }
 0x581   :  { %10136 = vmatpush.msrb.mxu3 %v19927_v7  ;;  %9989 = vmatpush.msrb.mxu0 %v20027_v23  ;;  %v4751_v52 = vadd.f32 %v4750_v42, %v4710_v0  ;;  %v475_v42 = vld [vmem:[%s21527_s1 + $0xe20] sm:$0xff] }
 0x582   :  { %10081 = vmatpush.msrb.mxu2 %v22431_v46  ;;  %10028 = vmatpush.msrb.mxu1 %v19927_v7  ;;  %v22432_v7 = vand.u32 4294901760, %v20027_v23  ;;  %v22434_v23 = vand.u32 4294901760, %v20063_v30 }
 0x583   :  { %10138 = vmatpush.msrb.mxu3 %v19936_v21  ;;  %9992 = vmatpush.msrb.mxu0 %v20047_v3 }
 0x584   :  { %10085 = vmatpush.msrb.mxu2 %v9900_v56  ;;  %10030 = vmatpush.msrb.mxu1 %v19936_v21  ;;  %v22433_v21 = vand.u32 4294901760, %v20047_v3  ;;  %v4851_v56 = vpop.f32.mrf.mxu1 }
 0x585   :  { %10140 = vmatpush.msrb.mxu3 %v19949_v26  ;;  %9995 = vmatpush.msrb.mxu0 %v20063_v30  ;;  %v4852_v3 = vadd.f32 %v4851_v56, %v4751_v52  ;;  %v4905_v30 = vpop.f32.mrf.mxu2  ;;  %v584_v52 = vld.sshfl [vmem:[#allocation1 + $0x20] sm:$0xff pattern:$0x73625140] }
 0x586   :  { %10089 = vmatpush.msrb.mxu2 %v22432_v7  ;;  %10032 = vmatpush.msrb.mxu1 %v19949_v26  ;;  %v486_v26 = vld [vmem:[%s21527_s1 + $0xe78] sm:$0xff] }
 0x587   :  { %10142 = vmatpush.msrb.mxu3 %v19973_v10  ;;  %9998 = vmatpush.msrb.mxu0 %v20079_v5  ;;  %v20281_v47 = vand.u32 4294901760, %v486_v26 }
 0x588   :  { %10093 = vmatpush.msrb.mxu2 %v22433_v21  ;;  %10034 = vmatpush.msrb.mxu1 %v19973_v10  ;;  %v485_v10 = vld [vmem:[%s21527_s1 + $0xe70] sm:$0xff] }
 0x589   :  { %10144 = vmatpush.msrb.mxu3 %v19993_v11  ;;  %10001 = vmatpush.msrb.mxu0 %v20092_v57  ;;  %v20291_v5 = vand.u32 4294901760, %v485_v10  ;;  %v483_v57 = vld [vmem:[%s21527_s1 + $0xe60] sm:$0xff] }
 0x58a   :  { %10097 = vmatpush.msrb.mxu2 %v22434_v23  ;;  %10036 = vmatpush.msrb.mxu1 %v19993_v11  ;;  %v484_v11 = vld [vmem:[%s21527_s1 + $0xe68] sm:$0xff] }
 0x58b   :  { %10146 = vmatpush.msrb.mxu3 %v20010_v8  ;;  %10004 = vmatpush.msrb.mxu0 %v20109_v50  ;;  %v5013_v50 = vpop.f32.mrf.mxu0 }
 0x58c   :  { %10101 = vmatpush.msrb.mxu2 %v9924_v27  ;;  %10038 = vmatpush.msrb.mxu1 %v20010_v8  ;;  %v4906_v8 = vadd.f32 %v4905_v30, %v4852_v3  ;;  %v4944_v27 = vpop.f32.mrf.mxu3  ;;  %v474_v3 = vld [vmem:[%s21527_s1 + $0xe18] sm:$0xff]  ;;  %v20437_v30 = vand.u32 4294901760, %v475_v42 }
 0x58d   :  { %10148 = vmatpush.msrb.mxu3 %v20029_v35  ;;  %10007 = vmatpush.msrb.mxu0 %v20125_v31  ;;  %v20325_v31 = vand.u32 4294901760, %v482_v1  ;;  %v5091_v41 = vpop.f32.mrf.mxu2 }
 0x58e   :  { %10105 = vmatpush.msrb.mxu2 %v9930_v61  ;;  %10040 = vmatpush.msrb.mxu1 %v20029_v35  ;;  %v20301_v35 = vand.u32 4294901760, %v484_v11  ;;  %v20304_v61 = vsub.f32 %v486_v26, %v20281_v47  ;;  %v4945_v63 = vadd.f32 %v4944_v27, %v4906_v8  ;;  %v20441_v8 = vsub.f32 %v477_v60, %v20407_v9 }
 0x58f   :  { %10150 = vmatpush.msrb.mxu3 %v20049_v15  ;;  %10010 = vmatpush.msrb.mxu0 %v20148_v38  ;;  %v20336_v38 = vand.u32 4294901760, %v481_v2 }
 0x590   :  { %10109 = vmatpush.msrb.mxu2 %v9936_v44  ;;  %10042 = vmatpush.msrb.mxu1 %v20049_v15  ;;  %v20314_v15 = vand.u32 4294901760, %v483_v57  ;;  %v20317_v44 = vsub.f32 %v485_v10, %v20291_v5  ;;  %v20331_v40 = vsub.f32 %v484_v11, %v20301_v35  ;;  %v5014_v20 = vadd.f32 %v5013_v50, %v4945_v63 }
 0x591   :  { %10152 = vmatpush.msrb.mxu3 %v20065_v19  ;;  %10013 = vmatpush.msrb.mxu0 %v20161_v51  ;;  %v20351_v51 = vsub.f32 %v482_v1, %v20325_v31  ;;  %v473_v1 = vld [vmem:[%s21527_s1 + $0xe10] sm:$0xff]  ;;  %v20448_v50 = vand.u32 4294901760, %v584_v52 }
 0x592   :  { %10113 = vmatpush.msrb.mxu2 %v9942_v13  ;;  %10044 = vmatpush.msrb.mxu1 %v20065_v19  ;;  %v5050_v19 = vpop.f32.mrf.mxu1  ;;  %v10211_v13 = vand.u32 4294901760, %v20304_v61  ;;  %v20345_v25 = vsub.f32 %v483_v57, %v20314_v15 }
 0x593   :  { %10154 = vmatpush.msrb.mxu3 %v20081_v14  ;;  %10016 = vmatpush.msrb.mxu0 %v20175_v28  ;;  %v5051_v62 = vadd.f32 %v5050_v19, %v5014_v20  ;;  %v21845_v28 = vand.u32 4294901760, %v20331_v40  ;;  %v21841_v45 = vand.u32 4294901760, %v20351_v51  ;;  %v5246_v22 = vpop.f32.mrf.mxu0  ;;  %v20454_v19 = vand.u32 4294901760, %v474_v3 }
 0x594   :  { %10117 = vmatpush.msrb.mxu2 %v9948_v32  ;;  %10046 = vmatpush.msrb.mxu1 %v20081_v14  ;;  %v480_v32 = vld [vmem:[%s21527_s1 + $0xe48] sm:$0xff]  ;;  %v10217_v14 = vand.u32 4294901760, %v20317_v44  ;;  %v21843_v36 = vand.u32 4294901760, %v20345_v25  ;;  %v5192_v18 = vpop.f32.mrf.mxu3  ;;  %v20478_v60 = vsub.f32 %v584_v52, %v20448_v50 }
 0x595   :  { %10156 = vmatpush.msrb.mxu3 %v20094_v37  ;;  %10019 = vmatmul.f32.vlgmr.msrb.gmra.mxu0 %v20164_v53  ;;  %v20361_v33 = vand.u32 4294901760, %v480_v32  ;;  %v5092_v49 = vadd.f32 %v5091_v41, %v5051_v62  ;;  %v10224_v48 = vsub.f32 %v20331_v40, %v21845_v28  ;;  %v20466_v41 = vand.u32 4294901760, %v473_v1 }
 0x596   :  { %10121 = vmatpush.msrb.mxu2 %v9954_v54  ;;  %10169 = vmatpush.msra.mxu0 %v20281_v47  ;;  %v479_v54 = vld [vmem:[%s21527_s1 + $0xe40] sm:$0xff]  ;;  %v10230_v24 = vsub.f32 %v20345_v25, %v21843_v36 }
 0x597   :  { %10048 = vmatpush.msrb.mxu1 %v20094_v37  ;;  %10158 = vmatpush.msrb.mxu3 %v20117_v4  ;;  %v10212_v37 = vsub.f32 %v20304_v61, %v10211_v13  ;;  %v20377_v34 = vand.u32 4294901760, %v479_v54  ;;  %v5193_v7 = vadd.f32 %v5192_v18, %v5092_v49  ;;  %v10225_v21 = vand.u32 4294901760, %v10224_v48 }
 0x598   :  { %10125 = vmatpush.msrb.mxu2 %v9960_v12  ;;  %10171 = vmatpush.msra.mxu0 %v20291_v5  ;;  %v20367_v12 = vsub.f32 %v481_v2, %v20336_v38  ;;  %v10231_v10 = vand.u32 4294901760, %v10230_v24  ;;  %v5354_v2 = vpop.f32.mrf.mxu2  ;;  %v20504_v52 = vsub.f32 %v473_v1, %v20466_v41 }
 0x599   :  { %10050 = vmatpush.msrb.mxu1 %v20117_v4  ;;  %10160 = vmatpush.msrb.mxu3 %v20134_v39  ;;  %v10218_v4 = vsub.f32 %v20317_v44, %v10217_v14  ;;  %v10213_v29 = vand.u32 4294901760, %v10212_v37  ;;  %v20410_v16 = vsub.f32 %v479_v54, %v20377_v34  ;;  %v5247_v23 = vadd.f32 %v5246_v22, %v5193_v7  ;;  %v471_v7 = vld [vmem:[%s21527_s1 + $0xe00] sm:$0xff] }
 0x59a   :  { %10127 = vmatmul.f32.vlgmr.msrb.gmra.mxu2 %v20136_v55  ;;  %10173 = vmatpush.msra.mxu0 %v20301_v35  ;;  %v21840_v6 = vand.u32 4294901760, %v20367_v12  ;;  %v5285_v0 = vpop.f32.mrf.mxu1  ;;  %v21835_v37 = vand.u32 4294901760, %v20441_v8  ;;  %v20486_v22 = vsub.f32 %v474_v3, %v20454_v19 }
 0x59b   :  { %10312 = vmatpush.msra.mxu2 %v20304_v61  ;;  %10052 = vmatpush.msrb.mxu1 %v20134_v39  ;;  %v20394_v39 = vsub.f32 %v480_v32, %v20361_v33  ;;  %v10219_v46 = vand.u32 4294901760, %v10218_v4  ;;  %v21838_v11 = vand.u32 4294901760, %v20410_v16  ;;  %v5286_v57 = vadd.f32 %v5285_v0, %v5247_v23  ;;  %v472_v4 = vld [vmem:[%s21527_s1 + $0xe08] sm:$0xff]  ;;  %v494_v61 = vld [vmem:[%s21527_s1 + $0xeb8] sm:$0xff] }
 0x59c   :  { %10162 = vmatpush.msrb.mxu3 %v20150_v58  ;;  %10175 = vmatpush.msra.mxu0 %v20314_v15  ;;  %v10242_v26 = vsub.f32 %v20367_v12, %v21840_v6  ;;  %v5391_v18 = vpop.f32.mrf.mxu3  ;;  %v20493_v24 = vand.u32 4294901760, %v472_v4  ;;  %v10266_v0 = vsub.f32 %v20441_v8, %v21835_v37 }
 0x59d   :  { %10164 = vmatmul.f32.vlgmr.msrb.gmra.mxu3 %v20136_v55  ;;  %10315 = vmatpush.msra.mxu2 %v20317_v44  ;;  %v476_v55 = vld [vmem:[%s21527_s1 + $0xe28] sm:$0xff]  ;;  %v21839_v53 = vand.u32 4294901760, %v20394_v39  ;;  %v10254_v54 = vsub.f32 %v20410_v16, %v21838_v11  ;;  %v5355_v49 = vadd.f32 %v5354_v2, %v5286_v57  ;;  %v20518_v2 = vand.u32 4294901760, %v471_v7  ;;  %v493_v44 = vld [vmem:[%s21527_s1 + $0xeb0] sm:$0xff] }
 0x59e   :  { %10365 = vmatpush.msra.mxu3 %v20281_v47  ;;  %10054 = vmatpush.msrb.mxu1 %v20150_v58  ;;  %v10236_v58 = vsub.f32 %v20351_v51, %v21841_v45  ;;  %v20422_v56 = vand.u32 4294901760, %v476_v55  ;;  %v10243_v62 = vand.u32 4294901760, %v10242_v26  ;;  %v21844_v26 = vand.u32 4294901760, %v20478_v60 }
 0x59f   :  { %10177 = vmatpush.msra.mxu0 %v20325_v31  ;;  %10058 = vmatmul.f32.vlgmr.msrb.gmra.mxu1 %v9861_v43  ;;  %v20426_v43 = vsub.f32 %v478_v59, %v20391_v17  ;;  %v10248_v63 = vsub.f32 %v20394_v39, %v21839_v53  ;;  %v20470_v59 = vsub.f32 %v475_v42, %v20437_v30  ;;  %v10255_v42 = vand.u32 4294901760, %v10254_v54 }
 0x5a0   :  { %10318 = vmatpush.msra.mxu2 %v20331_v40  ;;  %10214 = vmatpush.msra.mxu1 %v10213_v29  ;;  %v10237_v27 = vand.u32 4294901760, %v10236_v58  ;;  %v20458_v32 = vsub.f32 %v476_v55, %v20422_v56  ;;  %v5432_v58 = vpop.f32.mrf.mxu0  ;;  %v5392_v23 = vadd.f32 %v5391_v18, %v5355_v49  ;;  %22436 = vst [vmem:[#allocation26_spill] sm:$0xff] %v20518_v2  ;;  %v500_v49 = vld [vmem:[%s21527_s1 + $0xee8] sm:$0xff]  ;;  %v10267_v18 = vand.u32 4294901760, %v10266_v0 }
 0x5a1   :  { %10367 = vmatpush.msra.mxu3 %v20291_v5  ;;  %10179 = vmatpush.msra.mxu0 %v20336_v38  ;;  %v21836_v20 = vand.u32 4294901760, %v20426_v43  ;;  %v10249_v29 = vand.u32 4294901760, %v10248_v63  ;;  %v21837_v63 = vand.u32 4294901760, %v20486_v22  ;;  %v20524_v54 = vsub.f32 %v472_v4, %v20493_v24  ;;  %v499_v4 = vld [vmem:[%s21527_s1 + $0xee0] sm:$0xff] }
 0x5a2   :  { %10321 = vmatpush.msra.mxu2 %v20345_v25  ;;  %10220 = vmatpush.msra.mxu1 %v10219_v46  ;;  %v21834_v55 = vand.u32 4294901760, %v20458_v32  ;;  %v502_v46 = vld [vmem:[%s21527_s1 + $0xef8] sm:$0xff]  ;;  %v5533_v57 = vpop.f32.mrf.mxu1  ;;  %v20554_v37 = vand.u32 4294901760, %v500_v49 }
 0x5a3   :  { %10369 = vmatpush.msra.mxu3 %v20301_v35  ;;  %10181 = vmatpush.msra.mxu0 %v20361_v33  ;;  %v10260_v48 = vsub.f32 %v20426_v43, %v21836_v20  ;;  %v20509_v3 = vand.u32 4294901760, %v502_v46  ;;  %v498_v20 = vld [vmem:[%s21527_s1 + $0xed8] sm:$0xff] }
 0x5a4   :  { %10324 = vmatpush.msra.mxu2 %v20351_v51  ;;  %10226 = vmatpush.msra.mxu1 %v10225_v21  ;;  %v21833_v21 = vand.u32 4294901760, %v20470_v59  ;;  %v10272_v1 = vsub.f32 %v20458_v32, %v21834_v55  ;;  %22437 = vst [vmem:[#allocation27_spill] sm:$0xff] %v20554_v37  ;;  %v20574_v45 = vand.u32 4294901760, %v498_v20 }
 0x5a5   :  { %10371 = vmatpush.msra.mxu3 %v20314_v15  ;;  %10183 = vmatpush.msra.mxu0 %v20377_v34  ;;  %22435 = vst [vmem:[#allocation28_spill] sm:$0xff] %v20509_v3  ;;  %v20545_v0 = vsub.f32 %v502_v46, %v20509_v3  ;;  %v21846_v46 = vand.u32 4294901760, %v20524_v54 }
 0x5a6   :  { %10327 = vmatpush.msra.mxu2 %v20367_v12  ;;  %10232 = vmatpush.msra.mxu1 %v10231_v10  ;;  %v501_v10 = vld [vmem:[%s21527_s1 + $0xef0] sm:$0xff]  ;;  %v10273_v55 = vand.u32 4294901760, %v10272_v1 }
 0x5a7   :  { %10373 = vmatpush.msra.mxu3 %v20325_v31  ;;  %10185 = vmatpush.msra.mxu0 %v20391_v17  ;;  %v21847_v6 = vand.u32 4294901760, %v20545_v0 }
 0x5a8   :  { %10330 = vmatpush.msra.mxu2 %v20394_v39  ;;  %10238 = vmatpush.msra.mxu1 %v10237_v27  ;;  %v10261_v27 = vand.u32 4294901760, %v10260_v48  ;;  %v21842_v48 = vand.u32 4294901760, %v20504_v52 }
 0x5a9   :  { %10375 = vmatpush.msra.mxu3 %v20336_v38  ;;  %10187 = vmatpush.msra.mxu0 %v20407_v9 }
 0x5aa   :  { %10333 = vmatpush.msra.mxu2 %v20410_v16  ;;  %10244 = vmatpush.msra.mxu1 %v10243_v62  ;;  %v5433_v62 = vadd.f32 %v5432_v58, %v5392_v23  ;;  %v20534_v58 = vand.u32 4294901760, %v501_v10 }
 0x5ab   :  { %10377 = vmatpush.msra.mxu3 %v20361_v33  ;;  %10189 = vmatpush.msra.mxu0 %v20422_v56 }
 0x5ac   :  { %10336 = vmatpush.msra.mxu2 %v20426_v43  ;;  %10250 = vmatpush.msra.mxu1 %v10249_v29  ;;  %v10278_v29 = vsub.f32 %v20470_v59, %v21833_v21  ;;  %v5534_v23 = vadd.f32 %v5533_v57, %v5433_v62  ;;  %v5587_v21 = vpop.f32.mrf.mxu2  ;;  %v10284_v57 = vsub.f32 %v20486_v22, %v21837_v63 }
 0x5ad   :  { %10379 = vmatpush.msra.mxu3 %v20377_v34  ;;  %10191 = vmatpush.msra.mxu0 %v20437_v30  ;;  %v20552_v62 = vsub.f32 %v471_v7, %v20518_v2  ;;  %v10290_v7 = vsub.f32 %v20504_v52, %v21842_v48  ;;  %v20569_v63 = vsub.f32 %v501_v10, %v20534_v58 }
 0x5ae   :  { %10339 = vmatpush.msra.mxu2 %v20441_v8  ;;  %10256 = vmatpush.msra.mxu1 %v10255_v42  ;;  %v10203_v42 = vsub.f32 %v20478_v60, %v21844_v26  ;;  %v10279_v1 = vand.u32 4294901760, %v10278_v29  ;;  %v5588_v11 = vadd.f32 %v5587_v21, %v5534_v23  ;;  %v5626_v29 = vpop.f32.mrf.mxu3  ;;  %v10285_v10 = vand.u32 4294901760, %v10284_v57  ;;  %v5695_v57 = vpop.f32.mrf.mxu0 }
 0x5af   :  { %10381 = vmatpush.msra.mxu3 %v20391_v17  ;;  %10193 = vmatpush.msra.mxu0 %v20454_v19  ;;  %v21848_v21 = vand.u32 4294901760, %v20552_v62  ;;  %v20582_v23 = vsub.f32 %v500_v49, %v20554_v37  ;;  %v10291_v49 = vand.u32 4294901760, %v10290_v7  ;;  %v5732_v7 = vpop.f32.mrf.mxu1 }
 0x5b0   :  { %10342 = vmatpush.msra.mxu2 %v20458_v32  ;;  %10262 = vmatpush.msra.mxu1 %v10261_v27  ;;  %v20562_v27 = vand.u32 4294901760, %v499_v4  ;;  %v10204_v53 = vand.u32 4294901760, %v10203_v42  ;;  %v10296_v42 = vsub.f32 %v20524_v54, %v21846_v46  ;;  %v5627_v28 = vadd.f32 %v5626_v29, %v5588_v11 }
 0x5b1   :  { %10383 = vmatpush.msra.mxu3 %v20407_v9  ;;  %10195 = vmatpush.msra.mxu0 %v20466_v41  ;;  %v20604_v46 = vsub.f32 %v498_v20, %v20574_v45  ;;  %v21849_v11 = vand.u32 4294901760, %v20582_v23 }
 0x5b2   :  { %10345 = vmatpush.msra.mxu2 %v20470_v59  ;;  %10268 = vmatpush.msra.mxu1 %v10267_v18  ;;  %v497_v18 = vld [vmem:[%s21527_s1 + $0xed0] sm:$0xff]  ;;  %v20590_v48 = vsub.f32 %v499_v4, %v20562_v27  ;;  %v10553_v4 = vsub.f32 %v20545_v0, %v21847_v6  ;;  %v5696_v6 = vadd.f32 %v5695_v57, %v5627_v28  ;;  %v10297_v20 = vand.u32 4294901760, %v10296_v42 }
 0x5b3   :  { %10385 = vmatpush.msra.mxu3 %v20422_v56  ;;  %10197 = vmatpush.msra.mxu0 %v20493_v24  ;;  %v20597_v26 = vand.u32 4294901760, %v497_v18 }
 0x5b4   :  { %10348 = vmatpush.msra.mxu2 %v20486_v22  ;;  %10274 = vmatpush.msra.mxu1 %v10273_v55  ;;  %v496_v55 = vld [vmem:[%s21527_s1 + $0xec8] sm:$0xff]  ;;  %v5733_v42 = vadd.f32 %v5732_v7, %v5696_v6  ;;  %v10565_v6 = vsub.f32 %v20582_v23, %v21849_v11  ;;  %v22442_v11 = vand.u32 4294901760, %v20345_v25  ;;  %v491_v25 = vld [vmem:[%s21527_s1 + $0xea0] sm:$0xff] }
 0x5b5   :  { %10387 = vmatpush.msra.mxu3 %v20437_v30  ;;  %10199 = vmatpush.msra.mxu0 %v20518_v2  ;;  %v20615_v29 = vand.u32 4294901760, %v496_v55  ;;  %v20629_v28 = vsub.f32 %v497_v18, %v20597_v26 }
 0x5b6   :  { %10351 = vmatpush.msra.mxu2 %v20504_v52  ;;  %10280 = vmatpush.msra.mxu1 %v10279_v1  ;;  %v495_v1 = vld [vmem:[%s21527_s1 + $0xec0] sm:$0xff] }
 0x5b7   :  { %10389 = vmatpush.msra.mxu3 %v20454_v19  ;;  %10205 = vmatmul.f32.vlgmr.msra.gmra.mxu0 %v10204_v53  ;;  %v10302_v53 = vsub.f32 %v20552_v62, %v21848_v21  ;;  %v20631_v57 = vand.u32 4294901760, %v495_v1  ;;  %v10554_v21 = vand.u32 4294901760, %v10553_v4  ;;  %v20646_v7 = vsub.f32 %v496_v55, %v20615_v29 }
 0x5b8   :  { %10354 = vmatpush.msra.mxu2 %v20524_v54  ;;  %10406 = vmatpush.msrb.mxu0 %v10211_v13  ;;  %v22438_v13 = vand.u32 4294901760, %v20569_v63  ;;  %v20648_v4 = vand.u32 4294901760, %v494_v61  ;;  %v21855_v36 = vand.u32 4294901760, %v20629_v28 }
 0x5b9   :  { %10286 = vmatpush.msra.mxu1 %v10285_v10  ;;  %10391 = vmatpush.msra.mxu3 %v20466_v41  ;;  %v10303_v18 = vand.u32 4294901760, %v10302_v53  ;;  %v492_v53 = vld [vmem:[%s21527_s1 + $0xea8] sm:$0xff] }
 0x5ba   :  { %10357 = vmatpush.msra.mxu2 %v20552_v62  ;;  %10410 = vmatpush.msrb.mxu0 %v10217_v14  ;;  %v10559_v10 = vsub.f32 %v20569_v63, %v22438_v13  ;;  %v5773_v14 = vpop.f32.mrf.mxu2  ;;  %v22440_v13 = vand.u32 4294901760, %v20590_v48 }
 0x5bb   :  { %10292 = vmatpush.msra.mxu1 %v10291_v49  ;;  %10393 = vmatpush.msra.mxu3 %v20493_v24  ;;  %v22439_v49 = vand.u32 4294901760, %v20331_v40 }
 0x5bc   :  { %10360 = vmatmul.f32.vlgmr.msra.gmra.mxu2 %v20478_v60  ;;  %v10571_v40 = vsub.f32 %v20590_v48, %v22440_v13  ;;  %v10560_v55 = vand.u32 4294901760, %v10559_v10  ;;  %v22443_v13 = vand.u32 4294901760, %v20604_v46  ;;  %v22444_v10 = vand.u32 4294901760, %v20351_v51 }
 0x5bd   :  { %10414 = vmatpush.msrb.mxu0 %v22439_v49  ;;  %10510 = vmatpush.msrb.mxu2 %v20509_v3  ;;  %v22441_v49 = vand.u32 4294901760, %v20478_v60  ;;  %v5774_v3 = vadd.f32 %v5773_v14, %v5733_v42  ;;  %v20678_v42 = vsub.f32 %v494_v61, %v20648_v4  ;;  %v10583_v51 = vsub.f32 %v20629_v28, %v21855_v36 }
 0x5be   :  { %10298 = vmatpush.msra.mxu1 %v10297_v20  ;;  %10395 = vmatpush.msra.mxu3 %v20518_v2  ;;  %v20663_v20 = vsub.f32 %v495_v1, %v20631_v57  ;;  %v20665_v2 = vand.u32 4294901760, %v493_v44  ;;  %v10577_v60 = vsub.f32 %v20604_v46, %v22443_v13  ;;  %v10566_v1 = vand.u32 4294901760, %v10565_v6  ;;  %v5928_v13 = vpop.f32.mrf.mxu0 }
 0x5bf   :  { %10399 = vmatmul.f32.vlgmr.msra.gmra.mxu3 %v22441_v49  ;;  %10418 = vmatpush.msrb.mxu0 %v22442_v11  ;;  %v5874_v11 = vpop.f32.mrf.mxu3  ;;  %v10572_v14 = vand.u32 4294901760, %v10571_v40  ;;  %v22445_v49 = vand.u32 4294901760, %v20367_v12  ;;  %v489_v12 = vld [vmem:[%s21527_s1 + $0xe90] sm:$0xff] }
 0x5c0   :  { %10512 = vmatpush.msrb.mxu2 %v20534_v58  ;;  %10555 = vmatpush.msrb.mxu3 %v10554_v21  ;;  %v20680_v21 = vand.u32 4294901760, %v492_v53  ;;  %v20693_v6 = vsub.f32 %v493_v44, %v20665_v2  ;;  %v5875_v40 = vadd.f32 %v5874_v11, %v5774_v3  ;;  %v21856_v44 = vand.u32 4294901760, %v20678_v42 }
 0x5c1   :  { %10304 = vmatpush.msra.mxu1 %v10303_v18  ;;  %10422 = vmatpush.msrb.mxu0 %v22444_v10  ;;  %v490_v18 = vld [vmem:[%s21527_s1 + $0xe98] sm:$0xff]  ;;  %v20695_v10 = vand.u32 4294901760, %v491_v25  ;;  %v22447_v11 = vand.u32 4294901760, %v20394_v39  ;;  %v488_v39 = vld [vmem:[%s21527_s1 + $0xe88] sm:$0xff] }
 0x5c2   :  { %10306 = vmatmul.f32.vlgmr.msra.gmra.mxu1 %v20448_v50  ;;  %10514 = vmatpush.msrb.mxu2 %v20554_v37  ;;  %v10578_v37 = vand.u32 4294901760, %v10577_v60  ;;  %v20706_v61 = vsub.f32 %v492_v53, %v20680_v21  ;;  %v20708_v3 = vand.u32 4294901760, %v490_v18  ;;  %v5929_v60 = vadd.f32 %v5928_v13, %v5875_v40  ;;  %v585_v13 = vld.sshfl [vmem:[#allocation1 + $0x28] sm:$0xff pattern:$0x73625140] }
 0x5c3   :  { %10473 = vmatpush.msrb.mxu1 %v20281_v47  ;;  %10561 = vmatpush.msrb.mxu3 %v10560_v55  ;;  %v5967_v47 = vpop.f32.mrf.mxu1  ;;  %v22446_v55 = vand.u32 4294901760, %v20646_v7 }
 0x5c4   :  { %10426 = vmatpush.msrb.mxu0 %v22445_v49  ;;  %10516 = vmatpush.msrb.mxu2 %v20562_v27  ;;  %v21857_v49 = vand.u32 4294901760, %v20693_v6  ;;  %v5968_v40 = vadd.f32 %v5967_v47, %v5929_v60  ;;  %v20738_v47 = vsub.f32 %v490_v18, %v20708_v3  ;;  %v22450_v60 = vand.u32 4294901760, %v20426_v43 }
 0x5c5   :  { %10475 = vmatpush.msrb.mxu1 %v20291_v5  ;;  %10567 = vmatpush.msrb.mxu3 %v10566_v1  ;;  %v10589_v36 = vsub.f32 %v20646_v7, %v22446_v55  ;;  %v10584_v5 = vand.u32 4294901760, %v10583_v51  ;;  %v22448_v1 = vand.u32 4294901760, %v20663_v20  ;;  %v20722_v55 = vsub.f32 %v491_v25, %v20695_v10 }
 0x5c6   :  { %10430 = vmatpush.msrb.mxu0 %v22447_v11  ;;  %10518 = vmatpush.msrb.mxu2 %v20574_v45  ;;  %v22449_v11 = vand.u32 4294901760, %v20410_v16  ;;  %v10601_v25 = vsub.f32 %v20678_v42, %v21856_v44  ;;  %v487_v16 = vld [vmem:[%s21527_s1 + $0xe80] sm:$0xff]  ;;  %v10607_v18 = vsub.f32 %v20693_v6, %v21857_v49  ;;  %v22451_v43 = vand.u32 4294901760, %v20441_v8 }
 0x5c7   :  { %10477 = vmatpush.msrb.mxu1 %v20301_v35  ;;  %10573 = vmatpush.msrb.mxu3 %v10572_v14  ;;  %v10595_v53 = vsub.f32 %v20663_v20, %v22448_v1  ;;  %v20730_v35 = vand.u32 4294901760, %v489_v12  ;;  %v6036_v14 = vpop.f32.mrf.mxu2  ;;  %v10590_v51 = vand.u32 4294901760, %v10589_v36  ;;  %v20748_v36 = vand.u32 4294901760, %v585_v13 }
 0x5c8   :  { %10434 = vmatpush.msrb.mxu0 %v22449_v11  ;;  %10520 = vmatpush.msrb.mxu2 %v20597_v26  ;;  %v10618_v11 = vand.u32 4294901760, %v20722_v55  ;;  %v6037_v44 = vadd.f32 %v6036_v14, %v5968_v40  ;;  %v20761_v1 = vand.u32 4294901760, %v487_v16  ;;  %v10624_v40 = vand.u32 4294901760, %v20738_v47 }
 0x5c9   :  { %10479 = vmatpush.msrb.mxu1 %v20314_v15  ;;  %10579 = vmatpush.msrb.mxu3 %v10578_v37  ;;  %v20746_v15 = vand.u32 4294901760, %v488_v39  ;;  %v10596_v37 = vand.u32 4294901760, %v10595_v53  ;;  %v22452_v53 = vand.u32 4294901760, %v20706_v61  ;;  %v22453_v8 = vand.u32 4294901760, %v20458_v32 }
 0x5ca   :  { %10438 = vmatpush.msrb.mxu0 %v22450_v60  ;;  %10522 = vmatpush.msrb.mxu2 %v20615_v29  ;;  %v20759_v60 = vsub.f32 %v489_v12, %v20730_v35  ;;  %v20775_v14 = vsub.f32 %v585_v13, %v20748_v36  ;;  %v22454_v32 = vand.u32 4294901760, %v20470_v59  ;;  %v20786_v13 = vsub.f32 %v487_v16, %v20761_v1 }
 0x5cb   :  { %10481 = vmatpush.msrb.mxu1 %v20325_v31  ;;  %10585 = vmatpush.msrb.mxu3 %v10584_v5  ;;  %v6073_v31 = vpop.f32.mrf.mxu3  ;;  %v10602_v5 = vand.u32 4294901760, %v10601_v25  ;;  %v10613_v49 = vsub.f32 %v20706_v61, %v22452_v53  ;;  %v20772_v12 = vsub.f32 %v488_v39, %v20746_v15  ;;  %v10619_v25 = vsub.f32 %v20722_v55, %v10618_v11  ;;  %v6215_v53 = vpop.f32.mrf.mxu1 }
 0x5cc   :  { %10442 = vmatpush.msrb.mxu0 %v22451_v43  ;;  %10524 = vmatpush.msrb.mxu2 %v20631_v57  ;;  %v6074_v43 = vadd.f32 %v6073_v31, %v6037_v44  ;;  %v10630_v39 = vand.u32 4294901760, %v20759_v60  ;;  %v22455_v59 = vand.u32 4294901760, %v20486_v22  ;;  %v10543_v16 = vand.u32 4294901760, %v20775_v14 }
 0x5cd   :  { %10483 = vmatpush.msrb.mxu1 %v20336_v38  ;;  %10591 = vmatpush.msrb.mxu3 %v10590_v51  ;;  %v6114_v38 = vpop.f32.mrf.mxu0  ;;  %v10608_v51 = vand.u32 4294901760, %v10607_v18  ;;  %v10636_v18 = vand.u32 4294901760, %v20772_v12 }
 0x5ce   :  { %10446 = vmatpush.msrb.mxu0 %v22453_v8  ;;  %10526 = vmatpush.msrb.mxu2 %v20648_v4  ;;  %v6115_v44 = vadd.f32 %v6114_v38, %v6074_v43  ;;  %v10631_v22 = vsub.f32 %v20759_v60, %v10630_v39 }
 0x5cf   :  { %10485 = vmatpush.msrb.mxu1 %v20361_v33  ;;  %10597 = vmatpush.msrb.mxu3 %v10596_v37  ;;  %v10614_v33 = vand.u32 4294901760, %v10613_v49  ;;  %v10625_v37 = vsub.f32 %v20738_v47, %v10624_v40  ;;  %v22456_v49 = vand.u32 4294901760, %v20504_v52  ;;  %v6269_v8 = vpop.f32.mrf.mxu2  ;;  %v10637_v52 = vsub.f32 %v20772_v12, %v10636_v18 }
 0x5d0   :  { %10450 = vmatpush.msrb.mxu0 %v22454_v32  ;;  %10528 = vmatpush.msrb.mxu2 %v20665_v2  ;;  %v6216_v31 = vadd.f32 %v6215_v53, %v6115_v44 }
 0x5d1   :  { %10487 = vmatpush.msrb.mxu1 %v20377_v34  ;;  %10603 = vmatpush.msrb.mxu3 %v10602_v5  ;;  %v10620_v34 = vand.u32 4294901760, %v10619_v25  ;;  %v10642_v5 = vand.u32 4294901760, %v20786_v13  ;;  %v10626_v38 = vand.u32 4294901760, %v10625_v37 }
 0x5d2   :  { %10454 = vmatpush.msrb.mxu0 %v22455_v59  ;;  %10530 = vmatpush.msrb.mxu2 %v20680_v21  ;;  %v6270_v25 = vadd.f32 %v6269_v8, %v6216_v31  ;;  %v22459_v59 = vand.u32 4294901760, %v20545_v0  ;;  %v22460_v31 = vand.u32 4294901760, %v20569_v63 }
 0x5d3   :  { %10489 = vmatpush.msrb.mxu1 %v20391_v17  ;;  %10609 = vmatpush.msrb.mxu3 %v10608_v51  ;;  %v22457_v17 = vand.u32 4294901760, %v20524_v54  ;;  %v10544_v51 = vsub.f32 %v20775_v14, %v10543_v16  ;;  %v10632_v54 = vand.u32 4294901760, %v10631_v22  ;;  %v10643_v43 = vsub.f32 %v20786_v13, %v10642_v5  ;;  %v6308_v32 = vpop.f32.mrf.mxu3  ;;  %v6414_v44 = vpop.f32.mrf.mxu1 }
 0x5d4   :  { %10458 = vmatpush.msrb.mxu0 %v22456_v49  ;;  %10532 = vmatpush.msrb.mxu2 %v20695_v10  ;;  %v22462_v49 = vld [vmem:[#allocation26_spill] sm:$0xff] }
 0x5d5   :  { %10491 = vmatpush.msrb.mxu1 %v20407_v9  ;;  %10615 = vmatpush.msrb.mxu3 %v10614_v33  ;;  %v22458_v9 = vand.u32 4294901760, %v20552_v62  ;;  %v10545_v53 = vand.u32 4294901760, %v10544_v51  ;;  %v6377_v33 = vpop.f32.mrf.mxu0  ;;  %v6309_v62 = vadd.f32 %v6308_v32, %v6270_v25  ;;  %v10644_v37 = vand.u32 4294901760, %v10643_v43 }
 0x5d6   :  { %10462 = vmatpush.msrb.mxu0 %v22457_v17  ;;  %10534 = vmatpush.msrb.mxu2 %v20708_v3 }
 0x5d7   :  { %10493 = vmatpush.msrb.mxu1 %v20422_v56  ;;  %10621 = vmatpush.msrb.mxu3 %v10620_v34  ;;  %v10638_v56 = vand.u32 4294901760, %v10637_v52 }
 0x5d8   :  { %10466 = vmatpush.msrb.mxu0 %v22458_v9  ;;  %10536 = vmatpush.msrb.mxu2 %v20730_v35 }
 0x5d9   :  { %10495 = vmatpush.msrb.mxu1 %v20437_v30  ;;  %10627 = vmatpush.msrb.mxu3 %v10626_v38  ;;  %v6378_v30 = vadd.f32 %v6377_v33, %v6309_v62  ;;  %v22465_v38 = vld [vmem:[#allocation27_spill] sm:$0xff]  ;;  %v513_v62 = vld [vmem:[%s21527_s1 + $0xf50] sm:$0xff] }
 0x5da   :  { %10468 = vmatmul.f32.vlgmr.msrb.gmra.mxu0 %v20448_v50  ;;  %10538 = vmatpush.msrb.mxu2 %v20746_v15 }
 0x5db   :  { %10653 = vmatpush.msra.mxu0 %v20545_v0  ;;  %10497 = vmatpush.msrb.mxu1 %v20454_v19  ;;  %v6415_v34 = vadd.f32 %v6414_v44, %v6378_v30  ;;  %v6455_v19 = vpop.f32.mrf.mxu2  ;;  %v6556_v22 = vpop.f32.mrf.mxu3  ;;  %v20942_v44 = vand.u32 4294901760, %v513_v62 }
 0x5dc   :  { %10633 = vmatpush.msrb.mxu3 %v10632_v54  ;;  %10540 = vmatpush.msrb.mxu2 %v20761_v1 }
 0x5dd   :  { %10656 = vmatpush.msra.mxu0 %v20569_v63  ;;  %10499 = vmatpush.msrb.mxu1 %v20466_v41  ;;  %v22461_v41 = vld [vmem:[#allocation28_spill] sm:$0xff]  ;;  %v6456_v0 = vadd.f32 %v6455_v19, %v6415_v34  ;;  %v22464_v63 = vand.u32 4294901760, %v20590_v48  ;;  %v6610_v8 = vpop.f32.mrf.mxu0  ;;  %v20973_v19 = vsub.f32 %v513_v62, %v20942_v44 }
 0x5de   :  { %10639 = vmatpush.msrb.mxu3 %v10638_v56  ;;  %10546 = vmatmul.f32.vlgmr.msrb.gmra.mxu2 %v10545_v53  ;;  %v514_v53 = vld [vmem:[%s21527_s1 + $0xf58] sm:$0xff] }
 0x5df   :  { %10659 = vmatpush.msra.mxu0 %v20582_v23  ;;  %10747 = vmatpush.msra.mxu2 %v22459_v59  ;;  %v6557_v17 = vadd.f32 %v6556_v22, %v6456_v0 }
 0x5e0   :  { %10501 = vmatpush.msrb.mxu1 %v20493_v24  ;;  %10645 = vmatpush.msrb.mxu3 %v10644_v37  ;;  %v22463_v24 = vand.u32 4294901760, %v20582_v23  ;;  %v6649_v23 = vpop.f32.mrf.mxu1 }
 0x5e1   :  { %10647 = vmatmul.f32.vlgmr.msrb.gmra.mxu3 %v20748_v36  ;;  %10662 = vmatpush.msra.mxu0 %v20590_v48  ;;  %v6611_v52 = vadd.f32 %v6610_v8, %v6557_v17  ;;  %v22467_v48 = vand.u32 4294901760, %v20629_v28 }
 0x5e2   :  { %10751 = vmatpush.msra.mxu2 %v22460_v31  ;;  %10814 = vmatpush.msra.mxu3 %v22461_v41 }
 0x5e3   :  { %10503 = vmatpush.msrb.mxu1 %v22462_v49  ;;  %10665 = vmatpush.msra.mxu0 %v20604_v46  ;;  %v6718_v51 = vpop.f32.mrf.mxu2  ;;  %v6755_v25 = vpop.f32.mrf.mxu3 }
 0x5e4   :  { %10505 = vmatmul.f32.vlgmr.msrb.gmra.mxu1 %v20448_v50  ;;  %10755 = vmatpush.msra.mxu2 %v22463_v24  ;;  %v22466_v50 = vand.u32 4294901760, %v20604_v46  ;;  %v22468_v46 = vand.u32 4294901760, %v20646_v7 }
 0x5e5   :  { %10706 = vmatpush.msra.mxu1 %v22461_v41  ;;  %10816 = vmatpush.msra.mxu3 %v20534_v58 }
 0x5e6   :  { %10668 = vmatpush.msra.mxu0 %v20629_v28  ;;  %10759 = vmatpush.msra.mxu2 %v22464_v63  ;;  %v22469_v28 = vand.u32 4294901760, %v20663_v20  ;;  %v509_v63 = vld [vmem:[%s21527_s1 + $0xf30] sm:$0xff] }
 0x5e7   :  { %10708 = vmatpush.msra.mxu1 %v20534_v58  ;;  %10818 = vmatpush.msra.mxu3 %v22465_v38  ;;  %v6650_v58 = vadd.f32 %v6649_v23, %v6611_v52  ;;  %v21865_v23 = vand.u32 4294901760, %v20973_v19 }
 0x5e8   :  { %10671 = vmatpush.msra.mxu0 %v20646_v7  ;;  %10763 = vmatpush.msra.mxu2 %v22466_v50  ;;  %v22470_v7 = vand.u32 4294901760, %v20678_v42  ;;  %v6897_v43 = vpop.f32.mrf.mxu1 }
 0x5e9   :  { %10710 = vmatpush.msra.mxu1 %v22465_v38  ;;  %10820 = vmatpush.msra.mxu3 %v20562_v27 }
 0x5ea   :  { %10674 = vmatpush.msra.mxu0 %v20663_v20  ;;  %10767 = vmatpush.msra.mxu2 %v22467_v48  ;;  %v517_v20 = vld [vmem:[%s21527_s1 + $0xf70] sm:$0xff] }
 0x5eb   :  { %10712 = vmatpush.msra.mxu1 %v20562_v27  ;;  %10822 = vmatpush.msra.mxu3 %v20574_v45  ;;  %v6719_v27 = vadd.f32 %v6718_v51, %v6650_v58 }
 0x5ec   :  { %10677 = vmatpush.msra.mxu0 %v20678_v42  ;;  %10771 = vmatpush.msra.mxu2 %v22468_v46  ;;  %v6796_v42 = vpop.f32.mrf.mxu0  ;;  %v21013_v46 = vand.u32 4294901760, %v509_v63 }
 0x5ed   :  { %10714 = vmatpush.msra.mxu1 %v20574_v45  ;;  %10824 = vmatpush.msra.mxu3 %v20597_v26  ;;  %v518_v45 = vld [vmem:[%s21527_s1 + $0xf78] sm:$0xff]  ;;  %v6756_v54 = vadd.f32 %v6755_v25, %v6719_v27 }
 0x5ee   :  { %10680 = vmatpush.msra.mxu0 %v20693_v6  ;;  %10775 = vmatpush.msra.mxu2 %v22469_v28  ;;  %v20887_v9 = vand.u32 4294901760, %v518_v45  ;;  %v507_v28 = vld [vmem:[%s21527_s1 + $0xf20] sm:$0xff] }
 0x5ef   :  { %10716 = vmatpush.msra.mxu1 %v20597_v26  ;;  %10826 = vmatpush.msra.mxu3 %v20615_v29  ;;  %v22471_v26 = vand.u32 4294901760, %v20693_v6  ;;  %v516_v6 = vld [vmem:[%s21527_s1 + $0xf68] sm:$0xff]  ;;  %v6797_v32 = vadd.f32 %v6796_v42, %v6756_v54 }
 0x5f0   :  { %10683 = vmatpush.msra.mxu0 %v20706_v61  ;;  %10779 = vmatpush.msra.mxu2 %v22470_v7  ;;  %v20907_v56 = vand.u32 4294901760, %v516_v6  ;;  %v7096_v31 = vpop.f32.mrf.mxu1 }
 0x5f1   :  { %10718 = vmatpush.msra.mxu1 %v20615_v29  ;;  %10828 = vmatpush.msra.mxu3 %v20631_v57  ;;  %v22472_v29 = vand.u32 4294901760, %v20706_v61  ;;  %v515_v61 = vld [vmem:[%s21527_s1 + $0xf60] sm:$0xff]  ;;  %v6898_v33 = vadd.f32 %v6897_v43, %v6797_v32  ;;  %v21047_v43 = vsub.f32 %v509_v63, %v21013_v46 }
 0x5f2   :  { %10686 = vmatpush.msra.mxu0 %v20722_v55  ;;  %10783 = vmatpush.msra.mxu2 %v22471_v26  ;;  %v6951_v55 = vpop.f32.mrf.mxu2  ;;  %v10924_v26 = vsub.f32 %v20973_v19, %v21865_v23 }
 0x5f3   :  { %10720 = vmatpush.msra.mxu1 %v20631_v57  ;;  %10830 = vmatpush.msra.mxu3 %v20648_v4  ;;  %v20897_v57 = vand.u32 4294901760, %v517_v20  ;;  %v6952_v37 = vadd.f32 %v6951_v55, %v6898_v33 }
 0x5f4   :  { %10689 = vmatpush.msra.mxu0 %v20738_v47  ;;  %10787 = vmatpush.msra.mxu2 %v22472_v29  ;;  %v20931_v47 = vand.u32 4294901760, %v514_v53  ;;  %v7059_v59 = vpop.f32.mrf.mxu0  ;;  %v21043_v29 = vand.u32 4294901760, %v507_v28 }
 0x5f5   :  { %10722 = vmatpush.msra.mxu1 %v20648_v4  ;;  %10832 = vmatpush.msra.mxu3 %v20665_v2  ;;  %v20910_v4 = vsub.f32 %v518_v45, %v20887_v9 }
 0x5f6   :  { %10692 = vmatpush.msra.mxu0 %v20759_v60  ;;  %10791 = vmatpush.msra.mxu2 %v10618_v11  ;;  %v20923_v11 = vsub.f32 %v517_v20, %v20897_v57  ;;  %v512_v60 = vld [vmem:[%s21527_s1 + $0xf48] sm:$0xff]  ;;  %v506_v20 = vld [vmem:[%s21527_s1 + $0xf18] sm:$0xff] }
 0x5f7   :  { %10724 = vmatpush.msra.mxu1 %v20665_v2  ;;  %10834 = vmatpush.msra.mxu3 %v20680_v21  ;;  %v20920_v2 = vand.u32 4294901760, %v515_v61  ;;  %v20967_v34 = vand.u32 4294901760, %v512_v60  ;;  %v21060_v62 = vand.u32 4294901760, %v506_v20 }
 0x5f8   :  { %10695 = vmatpush.msra.mxu0 %v20772_v12  ;;  %10795 = vmatpush.msra.mxu2 %v10624_v40  ;;  %v20937_v40 = vsub.f32 %v516_v6, %v20907_v56  ;;  %v20957_v12 = vsub.f32 %v514_v53, %v20931_v47 }
 0x5f9   :  { %10726 = vmatpush.msra.mxu1 %v20680_v21  ;;  %10836 = vmatpush.msra.mxu3 %v20695_v10  ;;  %v10893_v21 = vand.u32 4294901760, %v20910_v4  ;;  %v20951_v30 = vsub.f32 %v515_v61, %v20920_v2  ;;  %v505_v61 = vld [vmem:[%s21527_s1 + $0xf10] sm:$0xff] }
 0x5fa   :  { %10698 = vmatpush.msra.mxu0 %v20786_v13  ;;  %10799 = vmatpush.msra.mxu2 %v10630_v39  ;;  %v10899_v39 = vand.u32 4294901760, %v20923_v11  ;;  %v21872_v13 = vand.u32 4294901760, %v20937_v40  ;;  %v21866_v22 = vand.u32 4294901760, %v20957_v12  ;;  %v7137_v52 = vpop.f32.mrf.mxu2 }
 0x5fb   :  { %10728 = vmatpush.msra.mxu1 %v20695_v10  ;;  %10838 = vmatpush.msra.mxu3 %v20708_v3  ;;  %v6990_v10 = vpop.f32.mrf.mxu3  ;;  %v21867_v0 = vand.u32 4294901760, %v20951_v30 }
 0x5fc   :  { %10701 = vmatmul.f32.vlgmr.msra.gmra.mxu0 %v20775_v14  ;;  %10803 = vmatpush.msra.mxu2 %v10636_v18  ;;  %v511_v18 = vld [vmem:[%s21527_s1 + $0xf40] sm:$0xff]  ;;  %v10900_v41 = vsub.f32 %v20923_v11, %v10899_v39  ;;  %v10906_v38 = vsub.f32 %v20937_v40, %v21872_v13  ;;  %v7292_v33 = vpop.f32.mrf.mxu0 }
 0x5fd   :  { %10851 = vmatpush.msrb.mxu0 %v20887_v9  ;;  %10730 = vmatpush.msra.mxu1 %v20708_v3  ;;  %v10894_v3 = vsub.f32 %v20910_v4, %v10893_v21  ;;  %v20983_v49 = vand.u32 4294901760, %v511_v18  ;;  %v10912_v58 = vsub.f32 %v20951_v30, %v21867_v0 }
 0x5fe   :  { %10840 = vmatpush.msra.mxu3 %v20730_v35  ;;  %10807 = vmatpush.msra.mxu2 %v10642_v5  ;;  %v6991_v5 = vadd.f32 %v6990_v10, %v6952_v37  ;;  %v10901_v48 = vand.u32 4294901760, %v10900_v41  ;;  %v10907_v27 = vand.u32 4294901760, %v10906_v38  ;;  %v504_v41 = vld [vmem:[%s21527_s1 + $0xf08] sm:$0xff] }
 0x5ff   :  { %10853 = vmatpush.msrb.mxu0 %v20897_v57  ;;  %10732 = vmatpush.msra.mxu1 %v20730_v35  ;;  %v510_v35 = vld [vmem:[%s21527_s1 + $0xf38] sm:$0xff]  ;;  %v10895_v8 = vand.u32 4294901760, %v10894_v3  ;;  %v21016_v51 = vsub.f32 %v511_v18, %v20983_v49  ;;  %v10913_v54 = vand.u32 4294901760, %v10912_v58  ;;  %v10925_v18 = vand.u32 4294901760, %v10924_v26 }
 0x600   :  { %10842 = vmatpush.msra.mxu3 %v20746_v15  ;;  %10809 = vmatmul.f32.vlgmr.msra.gmra.mxu2 %v20748_v36  ;;  %v7060_v24 = vadd.f32 %v7059_v59, %v6991_v5  ;;  %v20997_v17 = vand.u32 4294901760, %v510_v35  ;;  %v7331_v59 = vpop.f32.mrf.mxu1  ;;  %v21072_v5 = vand.u32 4294901760, %v505_v61  ;;  %v21099_v58 = vand.u32 4294901760, %v504_v41 }
 0x601   :  { %10855 = vmatpush.msrb.mxu0 %v20907_v56  ;;  %10994 = vmatpush.msrb.mxu2 %v20910_v4  ;;  %v21862_v6 = vand.u32 4294901760, %v21016_v51  ;;  %v526_v4 = vld [vmem:[%s21527_s1 + $0xfb8] sm:$0xff] }
 0x602   :  { %10734 = vmatpush.msra.mxu1 %v20746_v15  ;;  %10844 = vmatpush.msra.mxu3 %v20761_v1  ;;  %v21000_v15 = vsub.f32 %v512_v60, %v20967_v34  ;;  %v7097_v50 = vadd.f32 %v7096_v31, %v7060_v24  ;;  %v21032_v14 = vsub.f32 %v510_v35, %v20997_v17  ;;  %v21860_v35 = vand.u32 4294901760, %v21047_v43 }
 0x603   :  { %10846 = vmatmul.f32.vlgmr.msra.gmra.mxu3 %v20748_v36  ;;  %10857 = vmatpush.msrb.mxu0 %v20920_v2  ;;  %v508_v36 = vld [vmem:[%s21527_s1 + $0xf28] sm:$0xff]  ;;  %v7238_v42 = vpop.f32.mrf.mxu3  ;;  %v10936_v3 = vsub.f32 %v21016_v51, %v21862_v6  ;;  %v21076_v31 = vsub.f32 %v507_v28, %v21043_v29  ;;  %22473 = vst [vmem:[#allocation29_spill] sm:$0xff] %v21099_v58  ;;  %v7400_v28 = vpop.f32.mrf.mxu2  ;;  %v530_v6 = vld [vmem:[%s21527_s1 + $0xfd8] sm:$0xff] }
 0x604   :  { %10997 = vmatpush.msrb.mxu2 %v20923_v11  ;;  %11047 = vmatpush.msrb.mxu3 %v20887_v9  ;;  %v21028_v7 = vand.u32 4294901760, %v508_v36  ;;  %v21863_v45 = vand.u32 4294901760, %v21000_v15  ;;  %v7138_v25 = vadd.f32 %v7137_v52, %v7097_v50  ;;  %v21861_v37 = vand.u32 4294901760, %v21032_v14  ;;  %v534_v52 = vld [vmem:[%s21527_s1 + $0xff8] sm:$0xff]  ;;  %v525_v11 = vld [vmem:[%s21527_s1 + $0xfb0] sm:$0xff] }
 0x605   :  { %10736 = vmatpush.msra.mxu1 %v20761_v1  ;;  %10859 = vmatpush.msrb.mxu0 %v20931_v47  ;;  %v10918_v1 = vsub.f32 %v20957_v12, %v21866_v22  ;;  %v21110_v26 = vsub.f32 %v505_v61, %v21072_v5  ;;  %v21180_v0 = vand.u32 4294901760, %v530_v6 }
 0x606   :  { %10740 = vmatmul.f32.vlgmr.msra.gmra.mxu1 %v10543_v16  ;;  %11000 = vmatpush.msrb.mxu2 %v20937_v40  ;;  %v586_v16 = vld.sshfl [vmem:[#allocation1 + $0x30] sm:$0xff pattern:$0x73625140]  ;;  %v10930_v55 = vsub.f32 %v21000_v15, %v21863_v45  ;;  %v21064_v60 = vsub.f32 %v508_v36, %v21028_v7  ;;  %v7239_v10 = vadd.f32 %v7238_v42, %v7138_v25  ;;  %v21858_v25 = vand.u32 4294901760, %v21076_v31 }
 0x607   :  { %10896 = vmatpush.msrb.mxu1 %v10895_v8  ;;  %11049 = vmatpush.msrb.mxu3 %v20897_v57  ;;  %v10919_v32 = vand.u32 4294901760, %v10918_v1  ;;  %v21054_v53 = vand.u32 4294901760, %v586_v16  ;;  %v10942_v38 = vsub.f32 %v21032_v14, %v21861_v37  ;;  %v21092_v36 = vsub.f32 %v506_v20, %v21060_v62  ;;  %v503_v1 = vld [vmem:[%s21527_s1 + $0xf00] sm:$0xff] }
 0x608   :  { %10861 = vmatpush.msrb.mxu0 %v20942_v44  ;;  %11003 = vmatpush.msrb.mxu2 %v20951_v30  ;;  %v7293_v24 = vadd.f32 %v7292_v33, %v7239_v10  ;;  %v10931_v8 = vand.u32 4294901760, %v10930_v55  ;;  %v21859_v50 = vand.u32 4294901760, %v21064_v60  ;;  %v21115_v42 = vand.u32 4294901760, %v534_v52  ;;  %v7579_v45 = vpop.f32.mrf.mxu1 }
 0x609   :  { %10902 = vmatpush.msrb.mxu1 %v10901_v48  ;;  %11051 = vmatpush.msrb.mxu3 %v20907_v56  ;;  %v21084_v63 = vsub.f32 %v586_v16, %v21054_v53  ;;  %v10948_v16 = vsub.f32 %v21047_v43, %v21860_v35  ;;  %v21124_v33 = vand.u32 4294901760, %v503_v1  ;;  %v21864_v55 = vand.u32 4294901760, %v21092_v36 }
 0x60a   :  { %10863 = vmatpush.msrb.mxu0 %v20967_v34  ;;  %11006 = vmatpush.msrb.mxu2 %v20957_v12  ;;  %v7332_v48 = vadd.f32 %v7331_v59, %v7293_v24  ;;  %22474 = vst [vmem:[#allocation32_spill] sm:$0xff] %v21115_v42  ;;  %v10954_v61 = vsub.f32 %v21064_v60, %v21859_v50  ;;  %v532_v59 = vld [vmem:[%s21527_s1 + $0xfe8] sm:$0xff] }
 0x60b   :  { %10908 = vmatpush.msrb.mxu1 %v10907_v27  ;;  %11053 = vmatpush.msrb.mxu3 %v20920_v2  ;;  %v10937_v27 = vand.u32 4294901760, %v10936_v3  ;;  %v21870_v20 = vand.u32 4294901760, %v21084_v63  ;;  %22475 = vst [vmem:[#allocation30_spill] sm:$0xff] %v21124_v33  ;;  %v7437_v3 = vpop.f32.mrf.mxu3  ;;  %v10949_v24 = vand.u32 4294901760, %v10948_v16  ;;  %v7478_v16 = vpop.f32.mrf.mxu0  ;;  %v10966_v50 = vsub.f32 %v21092_v36, %v21864_v55 }
 0x60c   :  { %10865 = vmatpush.msrb.mxu0 %v20983_v49  ;;  %11009 = vmatpush.msrb.mxu2 %v20973_v19  ;;  %v7401_v10 = vadd.f32 %v7400_v28, %v7332_v48  ;;  %v21158_v35 = vsub.f32 %v503_v1, %v21124_v33  ;;  %v21160_v37 = vand.u32 4294901760, %v532_v59 }
 0x60d   :  { %10914 = vmatpush.msrb.mxu1 %v10913_v54  ;;  %11055 = vmatpush.msrb.mxu3 %v20931_v47  ;;  %v533_v54 = vld [vmem:[%s21527_s1 + $0xff0] sm:$0xff]  ;;  %v10885_v28 = vsub.f32 %v21084_v63, %v21870_v20 }
 0x60e   :  { %10867 = vmatpush.msrb.mxu0 %v20997_v17  ;;  %11012 = vmatpush.msrb.mxu2 %v21000_v15  ;;  %v21140_v48 = vand.u32 4294901760, %v533_v54 }
 0x60f   :  { %10920 = vmatpush.msrb.mxu1 %v10919_v32  ;;  %11057 = vmatpush.msrb.mxu3 %v20942_v44  ;;  %v10943_v32 = vand.u32 4294901760, %v10942_v38  ;;  %v21868_v38 = vand.u32 4294901760, %v21110_v26 }
 0x610   :  { %10869 = vmatpush.msrb.mxu0 %v21013_v46  ;;  %11015 = vmatpush.msrb.mxu2 %v21016_v51  ;;  %v21175_v23 = vsub.f32 %v533_v54, %v21140_v48  ;;  %v21873_v54 = vand.u32 4294901760, %v21158_v35 }
 0x611   :  { %10926 = vmatpush.msrb.mxu1 %v10925_v18  ;;  %11059 = vmatpush.msrb.mxu3 %v20967_v34  ;;  %v21130_v18 = vsub.f32 %v504_v41, %v21099_v58  ;;  %v531_v41 = vld [vmem:[%s21527_s1 + $0xfe0] sm:$0xff]  ;;  %v10972_v55 = vsub.f32 %v21110_v26, %v21868_v38 }
 0x612   :  { %10871 = vmatpush.msrb.mxu0 %v21028_v7  ;;  %11018 = vmatpush.msrb.mxu2 %v21032_v14 }
 0x613   :  { %10932 = vmatpush.msrb.mxu1 %v10931_v8  ;;  %11061 = vmatpush.msrb.mxu3 %v20983_v49  ;;  %v10960_v8 = vsub.f32 %v21076_v31, %v21858_v25  ;;  %v10955_v25 = vand.u32 4294901760, %v10954_v61  ;;  %v21168_v61 = vand.u32 4294901760, %v531_v41 }
 0x614   :  { %10873 = vmatpush.msrb.mxu0 %v21043_v29  ;;  %11021 = vmatpush.msrb.mxu2 %v21047_v43 }
 0x615   :  { %10938 = vmatpush.msrb.mxu1 %v10937_v27  ;;  %11063 = vmatpush.msrb.mxu3 %v20997_v17  ;;  %v21151_v27 = vsub.f32 %v534_v52, %v21115_v42  ;;  %v7438_v52 = vadd.f32 %v7437_v3, %v7401_v10  ;;  %v10961_v1 = vand.u32 4294901760, %v10960_v8  ;;  %v10886_v3 = vand.u32 4294901760, %v10885_v28 }
 0x616   :  { %10875 = vmatpush.msrb.mxu0 %v21060_v62  ;;  %11024 = vmatpush.msrb.mxu2 %v21064_v60  ;;  %v10967_v8 = vand.u32 4294901760, %v10966_v50  ;;  %v21196_v38 = vsub.f32 %v531_v41, %v21168_v61  ;;  %v528_v50 = vld [vmem:[%s21527_s1 + $0xfc8] sm:$0xff] }
 0x617   :  { %10944 = vmatpush.msrb.mxu1 %v10943_v32  ;;  %11065 = vmatpush.msrb.mxu3 %v21013_v46  ;;  %v21869_v32 = vand.u32 4294901760, %v21130_v18  ;;  %v7479_v10 = vadd.f32 %v7478_v16, %v7438_v52  ;;  %v21871_v22 = vand.u32 4294901760, %v21151_v27  ;;  %v21188_v16 = vsub.f32 %v532_v59, %v21160_v37 }
 0x618   :  { %10877 = vmatpush.msrb.mxu0 %v21072_v5  ;;  %11027 = vmatpush.msrb.mxu2 %v21076_v31  ;;  %v21874_v59 = vand.u32 4294901760, %v21175_v23  ;;  %v21221_v20 = vand.u32 4294901760, %v528_v50 }
 0x619   :  { %10950 = vmatpush.msrb.mxu1 %v10949_v24  ;;  %11067 = vmatpush.msrb.mxu3 %v21028_v7  ;;  %v529_v24 = vld [vmem:[%s21527_s1 + $0xfd0] sm:$0xff]  ;;  %v7580_v52 = vadd.f32 %v7579_v45, %v7479_v10  ;;  %v10978_v28 = vsub.f32 %v21130_v18, %v21869_v32  ;;  %v10973_v45 = vand.u32 4294901760, %v10972_v55  ;;  %v11235_v41 = vsub.f32 %v21151_v27, %v21871_v22 }
 0x61a   :  { %10879 = vmatpush.msrb.mxu0 %v21099_v58  ;;  %11030 = vmatpush.msrb.mxu2 %v21092_v36  ;;  %v21203_v10 = vand.u32 4294901760, %v529_v24  ;;  %v21210_v32 = vsub.f32 %v530_v6, %v21180_v0  ;;  %v10984_v55 = vsub.f32 %v21158_v35, %v21873_v54  ;;  %22476 = vst [vmem:[#allocation31_spill] sm:$0xff] %v21221_v20 }
 0x61b   :  { %10956 = vmatpush.msrb.mxu1 %v10955_v25  ;;  %11069 = vmatpush.msrb.mxu3 %v21043_v29  ;;  %v7633_v25 = vpop.f32.mrf.mxu2  ;;  %v10979_v6 = vand.u32 4294901760, %v10978_v28  ;;  %v11236_v28 = vand.u32 4294901760, %v11235_v41  ;;  %v21252_v13 = vsub.f32 %v528_v50, %v21221_v20  ;;  %v21254_v41 = vand.u32 4294901760, %v526_v4 }
 0x61c   :  { %10881 = vmatpush.msrb.mxu0 %v21124_v33  ;;  %11033 = vmatpush.msrb.mxu2 %v21110_v26  ;;  %v7634_v22 = vadd.f32 %v7633_v25, %v7580_v52  ;;  %v21235_v52 = vsub.f32 %v529_v24, %v21203_v10  ;;  %v10985_v24 = vand.u32 4294901760, %v10984_v55  ;;  %v524_v55 = vld [vmem:[%s21527_s1 + $0xfa8] sm:$0xff]  ;;  %v22480_v50 = vand.u32 4294901760, %v20951_v30  ;;  %v523_v30 = vld [vmem:[%s21527_s1 + $0xfa0] sm:$0xff] }
 0x61d   :  { %10962 = vmatpush.msrb.mxu1 %v10961_v1  ;;  %11071 = vmatpush.msrb.mxu3 %v21060_v62  ;;  %v527_v1 = vld [vmem:[%s21527_s1 + $0xfc0] sm:$0xff] }
 0x61e   :  { %10887 = vmatmul.f32.vlgmr.msrb.gmra.mxu0 %v10886_v3  ;;  %11036 = vmatpush.msrb.mxu2 %v21130_v18  ;;  %v21876_v3 = vand.u32 4294901760, %v21188_v16  ;;  %v21237_v25 = vand.u32 4294901760, %v527_v1 }
 0x61f   :  { %11088 = vmatpush.msra.mxu0 %v10893_v21  ;;  %10968 = vmatpush.msrb.mxu1 %v10967_v8  ;;  %v7672_v21 = vpop.f32.mrf.mxu3  ;;  %v11241_v8 = vsub.f32 %v21175_v23, %v21874_v59 }
 0x620   :  { %11073 = vmatpush.msrb.mxu3 %v21072_v5  ;;  %11039 = vmatpush.msrb.mxu2 %v21158_v35  ;;  %v11247_v59 = vsub.f32 %v21188_v16, %v21876_v3  ;;  %v7673_v54 = vadd.f32 %v7672_v21, %v7634_v22  ;;  %v22479_v3 = vand.u32 4294901760, %v21084_v63  ;;  %v21881_v22 = vand.u32 4294901760, %v21235_v52 }
 0x621   :  { %11092 = vmatpush.msra.mxu0 %v10899_v39  ;;  %10974 = vmatpush.msrb.mxu1 %v10973_v45  ;;  %v7741_v39 = vpop.f32.mrf.mxu0  ;;  %v22477_v45 = vand.u32 4294901760, %v20937_v40  ;;  %v21271_v21 = vand.u32 4294901760, %v525_v11 }
 0x622   :  { %11075 = vmatpush.msrb.mxu3 %v21099_v58  ;;  %11042 = vmatmul.f32.vlgmr.msrb.gmra.mxu2 %v21084_v63  ;;  %v22478_v58 = vand.u32 4294901760, %v21196_v38 }
 0x623   :  { %11096 = vmatpush.msra.mxu0 %v22477_v45  ;;  %11192 = vmatpush.msra.mxu2 %v21115_v42  ;;  %v7778_v45 = vpop.f32.mrf.mxu1  ;;  %v11242_v42 = vand.u32 4294901760, %v11241_v8  ;;  %v21880_v8 = vand.u32 4294901760, %v21252_v13 }
 0x624   :  { %10980 = vmatpush.msrb.mxu1 %v10979_v6  ;;  %11077 = vmatpush.msrb.mxu3 %v21124_v33  ;;  %v11253_v40 = vsub.f32 %v21196_v38, %v22478_v58  ;;  %v21269_v6 = vsub.f32 %v527_v1, %v21237_v25  ;;  %v7742_v58 = vadd.f32 %v7741_v39, %v7673_v54  ;;  %v22481_v33 = vand.u32 4294901760, %v21210_v32 }
 0x625   :  { %11081 = vmatmul.f32.vlgmr.msrb.gmra.mxu3 %v22479_v3  ;;  %11100 = vmatpush.msra.mxu0 %v22480_v50  ;;  %v22482_v3 = vand.u32 4294901760, %v20957_v12  ;;  %v11248_v1 = vand.u32 4294901760, %v11247_v59  ;;  %v21284_v54 = vsub.f32 %v526_v4, %v21254_v41  ;;  %v21286_v39 = vand.u32 4294901760, %v524_v55  ;;  %v7819_v12 = vpop.f32.mrf.mxu2 }
 0x626   :  { %11194 = vmatpush.msra.mxu2 %v21140_v48  ;;  %11237 = vmatpush.msra.mxu3 %v11236_v28  ;;  %v11259_v63 = vsub.f32 %v21210_v32, %v22481_v33  ;;  %v7779_v28 = vadd.f32 %v7778_v45, %v7742_v58  ;;  %v11254_v33 = vand.u32 4294901760, %v11253_v40  ;;  %v11265_v59 = vsub.f32 %v21235_v52, %v21881_v22 }
 0x627   :  { %10986 = vmatpush.msrb.mxu1 %v10985_v24  ;;  %11104 = vmatpush.msra.mxu0 %v22482_v3  ;;  %v522_v24 = vld [vmem:[%s21527_s1 + $0xf98] sm:$0xff]  ;;  %v21882_v4 = vand.u32 4294901760, %v21269_v6  ;;  %v21299_v45 = vsub.f32 %v525_v11, %v21271_v21  ;;  %v21301_v50 = vand.u32 4294901760, %v523_v30  ;;  %v22483_v40 = vand.u32 4294901760, %v20973_v19  ;;  %v521_v19 = vld [vmem:[%s21527_s1 + $0xf90] sm:$0xff] }
 0x628   :  { %10988 = vmatmul.f32.vlgmr.msrb.gmra.mxu1 %v21054_v53  ;;  %11196 = vmatpush.msra.mxu2 %v21160_v37  ;;  %v11260_v58 = vand.u32 4294901760, %v11259_v63  ;;  %v21312_v11 = vsub.f32 %v524_v55, %v21286_v39  ;;  %v21314_v3 = vand.u32 4294901760, %v522_v24  ;;  %v22484_v63 = vand.u32 4294901760, %v21000_v15  ;;  %v520_v15 = vld [vmem:[%s21527_s1 + $0xf88] sm:$0xff] }
 0x629   :  { %11155 = vmatpush.msra.mxu1 %v20887_v9  ;;  %11243 = vmatpush.msra.mxu3 %v11242_v42  ;;  %v11271_v9 = vsub.f32 %v21252_v13, %v21880_v8  ;;  %v21883_v42 = vand.u32 4294901760, %v21284_v54  ;;  %v11277_v55 = vsub.f32 %v21269_v6, %v21882_v4  ;;  %v21328_v22 = vsub.f32 %v523_v30, %v21301_v50 }
 0x62a   :  { %11108 = vmatpush.msra.mxu0 %v22483_v40  ;;  %11198 = vmatpush.msra.mxu2 %v21168_v61  ;;  %v7820_v40 = vadd.f32 %v7819_v12, %v7779_v28  ;;  %v587_v28 = vld.sshfl [vmem:[#allocation1 + $0x38] sm:$0xff pattern:$0x73625140]  ;;  %v22485_v12 = vand.u32 4294901760, %v21016_v51  ;;  %v21344_v4 = vsub.f32 %v522_v24, %v21314_v3  ;;  %v519_v51 = vld [vmem:[%s21527_s1 + $0xf80] sm:$0xff]  ;;  %v22486_v8 = vand.u32 4294901760, %v21032_v14 }
 0x62b   :  { %11157 = vmatpush.msra.mxu1 %v20897_v57  ;;  %11249 = vmatpush.msra.mxu3 %v11248_v1  ;;  %v7920_v57 = vpop.f32.mrf.mxu3  ;;  %v11266_v1 = vand.u32 4294901760, %v11265_v59  ;;  %v11272_v59 = vand.u32 4294901760, %v11271_v9  ;;  %v11283_v30 = vsub.f32 %v21284_v54, %v21883_v42  ;;  %v8013_v9 = vpop.f32.mrf.mxu1  ;;  %v11278_v24 = vand.u32 4294901760, %v11277_v55  ;;  %s11578_s1 = smov [#allocation2]  }
 0x62c   :  { %11112 = vmatpush.msra.mxu0 %v22484_v63  ;;  %11200 = vmatpush.msra.mxu2 %v21180_v0  ;;  %v22487_v42 = vand.u32 4294901760, %v21299_v45  ;;  %v22488_v14 = vand.u32 4294901760, %v21047_v43  ;;  %v11306_v55 = vand.u32 4294901760, %v21344_v4  ;;  %v22490_v43 = vand.u32 4294901760, %v21064_v60  ;;  %s11539_s13 = sshll.u32 %s11578_s1, 4  ;;  %s11540_s13 = int_to_ptr.vmem [resolvable:$true] %s11539_s13 }
 0x62d   :  { %11159 = vmatpush.msra.mxu1 %v20907_v56  ;;  %11255 = vmatpush.msra.mxu3 %v11254_v33  ;;  %v21336_v56 = vand.u32 4294901760, %v521_v19  ;;  %v7974_v33 = vpop.f32.mrf.mxu0  ;;  %v22491_v60 = vand.u32 4294901760, %v21076_v31 }
 0x62e   :  { %11116 = vmatpush.msra.mxu0 %v22485_v12  ;;  %11202 = vmatpush.msra.mxu2 %v21203_v10  ;;  %v7921_v12 = vadd.f32 %v7920_v57, %v7820_v40  ;;  %v11289_v63 = vsub.f32 %v21299_v45, %v22487_v42  ;;  %v11300_v40 = vand.u32 4294901760, %v21328_v22 }
 0x62f   :  { %11161 = vmatpush.msra.mxu1 %v20920_v2  ;;  %11261 = vmatpush.msra.mxu3 %v11260_v58  ;;  %v21352_v2 = vand.u32 4294901760, %v520_v15  ;;  %v21354_v58 = vand.u32 4294901760, %v587_v28 }
 0x630   :  { %11120 = vmatpush.msra.mxu0 %v22486_v8  ;;  %11204 = vmatpush.msra.mxu2 %v21221_v20  ;;  %v7975_v57 = vadd.f32 %v7974_v33, %v7921_v12  ;;  %v21365_v8 = vsub.f32 %v521_v19, %v21336_v56  ;;  %v21367_v20 = vand.u32 4294901760, %v519_v51 }
 0x631   :  { %11163 = vmatpush.msra.mxu1 %v20931_v47  ;;  %11267 = vmatpush.msra.mxu3 %v11266_v1  ;;  %v11284_v47 = vand.u32 4294901760, %v11283_v30  ;;  %v22489_v1 = vand.u32 4294901760, %v21312_v11  ;;  %v21378_v19 = vsub.f32 %v520_v15, %v21352_v2  ;;  %v21381_v12 = vsub.f32 %v587_v28, %v21354_v58 }
 0x632   :  { %11124 = vmatpush.msra.mxu0 %v22488_v14  ;;  %11206 = vmatpush.msra.mxu2 %v21237_v25  ;;  %v8014_v33 = vadd.f32 %v8013_v9, %v7975_v57  ;;  %v11301_v30 = vsub.f32 %v21328_v22, %v11300_v40  ;;  %v11312_v15 = vand.u32 4294901760, %v21365_v8  ;;  %v21392_v9 = vsub.f32 %v519_v51, %v21367_v20 }
 0x633   :  { %11165 = vmatpush.msra.mxu1 %v20942_v44  ;;  %11273 = vmatpush.msra.mxu3 %v11272_v59  ;;  %v11295_v42 = vsub.f32 %v21312_v11, %v22489_v1  ;;  %v8082_v44 = vpop.f32.mrf.mxu2  ;;  %v11290_v59 = vand.u32 4294901760, %v11289_v63  ;;  %v11307_v28 = vsub.f32 %v21344_v4, %v11306_v55  ;;  %v11318_v31 = vand.u32 4294901760, %v21378_v19  ;;  %v8119_v51 = vpop.f32.mrf.mxu3 }
 0x634   :  { %11128 = vmatpush.msra.mxu0 %v22490_v43  ;;  %11208 = vmatpush.msra.mxu2 %v21254_v41  ;;  %v8083_v63 = vadd.f32 %v8082_v44, %v8014_v33  ;;  %v11225_v57 = vand.u32 4294901760, %v21381_v12  ;;  %v22493_v14 = vand.u32 4294901760, %v21110_v26  ;;  %v8261_v44 = vpop.f32.mrf.mxu1 }
 0x635   :  { %11167 = vmatpush.msra.mxu1 %v20967_v34  ;;  %11279 = vmatpush.msra.mxu3 %v11278_v24  ;;  %v11296_v34 = vand.u32 4294901760, %v11295_v42  ;;  %v22492_v24 = vand.u32 4294901760, %v21092_v36  ;;  %v11313_v36 = vsub.f32 %v21365_v8, %v11312_v15  ;;  %v8160_v1 = vpop.f32.mrf.mxu0  ;;  %v11308_v42 = vand.u32 4294901760, %v11307_v28 }
 0x636   :  { %11132 = vmatpush.msra.mxu0 %v22491_v60  ;;  %11210 = vmatpush.msra.mxu2 %v21271_v21  ;;  %v8120_v33 = vadd.f32 %v8119_v51, %v8083_v63  ;;  %v11319_v26 = vsub.f32 %v21378_v19, %v11318_v31  ;;  %v11226_v43 = vsub.f32 %v21381_v12, %v11225_v57  ;;  %v22497_v51 = vld [vmem:[#allocation29_spill] sm:$0xff] }
 0x637   :  { %11169 = vmatpush.msra.mxu1 %v20983_v49  ;;  %11285 = vmatpush.msra.mxu3 %v11284_v47  ;;  %v11302_v49 = vand.u32 4294901760, %v11301_v30  ;;  %v11324_v47 = vand.u32 4294901760, %v21392_v9 }
 0x638   :  { %11136 = vmatpush.msra.mxu0 %v22492_v24  ;;  %11212 = vmatpush.msra.mxu2 %v21286_v39  ;;  %v22496_v24 = vand.u32 4294901760, %v21151_v27 }
 0x639   :  { %11171 = vmatpush.msra.mxu1 %v20997_v17  ;;  %11291 = vmatpush.msra.mxu3 %v11290_v59  ;;  %v22494_v17 = vand.u32 4294901760, %v21130_v18  ;;  %v22495_v59 = vand.u32 4294901760, %v21158_v35  ;;  %v11314_v18 = vand.u32 4294901760, %v11313_v36  ;;  %v11325_v30 = vsub.f32 %v21392_v9, %v11324_v47 }
 0x63a   :  { %11140 = vmatpush.msra.mxu0 %v22493_v14  ;;  %11214 = vmatpush.msra.mxu2 %v21301_v50  ;;  %v22499_v14 = vld [vmem:[#allocation32_spill] sm:$0xff] }
 0x63b   :  { %11173 = vmatpush.msra.mxu1 %v21013_v46  ;;  %11297 = vmatpush.msra.mxu3 %v11296_v34  ;;  %v8161_v46 = vadd.f32 %v8160_v1, %v8120_v33  ;;  %v11227_v34 = vand.u32 4294901760, %v11226_v43  ;;  %v8315_v28 = vpop.f32.mrf.mxu2  ;;  %v11326_v35 = vand.u32 4294901760, %v11325_v30  ;;  %v8354_v63 = vpop.f32.mrf.mxu3  ;;  %v22500_v1 = vld [vmem:[#allocation30_spill] sm:$0xff] }
 0x63c   :  { %11144 = vmatpush.msra.mxu0 %v22494_v17  ;;  %11216 = vmatpush.msra.mxu2 %v21314_v3  ;;  %v8460_v36 = vpop.f32.mrf.mxu1 }
 0x63d   :  { %11175 = vmatpush.msra.mxu1 %v21028_v7  ;;  %11303 = vmatpush.msra.mxu3 %v11302_v49  ;;  %v8262_v60 = vadd.f32 %v8261_v44, %v8161_v46  ;;  %v11320_v7 = vand.u32 4294901760, %v11319_v26 }
 0x63e   :  { %11148 = vmatpush.msra.mxu0 %v22495_v59  ;;  %11218 = vmatpush.msra.mxu2 %v21336_v56 }
 0x63f   :  { %11177 = vmatpush.msra.mxu1 %v21043_v29  ;;  %11309 = vmatpush.msra.mxu3 %v11308_v42  ;;  %v8316_v29 = vadd.f32 %v8315_v28, %v8262_v60  ;;  %v22501_v42 = vand.u32 4294901760, %v21188_v16 }
 0x640   :  { %11150 = vmatmul.f32.vlgmr.msra.gmra.mxu0 %v21054_v53  ;;  %11220 = vmatpush.msra.mxu2 %v21352_v2 }
 0x641   :  { %11335 = vmatpush.msrb.mxu0 %v21151_v27  ;;  %11179 = vmatpush.msra.mxu1 %v21060_v62  ;;  %v8423_v62 = vpop.f32.mrf.mxu0  ;;  %v8355_v49 = vadd.f32 %v8354_v63, %v8316_v29 }
 0x642   :  { %11315 = vmatpush.msra.mxu3 %v11314_v18  ;;  %11222 = vmatpush.msra.mxu2 %v21367_v20 }
 0x643   :  { %11338 = vmatpush.msrb.mxu0 %v21175_v23  ;;  %11181 = vmatpush.msra.mxu1 %v21072_v5  ;;  %v22498_v5 = vand.u32 4294901760, %v21175_v23  ;;  %v8424_v27 = vadd.f32 %v8423_v62, %v8355_v49  ;;  %v22502_v23 = vand.u32 4294901760, %v21196_v38  ;;  %v8501_v17 = vpop.f32.mrf.mxu2  ;;  %v8602_v26 = vpop.f32.mrf.mxu3 }
 0x644   :  { %11321 = vmatpush.msra.mxu3 %v11320_v7  ;;  %11228 = vmatmul.f32.vlgmr.msra.gmra.mxu2 %v11227_v34  ;;  %v8695_v43 = vpop.f32.mrf.mxu1 }
 0x645   :  { %11341 = vmatpush.msrb.mxu0 %v21188_v16  ;;  %11429 = vmatpush.msrb.mxu2 %v22496_v24  ;;  %v8461_v33 = vadd.f32 %v8460_v36, %v8424_v27 }
 0x646   :  { %11183 = vmatpush.msra.mxu1 %v22497_v51  ;;  %11327 = vmatpush.msra.mxu3 %v11326_v35 }
 0x647   :  { %11329 = vmatmul.f32.vlgmr.msra.gmra.mxu3 %v21354_v58  ;;  %11344 = vmatpush.msrb.mxu0 %v21196_v38  ;;  %v8502_v16 = vadd.f32 %v8501_v17, %v8461_v33  ;;  %v22504_v38 = vand.u32 4294901760, %v21235_v52 }
 0x648   :  { %11433 = vmatpush.msrb.mxu2 %v22498_v5  ;;  %11496 = vmatpush.msrb.mxu3 %v22499_v14 }
 0x649   :  { %11185 = vmatpush.msra.mxu1 %v22500_v1  ;;  %11347 = vmatpush.msrb.mxu0 %v21210_v32 }
 0x64a   :  { %11187 = vmatmul.f32.vlgmr.msra.gmra.mxu1 %v21054_v53  ;;  %11437 = vmatpush.msrb.mxu2 %v22501_v42  ;;  %v22503_v53 = vand.u32 4294901760, %v21210_v32  ;;  %v8656_v32 = vpop.f32.mrf.mxu0 }
 0x64b   :  { %11388 = vmatpush.msrb.mxu1 %v22499_v14  ;;  %11498 = vmatpush.msrb.mxu3 %v21140_v48  ;;  %v8764_v46 = vpop.f32.mrf.mxu2 }
 0x64c   :  { %11350 = vmatpush.msrb.mxu0 %v21235_v52  ;;  %11441 = vmatpush.msrb.mxu2 %v22502_v23  ;;  %v22506_v52 = vand.u32 4294901760, %v21269_v6 }
 0x64d   :  { %11390 = vmatpush.msrb.mxu1 %v21140_v48  ;;  %11500 = vmatpush.msrb.mxu3 %v21160_v37  ;;  %v22505_v48 = vand.u32 4294901760, %v21252_v13 }
 0x64e   :  { %11353 = vmatpush.msrb.mxu0 %v21252_v13  ;;  %11445 = vmatpush.msrb.mxu2 %v22503_v53  ;;  %v22508_v13 = vand.u32 4294901760, %v21284_v54 }
 0x64f   :  { %11392 = vmatpush.msrb.mxu1 %v21160_v37  ;;  %11502 = vmatpush.msrb.mxu3 %v21168_v61  ;;  %v8603_v37 = vadd.f32 %v8602_v26, %v8502_v16 }
 0x650   :  { %11356 = vmatpush.msrb.mxu0 %v21269_v6  ;;  %11449 = vmatpush.msrb.mxu2 %v22504_v38  ;;  %v22509_v6 = vand.u32 4294901760, %v21299_v45 }
 0x651   :  { %11394 = vmatpush.msrb.mxu1 %v21168_v61  ;;  %11504 = vmatpush.msrb.mxu3 %v21180_v0  ;;  %v22507_v61 = vld [vmem:[#allocation31_spill] sm:$0xff]  ;;  %v8657_v44 = vadd.f32 %v8656_v32, %v8603_v37 }
 0x652   :  { %11359 = vmatpush.msrb.mxu0 %v21284_v54  ;;  %11453 = vmatpush.msrb.mxu2 %v22505_v48 }
 0x653   :  { %11396 = vmatpush.msrb.mxu1 %v21180_v0  ;;  %11506 = vmatpush.msrb.mxu3 %v21203_v10  ;;  %v8696_v0 = vadd.f32 %v8695_v43, %v8657_v44 }
 0x654   :  { %11362 = vmatpush.msrb.mxu0 %v21299_v45  ;;  %11457 = vmatpush.msrb.mxu2 %v22506_v52  ;;  %v8801_v45 = vpop.f32.mrf.mxu3 }
 0x655   :  { %11398 = vmatpush.msrb.mxu1 %v21203_v10  ;;  %11508 = vmatpush.msrb.mxu3 %v22507_v61  ;;  %v22510_v10 = vand.u32 4294901760, %v21312_v11  ;;  %v8765_v54 = vadd.f32 %v8764_v46, %v8696_v0 }
 0x656   :  { %11365 = vmatpush.msrb.mxu0 %v21312_v11  ;;  %11461 = vmatpush.msrb.mxu2 %v22508_v13 }
 0x657   :  { %11400 = vmatpush.msrb.mxu1 %v22507_v61  ;;  %11510 = vmatpush.msrb.mxu3 %v21237_v25 }
 0x658   :  { %11368 = vmatpush.msrb.mxu0 %v21328_v22  ;;  %11465 = vmatpush.msrb.mxu2 %v22509_v6  ;;  %v8943_v22 = vpop.f32.mrf.mxu1 }
 0x659   :  { %11402 = vmatpush.msrb.mxu1 %v21237_v25  ;;  %11512 = vmatpush.msrb.mxu3 %v21254_v41  ;;  %v8842_v25 = vpop.f32.mrf.mxu0 }
 0x65a   :  { %11371 = vmatpush.msrb.mxu0 %v21344_v4  ;;  %11469 = vmatpush.msrb.mxu2 %v22510_v10  ;;  %v8997_v4 = vpop.f32.mrf.mxu2 }
 0x65b   :  { %11404 = vmatpush.msrb.mxu1 %v21254_v41  ;;  %11514 = vmatpush.msrb.mxu3 %v21271_v21  ;;  %v8802_v41 = vadd.f32 %v8801_v45, %v8765_v54 }
 0x65c   :  { %11374 = vmatpush.msrb.mxu0 %v21365_v8  ;;  %11473 = vmatpush.msrb.mxu2 %v11300_v40  ;;  %v9036_v11 = vpop.f32.mrf.mxu3 }
 0x65d   :  { %11406 = vmatpush.msrb.mxu1 %v21271_v21  ;;  %11516 = vmatpush.msrb.mxu3 %v21286_v39  ;;  %v8843_v21 = vadd.f32 %v8842_v25, %v8802_v41 }
 0x65e   :  { %11377 = vmatpush.msrb.mxu0 %v21378_v19  ;;  %11477 = vmatpush.msrb.mxu2 %v11306_v55 }
 0x65f   :  { %11408 = vmatpush.msrb.mxu1 %v21286_v39  ;;  %11518 = vmatpush.msrb.mxu3 %v21301_v50  ;;  %v8944_v39 = vadd.f32 %v8943_v22, %v8843_v21 }
 0x660   :  { %11380 = vmatpush.msrb.mxu0 %v21392_v9  ;;  %11481 = vmatpush.msrb.mxu2 %v11312_v15 }
 0x661   :  { %11410 = vmatpush.msrb.mxu1 %v21301_v50  ;;  %11520 = vmatpush.msrb.mxu3 %v21314_v3  ;;  %v8998_v50 = vadd.f32 %v8997_v4, %v8944_v39 }
 0x662   :  { %11383 = vmatmul.f32.vlgmr.msrb.gmra.mxu0 %v21381_v12  ;;  %11485 = vmatpush.msrb.mxu2 %v11318_v31  ;;  %v9183_v19 = vpop.f32.mrf.mxu2 }
 0x663   :  { %11412 = vmatpush.msrb.mxu1 %v21314_v3  ;;  %11522 = vmatpush.msrb.mxu3 %v21336_v56  ;;  %v9105_v3 = vpop.f32.mrf.mxu0  ;;  %v9037_v40 = vadd.f32 %v9036_v11, %v8998_v50 }
 0x664   :  { %11489 = vmatpush.msrb.mxu2 %v11324_v47  ;;  %v9284_v9 = vpop.f32.mrf.mxu3 }
 0x665   :  { %11414 = vmatpush.msrb.mxu1 %v21336_v56  ;;  %11524 = vmatpush.msrb.mxu3 %v21352_v2  ;;  %v9142_v56 = vpop.f32.mrf.mxu1  ;;  %v9106_v8 = vadd.f32 %v9105_v3, %v9037_v40 }
 0x666   :  { %11491 = vmatmul.f32.vlgmr.msrb.gmra.mxu2 %v21354_v58 }
 0x667   :  { %11416 = vmatpush.msrb.mxu1 %v21352_v2  ;;  %11526 = vmatpush.msrb.mxu3 %v21367_v20  ;;  %v9143_v55 = vadd.f32 %v9142_v56, %v9106_v8 }
 0x668   :  { %11528 = vmatmul.f32.vlgmr.msrb.gmra.mxu3 %v21354_v58 }
 0x669   :  { %11418 = vmatpush.msrb.mxu1 %v21367_v20  ;;  %v9184_v15 = vadd.f32 %v9183_v19, %v9143_v55 }
 0x66a   :  { %11422 = vmatmul.f32.vlgmr.msrb.gmra.mxu1 %v11225_v57  ;;  %v9446_v58 = vpop.f32.mrf.mxu2 }
 0x66b   :  { %v9338_v2 = vpop.f32.mrf.mxu0  ;;  %v9285_v31 = vadd.f32 %v9284_v9, %v9184_v15 }
 0x66c   :  { %v9483_v60 = vpop.f32.mrf.mxu3 }
 0x66d   :  { %v9377_v47 = vpop.f32.mrf.mxu1  ;;  %v9339_v59 = vadd.f32 %v9338_v2, %v9285_v31 }
 0x66f   :  { %v9378_v18 = vadd.f32 %v9377_v47, %v9339_v59 }
 0x671   :  { %v9447_v30 = vadd.f32 %v9446_v58, %v9378_v18 }
 0x672   :  { %v9679_v28 = vpop.f32.mrf.mxu2 }
 0x673   :  { %v9524_v20 = vpop.f32.mrf.mxu0  ;;  %v9484_v7 = vadd.f32 %v9483_v60, %v9447_v30 }
 0x674   :  { %v9718_v29 = vpop.f32.mrf.mxu3 }
 0x675   :  { %v9625_v12 = vpop.f32.mrf.mxu1  ;;  %v9525_v57 = vadd.f32 %v9524_v20, %v9484_v7 }
 0x677   :  { %v9626_v34 = vadd.f32 %v9625_v12, %v9525_v57 }
 0x679   :  { %v9680_v35 = vadd.f32 %v9679_v28, %v9626_v34 }
 0x67a   :  { %v9865_v5 = vpop.f32.mrf.mxu2 }
 0x67b   :  { %v9787_v63 = vpop.f32.mrf.mxu0  ;;  %v9719_v24 = vadd.f32 %v9718_v29, %v9680_v35 }
 0x67c   :  { %v9966_v36 = vpop.f32.mrf.mxu3 }
 0x67d   :  { %v9824_v51 = vpop.f32.mrf.mxu1  ;;  %v9788_v62 = vadd.f32 %v9787_v63, %v9719_v24 }
 0x67f   :  { %v9825_v49 = vadd.f32 %v9824_v51, %v9788_v62 }
 0x681   :  { %v9866_v14 = vadd.f32 %v9865_v5, %v9825_v49 }
 0x682   :  { %v10128_v17 = vpop.f32.mrf.mxu2 }
 0x683   :  { %v10020_v1 = vpop.f32.mrf.mxu0  ;;  %v9967_v27 = vadd.f32 %v9966_v36, %v9866_v14 }
 0x684   :  { %v10165_v16 = vpop.f32.mrf.mxu3 }
 0x685   :  { %v10059_v42 = vpop.f32.mrf.mxu1  ;;  %v10021_v33 = vadd.f32 %v10020_v1, %v9967_v27 }
 0x687   :  { %v10060_v23 = vadd.f32 %v10059_v42, %v10021_v33 }
 0x689   :  { %v10129_v53 = vadd.f32 %v10128_v17, %v10060_v23 }
 0x68a   :  { %v10361_v52 = vpop.f32.mrf.mxu2 }
 0x68b   :  { %v10206_v38 = vpop.f32.mrf.mxu0  ;;  %v10166_v26 = vadd.f32 %v10165_v16, %v10129_v53 }
 0x68c   :  { %v10400_v61 = vpop.f32.mrf.mxu3 }
 0x68d   :  { %v10307_v48 = vpop.f32.mrf.mxu1  ;;  %v10207_v32 = vadd.f32 %v10206_v38, %v10166_v26 }
 0x68f   :  { %v10308_v37 = vadd.f32 %v10307_v48, %v10207_v32 }
 0x691   :  { %v10362_v43 = vadd.f32 %v10361_v52, %v10308_v37 }
 0x692   :  { %v10547_v10 = vpop.f32.mrf.mxu2 }
 0x693   :  { %v10469_v44 = vpop.f32.mrf.mxu0  ;;  %v10401_v13 = vadd.f32 %v10400_v61, %v10362_v43 }
 0x694   :  { %v10648_v45 = vpop.f32.mrf.mxu3 }
 0x695   :  { %v10506_v0 = vpop.f32.mrf.mxu1  ;;  %v10470_v6 = vadd.f32 %v10469_v44, %v10401_v13 }
 0x697   :  { %v10507_v46 = vadd.f32 %v10506_v0, %v10470_v6 }
 0x699   :  { %v10548_v54 = vadd.f32 %v10547_v10, %v10507_v46 }
 0x69a   :  { %v10810_v4 = vpop.f32.mrf.mxu2 }
 0x69b   :  { %v10702_v25 = vpop.f32.mrf.mxu0  ;;  %v10649_v41 = vadd.f32 %v10648_v45, %v10548_v54 }
 0x69c   :  { %v10847_v11 = vpop.f32.mrf.mxu3 }
 0x69d   :  { %v10741_v22 = vpop.f32.mrf.mxu1  ;;  %v10703_v21 = vadd.f32 %v10702_v25, %v10649_v41 }
 0x69f   :  { %v10742_v39 = vadd.f32 %v10741_v22, %v10703_v21 }
 0x6a1   :  { %v10811_v50 = vadd.f32 %v10810_v4, %v10742_v39 }
 0x6a3   :  { %v10888_v3 = vpop.f32.mrf.mxu0  ;;  %v10848_v40 = vadd.f32 %v10847_v11, %v10811_v50 }
 0x6a5   :  { %v10989_v56 = vpop.f32.mrf.mxu1  ;;  %v10889_v8 = vadd.f32 %v10888_v3, %v10848_v40  ;;  %v11043_v19 = vpop.f32.mrf.mxu2 }
 0x6a7   :  { %v10990_v55 = vadd.f32 %v10989_v56, %v10889_v8 }
 0x6a8   :  { %v11082_v9 = vpop.f32.mrf.mxu3 }
 0x6a9   :  { %v11044_v15 = vadd.f32 %v11043_v19, %v10990_v55 }
 0x6ab   :  { %v11083_v31 = vadd.f32 %v11082_v9, %v11044_v15 }
 0x6bd   :  { %v11151_v2 = vpop.f32.mrf.mxu0 }
 0x6be   :  { %v11152_v59 = vadd.f32 %v11151_v2, %v11083_v31 }
 0x6c7   :  { %v11188_v47 = vpop.f32.mrf.mxu1  ;;  %v11229_v58 = vpop.f32.mrf.mxu2 }
 0x6c8   :  { %v11189_v18 = vadd.f32 %v11188_v47, %v11152_v59 }
 0x6ca   :  { %v11230_v30 = vadd.f32 %v11229_v58, %v11189_v18  ;;  %v11330_v60 = vpop.f32.mrf.mxu3 }
 0x6cc   :  { %v11331_v7 = vadd.f32 %v11330_v60, %v11230_v30 }
 0x6df   :  { %v11384_v20 = vpop.f32.mrf.mxu0 }
 0x6e0   :  { %v11385_v12 = vadd.f32 %v11384_v20, %v11331_v7 }
 0x6e7   :  { %v11423_v57 = vpop.f32.mrf.mxu1 }
 0x6e8   :  { %v11424_v34 = vadd.f32 %v11423_v57, %v11385_v12 }
 0x6e9   :  { %v11492_v28 = vpop.f32.mrf.mxu2 }
 0x6ea   :  { %v11493_v35 = vadd.f32 %v11492_v28, %v11424_v34 }
 0x6eb   :  { %v11529_v29 = vpop.f32.mrf.mxu3 }
 0x6ec   :  { %v11530_v63 = vadd.f32 %v11529_v29, %v11493_v35 }
 0x6ee   :  { %11533 = vst.msk [vmem:[#allocation2] sm:$0x3] %vm11532_vm0, %v11530_v63 }
 0x6ef   :  { %11544 = dma.vmem_to_hbm [thread:$0]  %s11540_s13, 32, %s11542_s16, [#allocation3]  }
 0x6f0   :  { %11576 = dma.done.wait [#allocation3], 32  }
 0x6f1   :  { %11577 = vsyncadd [#allocation3], 4294967264 }
 0x6f2   :  { %11549 = vsyncpa [#allocation3], 1 }

</bundles_post_ra>
